<compile_context>
chip_gen: v7x
topology: tpu7x:2x2x1
jax: 0.10.0
libtpu: 0.0.40
codegen_flags: <defaults>
</compile_context>

<pallas_src>
import jax
import jax.numpy as jnp
from jax.experimental import pallas as pl
from jax.experimental.pallas import tpu as pltpu


# ----------------------------- Pallas kernel -------------------------------

def _conv3x3(xpad, w9, hout, wout):
    """3x3 'valid' conv of xpad (hout+2, wout+2, Cin) with w9 (9, Cin, Cout).

    Returns fp32 (hout*wout, Cout). Inputs are bf16; accumulation is fp32.
    """
    cin = xpad.shape[-1]
    cout = w9.shape[-1]
    m = hout * wout
    taps = [xpad[dy:dy + hout, dx:dx + wout, :].reshape(m, cin)
            for dy in range(3) for dx in range(3)]
    if cin % 128 == 0:
        # Production channel counts: single big-K matmul keeps the MXU full.
        patch = jnp.concatenate(taps, axis=-1)                     # (m, 9*Cin)
        return jnp.dot(patch, w9.reshape(9 * cin, cout),
                       preferred_element_type=jnp.float32)
    # TODO(synk): also collapse to one (m, 9*Cin) matmul for lane-unaligned Cin
    # once unaligned minor-dim concatenation is guaranteed by Mosaic; the 9
    # accumulated dots below are the safe lowering path for small C.
    acc = jnp.zeros((m, cout), jnp.float32)
    for k in range(9):
        acc = acc + jnp.dot(taps[k], w9[k], preferred_element_type=jnp.float32)
    return acc


def _fused_residual_block_kernel(x_ref, w1_ref, s1_ref, b1_ref,
                                 w2_ref, s2_ref, b2_ref, o_ref):
    """Fused conv1+BN1+LReLU -> conv2+BN2 -> +residual -> LReLU on a row tile.

    x_ref: (1, 1, TH+4, W+4, C)  fp32 input tile (2-row/2-col halo, zero padded)
    w*_ref: (9, C, C) bf16       tap-major conv weights
    s*_ref, b*_ref: (1, C) fp32  folded BN scale / bias (conv bias included)
    o_ref: (1, 1, TH, W, C) fp32 output tile
    """
    th4, w4, c = x_ref.shape[2], x_ref.shape[3], x_ref.shape[4]
    TH, W = th4 - 4, w4 - 4
    t = pl.program_id(1)
    h_total = TH * pl.num_programs(1)

    xt = x_ref[0, 0]                               # (TH+4, W+4, C) fp32
    xb = xt.astype(jnp.bfloat16)

    # ---- conv1 + BN1 + LeakyReLU over the tile plus a 1-row/1-col halo ring.
    a1 = _conv3x3(xb, w1_ref[...], TH + 2, W + 2)  # ((TH+2)*(W+2), C) fp32
    y1 = a1 * s1_ref[...] + b1_ref[...]
    y1 = jnp.where(y1 > 0, y1, 0.1 * y1)
    y1 = y1.reshape(TH + 2, W + 2, c)

    # Halo positions outside the image must be conv2's zero padding, not conv1
    # evaluated out of range -> mask them to zero.
    row = jax.lax.broadcasted_iota(jnp.int32, (TH + 2, W + 2, c), 0)
    col = jax.lax.broadcasted_iota(jnp.int32, (TH + 2, W + 2, c), 1)
    row_g = row + t * TH - 1
    valid = (row_g >= 0) & (row_g < h_total) & (col >= 1) & (col <= W)
    y1 = jnp.where(valid, y1, 0.0).astype(jnp.bfloat16)

    # ---- conv2 + BN2 + residual add + final LeakyReLU (fp32 epilogue).
    a2 = _conv3x3(y1, w2_ref[...], TH, W)          # (TH*W, C) fp32
    res = xt[2:2 + TH, 2:2 + W, :].reshape(TH * W, c)
    y2 = a2 * s2_ref[...] + b2_ref[...] + res
    y2 = jnp.where(y2 > 0, y2, 0.1 * y2)
    o_ref[...] = y2.reshape(o_ref.shape)


# ------------------------------ JAX wrapper ---------------------------------

def _fold_bn(conv_bias, gamma, beta, mean, var, eps=1e-5):
    """Fold conv bias + eval-mode BatchNorm into per-channel scale/bias."""
    scale = gamma / jnp.sqrt(var + eps)
    bias = (conv_bias - mean) * scale + beta
    return scale[None, :].astype(jnp.float32), bias[None, :].astype(jnp.float32)


def _choose_row_tile(H, W, C, vmem_budget_bytes=12 * 1024 * 1024):
    """Largest divisor of H whose tile (double-buffered I/O + in-kernel patches
    and intermediates, ~100 B per (W+4)*C row element) fits the VMEM budget."""
    per_row = max(1, (W + 4) * C * 100)
    for th in range(H, 0, -1):
        if H % th == 0 and th * per_row <= vmem_budget_bytes:
            return th
    return 1


def residual_block_forward(x_nchw, params):
    N, C, H, W = x_nchw.shape
    x = jnp.transpose(x_nchw, (0, 2, 3, 1)).astype(jnp.float32)     # NHWC

    s1, b1 = _fold_bn(params["c1_bias"], params["bn1_gamma"], params["bn1_beta"],
                      params["bn1_mean"], params["bn1_var"])
    s2, b2 = _fold_bn(params["c2_bias"], params["bn2_gamma"], params["bn2_beta"],
                      params["bn2_mean"], params["bn2_var"])
    # torch (Cout, Cin, 3, 3) -> (9, Cin, Cout), tap order (dy, dx); bf16 for MXU.
    w1 = jnp.transpose(params["c1_weight"], (2, 3, 1, 0)).reshape(9, C, C)
    w2 = jnp.transpose(params["c2_weight"], (2, 3, 1, 0)).reshape(9, C, C)
    w1 = w1.astype(jnp.bfloat16)
    w2 = w2.astype(jnp.bfloat16)

    TH = _choose_row_tile(H, W, C)
    nT = H // TH

    # Zero-pad by 2 in H and W (covers both convs' halos), then lay out
    # overlapping row tiles so each grid step gets a contiguous (TH+4) block.
    xpad = jnp.pad(x, ((0, 0), (2, 2), (2, 2), (0, 0)))             # (N,H+4,W+4,C)
    xt = jnp.stack([xpad[:, t * TH:t * TH + TH + 4] for t in range(nT)], axis=1)
    # xt: (N, nT, TH+4, W+4, C)

    flops = 2 * 2 * 9 * N * H * W * C * C
    bytes_accessed = (xt.size * 4 + N * H * W * C * 4
                      + (w1.size + w2.size) * 2 + 4 * C * 4)

    out = pl.pallas_call(
        _fused_residual_block_kernel,
        grid=(N, nT),
        in_specs=[
            pl.BlockSpec((1, 1, TH + 4, W + 4, C), lambda n, t: (n, t, 0, 0, 0)),
            pl.BlockSpec((9, C, C), lambda n, t: (0, 0, 0)),   # resident weights
            pl.BlockSpec((1, C), lambda n, t: (0, 0)),
            pl.BlockSpec((1, C), lambda n, t: (0, 0)),
            pl.BlockSpec((9, C, C), lambda n, t: (0, 0, 0)),
            pl.BlockSpec((1, C), lambda n, t: (0, 0)),
            pl.BlockSpec((1, C), lambda n, t: (0, 0)),
        ],
        out_specs=pl.BlockSpec((1, 1, TH, W, C), lambda n, t: (n, t, 0, 0, 0)),
        out_shape=jax.ShapeDtypeStruct((N, nT, TH, W, C), jnp.float32),
        compiler_params=pltpu.CompilerParams(
            dimension_semantics=("parallel", "parallel")),
        cost_estimate=pl.CostEstimate(flops=int(flops), transcendentals=0,
                                      bytes_accessed=int(bytes_accessed)),
    )(xt, w1, s1, b1, w2, s2, b2)

    out = out.reshape(N, H, W, C)
    return jnp.transpose(out, (0, 3, 1, 2))                         # back to NCHW


# --------------------------- pure-JAX reference ------------------------------

def _reference_forward(x_nchw, params):
    def conv(x, w, b):
        y = jax.lax.conv_general_dilated(
            x, w, window_strides=(1, 1), padding=((1, 1), (1, 1)),
            dimension_numbers=("NCHW", "OIHW", "NCHW"))
        return y + b[None, :, None, None]

    def bn(x, g, bta, m, v, eps=1e-5):
        return (x - m[None, :, None, None]) / jnp.sqrt(v[None, :, None, None] + eps) \
               * g[None, :, None, None] + bta[None, :, None, None]

    lrelu = lambda v: jnp.where(v > 0, v, 0.1 * v)
    y = lrelu(bn(conv(x_nchw, params["c1_weight"], params["c1_bias"]),
                 params["bn1_gamma"], params["bn1_beta"],
                 params["bn1_mean"], params["bn1_var"]))
    y = bn(conv(y, params["c2_weight"], params["c2_bias"]),
           params["bn2_gamma"], params["bn2_beta"],
           params["bn2_mean"], params["bn2_var"])
    return lrelu(y + x_nchw)


# --------------------------------- main --------------------------------------

if __name__ == "__main__":
    N, C, H, W = 2, 4, 16, 16
    key = jax.random.PRNGKey(0)
    ks = jax.random.split(key, 12)

    params = {
        "c1_weight": 0.1 * jax.random.normal(ks[0], (C, C, 3, 3), jnp.float32),
        "c1_bias":   0.1 * jax.random.normal(ks[1], (C,), jnp.float32),
        "bn1_gamma": jax.random.uniform(ks[2], (C,), jnp.float32, 0.8, 1.2),
        "bn1_beta":  0.1 * jax.random.normal(ks[3], (C,), jnp.float32),
        "bn1_mean":  0.1 * jax.random.normal(ks[4], (C,), jnp.float32),
        "bn1_var":   jax.random.uniform(ks[5], (C,), jnp.float32, 0.5, 1.5),
        "c2_weight": 0.1 * jax.random.normal(ks[6], (C, C, 3, 3), jnp.float32),
        "c2_bias":   0.1 * jax.random.normal(ks[7], (C,), jnp.float32),
        "bn2_gamma": jax.random.uniform(ks[8], (C,), jnp.float32, 0.8, 1.2),
        "bn2_beta":  0.1 * jax.random.normal(ks[9], (C,), jnp.float32),
        "bn2_mean":  0.1 * jax.random.normal(ks[10], (C,), jnp.float32),
        "bn2_var":   jax.random.uniform(ks[11], (C,), jnp.float32, 0.5, 1.5),
    }
    x = jax.random.normal(jax.random.PRNGKey(1), (N, C, H, W), jnp.float32)

    fwd = jax.jit(residual_block_forward)
    out = jax.block_until_ready(fwd(x, params))
    ref = jax.block_until_ready(_reference_forward(x, params))

    assert out.shape == (N, C, H, W)
    # bf16 matmul inputs with fp32 accumulation -> relaxed tolerance vs fp32 ref.
    max_err = jnp.max(jnp.abs(out - ref))
    assert jnp.allclose(out, ref, atol=5e-2, rtol=5e-2), f"max err {max_err}"
    print("KERNEL_OK")
</pallas_src>

<mosaic_0001>
module attributes {stable_mosaic.version = 11 : i64} {
  func.func @_fused_residual_block_kernel(%arg0: i32, %arg1: i32, %arg2: memref<1x1x20x20x4xf32, #tpu.memory_space<vmem>>, %arg3: memref<9x4x4xbf16, #tpu.memory_space<vmem>>, %arg4: memref<1x4xf32, #tpu.memory_space<vmem>>, %arg5: memref<1x4xf32, #tpu.memory_space<vmem>>, %arg6: memref<9x4x4xbf16, #tpu.memory_space<vmem>>, %arg7: memref<1x4xf32, #tpu.memory_space<vmem>>, %arg8: memref<1x4xf32, #tpu.memory_space<vmem>>, %arg9: memref<1x1x16x16x4xf32, #tpu.memory_space<vmem>>) attributes {dimension_semantics = [#tpu.dimension_semantics<parallel>, #tpu.dimension_semantics<parallel>], iteration_bounds = array<i64: 2, 1>, scalar_prefetch = 0 : i64, scratch_operands = 0 : i64, tpu.core_type = #tpu.core_type<tc>, window_params = [{transform_indices = @transform_0, window_bounds = array<i64: 1, 1, 20, 20, 4>}, {pipeline_mode = #tpu.pipeline_mode<synchronous>, transform_indices = @transform_1, window_bounds = array<i64: 9, 4, 4>}, {pipeline_mode = #tpu.pipeline_mode<synchronous>, transform_indices = @transform_2, window_bounds = array<i64: 1, 4>}, {pipeline_mode = #tpu.pipeline_mode<synchronous>, transform_indices = @transform_3, window_bounds = array<i64: 1, 4>}, {pipeline_mode = #tpu.pipeline_mode<synchronous>, transform_indices = @transform_4, window_bounds = array<i64: 9, 4, 4>}, {pipeline_mode = #tpu.pipeline_mode<synchronous>, transform_indices = @transform_5, window_bounds = array<i64: 1, 4>}, {pipeline_mode = #tpu.pipeline_mode<synchronous>, transform_indices = @transform_6, window_bounds = array<i64: 1, 4>}, {transform_indices = @transform_7, window_bounds = array<i64: 1, 1, 16, 16, 4>}]} {
    %c0 = arith.constant 0 : index
    %c0_0 = arith.constant 0 : index
    %c0_1 = arith.constant 0 : index
    %c0_2 = arith.constant 0 : index
    %c0_3 = arith.constant 0 : index
    %0 = vector.load %arg2[%c0, %c0_0, %c0_1, %c0_2, %c0_3] : memref<1x1x20x20x4xf32, #tpu.memory_space<vmem>>, vector<1x1x20x20x4xf32>
    %1 = vector.shape_cast %0 : vector<1x1x20x20x4xf32> to vector<20x20x4xf32>
    %2 = arith.truncf %1 : vector<20x20x4xf32> to vector<20x20x4xbf16>
    %c0_4 = arith.constant 0 : index
    %c0_5 = arith.constant 0 : index
    %c0_6 = arith.constant 0 : index
    %3 = vector.load %arg3[%c0_4, %c0_5, %c0_6] : memref<9x4x4xbf16, #tpu.memory_space<vmem>>, vector<9x4x4xbf16>
    %4 = vector.extract_strided_slice %2 {offsets = [0, 0, 0], sizes = [18, 18, 4], strides = [1, 1, 1]} : vector<20x20x4xbf16> to vector<18x18x4xbf16>
    %5 = vector.shape_cast %4 : vector<18x18x4xbf16> to vector<324x4xbf16>
    %6 = vector.extract_strided_slice %2 {offsets = [0, 1, 0], sizes = [18, 18, 4], strides = [1, 1, 1]} : vector<20x20x4xbf16> to vector<18x18x4xbf16>
    %7 = vector.shape_cast %6 : vector<18x18x4xbf16> to vector<324x4xbf16>
    %8 = vector.extract_strided_slice %2 {offsets = [0, 2, 0], sizes = [18, 18, 4], strides = [1, 1, 1]} : vector<20x20x4xbf16> to vector<18x18x4xbf16>
    %9 = vector.shape_cast %8 : vector<18x18x4xbf16> to vector<324x4xbf16>
    %10 = vector.extract_strided_slice %2 {offsets = [1, 0, 0], sizes = [18, 18, 4], strides = [1, 1, 1]} : vector<20x20x4xbf16> to vector<18x18x4xbf16>
    %11 = vector.shape_cast %10 : vector<18x18x4xbf16> to vector<324x4xbf16>
    %12 = vector.extract_strided_slice %2 {offsets = [1, 1, 0], sizes = [18, 18, 4], strides = [1, 1, 1]} : vector<20x20x4xbf16> to vector<18x18x4xbf16>
    %13 = vector.shape_cast %12 : vector<18x18x4xbf16> to vector<324x4xbf16>
    %14 = vector.extract_strided_slice %2 {offsets = [1, 2, 0], sizes = [18, 18, 4], strides = [1, 1, 1]} : vector<20x20x4xbf16> to vector<18x18x4xbf16>
    %15 = vector.shape_cast %14 : vector<18x18x4xbf16> to vector<324x4xbf16>
    %16 = vector.extract_strided_slice %2 {offsets = [2, 0, 0], sizes = [18, 18, 4], strides = [1, 1, 1]} : vector<20x20x4xbf16> to vector<18x18x4xbf16>
    %17 = vector.shape_cast %16 : vector<18x18x4xbf16> to vector<324x4xbf16>
    %18 = vector.extract_strided_slice %2 {offsets = [2, 1, 0], sizes = [18, 18, 4], strides = [1, 1, 1]} : vector<20x20x4xbf16> to vector<18x18x4xbf16>
    %19 = vector.shape_cast %18 : vector<18x18x4xbf16> to vector<324x4xbf16>
    %20 = vector.extract_strided_slice %2 {offsets = [2, 2, 0], sizes = [18, 18, 4], strides = [1, 1, 1]} : vector<20x20x4xbf16> to vector<18x18x4xbf16>
    %21 = vector.shape_cast %20 : vector<18x18x4xbf16> to vector<324x4xbf16>
    %cst = arith.constant 0.000000e+00 : f32
    %22 = vector.broadcast %cst : f32 to vector<324x4xf32>
    %23 = vector.extract_strided_slice %3 {offsets = [0, 0, 0], sizes = [1, 4, 4], strides = [1, 1, 1]} : vector<9x4x4xbf16> to vector<1x4x4xbf16>
    %24 = vector.shape_cast %23 : vector<1x4x4xbf16> to vector<4x4xbf16>
    %cst_7 = arith.constant dense<0.000000e+00> : vector<324x4xf32>
    %25 = tpu.matmul %5, %24, %cst_7 {dimension_numbers = #tpu.dot_dimension_numbers<[1], [0], [0], [1], [0, 0, 1, 1], [], []>} : vector<324x4xbf16>, vector<4x4xbf16>, vector<324x4xf32> -> vector<324x4xf32>
    %26 = arith.addf %22, %25 : vector<324x4xf32>
    %27 = vector.extract_strided_slice %3 {offsets = [1, 0, 0], sizes = [1, 4, 4], strides = [1, 1, 1]} : vector<9x4x4xbf16> to vector<1x4x4xbf16>
    %28 = vector.shape_cast %27 : vector<1x4x4xbf16> to vector<4x4xbf16>
    %cst_8 = arith.constant dense<0.000000e+00> : vector<324x4xf32>
    %29 = tpu.matmul %7, %28, %cst_8 {dimension_numbers = #tpu.dot_dimension_numbers<[1], [0], [0], [1], [0, 0, 1, 1], [], []>} : vector<324x4xbf16>, vector<4x4xbf16>, vector<324x4xf32> -> vector<324x4xf32>
    %30 = arith.addf %26, %29 : vector<324x4xf32>
    %31 = vector.extract_strided_slice %3 {offsets = [2, 0, 0], sizes = [1, 4, 4], strides = [1, 1, 1]} : vector<9x4x4xbf16> to vector<1x4x4xbf16>
    %32 = vector.shape_cast %31 : vector<1x4x4xbf16> to vector<4x4xbf16>
    %cst_9 = arith.constant dense<0.000000e+00> : vector<324x4xf32>
    %33 = tpu.matmul %9, %32, %cst_9 {dimension_numbers = #tpu.dot_dimension_numbers<[1], [0], [0], [1], [0, 0, 1, 1], [], []>} : vector<324x4xbf16>, vector<4x4xbf16>, vector<324x4xf32> -> vector<324x4xf32>
    %34 = arith.addf %30, %33 : vector<324x4xf32>
    %35 = vector.extract_strided_slice %3 {offsets = [3, 0, 0], sizes = [1, 4, 4], strides = [1, 1, 1]} : vector<9x4x4xbf16> to vector<1x4x4xbf16>
    %36 = vector.shape_cast %35 : vector<1x4x4xbf16> to vector<4x4xbf16>
    %cst_10 = arith.constant dense<0.000000e+00> : vector<324x4xf32>
    %37 = tpu.matmul %11, %36, %cst_10 {dimension_numbers = #tpu.dot_dimension_numbers<[1], [0], [0], [1], [0, 0, 1, 1], [], []>} : vector<324x4xbf16>, vector<4x4xbf16>, vector<324x4xf32> -> vector<324x4xf32>
    %38 = arith.addf %34, %37 : vector<324x4xf32>
    %39 = vector.extract_strided_slice %3 {offsets = [4, 0, 0], sizes = [1, 4, 4], strides = [1, 1, 1]} : vector<9x4x4xbf16> to vector<1x4x4xbf16>
    %40 = vector.shape_cast %39 : vector<1x4x4xbf16> to vector<4x4xbf16>
    %cst_11 = arith.constant dense<0.000000e+00> : vector<324x4xf32>
    %41 = tpu.matmul %13, %40, %cst_11 {dimension_numbers = #tpu.dot_dimension_numbers<[1], [0], [0], [1], [0, 0, 1, 1], [], []>} : vector<324x4xbf16>, vector<4x4xbf16>, vector<324x4xf32> -> vector<324x4xf32>
    %42 = arith.addf %38, %41 : vector<324x4xf32>
    %43 = vector.extract_strided_slice %3 {offsets = [5, 0, 0], sizes = [1, 4, 4], strides = [1, 1, 1]} : vector<9x4x4xbf16> to vector<1x4x4xbf16>
    %44 = vector.shape_cast %43 : vector<1x4x4xbf16> to vector<4x4xbf16>
    %cst_12 = arith.constant dense<0.000000e+00> : vector<324x4xf32>
    %45 = tpu.matmul %15, %44, %cst_12 {dimension_numbers = #tpu.dot_dimension_numbers<[1], [0], [0], [1], [0, 0, 1, 1], [], []>} : vector<324x4xbf16>, vector<4x4xbf16>, vector<324x4xf32> -> vector<324x4xf32>
    %46 = arith.addf %42, %45 : vector<324x4xf32>
    %47 = vector.extract_strided_slice %3 {offsets = [6, 0, 0], sizes = [1, 4, 4], strides = [1, 1, 1]} : vector<9x4x4xbf16> to vector<1x4x4xbf16>
    %48 = vector.shape_cast %47 : vector<1x4x4xbf16> to vector<4x4xbf16>
    %cst_13 = arith.constant dense<0.000000e+00> : vector<324x4xf32>
    %49 = tpu.matmul %17, %48, %cst_13 {dimension_numbers = #tpu.dot_dimension_numbers<[1], [0], [0], [1], [0, 0, 1, 1], [], []>} : vector<324x4xbf16>, vector<4x4xbf16>, vector<324x4xf32> -> vector<324x4xf32>
    %50 = arith.addf %46, %49 : vector<324x4xf32>
    %51 = vector.extract_strided_slice %3 {offsets = [7, 0, 0], sizes = [1, 4, 4], strides = [1, 1, 1]} : vector<9x4x4xbf16> to vector<1x4x4xbf16>
    %52 = vector.shape_cast %51 : vector<1x4x4xbf16> to vector<4x4xbf16>
    %cst_14 = arith.constant dense<0.000000e+00> : vector<324x4xf32>
    %53 = tpu.matmul %19, %52, %cst_14 {dimension_numbers = #tpu.dot_dimension_numbers<[1], [0], [0], [1], [0, 0, 1, 1], [], []>} : vector<324x4xbf16>, vector<4x4xbf16>, vector<324x4xf32> -> vector<324x4xf32>
    %54 = arith.addf %50, %53 : vector<324x4xf32>
    %55 = vector.extract_strided_slice %3 {offsets = [8, 0, 0], sizes = [1, 4, 4], strides = [1, 1, 1]} : vector<9x4x4xbf16> to vector<1x4x4xbf16>
    %56 = vector.shape_cast %55 : vector<1x4x4xbf16> to vector<4x4xbf16>
    %cst_15 = arith.constant dense<0.000000e+00> : vector<324x4xf32>
    %57 = tpu.matmul %21, %56, %cst_15 {dimension_numbers = #tpu.dot_dimension_numbers<[1], [0], [0], [1], [0, 0, 1, 1], [], []>} : vector<324x4xbf16>, vector<4x4xbf16>, vector<324x4xf32> -> vector<324x4xf32>
    %58 = arith.addf %54, %57 : vector<324x4xf32>
    %c0_16 = arith.constant 0 : index
    %c0_17 = arith.constant 0 : index
    %59 = vector.load %arg4[%c0_16, %c0_17] : memref<1x4xf32, #tpu.memory_space<vmem>>, vector<1x4xf32>
    %60 = vector.broadcast %59 : vector<1x4xf32> to vector<324x4xf32>
    %61 = arith.mulf %58, %60 : vector<324x4xf32>
    %c0_18 = arith.constant 0 : index
    %c0_19 = arith.constant 0 : index
    %62 = vector.load %arg5[%c0_18, %c0_19] : memref<1x4xf32, #tpu.memory_space<vmem>>, vector<1x4xf32>
    %63 = vector.broadcast %62 : vector<1x4xf32> to vector<324x4xf32>
    %64 = arith.addf %61, %63 : vector<324x4xf32>
    %cst_20 = arith.constant 0.000000e+00 : f32
    %65 = vector.broadcast %cst_20 : f32 to vector<324x4xf32>
    %66 = arith.cmpf ogt, %64, %65 : vector<324x4xf32>
    %cst_21 = arith.constant 1.000000e-01 : f32
    %67 = vector.broadcast %cst_21 : f32 to vector<324x4xf32>
    %68 = arith.mulf %67, %64 : vector<324x4xf32>
    %69 = arith.select %66, %64, %68 : vector<324x4xi1>, vector<324x4xf32>
    %70 = vector.shape_cast %69 : vector<324x4xf32> to vector<18x18x4xf32>
    %71 = tpu.iota {dimensions = array<i32: 0>} : vector<18x18x4xi32>
    %72 = tpu.iota {dimensions = array<i32: 1>} : vector<18x18x4xi32>
    %c16_i32 = arith.constant 16 : i32
    %73 = arith.muli %arg1, %c16_i32 : i32
    %74 = vector.broadcast %73 : i32 to vector<18x18x4xi32>
    %75 = arith.addi %71, %74 : vector<18x18x4xi32>
    %c1_i32 = arith.constant 1 : i32
    %76 = vector.broadcast %c1_i32 : i32 to vector<18x18x4xi32>
    %77 = arith.subi %75, %76 : vector<18x18x4xi32>
    %c0_i32 = arith.constant 0 : i32
    %78 = vector.broadcast %c0_i32 : i32 to vector<18x18x4xi32>
    %79 = arith.cmpi sge, %77, %78 : vector<18x18x4xi32>
    %c16_i32_22 = arith.constant 16 : i32
    %80 = vector.broadcast %c16_i32_22 : i32 to vector<18x18x4xi32>
    %81 = arith.cmpi slt, %77, %80 : vector<18x18x4xi32>
    %82 = arith.andi %79, %81 : vector<18x18x4xi1>
    %c1_i32_23 = arith.constant 1 : i32
    %83 = vector.broadcast %c1_i32_23 : i32 to vector<18x18x4xi32>
    %84 = arith.cmpi sge, %72, %83 : vector<18x18x4xi32>
    %85 = arith.andi %82, %84 : vector<18x18x4xi1>
    %c16_i32_24 = arith.constant 16 : i32
    %86 = vector.broadcast %c16_i32_24 : i32 to vector<18x18x4xi32>
    %87 = arith.cmpi sle, %72, %86 : vector<18x18x4xi32>
    %88 = arith.andi %85, %87 : vector<18x18x4xi1>
    %cst_25 = arith.constant 0.000000e+00 : f32
    %89 = vector.broadcast %cst_25 : f32 to vector<18x18x4xf32>
    %90 = arith.select %88, %70, %89 : vector<18x18x4xi1>, vector<18x18x4xf32>
    %91 = arith.truncf %90 : vector<18x18x4xf32> to vector<18x18x4xbf16>
    %c0_26 = arith.constant 0 : index
    %c0_27 = arith.constant 0 : index
    %c0_28 = arith.constant 0 : index
    %92 = vector.load %arg6[%c0_26, %c0_27, %c0_28] : memref<9x4x4xbf16, #tpu.memory_space<vmem>>, vector<9x4x4xbf16>
    %93 = vector.extract_strided_slice %91 {offsets = [0, 0, 0], sizes = [16, 16, 4], strides = [1, 1, 1]} : vector<18x18x4xbf16> to vector<16x16x4xbf16>
    %94 = vector.shape_cast %93 : vector<16x16x4xbf16> to vector<256x4xbf16>
    %95 = vector.extract_strided_slice %91 {offsets = [0, 1, 0], sizes = [16, 16, 4], strides = [1, 1, 1]} : vector<18x18x4xbf16> to vector<16x16x4xbf16>
    %96 = vector.shape_cast %95 : vector<16x16x4xbf16> to vector<256x4xbf16>
    %97 = vector.extract_strided_slice %91 {offsets = [0, 2, 0], sizes = [16, 16, 4], strides = [1, 1, 1]} : vector<18x18x4xbf16> to vector<16x16x4xbf16>
    %98 = vector.shape_cast %97 : vector<16x16x4xbf16> to vector<256x4xbf16>
    %99 = vector.extract_strided_slice %91 {offsets = [1, 0, 0], sizes = [16, 16, 4], strides = [1, 1, 1]} : vector<18x18x4xbf16> to vector<16x16x4xbf16>
    %100 = vector.shape_cast %99 : vector<16x16x4xbf16> to vector<256x4xbf16>
    %101 = vector.extract_strided_slice %91 {offsets = [1, 1, 0], sizes = [16, 16, 4], strides = [1, 1, 1]} : vector<18x18x4xbf16> to vector<16x16x4xbf16>
    %102 = vector.shape_cast %101 : vector<16x16x4xbf16> to vector<256x4xbf16>
    %103 = vector.extract_strided_slice %91 {offsets = [1, 2, 0], sizes = [16, 16, 4], strides = [1, 1, 1]} : vector<18x18x4xbf16> to vector<16x16x4xbf16>
    %104 = vector.shape_cast %103 : vector<16x16x4xbf16> to vector<256x4xbf16>
    %105 = vector.extract_strided_slice %91 {offsets = [2, 0, 0], sizes = [16, 16, 4], strides = [1, 1, 1]} : vector<18x18x4xbf16> to vector<16x16x4xbf16>
    %106 = vector.shape_cast %105 : vector<16x16x4xbf16> to vector<256x4xbf16>
    %107 = vector.extract_strided_slice %91 {offsets = [2, 1, 0], sizes = [16, 16, 4], strides = [1, 1, 1]} : vector<18x18x4xbf16> to vector<16x16x4xbf16>
    %108 = vector.shape_cast %107 : vector<16x16x4xbf16> to vector<256x4xbf16>
    %109 = vector.extract_strided_slice %91 {offsets = [2, 2, 0], sizes = [16, 16, 4], strides = [1, 1, 1]} : vector<18x18x4xbf16> to vector<16x16x4xbf16>
    %110 = vector.shape_cast %109 : vector<16x16x4xbf16> to vector<256x4xbf16>
    %cst_29 = arith.constant 0.000000e+00 : f32
    %111 = vector.broadcast %cst_29 : f32 to vector<256x4xf32>
    %112 = vector.extract_strided_slice %92 {offsets = [0, 0, 0], sizes = [1, 4, 4], strides = [1, 1, 1]} : vector<9x4x4xbf16> to vector<1x4x4xbf16>
    %113 = vector.shape_cast %112 : vector<1x4x4xbf16> to vector<4x4xbf16>
    %cst_30 = arith.constant dense<0.000000e+00> : vector<256x4xf32>
    %114 = tpu.matmul %94, %113, %cst_30 {dimension_numbers = #tpu.dot_dimension_numbers<[1], [0], [0], [1], [0, 0, 1, 1], [], []>} : vector<256x4xbf16>, vector<4x4xbf16>, vector<256x4xf32> -> vector<256x4xf32>
    %115 = arith.addf %111, %114 : vector<256x4xf32>
    %116 = vector.extract_strided_slice %92 {offsets = [1, 0, 0], sizes = [1, 4, 4], strides = [1, 1, 1]} : vector<9x4x4xbf16> to vector<1x4x4xbf16>
    %117 = vector.shape_cast %116 : vector<1x4x4xbf16> to vector<4x4xbf16>
    %cst_31 = arith.constant dense<0.000000e+00> : vector<256x4xf32>
    %118 = tpu.matmul %96, %117, %cst_31 {dimension_numbers = #tpu.dot_dimension_numbers<[1], [0], [0], [1], [0, 0, 1, 1], [], []>} : vector<256x4xbf16>, vector<4x4xbf16>, vector<256x4xf32> -> vector<256x4xf32>
    %119 = arith.addf %115, %118 : vector<256x4xf32>
    %120 = vector.extract_strided_slice %92 {offsets = [2, 0, 0], sizes = [1, 4, 4], strides = [1, 1, 1]} : vector<9x4x4xbf16> to vector<1x4x4xbf16>
    %121 = vector.shape_cast %120 : vector<1x4x4xbf16> to vector<4x4xbf16>
    %cst_32 = arith.constant dense<0.000000e+00> : vector<256x4xf32>
    %122 = tpu.matmul %98, %121, %cst_32 {dimension_numbers = #tpu.dot_dimension_numbers<[1], [0], [0], [1], [0, 0, 1, 1], [], []>} : vector<256x4xbf16>, vector<4x4xbf16>, vector<256x4xf32> -> vector<256x4xf32>
    %123 = arith.addf %119, %122 : vector<256x4xf32>
    %124 = vector.extract_strided_slice %92 {offsets = [3, 0, 0], sizes = [1, 4, 4], strides = [1, 1, 1]} : vector<9x4x4xbf16> to vector<1x4x4xbf16>
    %125 = vector.shape_cast %124 : vector<1x4x4xbf16> to vector<4x4xbf16>
    %cst_33 = arith.constant dense<0.000000e+00> : vector<256x4xf32>
    %126 = tpu.matmul %100, %125, %cst_33 {dimension_numbers = #tpu.dot_dimension_numbers<[1], [0], [0], [1], [0, 0, 1, 1], [], []>} : vector<256x4xbf16>, vector<4x4xbf16>, vector<256x4xf32> -> vector<256x4xf32>
    %127 = arith.addf %123, %126 : vector<256x4xf32>
    %128 = vector.extract_strided_slice %92 {offsets = [4, 0, 0], sizes = [1, 4, 4], strides = [1, 1, 1]} : vector<9x4x4xbf16> to vector<1x4x4xbf16>
    %129 = vector.shape_cast %128 : vector<1x4x4xbf16> to vector<4x4xbf16>
    %cst_34 = arith.constant dense<0.000000e+00> : vector<256x4xf32>
    %130 = tpu.matmul %102, %129, %cst_34 {dimension_numbers = #tpu.dot_dimension_numbers<[1], [0], [0], [1], [0, 0, 1, 1], [], []>} : vector<256x4xbf16>, vector<4x4xbf16>, vector<256x4xf32> -> vector<256x4xf32>
    %131 = arith.addf %127, %130 : vector<256x4xf32>
    %132 = vector.extract_strided_slice %92 {offsets = [5, 0, 0], sizes = [1, 4, 4], strides = [1, 1, 1]} : vector<9x4x4xbf16> to vector<1x4x4xbf16>
    %133 = vector.shape_cast %132 : vector<1x4x4xbf16> to vector<4x4xbf16>
    %cst_35 = arith.constant dense<0.000000e+00> : vector<256x4xf32>
    %134 = tpu.matmul %104, %133, %cst_35 {dimension_numbers = #tpu.dot_dimension_numbers<[1], [0], [0], [1], [0, 0, 1, 1], [], []>} : vector<256x4xbf16>, vector<4x4xbf16>, vector<256x4xf32> -> vector<256x4xf32>
    %135 = arith.addf %131, %134 : vector<256x4xf32>
    %136 = vector.extract_strided_slice %92 {offsets = [6, 0, 0], sizes = [1, 4, 4], strides = [1, 1, 1]} : vector<9x4x4xbf16> to vector<1x4x4xbf16>
    %137 = vector.shape_cast %136 : vector<1x4x4xbf16> to vector<4x4xbf16>
    %cst_36 = arith.constant dense<0.000000e+00> : vector<256x4xf32>
    %138 = tpu.matmul %106, %137, %cst_36 {dimension_numbers = #tpu.dot_dimension_numbers<[1], [0], [0], [1], [0, 0, 1, 1], [], []>} : vector<256x4xbf16>, vector<4x4xbf16>, vector<256x4xf32> -> vector<256x4xf32>
    %139 = arith.addf %135, %138 : vector<256x4xf32>
    %140 = vector.extract_strided_slice %92 {offsets = [7, 0, 0], sizes = [1, 4, 4], strides = [1, 1, 1]} : vector<9x4x4xbf16> to vector<1x4x4xbf16>
    %141 = vector.shape_cast %140 : vector<1x4x4xbf16> to vector<4x4xbf16>
    %cst_37 = arith.constant dense<0.000000e+00> : vector<256x4xf32>
    %142 = tpu.matmul %108, %141, %cst_37 {dimension_numbers = #tpu.dot_dimension_numbers<[1], [0], [0], [1], [0, 0, 1, 1], [], []>} : vector<256x4xbf16>, vector<4x4xbf16>, vector<256x4xf32> -> vector<256x4xf32>
    %143 = arith.addf %139, %142 : vector<256x4xf32>
    %144 = vector.extract_strided_slice %92 {offsets = [8, 0, 0], sizes = [1, 4, 4], strides = [1, 1, 1]} : vector<9x4x4xbf16> to vector<1x4x4xbf16>
    %145 = vector.shape_cast %144 : vector<1x4x4xbf16> to vector<4x4xbf16>
    %cst_38 = arith.constant dense<0.000000e+00> : vector<256x4xf32>
    %146 = tpu.matmul %110, %145, %cst_38 {dimension_numbers = #tpu.dot_dimension_numbers<[1], [0], [0], [1], [0, 0, 1, 1], [], []>} : vector<256x4xbf16>, vector<4x4xbf16>, vector<256x4xf32> -> vector<256x4xf32>
    %147 = arith.addf %143, %146 : vector<256x4xf32>
    %148 = vector.extract_strided_slice %1 {offsets = [2, 2, 0], sizes = [16, 16, 4], strides = [1, 1, 1]} : vector<20x20x4xf32> to vector<16x16x4xf32>
    %149 = vector.shape_cast %148 : vector<16x16x4xf32> to vector<256x4xf32>
    %c0_39 = arith.constant 0 : index
    %c0_40 = arith.constant 0 : index
    %150 = vector.load %arg7[%c0_39, %c0_40] : memref<1x4xf32, #tpu.memory_space<vmem>>, vector<1x4xf32>
    %151 = vector.broadcast %150 : vector<1x4xf32> to vector<256x4xf32>
    %152 = arith.mulf %147, %151 : vector<256x4xf32>
    %c0_41 = arith.constant 0 : index
    %c0_42 = arith.constant 0 : index
    %153 = vector.load %arg8[%c0_41, %c0_42] : memref<1x4xf32, #tpu.memory_space<vmem>>, vector<1x4xf32>
    %154 = vector.broadcast %153 : vector<1x4xf32> to vector<256x4xf32>
    %155 = arith.addf %152, %154 : vector<256x4xf32>
    %156 = arith.addf %155, %149 : vector<256x4xf32>
    %cst_43 = arith.constant 0.000000e+00 : f32
    %157 = vector.broadcast %cst_43 : f32 to vector<256x4xf32>
    %158 = arith.cmpf ogt, %156, %157 : vector<256x4xf32>
    %cst_44 = arith.constant 1.000000e-01 : f32
    %159 = vector.broadcast %cst_44 : f32 to vector<256x4xf32>
    %160 = arith.mulf %159, %156 : vector<256x4xf32>
    %161 = arith.select %158, %156, %160 : vector<256x4xi1>, vector<256x4xf32>
    %162 = vector.shape_cast %161 : vector<256x4xf32> to vector<1x1x16x16x4xf32>
    %c0_45 = arith.constant 0 : index
    %c0_46 = arith.constant 0 : index
    %c0_47 = arith.constant 0 : index
    %c0_48 = arith.constant 0 : index
    %c0_49 = arith.constant 0 : index
    %163 = vector.load %arg9[%c0_45, %c0_46, %c0_47, %c0_48, %c0_49] : memref<1x1x16x16x4xf32, #tpu.memory_space<vmem>>, vector<1x1x16x16x4xf32>
    tpu.vector_store %arg9[%c0_45, %c0_46, %c0_47, %c0_48, %c0_49], %162 {strides = array<i32>} : memref<1x1x16x16x4xf32, #tpu.memory_space<vmem>>, vector<1x1x16x16x4xf32>,
    return
  }
  func.func @transform_0(%arg0: i32, %arg1: i32) -> (i32, i32, i32, i32, i32) {
    %c0_i32 = arith.constant 0 : i32
    %c0_i32_0 = arith.constant 0 : i32
    %c0_i32_1 = arith.constant 0 : i32
    %c0_i32_2 = arith.constant 0 : i32
    return %arg0, %arg1, %c0_i32, %c0_i32_0, %c0_i32_1 : i32, i32, i32, i32, i32
  }
  func.func @transform_1(%arg0: i32, %arg1: i32) -> (i32, i32, i32) {
    %c0_i32 = arith.constant 0 : i32
    %c0_i32_0 = arith.constant 0 : i32
    %c0_i32_1 = arith.constant 0 : i32
    %c0_i32_2 = arith.constant 0 : i32
    return %c0_i32, %c0_i32_0, %c0_i32_1 : i32, i32, i32
  }
  func.func @transform_2(%arg0: i32, %arg1: i32) -> (i32, i32) {
    %c0_i32 = arith.constant 0 : i32
    %c0_i32_0 = arith.constant 0 : i32
    %c0_i32_1 = arith.constant 0 : i32
    return %c0_i32, %c0_i32_0 : i32, i32
  }
  func.func @transform_3(%arg0: i32, %arg1: i32) -> (i32, i32) {
    %c0_i32 = arith.constant 0 : i32
    %c0_i32_0 = arith.constant 0 : i32
    %c0_i32_1 = arith.constant 0 : i32
    return %c0_i32, %c0_i32_0 : i32, i32
  }
  func.func @transform_4(%arg0: i32, %arg1: i32) -> (i32, i32, i32) {
    %c0_i32 = arith.constant 0 : i32
    %c0_i32_0 = arith.constant 0 : i32
    %c0_i32_1 = arith.constant 0 : i32
    %c0_i32_2 = arith.constant 0 : i32
    return %c0_i32, %c0_i32_0, %c0_i32_1 : i32, i32, i32
  }
  func.func @transform_5(%arg0: i32, %arg1: i32) -> (i32, i32) {
    %c0_i32 = arith.constant 0 : i32
    %c0_i32_0 = arith.constant 0 : i32
    %c0_i32_1 = arith.constant 0 : i32
    return %c0_i32, %c0_i32_0 : i32, i32
  }
  func.func @transform_6(%arg0: i32, %arg1: i32) -> (i32, i32) {
    %c0_i32 = arith.constant 0 : i32
    %c0_i32_0 = arith.constant 0 : i32
    %c0_i32_1 = arith.constant 0 : i32
    return %c0_i32, %c0_i32_0 : i32, i32
  }
  func.func @transform_7(%arg0: i32, %arg1: i32) -> (i32, i32, i32, i32, i32) {
    %c0_i32 = arith.constant 0 : i32
    %c0_i32_0 = arith.constant 0 : i32
    %c0_i32_1 = arith.constant 0 : i32
    %c0_i32_2 = arith.constant 0 : i32
    return %arg0, %arg1, %c0_i32, %c0_i32_0, %c0_i32_1 : i32, i32, i32, i32, i32
  }
}

</mosaic_0001>

<bundles_post_ra>
// kernel: residual_block_forward.1
= control target key start
LH: loop header
LB: loop body
LE: loop exit
PB: predicated region body
PF: predicated region fallthrough
CT: control target
= control target key end

     0   :  { %s19603_s24 = smov 0   ;;  %s19605_s25 = smov 0   ;;  %s26637_s0 = inlined_call_operand.vmem [shape: f32[2,1,20,20,4], index: 0, kind: input, shape index: {}]   ;;  %s26638_s1 = inlined_call_operand.vmem [shape: bf16[9,4,4], index: 1, kind: input, shape index: {}]   ;;  %s26639_s2 = inlined_call_operand.vmem [shape: f32[1,4], index: 2, kind: input, shape index: {}]   ;;  %s26640_s3 = inlined_call_operand.vmem [shape: f32[1,4], index: 3, kind: input, shape index: {}]   ;;  %s26641_s4 = inlined_call_operand.vmem [shape: bf16[9,4,4], index: 4, kind: input, shape index: {}]   ;;  %s26642_s5 = inlined_call_operand.vmem [shape: f32[1,4], index: 5, kind: input, shape index: {}]   ;;  %s26643_s6 = inlined_call_operand.vmem [shape: f32[1,4], index: 6, kind: input, shape index: {}]   ;;  %s26644_s7 = inlined_call_operand.vmem [shape: f32[2,1,16,16,4], index: 7, kind: output, shape index: {}]  }
   0x1   :  { %s19607_s26 = smov 0  }
   0x2 LB: > { %s29_s27 = sadd.s32 1, %s19551_s25  ;;  %p16603_p0 = scmp.ge.s32.totalorder %s19555_s26, 1  ;;  %s19555_s26 = sphi %s19607_s26, %s17_s26   ;;  %s19551_s25 = sphi %s19605_s25, %s28579_s25   ;;  %s19547_s24 = sphi %s19603_s24, %s28578_s24  }
   0x3   : > { %p31_p1 = scmp.ge.s32.totalorder %s29_s27, 2  ;;  %p257_p2 = scmp.lt.s32.totalorder %s19555_s26, 3 }
   0x5   : > { %s28581_s27 = smov (%p31_p1, %s29_s27), 0  ;;  %p258_p3 = pnand %p16603_p0, %p257_p2 }
   0x7   : > { %261 = sbr.rel (%p258_p3) target bundleno = 2120 (0x848), region = 48 }
   0xe   : > { %v418_v0 = vld [vmem:[%s26638_s1 + $0x4] sm:$0x3]  ;;  %vm4419_vm0 = vcmask 1041408   ;;  %p297_p4 = scmp.lt.s32.totalorder %s19547_s24, 1  ;;  %v465_v1 = vlaneseq  ;;  %v26648_v2 = vmov 0.0   ;;  %vm19558_vm1 = vmmov 0  }
   0xf   : > { %17708 = vmatprep.subr.bf16.mxu0 %v26648_v2  ;;  %v19626_v3 = vsel %vm4419_vm0, %v418_v0, 0  ;;  %17710 = vmatprep.mubr.msk.bf16.mxu0 %vm19558_vm1, %v26648_v2  ;;  %v19559_v4 = vmov 1966171168   ;;  %v419_v56 = vld [vmem:[%s26638_s1 + $0x6] sm:$0x3]  ;;  %vm4355_vm2 = vcmask 31744  }
  0x10   : > { %27376 = vst [vmem:[#allocation2_spill] sm:$0xff] %v19626_v3  ;;  %17709 = vmatpush3.bf16.msra.mxu0 %v19626_v3  ;;  %s28583_s24 = smov (!%p297_p4, %s19547_s24), 1  ;;  %v463_v5 = vunpack.c.l.s4 %v19559_v4  ;;  %v19633_v6 = vshrl.u32 %v465_v1, 7  ;;  %17536 = vmatprep.subr.bf16.mxu1 %v26648_v2  ;;  %v7597_v1 = vsel %vm4419_vm0, %v419_v56, 0  ;;  %vm1739_vm3 = vsmask.f32 256 }
  0x11   : > { %17794 = vmatprep.subr.bf16.mxu0 %v26648_v2  ;;  %17538 = vmatprep.mubr.msk.bf16.mxu1 %vm19558_vm1, %v26648_v2  ;;  %s19452_s30 = smul.u32 480, %s28583_s24  ;;  %vm1740_vm4 = vsmask.f32 1284  ;;  %vm1742_vm5 = vsmask.f32 2312  ;;  %s17184_s21 = sshll.u32 %s28583_s24, 8 }
  0x12   : > { %27377 = vst [vmem:[#allocation3_spill] sm:$0xff] %v19633_v6  ;;  %v464_v7 = vunpack.c.0.s8 %v463_v5  ;;  %vm1744_vm6 = vsmask.f32 3340  ;;  %vm1741_vm7 = vmor %vm1739_vm3, %vm1740_vm4  ;;  %vm1746_vm8 = vsmask.f32 4368  ;;  %s26403_s23 = scalar_lea.vmem %s26644_s7, %s17184_s21 }
  0x13   : > { %s19643_s10 = scalar_lea.vmem %s26637_s0, %s19452_s30  ;;  %vm1743_vm9 = vmor %vm1741_vm7, %vm1742_vm5  ;;  %vm1748_vm10 = vsmask.f32 5396  ;;  %vm1750_vm11 = vsmask.f32 6424  ;;  %vm1752_vm12 = vsmask.f32 7452 }
  0x14   : > { %v19646_v8 = vsub.s32 %v464_v7, %v19633_v6  ;;  %v316_v9 = vld [vmem:[%s19643_s10] sm:$0xff]  ;;  %v317_v10 = vld [vmem:[%s19643_s10 + $0x8] sm:$0xff]  ;;  %v318_v11 = vld [vmem:[%s19643_s10 + $0x10] sm:$0xf] }
  0x15   : > { %v376_v12 = vpack.c.bf16 %v317_v10, %v316_v9  ;;  %v377_v13 = vpack.c.bf16 %v318_v11, %v318_v11  ;;  %v16607_v14 = vpack.c.bf16 %v317_v10, %v317_v10  ;;  %v319_v15 = vld [vmem:[%s19643_s10 + $0x18] sm:$0xff]  ;;  %v320_v16 = vld [vmem:[%s19643_s10 + $0x20] sm:$0xff]  ;;  %v322_v19 = vld [vmem:[%s19643_s10 + $0x30] sm:$0xff] }
  0x16   : > { %27378 = vst [vmem:[#allocation4_spill] sm:$0xff] %v19646_v8  ;;  %v378_v17 = vpack.c.bf16 %v320_v16, %v319_v15  ;;  %v16608_v18 = vpack.c.bf16 %v320_v16, %v320_v16  ;;  %v323_v20 = vld [vmem:[%s19643_s10 + $0x38] sm:$0xff]  ;;  %v321_v51 = vld [vmem:[%s19643_s10 + $0x28] sm:$0xf]  ;;  %v324_v60 = vld [vmem:[%s19643_s10 + $0x40] sm:$0xf] }
  0x17   : > { %v468_v21 = vrot.slane %v376_v12, %v19646_v8  ;;  %v475_v22 = vrot.slane %v16607_v14, %v19646_v8  ;;  %v516_v23 = vrot.slane %v377_v13, %v19646_v8  ;;  %v380_v26 = vpack.c.bf16 %v323_v20, %v322_v19  ;;  %v327_v56 = vld [vmem:[%s19643_s10 + $0x58] sm:$0xf]  ;;  %vm1745_vm13 = vmor %vm1743_vm9, %vm1744_vm6 }
  0x18   : > { %v531_v24 = vrot.slane %v378_v17, %v19646_v8  ;;  %v538_v25 = vrot.slane %v16608_v18, %v19646_v8  ;;  %v379_v0 = vpack.c.bf16 %v321_v51, %v321_v51  ;;  %v16609_v5 = vpack.c.bf16 %v323_v20, %v323_v20  ;;  %vm1747_vm14 = vmor %vm1745_vm13, %vm1746_vm8 }
  0x19   : > { %v476_v27 = vcombine.high %v468_v21, %v468_v21  ;;  %v477_v28 = vcombine.high %v475_v22, %v475_v22  ;;  %v19661_v29 = vrot.slane %v468_v21, %v19646_v8  ;;  %v19664_v30 = vrot.slane %v475_v22, %v19646_v8  ;;  %vm1749_vm15 = vmor %vm1747_vm14, %vm1748_vm10 }
  0x1a   : > { %v19667_v31 = vrot.slane %v516_v23, %v19646_v8  ;;  %v539_v32 = vcombine.high %v531_v24, %v531_v24  ;;  %v540_v33 = vcombine.high %v538_v25, %v538_v25  ;;  %v19670_v34 = vrot.slane %v531_v24, %v19646_v8  ;;  %vm1751_vm3 = vmor %vm1749_vm15, %vm1750_vm11 }
  0x1b   : > { %27379 = vst [vmem:[#allocation5_spill] sm:$0xff] %v19661_v29  ;;  %27380 = vst [vmem:[#allocation6_spill] sm:$0xff] %v19664_v30  ;;  %v19673_v35 = vrot.slane %v476_v27, %v19646_v8  ;;  %v19676_v36 = vrot.slane %v477_v28, %v19646_v8  ;;  %v19680_v37 = vcombine.high %v19661_v29, %v19661_v29  ;;  %vm13956_vm14 = vsmask.f32 7424 }
  0x1c   : > { %27381 = vst [vmem:[#allocation7_spill] sm:$0xff] %v19667_v31  ;;  %27382 = vst [vmem:[#allocation8_spill] sm:$0xff] %v19670_v34  ;;  %v19684_v38 = vcombine.high %v19664_v30, %v19664_v30  ;;  %v19687_v39 = vrot.slane %v538_v25, %v19646_v8  ;;  %v19690_v40 = vrot.slane %v539_v32, %v19646_v8 }
  0x1d   : > { %27383 = vst [vmem:[#allocation9_spill] sm:$0xff] %v19673_v35  ;;  %27384 = vst [vmem:[#allocation10_spill] sm:$0xff] %v19676_v36  ;;  %v19693_v41 = vrot.slane %v540_v33, %v19646_v8  ;;  %v1595_v42 = vcombine.high %v516_v23, %v516_v23  ;;  %v19697_v43 = vcombine.high %v19673_v35, %v19673_v35 }
  0x1e   : > { %27385 = vst [vmem:[#allocation11_spill] sm:$0xff] %v19680_v37  ;;  %27386 = vst [vmem:[#allocation12_spill] sm:$0xff] %v19684_v38  ;;  %v19701_v44 = vcombine.high %v19676_v36, %v19676_v36  ;;  %v5884_v45 = vcombine.low %v19673_v35, %v19680_v37  ;;  %v5886_v46 = vcombine.low %v19676_v36, %v19684_v38  ;;  %v334_v38 = vld [vmem:[%s19643_s10 + $0x90] sm:$0xff]  ;;  %v335_v36 = vld [vmem:[%s19643_s10 + $0x98] sm:$0xff] }
  0x1f   : > { %27387 = vst [vmem:[#allocation13_spill] sm:$0xff] %v19687_v39  ;;  %27388 = vst [vmem:[#allocation14_spill] sm:$0xff] %v19690_v40  ;;  %v19708_v47 = vrot.slane %v1595_v42, %v19646_v8  ;;  %v16867_v48 = vcombine.high %v19670_v34, %v19690_v40  ;;  %v5935_v49 = vcombine.low %v19687_v39, %v19693_v41 }
  0x20   : > { %27389 = vst [vmem:[#allocation15_spill] sm:$0xff] %v19693_v41  ;;  %27390 = vst [vmem:[#allocation16_spill] sm:$0xff] %v19697_v43  ;;  %v16868_v50 = vcombine.high %v19687_v39, %v19693_v41  ;;  %v5885_v52 = vcombine.low %v19697_v43, %v19664_v30  ;;  %v5887_v53 = vcombine.low %v19701_v44, %v19667_v31 }
  0x21   : > { %27391 = vst [vmem:[#allocation17_spill] sm:$0xff] %v19701_v44  ;;  %27392 = vst [vmem:[#allocation18_spill] sm:$0xff] %v19708_v47  ;;  %v5894_v54 = vrot.slane %v5884_v45, %v19646_v8  ;;  %v5908_v55 = vrot.slane %v5886_v46, %v19646_v8  ;;  %v5933_v57 = vcombine.low %v19708_v47, %v19690_v40  ;;  %v325_v46 = vld [vmem:[%s19643_s10 + $0x48] sm:$0xff]  ;;  %v342_v47 = vld [vmem:[%s19643_s10 + $0xd0] sm:$0xf] }
  0x22   : > { %v19729_v58 = vrot.slane %v16867_v48, %v19646_v8  ;;  %v5957_v59 = vrot.slane %v5935_v49, %v19646_v8  ;;  %v5901_v61 = vrot.slane %v5885_v52, %v19646_v8  ;;  %v5915_v62 = vrot.slane %v5887_v53, %v19646_v8  ;;  %v326_v48 = vld [vmem:[%s19643_s10 + $0x50] sm:$0xff]  ;;  %vm21027_vm4 = vmor %vm1751_vm3, %vm1752_vm12 }
  0x23   : > { %v5964_v63 = vrot.slane %v16868_v50, %v19646_v8  ;;  %v5943_v4 = vrot.slane %v5933_v57, %v19646_v8  ;;  %v594_v7 = vrot.slane %v380_v26, %v19646_v8  ;;  %v381_v12 = vpack.c.bf16 %v324_v60, %v324_v60 }
  0x24   : > { %v5916_v9 = vcombine.low %v5894_v54, %v5901_v61  ;;  %v5917_v10 = vcombine.low %v5908_v55, %v5915_v62  ;;  %v601_v14 = vrot.slane %v16609_v5, %v19646_v8  ;;  %v579_v20 = vrot.slane %v379_v0, %v19646_v8 }
  0x25   : > { %v5966_v11 = vcombine.low %v5957_v59, %v5964_v63  ;;  %v5965_v13 = vcombine.low %v5943_v4, %v19729_v58  ;;  %v602_v15 = vcombine.high %v594_v7, %v594_v7  ;;  %v19742_v16 = vrot.slane %v594_v7, %v19646_v8 }
  0x26   : > { %v5924_v17 = vrot.slane %v5916_v9, %v19646_v8  ;;  %v5931_v18 = vrot.slane %v5917_v10, %v19646_v8  ;;  %v603_v22 = vcombine.high %v601_v14, %v601_v14  ;;  %v19752_v23 = vrot.slane %v601_v14, %v19646_v8  ;;  %v328_v14 = vld [vmem:[%s19643_s10 + $0x60] sm:$0xff] }
  0x27   : > { %27393 = vst [vmem:[#allocation19_spill] sm:$0xff] %v19742_v16  ;;  %v19747_v19 = vrot.slane %v5966_v11, %v19646_v8  ;;  %v5973_v21 = vrot.slane %v5965_v13, %v19646_v8  ;;  %v19755_v24 = vrot.slane %v602_v15, %v19646_v8  ;;  %v7186_v26 = vcombine.low %v19670_v34, %v19690_v40  ;;  %v329_v15 = vld [vmem:[%s19643_s10 + $0x68] sm:$0xff] }
  0x28   : > { %27394 = vst [vmem:[#allocation20_spill] sm:$0xff] %v19752_v23  ;;  %v5932_v25 = vcombine.low %v5924_v17, %v5931_v18  ;;  %v19761_v27 = vcombine.high %v19742_v16, %v19742_v16  ;;  %v642_v28 = vrot.slane %v381_v12, %v19646_v8  ;;  %v19765_v32 = vrot.slane %v579_v20, %v19646_v8 }
  0x29   : > { %27395 = vst [vmem:[#allocation21_spill] sm:$0xff] %v19755_v24  ;;  %v19768_v33 = vrot.slane %v603_v22, %v19646_v8  ;;  %v19772_v42 = vcombine.high %v19752_v23, %v19752_v23  ;;  %v19776_v45 = vcombine.high %v19755_v24, %v19755_v24  ;;  %v5981_v49 = vcombine.low %v5973_v21, %v19747_v19 }
  0x2a   : > { %27396 = vst [vmem:[#allocation22_spill] sm:$0xff] %v19765_v32  ;;  %17711 = vmatmul.mubr.msk.bf16.vlgmr.msra.gmra.mrb[0].mxu0 %vm4355_vm2, %v5932_v25  ;;  %v19783_v50 = vrot.slane %v642_v28, %v19646_v8  ;;  %v1603_v51 = vcombine.high %v579_v20, %v579_v20  ;;  %v5983_v52 = vcombine.low %v19755_v24, %v19761_v27 }
  0x2b   : > { %27397 = vst [vmem:[#allocation23_spill] sm:$0xff] %v19768_v33  ;;  %17795 = vmatpush3.bf16.msra.mxu0 %v7597_v1  ;;  %17714 = vmatprep.mubr.msk.bf16.mxu0 %vm19558_vm1, %v26648_v2  ;;  %v19791_v53 = vcombine.high %v19768_v33, %v19768_v33  ;;  %v5984_v54 = vcombine.low %v19776_v45, %v19752_v23 }
  0x2c   : > { %27398 = vst [vmem:[#allocation24_spill] sm:$0xff] %v19783_v50  ;;  %v5985_v55 = vcombine.low %v19768_v33, %v19772_v42  ;;  %v19799_v57 = vrot.slane %v1603_v51, %v19646_v8  ;;  %v19802_v59 = vrot.slane %v5983_v52, %v19646_v8  ;;  %v382_v60 = vpack.c.bf16 %v326_v48, %v325_v46 }
  0x2d   : > { %v16610_v61 = vpack.c.bf16 %v326_v48, %v326_v48  ;;  %17880 = vmatprep.subr.bf16.mxu0 %v26648_v2  ;;  %v19806_v62 = vrot.slane %v5984_v54, %v19646_v8  ;;  %v6031_v0 = vcombine.low %v19791_v53, %v19783_v50  ;;  %v1611_v1 = vcombine.high %v642_v28, %v642_v28 }
  0x2e   : > { %27399 = vst [vmem:[#allocation25_spill] sm:$0xff] %v19799_v57  ;;  %27400 = vst [vmem:[#allocation26_spill] sm:$0xff] %v19802_v59  ;;  %v19809_v63 = vrot.slane %v5985_v55, %v19646_v8  ;;  %v5982_v4 = vcombine.low %v19765_v32, %v19799_v57  ;;  %v657_v5 = vrot.slane %v382_v60, %v19646_v8 }
  0x2f   : > { %27401 = vst [vmem:[#allocation27_spill] sm:$0xff] %v19806_v62  ;;  %v664_v7 = vrot.slane %v16610_v61, %v19646_v8  ;;  %v383_v9 = vpack.c.bf16 %v327_v56, %v327_v56  ;;  %v19820_v11 = vrot.slane %v6031_v0, %v19646_v8  ;;  %v19825_v13 = vrot.slane %v1611_v1, %v19646_v8 }
  0x30   : > { %27402 = vst [vmem:[#allocation28_spill] sm:$0xff] %v19809_v63  ;;  %v6015_v10 = vcombine.low %v19806_v62, %v19809_v63  ;;  %v5992_v17 = vrot.slane %v5982_v4, %v19646_v8  ;;  %v665_v18 = vcombine.high %v657_v5, %v657_v5  ;;  %v19831_v21 = vrot.slane %v657_v5, %v19646_v8 }
  0x31   : > { %27403 = vst [vmem:[#allocation29_spill] sm:$0xff] %v19820_v11  ;;  %27404 = vst [vmem:[#allocation30_spill] sm:$0xff] %v19825_v13  ;;  %v666_v20 = vcombine.high %v664_v7, %v664_v7  ;;  %v19839_v28 = vrot.slane %v664_v7, %v19646_v8  ;;  %v384_v52 = vpack.c.bf16 %v329_v15, %v328_v14 }
  0x32   : > { %27405 = vst [vmem:[#allocation31_spill] sm:$0xff] %v19831_v21  ;;  %v19834_v22 = vrot.slane %v6015_v10, %v19646_v8  ;;  %17715 = vmatmul.mubr.msk.bf16.gmra.mrb[4].mxu0 %vm4355_vm2, %v5981_v49  ;;  %v6014_v46 = vcombine.low %v5992_v17, %v19802_v59  ;;  %v19844_v48 = vrot.slane %v665_v18, %v19646_v8 }
  0x33   : > { %27406 = vst [vmem:[#allocation32_spill] sm:$0xff] %v19839_v28  ;;  %v19847_v51 = vrot.slane %v666_v20, %v19646_v8  ;;  %v7193_v54 = vrot.slane %v7186_v26, %v19646_v8  ;;  %17718 = vmatprep.mubr.msk.bf16.mxu0 %vm19558_vm1, %v26648_v2  ;;  %v705_v55 = vrot.slane %v383_v9, %v19646_v8 }
  0x34   : > { %27407 = vst [vmem:[#allocation33_spill] sm:$0xff] %v19844_v48  ;;  %v16611_v56 = vpack.c.bf16 %v329_v15, %v329_v15  ;;  %v7203_v49 = vcombine.low %v19765_v32, %v19742_v16  ;;  %v6022_v60 = vrot.slane %v6014_v46, %v19646_v8  ;;  %v6032_v61 = vcombine.low %v19825_v13, %v19844_v48 }
  0x35   : > { %27408 = vst [vmem:[#allocation34_spill] sm:$0xff] %v19847_v51  ;;  %v16869_v0 = vcombine.high %v19831_v21, %v19844_v48  ;;  %v6034_v26 = vcombine.low %v19839_v28, %v19847_v51  ;;  %v19863_v1 = vrot.slane %v705_v55, %v19646_v8  ;;  %v720_v4 = vrot.slane %v384_v52, %v19646_v8 }
  0x36   : > { %v727_v5 = vrot.slane %v16611_v56, %v19646_v8  ;;  %v1619_v7 = vcombine.high %v705_v55, %v705_v55  ;;  %v6030_v9 = vcombine.low %v6022_v60, %v19834_v22  ;;  %v19869_v10 = vrot.slane %v6032_v61, %v19646_v8 }
  0x37   : > { %27409 = vst [vmem:[#allocation35_spill] sm:$0xff] %v19863_v1  ;;  %v19872_v14 = vrot.slane %v16869_v0, %v19646_v8  ;;  %v19875_v15 = vrot.slane %v6034_v26, %v19646_v8  ;;  %v728_v17 = vcombine.high %v720_v4, %v720_v4  ;;  %v19878_v18 = vrot.slane %v720_v4, %v19646_v8 }
  0x38   : > { %27410 = vst [vmem:[#allocation36_spill] sm:$0xff] %v19869_v10  ;;  %v19881_v20 = vrot.slane %v727_v5, %v19646_v8  ;;  %v19884_v46 = vrot.slane %v1619_v7, %v19646_v8  ;;  %v6063_v52 = vcombine.low %v19820_v11, %v19869_v10  ;;  %v16870_v56 = vcombine.high %v19839_v28, %v19847_v51  ;;  %v330_v7 = vld [vmem:[%s19643_s10 + $0x70] sm:$0xf] }
  0x39   : > { %27411 = vst [vmem:[#allocation37_spill] sm:$0xff] %v19872_v14  ;;  %27412 = vst [vmem:[#allocation38_spill] sm:$0xff] %v19875_v15  ;;  %v6064_v55 = vcombine.low %v19872_v14, %v19875_v15  ;;  %v7210_v60 = vrot.slane %v7203_v49, %v19646_v8  ;;  %v19894_v61 = vrot.slane %v728_v17, %v19646_v8  ;;  %v332_v15 = vld [vmem:[%s19643_s10 + $0x80] sm:$0xff] }
  0x3a   : > { %27413 = vst [vmem:[#allocation39_spill] sm:$0xff] %v19878_v18  ;;  %27414 = vst [vmem:[#allocation40_spill] sm:$0xff] %v19881_v20  ;;  %v19898_v0 = vcombine.high %v19878_v18, %v19878_v18  ;;  %v6081_v26 = vcombine.low %v19863_v1, %v19884_v46  ;;  %v7220_v4 = vcombine.low %v19831_v21, %v19844_v48  ;;  %17719 = vmatmul.mubr.msk.bf16.gmra.mrb[8].mxu0 %vm4355_vm2, %v6030_v9 }
  0x3b   : > { %27415 = vst [vmem:[#allocation41_spill] sm:$0xff] %v19884_v46  ;;  %27416 = vst [vmem:[#allocation42_spill] sm:$0xff] %v19894_v61  ;;  %v6071_v25 = vrot.slane %v6063_v52, %v19646_v8  ;;  %v19908_v49 = vrot.slane %v6064_v55, %v19646_v8  ;;  %v19911_v17 = vrot.slane %v16870_v56, %v19646_v8  ;;  %17722 = vmatprep.mubr.msk.bf16.mxu0 %vm19558_vm1, %v26648_v2  ;;  %v331_v55 = vld [vmem:[%s19643_s10 + $0x78] sm:$0xff] }
  0x3c   : > { %v7194_v12 = vcombine.low %v7193_v54, %v19729_v58  ;;  %v19918_v6 = vcombine.high %v19894_v61, %v19894_v61  ;;  %v6082_v9 = vcombine.low %v19894_v61, %v19898_v0  ;;  %v19923_v52 = vrot.slane %v6081_v26, %v19646_v8  ;;  %v420_v58 = vld [vmem:[%s26638_s1 + $0x8] sm:$0x3] }
  0x3d   : > { %27417 = vst [vmem:[#allocation43_spill] sm:$0xff] %v19911_v17  ;;  %v7227_v54 = vrot.slane %v7220_v4, %v19646_v8  ;;  %v385_v56 = vpack.c.bf16 %v330_v7, %v330_v7  ;;  %v7211_v14 = vcombine.low %v7210_v60, %v19802_v59  ;;  %v7237_v26 = vcombine.low %v19863_v1, %v19878_v18 }
  0x3e   : > { %27418 = vst [vmem:[#allocation44_spill] sm:$0xff] %v19923_v52  ;;  %v6083_v2 = vcombine.low %v19918_v6, %v19881_v20  ;;  %v19934_v10 = vrot.slane %v6082_v9, %v19646_v8  ;;  %v6079_v63 = vcombine.low %v6071_v25, %v19908_v49  ;;  %v6112_v62 = vcombine.low %v19911_v17, %v19923_v52  ;;  %v333_v25 = vld [vmem:[%s19643_s10 + $0x88] sm:$0xf] }
  0x3f   : > { %v386_v3 = vpack.c.bf16 %v332_v15, %v331_v55  ;;  %v729_v4 = vcombine.high %v727_v5, %v727_v5  ;;  %v19943_v7 = vrot.slane %v7194_v12, %v19646_v8  ;;  %v19949_v60 = vsel %vm4419_vm0, %v420_v58, 0 }
  0x40   : > { %27419 = vst [vmem:[#allocation45_spill] sm:$0xff] %v19934_v10  ;;  %v19946_v9 = vrot.slane %v6083_v2, %v19646_v8  ;;  %v19953_v59 = vcombine.high %v19881_v20, %v19881_v20  ;;  %v7228_v52 = vcombine.low %v19820_v11, %v7227_v54  ;;  %v768_v5 = vrot.slane %v385_v56, %v19646_v8 }
  0x41   : > { %v19958_v55 = vrot.slane %v729_v4, %v19646_v8  ;;  %v16612_v12 = vpack.c.bf16 %v332_v15, %v332_v15  ;;  %v19964_v31 = vrot.slane %v7211_v14, %v19646_v8  ;;  %v7244_v58 = vrot.slane %v7237_v26, %v19646_v8 }
  0x42   : > { %27420 = vst [vmem:[#allocation46_spill] sm:$0xff] %v19946_v9  ;;  %27421 = vst [vmem:[#allocation47_spill] sm:$0xff] %v19953_v59  ;;  %v6113_v2 = vcombine.low %v19934_v10, %v19946_v9  ;;  %v783_v44 = vrot.slane %v386_v3, %v19646_v8  ;;  %17723 = vmatmul.mubr.msk.bf16.gmra.mrb[12].mxu0 %vm4355_vm2, %v6079_v63  ;;  %v6120_v54 = vrot.slane %v6112_v62, %v19646_v8  ;;  %v27425_v14 = vmov 0.0  }
  0x43   : > { %27422 = vst [vmem:[#allocation48_spill] sm:$0xff] %v19958_v55  ;;  %v19974_v56 = vcombine.high %v19958_v55, %v19958_v55  ;;  %v19977_v15 = vrot.slane %v768_v5, %v19646_v8  ;;  %v387_v4 = vpack.c.bf16 %v333_v25, %v333_v25  ;;  %17726 = vmatprep.mubr.msk.bf16.mxu0 %vm19558_vm1, %v27425_v14 }
  0x44   : > { %v19982_v26 = vrot.slane %v6113_v2, %v19646_v8  ;;  %v791_v3 = vcombine.high %v783_v44, %v783_v44  ;;  %v19985_v9 = vrot.slane %v783_v44, %v19646_v8  ;;  %v6129_v62 = vcombine.low %v19958_v55, %v19953_v59 }
  0x45   : > { %27423 = vst [vmem:[#allocation49_spill] sm:$0xff] %v19974_v56  ;;  %27424 = vst [vmem:[#allocation50_spill] sm:$0xff] %v19977_v15  ;;  %v19990_v63 = vrot.slane %v7228_v52, %v19646_v8  ;;  %v6130_v25 = vcombine.low %v19974_v56, %v19977_v15  ;;  %v388_v10 = vpack.c.bf16 %v335_v36, %v334_v38  ;;  %v338_v56 = vld [vmem:[%s19643_s10 + $0xb0] sm:$0xff] }
  0x46   : > { %27426 = vst [vmem:[#allocation51_spill] sm:$0xff] %v19985_v9  ;;  %v790_v11 = vrot.slane %v16612_v12, %v19646_v8  ;;  %v7202_v2 = vcombine.low %v19943_v7, %v19747_v19  ;;  %v7245_v30 = vcombine.low %v19911_v17, %v7244_v58  ;;  %v20001_v43 = vrot.slane %v791_v3, %v19646_v8 }
  0x47   : > { %v6128_v52 = vcombine.low %v6120_v54, %v19982_v26  ;;  %v20008_v38 = vrot.slane %v387_v4, %v19646_v8  ;;  %v20013_v7 = vrot.slane %v6129_v62, %v19646_v8  ;;  %v20016_v12 = vrot.slane %v6130_v25, %v19646_v8  ;;  %v336_v54 = vld [vmem:[%s19643_s10 + $0xa0] sm:$0xf] }
  0x48   : > { %27427 = vst [vmem:[#allocation52_spill] sm:$0xff] %v20001_v43  ;;  %v792_v37 = vcombine.high %v790_v11, %v790_v11  ;;  %v20005_v35 = vrot.slane %v790_v11, %v19646_v8  ;;  %v16871_v19 = vcombine.high %v19985_v9, %v20001_v43  ;;  %v7254_v58 = vcombine.low %v19985_v9, %v20001_v43 }
  0x49   : > { %27429 = vst [vmem:[#allocation54_spill] sm:$0xff] %v20008_v38  ;;  %27430 = vst [vmem:[#allocation55_spill] sm:$0xff] %v20013_v7  ;;  %v20028_v3 = vrot.slane %v20008_v38, %v19646_v8  ;;  %v846_v62 = vrot.slane %v388_v10, %v19646_v8  ;;  %v1627_v44 = vcombine.high %v768_v5, %v768_v5  ;;  %v337_v38 = vld [vmem:[%s19643_s10 + $0xa8] sm:$0xff] }
  0x4a   : > { %27428 = vst [vmem:[#allocation53_spill] sm:$0xff] %v20005_v35  ;;  %27431 = vst [vmem:[#allocation56_spill] sm:$0xff] %v20016_v12  ;;  %v20024_v4 = vrot.slane %v792_v37, %v19646_v8  ;;  %v20032_v25 = vrot.slane %v16871_v19, %v19646_v8  ;;  %v7261_v17 = vrot.slane %v7254_v58, %v19646_v8  ;;  %17727 = vmatmul.mubr.msk.bf16.gmra.mrb[16].mxu0 %vm4355_vm2, %v6128_v52 }
  0x4b   : > { %27433 = vst [vmem:[#allocation58_spill] sm:$0xff] %v20028_v3  ;;  %v16613_v29 = vpack.c.bf16 %v335_v36, %v335_v36  ;;  %v854_v15 = vcombine.high %v846_v62, %v846_v62  ;;  %v20037_v11 = vrot.slane %v846_v62, %v19646_v8  ;;  %v389_v59 = vpack.c.bf16 %v336_v54, %v336_v54 }
  0x4c   : > { %27432 = vst [vmem:[#allocation57_spill] sm:$0xff] %v20024_v4  ;;  %27434 = vst [vmem:[#allocation59_spill] sm:$0xff] %v20032_v25  ;;  %v6178_v37 = vcombine.low %v20005_v35, %v20024_v4  ;;  %17796 = vmatprep.mubr.msk.bf16.mxu0 %vm19558_vm1, %v27425_v14  ;;  %v20046_v10 = vrot.slane %v7245_v30, %v19646_v8  ;;  %v6161_v36 = vcombine.low %v20013_v7, %v20016_v12 }
  0x4d   : > { %27435 = vst [vmem:[#allocation60_spill] sm:$0xff] %v20037_v11  ;;  %v7262_v5 = vcombine.low %v7261_v17, %v20032_v25  ;;  %v16872_v52 = vcombine.high %v20005_v35, %v20024_v4  ;;  %v20054_v19 = vrot.slane %v854_v15, %v19646_v8  ;;  %v20058_v58 = vcombine.high %v20037_v11, %v20037_v11 }
  0x4e   : > { %v20061_v30 = vrot.slane %v6178_v37, %v19646_v8  ;;  %v7271_v54 = vcombine.low %v20028_v3, %v20037_v11  ;;  %v20066_v17 = vrot.slane %v1627_v44, %v19646_v8  ;;  %v390_v15 = vpack.c.bf16 %v338_v56, %v337_v38  ;;  %v339_v44 = vld [vmem:[%s19643_s10 + $0xb8] sm:$0xf]  ;;  %v340_v3 = vld [vmem:[%s19643_s10 + $0xc0] sm:$0xff] }
  0x4f   : > { %27436 = vst [vmem:[#allocation61_spill] sm:$0xff] %v20054_v19  ;;  %27437 = vst [vmem:[#allocation62_spill] sm:$0xff] %v20058_v58  ;;  %v20069_v62 = vrot.slane %v16872_v52, %v19646_v8  ;;  %v853_v12 = vrot.slane %v16613_v29, %v19646_v8  ;;  %v6181_v7 = vcombine.low %v20054_v19, %v20058_v58 }
  0x50   : > { %27438 = vst [vmem:[#allocation63_spill] sm:$0xff] %v20061_v30  ;;  %27439 = vst [vmem:[#allocation64_spill] sm:$0xff] %v20066_v17  ;;  %v7278_v25 = vrot.slane %v7271_v54, %v19646_v8  ;;  %v20077_v37 = vcombine.high %v20054_v19, %v20054_v19  ;;  %v20080_v11 = vrot.slane %v389_v59, %v19646_v8  ;;  %v341_v54 = vld [vmem:[%s19643_s10 + $0xc8] sm:$0xff] }
  0x51   : > { %27440 = vst [vmem:[#allocation65_spill] sm:$0xff] %v20069_v62  ;;  %v20086_v38 = vrot.slane %v6161_v36, %v19646_v8  ;;  %v20089_v29 = vrot.slane %v7262_v5, %v19646_v8  ;;  %v855_v58 = vcombine.high %v853_v12, %v853_v12  ;;  %v20094_v4 = vrot.slane %v6181_v7, %v19646_v8 }
  0x52   : > { %27441 = vst [vmem:[#allocation66_spill] sm:$0xff] %v20077_v37  ;;  %27442 = vst [vmem:[#allocation67_spill] sm:$0xff] %v20080_v11  ;;  %v6210_v59 = vcombine.low %v20061_v30, %v20069_v62  ;;  %v20099_v19 = vrot.slane %v853_v12, %v19646_v8  ;;  %v16614_v35 = vpack.c.bf16 %v338_v56, %v338_v56  ;;  %17797 = vmatmul.mubr.msk.bf16.vlgmr.msra.gmra.mrb[20].mxu0 %vm4355_vm2, %v7202_v2 }
  0x53   : > { %27443 = vst [vmem:[#allocation68_spill] sm:$0xff] %v20086_v38  ;;  %27444 = vst [vmem:[#allocation69_spill] sm:$0xff] %v20094_v4  ;;  %v20102_v52 = vrot.slane %v855_v58, %v19646_v8  ;;  %v20106_v36 = vrot.slane %v20080_v11, %v19646_v8  ;;  %v909_v5 = vrot.slane %v390_v15, %v19646_v8  ;;  %17881 = vmatpush3.bf16.msra.mxu0 %v19949_v60 }
  0x54   : > { %27445 = vst [vmem:[#allocation70_spill] sm:$0xff] %v20099_v19  ;;  %v391_v17 = vpack.c.bf16 %v339_v44, %v339_v44  ;;  %v7279_v7 = vcombine.low %v7278_v25, %v20094_v4  ;;  %v20113_v62 = vcombine.high %v20099_v19, %v20099_v19  ;;  %v6227_v56 = vcombine.low %v20077_v37, %v20099_v19 }
  0x55   : > { %27446 = vst [vmem:[#allocation71_spill] sm:$0xff] %v20102_v52  ;;  %27447 = vst [vmem:[#allocation72_spill] sm:$0xff] %v20106_v36  ;;  %v392_v12 = vpack.c.bf16 %v341_v54, %v340_v3  ;;  %17800 = vmatprep.mubr.msk.bf16.mxu0 %vm19558_vm1, %v27425_v14  ;;  %v20123_v2 = vcombine.high %v20102_v52, %v20102_v52  ;;  %v917_v25 = vcombine.high %v909_v5, %v909_v5 }
  0x56   : > { %27448 = vst [vmem:[#allocation73_spill] sm:$0xff] %v20113_v62  ;;  %v20126_v15 = vrot.slane %v909_v5, %v19646_v8  ;;  %v20129_v44 = vrot.slane %v6210_v59, %v19646_v8  ;;  %v6228_v3 = vcombine.low %v20102_v52, %v20113_v62  ;;  %v20134_v58 = vrot.slane %v6227_v56, %v19646_v8 }
  0x57   : > { %27449 = vst [vmem:[#allocation74_spill] sm:$0xff] %v20123_v2  ;;  %v916_v60 = vrot.slane %v16614_v35, %v19646_v8  ;;  %17966 = vmatprep.subr.bf16.mxu0 %v27425_v14  ;;  %v20139_v30 = vrot.slane %v917_v25, %v19646_v8  ;;  %v6229_v5 = vcombine.low %v20123_v2, %v20106_v36 }
  0x58   : > { %27450 = vst [vmem:[#allocation75_spill] sm:$0xff] %v20126_v15  ;;  %27451 = vst [vmem:[#allocation76_spill] sm:$0xff] %v20129_v44  ;;  %v20144_v4 = vrot.slane %v391_v17, %v19646_v8  ;;  %v16615_v59 = vpack.c.bf16 %v341_v54, %v341_v54  ;;  %v20148_v62 = vrot.slane %v7279_v7, %v19646_v8 }
  0x59   : > { %27452 = vst [vmem:[#allocation77_spill] sm:$0xff] %v20134_v58  ;;  %27453 = vst [vmem:[#allocation78_spill] sm:$0xff] %v20139_v30  ;;  %v20151_v56 = vrot.slane %v6228_v3, %v19646_v8  ;;  %v918_v35 = vcombine.high %v916_v60, %v916_v60  ;;  %v20154_v52 = vrot.slane %v916_v60, %v19646_v8 }
  0x5a   : > { %27454 = vst [vmem:[#allocation79_spill] sm:$0xff] %v20144_v4  ;;  %v20157_v25 = vrot.slane %v6229_v5, %v19646_v8  ;;  %v7288_v36 = vcombine.low %v20126_v15, %v20139_v30  ;;  %v20163_v17 = vrot.slane %v20144_v4, %v19646_v8  ;;  %v972_v54 = vrot.slane %v392_v12, %v19646_v8 }
  0x5b   : > { %27455 = vst [vmem:[#allocation80_spill] sm:$0xff] %v20151_v56  ;;  %27456 = vst [vmem:[#allocation81_spill] sm:$0xff] %v20154_v52  ;;  %v6259_v7 = vcombine.low %v20134_v58, %v20151_v56  ;;  %v20169_v3 = vrot.slane %v918_v35, %v19646_v8  ;;  %v16873_v60 = vcombine.high %v20126_v15, %v20139_v30  ;;  %v346_v30 = vld [vmem:[%s19643_s10 + $0xf0] sm:$0xff]  ;;  %v347_v15 = vld [vmem:[%s19643_s10 + $0xf8] sm:$0xff] }
  0x5c   : > { %27457 = vst [vmem:[#allocation82_spill] sm:$0xff] %v20157_v25  ;;  %27458 = vst [vmem:[#allocation83_spill] sm:$0xff] %v20163_v17  ;;  %v393_v5 = vpack.c.bf16 %v342_v47, %v342_v47  ;;  %v7295_v2 = vrot.slane %v7288_v36, %v19646_v8  ;;  %v980_v19 = vcombine.high %v972_v54, %v972_v54 }
  0x5d   : > { %27459 = vst [vmem:[#allocation84_spill] sm:$0xff] %v20169_v3  ;;  %v20175_v11 = vrot.slane %v972_v54, %v19646_v8  ;;  %v979_v4 = vrot.slane %v16615_v59, %v19646_v8  ;;  %v27461_v12 = vcombine.low %v19964_v31, %v19834_v22  ;;  %v20183_v35 = vrot.slane %v6259_v7, %v19646_v8 }
  0x5e   : > { %v6277_v56 = vcombine.low %v20154_v52, %v20169_v3  ;;  %v16874_v47 = vcombine.high %v20154_v52, %v20169_v3  ;;  %v20190_v36 = vrot.slane %v16873_v60, %v19646_v8  ;;  %v7296_v59 = vcombine.low %v20157_v25, %v7295_v2 }
  0x5f   : > { %27460 = vst [vmem:[#allocation85_spill] sm:$0xff] %v20175_v11  ;;  %17801 = vmatmul.mubr.msk.bf16.gmra.mrb[4].mxu0 %vm4355_vm2, %v27461_v12  ;;  %27462 = vst [vmem:[#allocation86_spill] sm:$0xff] %v20183_v35  ;;  %v20196_v31 = vrot.slane %v980_v19, %v19646_v8  ;;  %v7305_v22 = vcombine.low %v20163_v17, %v20175_v11  ;;  %v981_v54 = vcombine.high %v979_v4, %v979_v4 }
  0x60   : > { %27463 = vst [vmem:[#allocation87_spill] sm:$0xff] %v20190_v36  ;;  %17804 = vmatprep.mubr.msk.bf16.mxu0 %vm19558_vm1, %v27425_v14  ;;  %v20201_v7 = vrot.slane %v6277_v56, %v19646_v8  ;;  %v20204_v60 = vrot.slane %v16874_v47, %v19646_v8  ;;  %v20207_v12 = vrot.slane %v979_v4, %v19646_v8 }
  0x61   : > { %27464 = vst [vmem:[#allocation88_spill] sm:$0xff] %v20196_v31  ;;  %v20211_v2 = vcombine.high %v20175_v11, %v20175_v11  ;;  %v20214_v19 = vrot.slane %v7296_v59, %v19646_v8  ;;  %v7312_v58 = vrot.slane %v7305_v22, %v19646_v8  ;;  %v20218_v56 = vrot.slane %v981_v54, %v19646_v8  ;;  %v343_v11 = vld [vmem:[%s19643_s10 + $0xd8] sm:$0xff]  ;;  %v344_v54 = vld [vmem:[%s19643_s10 + $0xe0] sm:$0xff] }
  0x62   : > { %27465 = vst [vmem:[#allocation89_spill] sm:$0xff] %v20201_v7  ;;  %27466 = vst [vmem:[#allocation90_spill] sm:$0xff] %v20204_v60  ;;  %v20222_v47 = vcombine.high %v20196_v31, %v20196_v31  ;;  %v20228_v25 = vcombine.high %v20207_v12, %v20207_v12  ;;  %v20231_v59 = vrot.slane %v393_v5, %v19646_v8  ;;  %v345_v5 = vld [vmem:[%s19643_s10 + $0xe8] sm:$0xf] }
  0x63   : > { %27467 = vst [vmem:[#allocation91_spill] sm:$0xff] %v20207_v12  ;;  %27468 = vst [vmem:[#allocation92_spill] sm:$0xff] %v20211_v2  ;;  %v6325_v22 = vcombine.low %v20196_v31, %v20211_v2  ;;  %v6308_v3 = vcombine.low %v20190_v36, %v20201_v7  ;;  %v20243_v4 = vcombine.high %v20218_v56, %v20218_v56 }
  0x64   : > { %27469 = vst [vmem:[#allocation93_spill] sm:$0xff] %v20218_v56  ;;  %27470 = vst [vmem:[#allocation94_spill] sm:$0xff] %v20222_v47  ;;  %v6326_v52 = vcombine.low %v20222_v47, %v20207_v12  ;;  %v20254_v31 = vrot.slane %v20231_v59, %v19646_v8  ;;  %v6327_v17 = vcombine.low %v20218_v56, %v20228_v25 }
  0x65   : > { %27471 = vst [vmem:[#allocation95_spill] sm:$0xff] %v20228_v25  ;;  %27472 = vst [vmem:[#allocation96_spill] sm:$0xff] %v20231_v59  ;;  %v20259_v7 = vrot.slane %v6325_v22, %v19646_v8  ;;  %v7313_v36 = vcombine.low %v20204_v60, %v7312_v58  ;;  %v394_v47 = vpack.c.bf16 %v344_v54, %v343_v11 }
  0x66   : > { %27473 = vst [vmem:[#allocation97_spill] sm:$0xff] %v20243_v4  ;;  %27474 = vst [vmem:[#allocation98_spill] sm:$0xff] %v20254_v31  ;;  %v20263_v12 = vrot.slane %v6326_v52, %v19646_v8  ;;  %v16616_v37 = vpack.c.bf16 %v344_v54, %v344_v54  ;;  %v27477_v2 = vcombine.low %v19990_v63, %v19908_v49 }
  0x67   : > { %27475 = vst [vmem:[#allocation99_spill] sm:$0xff] %v20259_v7  ;;  %v6328_v59 = vcombine.low %v20243_v4, %v20254_v31  ;;  %v20272_v25 = vrot.slane %v6327_v17, %v19646_v8  ;;  %v395_v22 = vpack.c.bf16 %v345_v5, %v345_v5  ;;  %v396_v56 = vpack.c.bf16 %v347_v15, %v346_v30  ;;  %v349_v31 = vld [vmem:[%s19643_s10 + $0x108] sm:$0xff] }
  0x68   : > { %27476 = vst [vmem:[#allocation100_spill] sm:$0xff] %v20263_v12  ;;  %17805 = vmatmul.mubr.msk.bf16.gmra.mrb[8].mxu0 %vm4355_vm2, %v27477_v2  ;;  %v20277_v52 = vrot.slane %v6308_v3, %v19646_v8  ;;  %v6357_v11 = vcombine.low %v20259_v7, %v20263_v12  ;;  %v1035_v49 = vrot.slane %v394_v47, %v19646_v8 }
  0x69   : > { %27478 = vst [vmem:[#allocation101_spill] sm:$0xff] %v20272_v25  ;;  %17808 = vmatprep.mubr.msk.bf16.mxu0 %vm19558_vm1, %v27425_v14  ;;  %v1042_v63 = vrot.slane %v16616_v37, %v19646_v8  ;;  %v20284_v58 = vrot.slane %v6328_v59, %v19646_v8  ;;  %v20287_v17 = vrot.slane %v395_v22, %v19646_v8 }
  0x6a   : > { %27479 = vst [vmem:[#allocation102_spill] sm:$0xff] %v20277_v52  ;;  %v16617_v30 = vpack.c.bf16 %v347_v15, %v347_v15  ;;  %v1098_v2 = vrot.slane %v396_v56, %v19646_v8  ;;  %v20291_v3 = vrot.slane %v7313_v36, %v19646_v8  ;;  %v1043_v54 = vcombine.high %v1035_v49, %v1035_v49 }
  0x6b   : > { %27480 = vst [vmem:[#allocation103_spill] sm:$0xff] %v20284_v58  ;;  %27481 = vst [vmem:[#allocation104_spill] sm:$0xff] %v20287_v17  ;;  %v1044_v5 = vcombine.high %v1042_v63, %v1042_v63  ;;  %v20294_v12 = vrot.slane %v1035_v49, %v19646_v8  ;;  %v6358_v37 = vcombine.low %v20272_v25, %v20284_v58  ;;  %v348_v58 = vld [vmem:[%s19643_s10 + $0x100] sm:$0xf] }
  0x6c   : > { %v6365_v47 = vrot.slane %v6357_v11, %v19646_v8  ;;  %v20300_v59 = vrot.slane %v1042_v63, %v19646_v8  ;;  %v1105_v15 = vrot.slane %v16617_v30, %v19646_v8  ;;  %v20304_v56 = vrot.slane %v1043_v54, %v19646_v8 }
  0x6d   : > { %27482 = vst [vmem:[#allocation105_spill] sm:$0xff] %v20294_v12  ;;  %v20307_v36 = vrot.slane %v1044_v5, %v19646_v8  ;;  %v1106_v22 = vcombine.high %v1098_v2, %v1098_v2  ;;  %v20310_v49 = vrot.slane %v1098_v2, %v19646_v8  ;;  %v6372_v11 = vrot.slane %v6358_v37, %v19646_v8 }
  0x6e   : > { %27483 = vst [vmem:[#allocation106_spill] sm:$0xff] %v20300_v59  ;;  %27484 = vst [vmem:[#allocation107_spill] sm:$0xff] %v20304_v56  ;;  %v20316_v63 = vrot.slane %v20287_v17, %v19646_v8  ;;  %v1107_v30 = vcombine.high %v1105_v15, %v1105_v15  ;;  %v20319_v54 = vrot.slane %v1105_v15, %v19646_v8 }
  0x6f   : > { %27485 = vst [vmem:[#allocation108_spill] sm:$0xff] %v20307_v36  ;;  %27486 = vst [vmem:[#allocation109_spill] sm:$0xff] %v20310_v49  ;;  %v16875_v5 = vcombine.high %v20294_v12, %v20304_v56  ;;  %v6376_v25 = vcombine.low %v20300_v59, %v20307_v36  ;;  %v16876_v2 = vcombine.high %v20300_v59, %v20307_v36  ;;  %v350_v36 = vld [vmem:[%s19643_s10 + $0x110] sm:$0xff] }
  0x70   : > { %27487 = vst [vmem:[#allocation110_spill] sm:$0xff] %v20316_v63  ;;  %27488 = vst [vmem:[#allocation111_spill] sm:$0xff] %v20319_v54  ;;  %v7322_v37 = vcombine.low %v20294_v12, %v20304_v56  ;;  %v27489_v7 = vcombine.low %v20046_v10, %v19982_v26  ;;  %v20334_v15 = vrot.slane %v1106_v22, %v19646_v8 }
  0x71   : > { %v20337_v60 = vrot.slane %v1107_v30, %v19646_v8  ;;  %v20341_v17 = vcombine.high %v20310_v49, %v20310_v49  ;;  %v397_v59 = vpack.c.bf16 %v348_v58, %v348_v58  ;;  %v20348_v26 = vrot.slane %v16875_v5, %v19646_v8 }
  0x72   : > { %17809 = vmatmul.mubr.msk.bf16.gmra.mrb[12].mxu0 %vm4355_vm2, %v27489_v7  ;;  %27490 = vst [vmem:[#allocation112_spill] sm:$0xff] %v20334_v15  ;;  %v20351_v10 = vrot.slane %v6376_v25, %v19646_v8  ;;  %v20354_v7 = vrot.slane %v16876_v2, %v19646_v8  ;;  %v7329_v22 = vrot.slane %v7322_v37, %v19646_v8  ;;  %v351_v2 = vld [vmem:[%s19643_s10 + $0x118] sm:$0xf] }
  0x73   : > { %27491 = vst [vmem:[#allocation113_spill] sm:$0xff] %v20337_v60  ;;  %27492 = vst [vmem:[#allocation114_spill] sm:$0xff] %v20341_v17  ;;  %17812 = vmatprep.mubr.msk.bf16.mxu0 %vm19558_vm1, %v27425_v14  ;;  %v20359_v30 = vcombine.high %v20319_v54, %v20319_v54  ;;  %v20363_v58 = vcombine.high %v20334_v15, %v20334_v15  ;;  %v6424_v5 = vcombine.low %v20334_v15, %v20341_v17 }
  0x74   : > { %27493 = vst [vmem:[#allocation115_spill] sm:$0xff] %v20348_v26  ;;  %27494 = vst [vmem:[#allocation116_spill] sm:$0xff] %v20351_v10  ;;  %v7339_v25 = vcombine.low %v20316_v63, %v20310_v49  ;;  %v6407_v37 = vcombine.low %v20351_v10, %v20354_v7  ;;  %v7330_v56 = vcombine.low %v7329_v22, %v20348_v26 }
  0x75   : > { %27495 = vst [vmem:[#allocation117_spill] sm:$0xff] %v20354_v7  ;;  %27496 = vst [vmem:[#allocation118_spill] sm:$0xff] %v20359_v30  ;;  %v398_v12 = vpack.c.bf16 %v350_v36, %v349_v31  ;;  %v6425_v4 = vcombine.low %v20363_v58, %v20319_v54  ;;  %v6426_v17 = vcombine.low %v20337_v60, %v20359_v30 }
  0x76   : > { %27497 = vst [vmem:[#allocation119_spill] sm:$0xff] %v20363_v58  ;;  %v20379_v15 = vrot.slane %v6424_v5, %v19646_v8  ;;  %v7346_v49 = vrot.slane %v7339_v25, %v19646_v8  ;;  %v20383_v63 = vcombine.low %v6365_v47, %v6372_v11  ;;  %v20387_v7 = vcombine.high %v20337_v60, %v20337_v60  ;;  %v352_v47 = vld [vmem:[%s19643_s10 + $0x120] sm:$0xff]  ;;  %v353_v11 = vld [vmem:[%s19643_s10 + $0x128] sm:$0xff] }
  0x77   : > { %v20390_v31 = vrot.slane %v397_v59, %v19646_v8  ;;  %v16618_v22 = vpack.c.bf16 %v350_v36, %v350_v36  ;;  %v20393_v10 = vrot.slane %v6425_v4, %v19646_v8  ;;  %v20396_v26 = vrot.slane %v6426_v17, %v19646_v8 }
  0x78   : > { %27498 = vst [vmem:[#allocation120_spill] sm:$0xff] %v20379_v15  ;;  %27499 = vst [vmem:[#allocation121_spill] sm:$0xff] %v20383_v63  ;;  %v7347_v5 = vcombine.low %v7346_v49, %v20379_v15  ;;  %v1161_v25 = vrot.slane %v398_v12, %v19646_v8  ;;  %v20403_v30 = vrot.slane %v6407_v37, %v19646_v8 }
  0x79   : > { %27500 = vst [vmem:[#allocation122_spill] sm:$0xff] %v20387_v7  ;;  %27501 = vst [vmem:[#allocation123_spill] sm:$0xff] %v20390_v31  ;;  %v20407_v59 = vrot.slane %v20390_v31, %v19646_v8  ;;  %v1168_v4 = vrot.slane %v16618_v22, %v19646_v8  ;;  %v399_v36 = vpack.c.bf16 %v351_v2, %v351_v2 }
  0x7a   : > { %27502 = vst [vmem:[#allocation124_spill] sm:$0xff] %v20393_v10  ;;  %27503 = vst [vmem:[#allocation125_spill] sm:$0xff] %v20396_v26  ;;  %v27506_v17 = vcombine.low %v20086_v38, %v20089_v29  ;;  %v20415_v12 = vrot.slane %v7330_v56, %v19646_v8  ;;  %v6456_v49 = vcombine.low %v20393_v10, %v20396_v26 }
  0x7b   : > { %27504 = vst [vmem:[#allocation126_spill] sm:$0xff] %v20403_v30  ;;  %27505 = vst [vmem:[#allocation127_spill] sm:$0xff] %v20407_v59  ;;  %v1169_v37 = vcombine.high %v1161_v25, %v1161_v25  ;;  %v20420_v15 = vrot.slane %v1161_v25, %v19646_v8  ;;  %v1170_v2 = vcombine.high %v1168_v4, %v1168_v4 }
  0x7c   : > { %17813 = vmatmul.mubr.msk.bf16.gmra.mrb[16].mxu0 %vm4355_vm2, %v27506_v17  ;;  %v20425_v29 = vrot.slane %v1168_v4, %v19646_v8  ;;  %v6472_v56 = vcombine.low %v20387_v7, %v20407_v59  ;;  %v400_v22 = vpack.c.bf16 %v353_v11, %v352_v47  ;;  %v354_v17 = vld [vmem:[%s19643_s10 + $0x130] sm:$0xf]  ;;  %v20431_v26 = vrot.slane %v7347_v5, %v19646_v8  ;;  %v355_v5 = vld [vmem:[%s19643_s10 + $0x138] sm:$0xff]  ;;  %v356_v7 = vld [vmem:[%s19643_s10 + $0x140] sm:$0xff] }
  0x7d   : > { %27507 = vst [vmem:[#allocation128_spill] sm:$0xff] %v20420_v15  ;;  %17816 = vmatprep.mubr.msk.bf16.mxu0 %vm19558_vm1, %v27425_v14  ;;  %v20434_v10 = vrot.slane %v1169_v37, %v19646_v8  ;;  %v20437_v25 = vrot.slane %v399_v36, %v19646_v8  ;;  %v16619_v38 = vpack.c.bf16 %v353_v11, %v353_v11 }
  0x7e   : > { %27508 = vst [vmem:[#allocation129_spill] sm:$0xff] %v20425_v29  ;;  %v20440_v31 = vrot.slane %v6456_v49, %v19646_v8  ;;  %v20443_v4 = vrot.slane %v1170_v2, %v19646_v8  ;;  %v20446_v59 = vrot.slane %v6472_v56, %v19646_v8  ;;  %v1224_v47 = vrot.slane %v400_v22, %v19646_v8 }
  0x7f   : > { %27509 = vst [vmem:[#allocation130_spill] sm:$0xff] %v20434_v10  ;;  %27510 = vst [vmem:[#allocation131_spill] sm:$0xff] %v20437_v25  ;;  %v16877_v37 = vcombine.high %v20420_v15, %v20434_v10  ;;  %v7356_v36 = vcombine.low %v20420_v15, %v20434_v10  ;;  %v20457_v11 = vrot.slane %v20437_v25, %v19646_v8 }
  0x80   : > { %27511 = vst [vmem:[#allocation132_spill] sm:$0xff] %v20440_v31  ;;  %27512 = vst [vmem:[#allocation133_spill] sm:$0xff] %v20443_v4  ;;  %v401_v49 = vpack.c.bf16 %v354_v17, %v354_v17  ;;  %v6475_v2 = vcombine.low %v20425_v29, %v20443_v4  ;;  %v1231_v56 = vrot.slane %v16619_v38, %v19646_v8 }
  0x81   : > { %27513 = vst [vmem:[#allocation134_spill] sm:$0xff] %v20446_v59  ;;  %27514 = vst [vmem:[#allocation135_spill] sm:$0xff] %v20457_v11  ;;  %v1232_v60 = vcombine.high %v1224_v47, %v1224_v47  ;;  %v20463_v22 = vrot.slane %v1224_v47, %v19646_v8  ;;  %v20466_v54 = vrot.slane %v16877_v37, %v19646_v8 }
  0x82   : > { %v7363_v58 = vrot.slane %v7356_v36, %v19646_v8  ;;  %v16878_v10 = vcombine.high %v20425_v29, %v20443_v4  ;;  %v402_v25 = vpack.c.bf16 %v356_v7, %v355_v5  ;;  %v20472_v17 = vrot.slane %v6475_v2, %v19646_v8 }
  0x83   : > { %27515 = vst [vmem:[#allocation136_spill] sm:$0xff] %v20463_v22  ;;  %27516 = vst [vmem:[#allocation137_spill] sm:$0xff] %v20466_v54  ;;  %v20475_v15 = vrot.slane %v1231_v56, %v19646_v8  ;;  %v20478_v38 = vrot.slane %v1232_v60, %v19646_v8  ;;  %v20482_v47 = vcombine.high %v20463_v22, %v20463_v22 }
  0x84   : > { %27517 = vst [vmem:[#allocation138_spill] sm:$0xff] %v20472_v17  ;;  %v27521_v37 = vcombine.low %v20129_v44, %v20148_v62  ;;  %v7364_v5 = vcombine.low %v20446_v59, %v7363_v58  ;;  %v20490_v36 = vrot.slane %v16878_v10, %v19646_v8  ;;  %v7373_v2 = vcombine.low %v20457_v11, %v20463_v22  ;;  %v357_v59 = vld [vmem:[%s19643_s10 + $0x148] sm:$0xf]  ;;  %v358_v22 = vld [vmem:[%s19643_s10 + $0x150] sm:$0xff]  ;;  %v359_v11 = vld [vmem:[%s19643_s10 + $0x158] sm:$0xff] }
  0x85   : > { %27518 = vst [vmem:[#allocation139_spill] sm:$0xff] %v20475_v15  ;;  %27519 = vst [vmem:[#allocation140_spill] sm:$0xff] %v20478_v38  ;;  %v1233_v60 = vcombine.high %v1231_v56, %v1231_v56  ;;  %v6505_v4 = vcombine.low %v20466_v54, %v20472_v17  ;;  %v20500_v62 = vcombine.high %v20478_v38, %v20478_v38 }
  0x86   : > { %27520 = vst [vmem:[#allocation141_spill] sm:$0xff] %v20482_v47  ;;  %17817 = vmatmul.mubr.msk.bf16.gmra.mrb[24].mxu0 %vm4355_vm2, %v27521_v37  ;;  %27522 = vst [vmem:[#allocation142_spill] sm:$0xff] %v20490_v36  ;;  %v6523_v58 = vcombine.low %v20478_v38, %v20482_v47  ;;  %v20506_v10 = vcombine.high %v20475_v15, %v20475_v15  ;;  %v20509_v56 = vrot.slane %v7364_v5, %v19646_v8 }
  0x87   : > { %17820 = vmatprep.mubr.msk.bf16.mxu0 %vm19558_vm1, %v27425_v14  ;;  %27523 = vst [vmem:[#allocation143_spill] sm:$0xff] %v20500_v62  ;;  %v7380_v37 = vrot.slane %v7373_v2, %v19646_v8  ;;  %v20513_v17 = vrot.slane %v1233_v60, %v19646_v8  ;;  %v20516_v54 = vrot.slane %v401_v49, %v19646_v8 }
  0x88   : > { %27524 = vst [vmem:[#allocation144_spill] sm:$0xff] %v20506_v10  ;;  %v20520_v44 = vrot.slane %v6505_v4, %v19646_v8  ;;  %v6524_v47 = vcombine.low %v20500_v62, %v20475_v15  ;;  %v20525_v38 = vrot.slane %v6523_v58, %v19646_v8  ;;  %v16620_v5 = vpack.c.bf16 %v356_v7, %v356_v7 }
  0x89   : > { %27525 = vst [vmem:[#allocation145_spill] sm:$0xff] %v20513_v17  ;;  %27526 = vst [vmem:[#allocation146_spill] sm:$0xff] %v20516_v54  ;;  %v20531_v60 = vcombine.high %v20513_v17, %v20513_v17  ;;  %v20535_v49 = vrot.slane %v20516_v54, %v19646_v8  ;;  %v1287_v4 = vrot.slane %v402_v25, %v19646_v8 }
  0x8a   : > { %27527 = vst [vmem:[#allocation147_spill] sm:$0xff] %v20520_v44  ;;  %27528 = vst [vmem:[#allocation148_spill] sm:$0xff] %v20525_v38  ;;  %v20541_v15 = vrot.slane %v6524_v47, %v19646_v8  ;;  %v7381_v7 = vcombine.low %v20490_v36, %v7380_v37  ;;  %v6570_v58 = vcombine.low %v20513_v17, %v20506_v10 }
  0x8b   : > { %27529 = vst [vmem:[#allocation149_spill] sm:$0xff] %v20531_v60  ;;  %27530 = vst [vmem:[#allocation150_spill] sm:$0xff] %v20535_v49  ;;  %v403_v2 = vpack.c.bf16 %v357_v59, %v357_v59  ;;  %v1295_v29 = vcombine.high %v1287_v4, %v1287_v4  ;;  %v20549_v54 = vrot.slane %v1287_v4, %v19646_v8 }
  0x8c   : > { %27531 = vst [vmem:[#allocation151_spill] sm:$0xff] %v20541_v15  ;;  %v6571_v25 = vcombine.low %v20531_v60, %v20535_v49  ;;  %v6554_v37 = vcombine.low %v20525_v38, %v20541_v15  ;;  %v404_v36 = vpack.c.bf16 %v359_v11, %v358_v22  ;;  %v1294_v59 = vrot.slane %v16620_v5, %v19646_v8  ;;  %v360_v5 = vld [vmem:[%s19643_s10 + $0x160] sm:$0xf]  ;;  %v362_v60 = vld [vmem:[%s19643_s10 + $0x170] sm:$0xff] }
  0x8d   : > { %27532 = vst [vmem:[#allocation152_spill] sm:$0xff] %v20549_v54  ;;  %v27533_v62 = vcombine.low %v20183_v35, %v20214_v19  ;;  %v20563_v4 = vrot.slane %v1295_v29, %v19646_v8  ;;  %v20566_v10 = vrot.slane %v6570_v58, %v19646_v8  ;;  %v20572_v47 = vrot.slane %v403_v2, %v19646_v8  ;;  %v361_v35 = vld [vmem:[%s19643_s10 + $0x168] sm:$0xff] }
  0x8e   : > { %v20569_v49 = vrot.slane %v6571_v25, %v19646_v8  ;;  %v20577_v19 = vrot.slane %v7381_v7, %v19646_v8  ;;  %v1296_v22 = vcombine.high %v1294_v59, %v1294_v59  ;;  %v20580_v29 = vrot.slane %v1294_v59, %v19646_v8 }
  0x8f   : > { %17821 = vmatmul.mubr.msk.bf16.gmra.mrb[28].mxu0 %vm4355_vm2, %v27533_v62  ;;  %27534 = vst [vmem:[#allocation153_spill] sm:$0xff] %v20563_v4  ;;  %27535 = vst [vmem:[#allocation154_spill] sm:$0xff] %v20566_v10  ;;  %v1350_v62 = vrot.slane %v404_v36, %v19646_v8  ;;  %v16879_v58 = vcombine.high %v20549_v54, %v20563_v4  ;;  %v7390_v2 = vcombine.low %v20549_v54, %v20563_v4 }
  0x90   : > { %27536 = vst [vmem:[#allocation155_spill] sm:$0xff] %v20569_v49  ;;  %27537 = vst [vmem:[#allocation156_spill] sm:$0xff] %v20572_v47  ;;  %17824 = vmatprep.mubr.msk.bf16.mxu0 %vm19558_vm1, %v27425_v14  ;;  %v20590_v25 = vrot.slane %v20572_v47, %v19646_v8  ;;  %v16621_v15 = vpack.c.bf16 %v359_v11, %v359_v11  ;;  %v20593_v7 = vrot.slane %v6554_v37, %v19646_v8 }
  0x91   : > { %27538 = vst [vmem:[#allocation157_spill] sm:$0xff] %v20580_v29  ;;  %v20596_v59 = vrot.slane %v1296_v22, %v19646_v8  ;;  %v1358_v38 = vcombine.high %v1350_v62, %v1350_v62  ;;  %v20599_v36 = vrot.slane %v1350_v62, %v19646_v8  ;;  %v20604_v17 = vrot.slane %v16879_v58, %v19646_v8 }
  0x92   : > { %27539 = vst [vmem:[#allocation158_spill] sm:$0xff] %v20590_v25  ;;  %27540 = vst [vmem:[#allocation159_spill] sm:$0xff] %v20593_v7  ;;  %v6602_v47 = vcombine.low %v20566_v10, %v20569_v49  ;;  %v7397_v11 = vrot.slane %v7390_v2, %v19646_v8  ;;  %v405_v4 = vpack.c.bf16 %v360_v5, %v360_v5 }
  0x93   : > { %27541 = vst [vmem:[#allocation160_spill] sm:$0xff] %v20596_v59  ;;  %27542 = vst [vmem:[#allocation161_spill] sm:$0xff] %v20599_v36  ;;  %v20610_v37 = vrot.slane %v1358_v38, %v19646_v8  ;;  %v20614_v22 = vcombine.high %v20599_v36, %v20599_v36  ;;  %v6619_v62 = vcombine.low %v20580_v29, %v20596_v59 }
  0x94   : > { %27543 = vst [vmem:[#allocation162_spill] sm:$0xff] %v20604_v17  ;;  %v16880_v58 = vcombine.high %v20580_v29, %v20596_v59  ;;  %v7398_v54 = vcombine.low %v7397_v11, %v20604_v17  ;;  %v7407_v49 = vcombine.low %v20590_v25, %v20599_v36  ;;  %v406_v2 = vpack.c.bf16 %v362_v60, %v361_v35 }
  0x95   : > { %27544 = vst [vmem:[#allocation163_spill] sm:$0xff] %v20610_v37  ;;  %27545 = vst [vmem:[#allocation164_spill] sm:$0xff] %v20614_v22  ;;  %v1357_v5 = vrot.slane %v16621_v15, %v19646_v8  ;;  %v6622_v38 = vcombine.low %v20610_v37, %v20614_v22  ;;  %v20627_v10 = vrot.slane %v6619_v62, %v19646_v8  ;;  %v363_v22 = vld [vmem:[%s19643_s10 + $0x178] sm:$0xf] }
  0x96   : > { %v20630_v43 = vrot.slane %v16880_v58, %v19646_v8  ;;  %v20634_v59 = vcombine.high %v20610_v37, %v20610_v37  ;;  %v27549_v11 = vcombine.low %v20277_v52, %v20291_v3  ;;  %v7414_v15 = vrot.slane %v7407_v49, %v19646_v8  ;;  %v364_v37 = vld [vmem:[%s19643_s10 + $0x180] sm:$0xff] }
  0x97   : > { %27546 = vst [vmem:[#allocation165_spill] sm:$0xff] %v20627_v10  ;;  %v1359_v62 = vcombine.high %v1357_v5, %v1357_v5  ;;  %v20644_v58 = vrot.slane %v1357_v5, %v19646_v8  ;;  %v20649_v17 = vrot.slane %v6602_v47, %v19646_v8  ;;  %v20652_v3 = vrot.slane %v7398_v54, %v19646_v8  ;;  %v365_v54 = vld [vmem:[%s19643_s10 + $0x188] sm:$0xff] }
  0x98   : > { %27547 = vst [vmem:[#allocation166_spill] sm:$0xff] %v20630_v43  ;;  %27548 = vst [vmem:[#allocation167_spill] sm:$0xff] %v20634_v59  ;;  %17825 = vmatmul.mubr.msk.bf16.gmra.mrb[32].mxu0 %vm4355_vm2, %v27549_v11  ;;  %v20655_v11 = vrot.slane %v6622_v38, %v19646_v8  ;;  %v20658_v35 = vrot.slane %v405_v4, %v19646_v8  ;;  %v16622_v52 = vpack.c.bf16 %v362_v60, %v362_v60 }
  0x99   : > { %27550 = vst [vmem:[#allocation168_spill] sm:$0xff] %v20644_v58  ;;  %17828 = vmatprep.mubr.msk.bf16.mxu0 %vm19558_vm1, %v27425_v14  ;;  %27551 = vst [vmem:[#allocation169_spill] sm:$0xff] %v20649_v17  ;;  %v20661_v49 = vrot.slane %v1359_v62, %v19646_v8  ;;  %v20665_v5 = vcombine.high %v20644_v58, %v20644_v58  ;;  %v1413_v47 = vrot.slane %v406_v2, %v19646_v8 }
  0x9a   : > { %27552 = vst [vmem:[#allocation170_spill] sm:$0xff] %v20655_v11  ;;  %27553 = vst [vmem:[#allocation171_spill] sm:$0xff] %v20658_v35  ;;  %v6651_v38 = vcombine.low %v20627_v10, %v20630_v43  ;;  %v7415_v36 = vcombine.low %v7414_v15, %v20655_v11  ;;  %v20676_v4 = vrot.slane %v20658_v35, %v19646_v8 }
  0x9b   : > { %27554 = vst [vmem:[#allocation172_spill] sm:$0xff] %v20661_v49  ;;  %27555 = vst [vmem:[#allocation173_spill] sm:$0xff] %v20665_v5  ;;  %v6668_v62 = vcombine.low %v20634_v59, %v20644_v58  ;;  %v20682_v60 = vcombine.high %v20661_v49, %v20661_v49  ;;  %v1421_v2 = vcombine.high %v1413_v47, %v1413_v47 }
  0x9c   : > { %27556 = vst [vmem:[#allocation174_spill] sm:$0xff] %v20676_v4  ;;  %v20685_v25 = vrot.slane %v1413_v47, %v19646_v8  ;;  %v6669_v43 = vcombine.low %v20661_v49, %v20665_v5  ;;  %v407_v11 = vpack.c.bf16 %v363_v22, %v363_v22  ;;  %v408_v58 = vpack.c.bf16 %v365_v54, %v364_v37 }
  0x9d   : > { %27557 = vst [vmem:[#allocation175_spill] sm:$0xff] %v20682_v60  ;;  %v20692_v10 = vrot.slane %v6668_v62, %v19646_v8  ;;  %v20695_v35 = vrot.slane %v1421_v2, %v19646_v8  ;;  %v6670_v59 = vcombine.low %v20682_v60, %v20676_v4  ;;  %v1420_v5 = vrot.slane %v16622_v52, %v19646_v8  ;;  %v366_v2 = vld [vmem:[%s19643_s10 + $0x190] sm:$0xf] }
  0x9e   : > { %27558 = vst [vmem:[#allocation176_spill] sm:$0xff] %v20685_v25  ;;  %v20700_v47 = vrot.slane %v6669_v43, %v19646_v8  ;;  %v20704_v49 = vrot.slane %v6651_v38, %v19646_v8  ;;  %v20707_v62 = vrot.slane %v407_v11, %v19646_v8  ;;  %v16623_v15 = vpack.c.bf16 %v365_v54, %v365_v54 }
  0x9f   : > { %27559 = vst [vmem:[#allocation177_spill] sm:$0xff] %v20692_v10  ;;  %27560 = vst [vmem:[#allocation178_spill] sm:$0xff] %v20695_v35  ;;  %v1476_v37 = vrot.slane %v408_v58, %v19646_v8  ;;  %v20713_v22 = vrot.slane %v7415_v36, %v19646_v8  ;;  %v20716_v43 = vrot.slane %v6670_v59, %v19646_v8 }
  0xa0   : > { %27561 = vst [vmem:[#allocation179_spill] sm:$0xff] %v20700_v47  ;;  %27562 = vst [vmem:[#allocation180_spill] sm:$0xff] %v20704_v49  ;;  %17829 = vmatmul.mubr.msk.bf16.gmra.mrb[36].mxu0 %vm4355_vm2, %v20383_v63  ;;  %v7424_v52 = vcombine.low %v20685_v25, %v20695_v35  ;;  %v1422_v38 = vcombine.high %v1420_v5, %v1420_v5  ;;  %v20724_v11 = vrot.slane %v1420_v5, %v19646_v8 }
  0xa1   : > { %27563 = vst [vmem:[#allocation181_spill] sm:$0xff] %v20707_v62  ;;  %27564 = vst [vmem:[#allocation182_spill] sm:$0xff] %v20716_v43  ;;  %17832 = vmatprep.mubr.msk.bf16.mxu0 %vm19558_vm1, %v27425_v14  ;;  %v20728_v58 = vrot.slane %v20707_v62, %v19646_v8  ;;  %v1484_v36 = vcombine.high %v1476_v37, %v1476_v37  ;;  %v20731_v54 = vrot.slane %v1476_v37, %v19646_v8 }
  0xa2   : > { %27565 = vst [vmem:[#allocation183_spill] sm:$0xff] %v20724_v11  ;;  %v6700_v59 = vcombine.low %v20692_v10, %v20700_v47  ;;  %v7431_v63 = vrot.slane %v7424_v52, %v19646_v8  ;;  %v20737_v4 = vrot.slane %v1422_v38, %v19646_v8  ;;  %v16881_v5 = vcombine.high %v20685_v25, %v20695_v35  ;;  %v369_v25 = vld [vmem:[%s19643_s10 + $0x1a8] sm:$0xf] }
  0xa3   : > { %27566 = vst [vmem:[#allocation184_spill] sm:$0xff] %v20728_v58  ;;  %27567 = vst [vmem:[#allocation185_spill] sm:$0xff] %v20731_v54  ;;  %v20742_v60 = vrot.slane %v1484_v36, %v19646_v8  ;;  %v7441_v62 = vcombine.low %v20728_v58, %v20731_v54  ;;  %v409_v29 = vpack.c.bf16 %v366_v2, %v366_v2  ;;  %v368_v58 = vld [vmem:[%s19643_s10 + $0x1a0] sm:$0xff] }
  0xa4   : > { %27568 = vst [vmem:[#allocation186_spill] sm:$0xff] %v20737_v4  ;;  %v1483_v37 = vrot.slane %v16623_v15, %v19646_v8  ;;  %v7432_v9 = vcombine.low %v20716_v43, %v7431_v63  ;;  %v6718_v52 = vcombine.low %v20724_v11, %v20737_v4  ;;  %v16882_v38 = vcombine.high %v20724_v11, %v20737_v4 }
  0xa5   : > { %27569 = vst [vmem:[#allocation187_spill] sm:$0xff] %v20742_v60  ;;  %v20753_v47 = vrot.slane %v16881_v5, %v19646_v8  ;;  %v7448_v36 = vrot.slane %v7441_v62, %v19646_v8  ;;  %v20761_v63 = vcombine.high %v20731_v54, %v20731_v54  ;;  %v20764_v15 = vrot.slane %v6700_v59, %v19646_v8 }
  0xa6   : > { %v1485_v10 = vcombine.high %v1483_v37, %v1483_v37  ;;  %v20757_v2 = vrot.slane %v1483_v37, %v19646_v8  ;;  %v20767_v43 = vrot.slane %v6718_v52, %v19646_v8  ;;  %v20770_v5 = vrot.slane %v16882_v38, %v19646_v8  ;;  %v367_v38 = vld [vmem:[%s19643_s10 + $0x198] sm:$0xff] }
  0xa7   : > { %27570 = vst [vmem:[#allocation188_spill] sm:$0xff] %v20753_v47  ;;  %27572 = vst [vmem:[#allocation190_spill] sm:$0xff] %v20761_v63  ;;  %v20774_v62 = vcombine.high %v20742_v60, %v20742_v60  ;;  %v20784_v59 = vrot.slane %v409_v29, %v19646_v8  ;;  %v6766_v52 = vcombine.low %v20742_v60, %v20761_v63 }
  0xa8   : > { %27571 = vst [vmem:[#allocation189_spill] sm:$0xff] %v20757_v2  ;;  %27573 = vst [vmem:[#allocation191_spill] sm:$0xff] %v20764_v15  ;;  %v20777_v37 = vrot.slane %v1485_v10, %v19646_v8  ;;  %v20781_v54 = vcombine.high %v20757_v2, %v20757_v2  ;;  %v27580_v4 = vcombine.low %v20415_v12, %v20403_v30 }
  0xa9   : > { %27574 = vst [vmem:[#allocation192_spill] sm:$0xff] %v20767_v43  ;;  %27575 = vst [vmem:[#allocation193_spill] sm:$0xff] %v20770_v5  ;;  %v20795_v10 = vrot.slane %v7432_v9, %v19646_v8  ;;  %v6749_v11 = vcombine.low %v20753_v47, %v20767_v43  ;;  %v7449_v29 = vcombine.low %v20770_v5, %v7448_v36  ;;  %v370_v43 = vld [vmem:[%s19643_s10 + $0x1b0] sm:$0xff]  ;;  %v371_v47 = vld [vmem:[%s19643_s10 + $0x1b8] sm:$0xff] }
  0xaa   : > { %27576 = vst [vmem:[#allocation194_spill] sm:$0xff] %v20774_v62  ;;  %27577 = vst [vmem:[#allocation195_spill] sm:$0xff] %v20777_v37  ;;  %17833 = vmatmul.mubr.msk.bf16.gmra.mrb[40].mxu0 %vm4355_vm2, %v27580_v4  ;;  %v6767_v35 = vcombine.low %v20774_v62, %v20757_v2  ;;  %v20807_v12 = vcombine.high %v20777_v37, %v20777_v37  ;;  %v20811_v9 = vrot.slane %v20784_v59, %v19646_v8 }
  0xab   : > { %27578 = vst [vmem:[#allocation196_spill] sm:$0xff] %v20781_v54  ;;  %27579 = vst [vmem:[#allocation197_spill] sm:$0xff] %v20784_v59  ;;  %17836 = vmatprep.mubr.msk.bf16.mxu0 %vm19558_vm1, %v27425_v14  ;;  %v6768_v4 = vcombine.low %v20777_v37, %v20781_v54  ;;  %v20816_v36 = vrot.slane %v6766_v52, %v19646_v8  ;;  %v20821_v5 = vrot.slane %v6749_v11, %v19646_v8 }
  0xac   : > { %27581 = vst [vmem:[#allocation198_spill] sm:$0xff] %v20807_v12  ;;  %27582 = vst [vmem:[#allocation199_spill] sm:$0xff] %v20811_v9  ;;  %v20824_v30 = vrot.slane %v7449_v29, %v19646_v8  ;;  %v20827_v2 = vrot.slane %v6767_v35, %v19646_v8  ;;  %v410_v62 = vpack.c.bf16 %v368_v58, %v367_v38 }
  0xad   : > { %27583 = vst [vmem:[#allocation200_spill] sm:$0xff] %v20816_v36  ;;  %27584 = vst [vmem:[#allocation201_spill] sm:$0xff] %v20821_v5  ;;  %v6769_v63 = vcombine.low %v20807_v12, %v20811_v9  ;;  %v20832_v54 = vrot.slane %v6768_v4, %v19646_v8  ;;  %v16624_v52 = vpack.c.bf16 %v368_v58, %v368_v58 }
  0xae   : > { %27585 = vst [vmem:[#allocation202_spill] sm:$0xff] %v20827_v2  ;;  %v411_v37 = vpack.c.bf16 %v369_v25, %v369_v25  ;;  %v6798_v11 = vcombine.low %v20816_v36, %v20827_v2  ;;  %v1539_v29 = vrot.slane %v410_v62, %v19646_v8  ;;  %v412_v60 = vpack.c.bf16 %v371_v47, %v370_v43  ;;  %v372_v2 = vld [vmem:[%s19643_s10 + $0x1c0] sm:$0xf] }
  0xaf   : > { %27586 = vst [vmem:[#allocation203_spill] sm:$0xff] %v20832_v54  ;;  %v20840_v35 = vrot.slane %v6769_v63, %v19646_v8  ;;  %v1546_v38 = vrot.slane %v16624_v52, %v19646_v8  ;;  %v16787_v58 = vpack.c.bf16 %v371_v47, %v371_v47  ;;  %v27591_v47 = vcombine.low %v20431_v26, %v20440_v31 }
  0xb0   : > { %v20844_v4 = vrot.slane %v411_v37, %v19646_v8  ;;  %v1547_v59 = vcombine.high %v1539_v29, %v1539_v29  ;;  %v20849_v9 = vrot.slane %v1539_v29, %v19646_v8  ;;  %v3077_v62 = vrot.slane %v412_v60, %v19646_v8 }
  0xb1   : > { %27587 = vst [vmem:[#allocation204_spill] sm:$0xff] %v20840_v35  ;;  %v6799_v63 = vcombine.low %v20832_v54, %v20840_v35  ;;  %v1548_v52 = vcombine.high %v1546_v38, %v1546_v38  ;;  %v20857_v37 = vrot.slane %v1546_v38, %v19646_v8  ;;  %v3084_v60 = vrot.slane %v16787_v58, %v19646_v8 }
  0xb2   : > { %27588 = vst [vmem:[#allocation205_spill] sm:$0xff] %v20844_v4  ;;  %27589 = vst [vmem:[#allocation206_spill] sm:$0xff] %v20849_v9  ;;  %17837 = vmatmul.mubr.msk.bf16.gmra.mrb[44].mxu0 %vm4355_vm2, %v27591_v47  ;;  %v20864_v29 = vrot.slane %v1547_v59, %v19646_v8  ;;  %v3085_v25 = vcombine.high %v3077_v62, %v3077_v62  ;;  %v20868_v43 = vrot.slane %v3077_v62, %v19646_v8 }
  0xb3   : > { %27590 = vst [vmem:[#allocation207_spill] sm:$0xff] %v20857_v37  ;;  %17840 = vmatprep.mubr.msk.bf16.mxu0 %vm19558_vm1, %v27425_v14  ;;  %v6806_v38 = vrot.slane %v6798_v11, %v19646_v8  ;;  %v6813_v35 = vrot.slane %v6799_v63, %v19646_v8  ;;  %v20876_v26 = vrot.slane %v1548_v52, %v19646_v8 }
  0xb4   : > { %27592 = vst [vmem:[#allocation208_spill] sm:$0xff] %v20864_v29  ;;  %27593 = vst [vmem:[#allocation209_spill] sm:$0xff] %v20868_v43  ;;  %v20880_v59 = vrot.slane %v20844_v4, %v19646_v8  ;;  %v16883_v58 = vcombine.high %v20849_v9, %v20864_v29  ;;  %v7458_v62 = vcombine.low %v20849_v9, %v20864_v29 }
  0xb5   : > { %27594 = vst [vmem:[#allocation210_spill] sm:$0xff] %v20876_v26  ;;  %v3086_v47 = vcombine.high %v3084_v60, %v3084_v60  ;;  %v20887_v54 = vrot.slane %v3084_v60, %v19646_v8  ;;  %v6817_v11 = vcombine.low %v20857_v37, %v20876_v26  ;;  %v16884_v63 = vcombine.high %v20857_v37, %v20876_v26 }
  0xb6   : > { %27595 = vst [vmem:[#allocation211_spill] sm:$0xff] %v20880_v59  ;;  %v20894_v52 = vrot.slane %v3085_v25, %v19646_v8  ;;  %v413_v36 = vpack.c.bf16 %v372_v2, %v372_v2  ;;  %v20897_v31 = vrot.slane %v16883_v58, %v19646_v8  ;;  %v7465_v4 = vrot.slane %v7458_v62, %v19646_v8 }
  0xb7   : > { %27596 = vst [vmem:[#allocation212_spill] sm:$0xff] %v20887_v54  ;;  %v20901_v29 = vrot.slane %v3086_v47, %v19646_v8  ;;  %v20905_v60 = vcombine.high %v20868_v43, %v20868_v43  ;;  %v20908_v9 = vrot.slane %v6817_v11, %v19646_v8  ;;  %v20911_v26 = vrot.slane %v16884_v63, %v19646_v8 }
  0xb8   : > { %27597 = vst [vmem:[#allocation213_spill] sm:$0xff] %v20894_v52  ;;  %27598 = vst [vmem:[#allocation214_spill] sm:$0xff] %v20897_v31  ;;  %v20915_v2 = vcombine.high %v20887_v54, %v20887_v54  ;;  %v20919_v25 = vcombine.high %v20894_v52, %v20894_v52  ;;  %v7466_v58 = vcombine.low %v7465_v4, %v20897_v31 }
  0xb9   : > { %27599 = vst [vmem:[#allocation215_spill] sm:$0xff] %v20901_v29  ;;  %27600 = vst [vmem:[#allocation216_spill] sm:$0xff] %v20905_v60  ;;  %v7475_v62 = vcombine.low %v20880_v59, %v20868_v43  ;;  %v7476_v47 = vcombine.low %v20894_v52, %v20905_v60  ;;  %v20928_v11 = vcombine.high %v20901_v29, %v20901_v29 }
  0xba   : > { %27601 = vst [vmem:[#allocation217_spill] sm:$0xff] %v20908_v9  ;;  %27602 = vst [vmem:[#allocation218_spill] sm:$0xff] %v20911_v26  ;;  %v6848_v63 = vcombine.low %v20908_v9, %v20911_v26  ;;  %v7477_v37 = vcombine.low %v20919_v25, %v20887_v54  ;;  %v7478_v12 = vcombine.low %v20901_v29, %v20915_v2  ;;  %v1889_v29 = vshll.u32 %v19765_v32, 16 }
  0xbb   : > { %27603 = vst [vmem:[#allocation219_spill] sm:$0xff] %v20915_v2  ;;  %27604 = vst [vmem:[#allocation220_spill] sm:$0xff] %v20919_v25  ;;  %v20937_v4 = vrot.slane %v413_v36, %v19646_v8  ;;  %v27607_v31 = vcombine.low %v20509_v56, %v20520_v44  ;;  %v20944_v60 = vrot.slane %v7466_v58, %v19646_v8  ;;  %v1897_v25 = vshll.u32 %v19799_v57, 16 }
  0xbc   : > { %27605 = vst [vmem:[#allocation221_spill] sm:$0xff] %v20928_v11  ;;  %v7485_v52 = vrot.slane %v7475_v62, %v19646_v8  ;;  %v20948_v26 = vrot.slane %v7476_v47, %v19646_v8  ;;  %v20952_v9 = vcombine.high %v19670_v34, %v19670_v34  ;;  %v20957_v36 = vrot.slane %v6848_v63, %v19646_v8 }
  0xbd   : > { %27606 = vst [vmem:[#allocation222_spill] sm:$0xff] %v20937_v4  ;;  %17841 = vmatmul.mubr.msk.bf16.gmra.mrb[48].mxu0 %vm4355_vm2, %v27607_v31  ;;  %v20960_v31 = vrot.slane %v7477_v37, %v19646_v8  ;;  %v20963_v56 = vrot.slane %v7478_v12, %v19646_v8  ;;  %v20967_v58 = vrot.slane %v20937_v4, %v19646_v8 }
  0xbe   : > { %27608 = vst [vmem:[#allocation223_spill] sm:$0xff] %v20948_v26  ;;  %27609 = vst [vmem:[#allocation224_spill] sm:$0xff] %v20952_v9  ;;  %17844 = vmatprep.mubr.msk.bf16.mxu0 %vm19558_vm1, %v27425_v14  ;;  %v20969_v62 = vcombine.low %v6806_v38, %v6813_v35  ;;  %v7507_v47 = vcombine.low %v7485_v52, %v20948_v26  ;;  %v20975_v63 = vcombine.high %v19687_v39, %v19687_v39 }
  0xbf   : > { %27610 = vst [vmem:[#allocation225_spill] sm:$0xff] %v20957_v36  ;;  %27611 = vst [vmem:[#allocation226_spill] sm:$0xff] %v20960_v31  ;;  %v7508_v37 = vcombine.low %v20960_v31, %v20963_v56  ;;  %v7524_v12 = vcombine.low %v20928_v11, %v20967_v58  ;;  %v20983_v4 = vcombine.high %v19690_v40, %v19690_v40  ;;  %v1828_v26 = vshrl.u32 %v19670_v34, 16 }
  0xc0   : > { %27612 = vst [vmem:[#allocation227_spill] sm:$0xff] %v20963_v56  ;;  %27613 = vst [vmem:[#allocation228_spill] sm:$0xff] %v20967_v58  ;;  %v20987_v35 = vcombine.high %v19693_v41, %v19693_v41  ;;  %v20992_v52 = vrot.slane %v7507_v47, %v19646_v8  ;;  %v1833_v38 = vshll.u32 %v19690_v40, 16  ;;  %v1836_v47 = vshrl.u32 %v19690_v40, 16 }
  0xc1   : > { %27614 = vst [vmem:[#allocation229_spill] sm:$0xff] %v20969_v62  ;;  %27615 = vst [vmem:[#allocation230_spill] sm:$0xff] %v20975_v63  ;;  %v20995_v44 = vrot.slane %v7508_v37, %v19646_v8  ;;  %v20998_v56 = vrot.slane %v7524_v12, %v19646_v8  ;;  %v1841_v31 = vshll.u32 %v20952_v9, 16  ;;  %v27619_v37 = vcombine.low %v20577_v19, %v20593_v7 }
  0xc2   : > { %27616 = vst [vmem:[#allocation231_spill] sm:$0xff] %v20983_v4  ;;  %27617 = vst [vmem:[#allocation232_spill] sm:$0xff] %v20987_v35  ;;  %v1844_v12 = vshrl.u32 %v20952_v9, 16  ;;  %v1849_v58 = vshll.u32 %v20983_v4, 16  ;;  %v1852_v11 = vshrl.u32 %v20983_v4, 16  ;;  %v1857_v34 = vshll.u32 %v19687_v39, 16 }
  0xc3   : > { %27618 = vst [vmem:[#allocation233_spill] sm:$0xff] %v20998_v56  ;;  %v1860_v40 = vshrl.u32 %v19687_v39, 16  ;;  %v1865_v19 = vshll.u32 %v19693_v41, 16  ;;  %v1873_v7 = vshll.u32 %v20975_v63, 16  ;;  %v1876_v9 = vshrl.u32 %v20975_v63, 16 }
  0xc4   : > { %v1881_v4 = vshll.u32 %v20987_v35, 16  ;;  %v1884_v2 = vshrl.u32 %v20987_v35, 16  ;;  %v27620_v39 = vmov 0  ;;  %v1901_v63 = vshrl.u32 %v19742_v16, 16 }
  0xc5   : > { %17845 = vmatmul.mubr.msk.bf16.gmra.mrb[52].mxu0 %vm4355_vm2, %v27619_v37  ;;  %v1868_v37 = vshrl.u32 %v19693_v41, 16  ;;  %v27621_v39 = vsel %vm21027_vm4, 4294967295, %v27620_v39  ;;  %v1892_v41 = vshrl.u32 %v19765_v32, 16  ;;  %v21036_v43 = vsel %vm21027_vm4, %v1828_v26, %v1833_v38 }
  0xc6   : > { %17848 = vmatprep.mubr.msk.bf16.mxu0 %vm19558_vm1, %v27425_v14  ;;  %27622 = vst [vmem:[#allocation234_spill] sm:$0xff] %v27621_v39  ;;  %v21040_v35 = vsel %vm21027_vm4, %v1836_v47, %v1841_v31  ;;  %v21044_v54 = vsel %vm21027_vm4, %v1844_v12, %v1849_v58  ;;  %v21048_v59 = vsel %vm21027_vm4, %v1852_v11, %v1857_v34  ;;  %v2052_v32 = vshll.u32 %v19894_v61, 16 }
  0xc7   : > { %v21052_v57 = vsel %vm21027_vm4, %v1860_v40, %v1865_v19  ;;  %v21056_v26 = vsel %vm21027_vm4, %v1868_v37, %v1873_v7  ;;  %v21060_v31 = vsel %vm21027_vm4, %v1876_v9, %v1881_v4  ;;  %v21064_v58 = vsel %vm21027_vm4, %v1884_v2, %v1889_v29 }
  0xc8   : > { %v7840_v34 = vcombine.low %v21036_v43, %v21040_v35  ;;  %v7841_v11 = vcombine.low %v21044_v54, %v21048_v59  ;;  %v7842_v40 = vcombine.low %v21052_v57, %v21056_v26  ;;  %v7843_v7 = vcombine.low %v21060_v31, %v21064_v58 }
  0xc9   : > { %v21076_v9 = vsel %vm21027_vm4, %v1892_v41, %v1897_v25  ;;  %v1906_v4 = vshll.u32 %v19755_v24, 16  ;;  %v1909_v29 = vshrl.u32 %v19755_v24, 16  ;;  %v1914_v2 = vshll.u32 %v19761_v27, 16  ;;  %v421_v25 = vld [vmem:[%s26638_s1 + $0xa] sm:$0x3] }
  0xca   : > { %v27623_v38 = vcombine.low %v20649_v17, %v20652_v3  ;;  %v7850_v47 = vrot.slane %v7840_v34, %v19646_v8  ;;  %v7857_v12 = vrot.slane %v7841_v11, %v19646_v8  ;;  %v7864_v19 = vrot.slane %v7842_v40, %v19646_v8 }
  0xcb   : > { %v7871_v41 = vrot.slane %v7843_v7, %v19646_v8  ;;  %v21096_v3 = vsel %vm21027_vm4, %v1901_v63, %v1906_v4  ;;  %v21100_v37 = vsel %vm21027_vm4, %v1909_v29, %v1914_v2  ;;  %v1917_v34 = vshrl.u32 %v19761_v27, 16 }
  0xcc   : > { %v1922_v11 = vshll.u32 %v19776_v45, 16  ;;  %v7872_v40 = vcombine.low %v7850_v47, %v7857_v12  ;;  %v1930_v17 = vshll.u32 %v19752_v23, 16  ;;  %v1933_v63 = vshrl.u32 %v19752_v23, 16 }
  0xcd   : > { %17849 = vmatmul.mubr.msk.bf16.gmra.mrb[56].mxu0 %vm4355_vm2, %v27623_v38  ;;  %v7873_v7 = vcombine.low %v7864_v19, %v7871_v41  ;;  %v1925_v38 = vshrl.u32 %v19776_v45, 16  ;;  %v1938_v4 = vshll.u32 %v19768_v33, 16  ;;  %v1941_v29 = vshrl.u32 %v19768_v33, 16 }
  0xce   : > { %17852 = vmatprep.mubr.msk.bf16.mxu0 %vm19558_vm1, %v27425_v14  ;;  %v21108_v16 = vsel %vm21027_vm4, %v1917_v34, %v1922_v11  ;;  %v21116_v2 = vsel %vm4419_vm0, %v421_v25, 0  ;;  %v1946_v47 = vshll.u32 %v19772_v42, 16  ;;  %v1949_v19 = vshrl.u32 %v19772_v42, 16 }
  0xcf   : > { %v21120_v45 = vsel %vm21027_vm4, %v1925_v38, %v1930_v17  ;;  %v21125_v12 = vsel %vm21027_vm4, %v1933_v63, %v1938_v4  ;;  %v1954_v41 = vshll.u32 %v19791_v53, 16  ;;  %v7889_v34 = vcombine.low %v21076_v9, %v21096_v3 }
  0xd0   : > { %v21132_v25 = vrot.slane %v7872_v40, %v19646_v8  ;;  %v21136_v17 = vsel %vm21027_vm4, %v1941_v29, %v1946_v47  ;;  %v7890_v11 = vcombine.low %v21100_v37, %v21108_v16  ;;  %v7891_v38 = vcombine.low %v21120_v45, %v21125_v12 }
  0xd1   : > { %v21143_v42 = vrot.slane %v7873_v7, %v19646_v8  ;;  %v21147_v63 = vsel %vm21027_vm4, %v1949_v19, %v1954_v41  ;;  %v7899_v40 = vrot.slane %v7889_v34, %v19646_v8  ;;  %v21152_v4 = vcombine.high %v19831_v21, %v19831_v21 }
  0xd2   : > { %v27625_v29 = vcombine.low %v20704_v49, %v20713_v22  ;;  %v7892_v47 = vcombine.low %v21136_v17, %v21147_v63  ;;  %v7906_v7 = vrot.slane %v7890_v11, %v19646_v8  ;;  %v7913_v27 = vrot.slane %v7891_v38, %v19646_v8 }
  0xd3   : > { %27624 = vst [vmem:[#allocation235_spill] sm:$0xff] %v21152_v4  ;;  %v21164_v19 = vcombine.high %v19844_v48, %v19844_v48  ;;  %v1957_v41 = vshrl.u32 %v19791_v53, 16  ;;  %v1962_v22 = vshll.u32 %v19783_v50, 16  ;;  %v1965_v34 = vshrl.u32 %v19783_v50, 16 }
  0xd4   : > { %v7920_v49 = vrot.slane %v7892_v47, %v19646_v8  ;;  %v7921_v11 = vcombine.low %v7899_v40, %v7906_v7  ;;  %v1974_v38 = vshrl.u32 %v19831_v21, 16  ;;  %v1979_v23 = vshll.u32 %v19844_v48, 16 }
  0xd5   : > { %17853 = vmatmul.mubr.msk.bf16.gmra.mrb[60].mxu0 %vm4355_vm2, %v27625_v29  ;;  %27626 = vst [vmem:[#allocation236_spill] sm:$0xff] %v21164_v19  ;;  %v1970_v29 = vshll.u32 %v19825_v13, 16  ;;  %v21177_v33 = vcombine.high %v19839_v28, %v19839_v28  ;;  %v21181_v53 = vsel %vm21027_vm4, %v1957_v41, %v1962_v22  ;;  %v1982_v24 = vshrl.u32 %v19844_v48, 16 }
  0xd6   : > { %17856 = vmatprep.mubr.msk.bf16.mxu0 %vm19558_vm1, %v27425_v14  ;;  %v1987_v50 = vshll.u32 %v21152_v4, 16  ;;  %v7922_v13 = vcombine.low %v7913_v27, %v7920_v49  ;;  %v21191_v47 = vsel %vm21027_vm4, %v1974_v38, %v1979_v23  ;;  %v1990_v7 = vshrl.u32 %v21152_v4, 16 }
  0xd7   : > { %27627 = vst [vmem:[#allocation237_spill] sm:$0xff] %v21177_v33  ;;  %v21187_v40 = vsel %vm21027_vm4, %v1965_v34, %v1970_v29  ;;  %v1995_v41 = vshll.u32 %v21164_v19, 16  ;;  %v1998_v22 = vshrl.u32 %v21164_v19, 16  ;;  %v2003_v49 = vshll.u32 %v19839_v28, 16 }
  0xd8   : > { %v21196_v21 = vsel %vm21027_vm4, %v1982_v24, %v1987_v50  ;;  %v21202_v27 = vrot.slane %v7921_v11, %v19646_v8  ;;  %v2006_v34 = vshrl.u32 %v19839_v28, 16  ;;  %v2011_v23 = vshll.u32 %v19847_v51, 16 }
  0xd9   : > { %v2014_v29 = vshrl.u32 %v19847_v51, 16  ;;  %v21209_v38 = vsel %vm21027_vm4, %v1990_v7, %v1995_v41  ;;  %v21213_v24 = vsel %vm21027_vm4, %v1998_v22, %v2003_v49  ;;  %v2019_v50 = vshll.u32 %v21177_v33, 16 }
  0xda   : > { %27628 = vst [vmem:[#allocation238_spill] sm:$0xff] %v21213_v24  ;;  %v7938_v11 = vcombine.low %v21181_v53, %v21187_v40  ;;  %v27629_v19 = vcombine.low %v20764_v15, %v20795_v10  ;;  %v21223_v28 = vrot.slane %v7922_v13, %v19646_v8  ;;  %v21227_v7 = vsel %vm21027_vm4, %v2006_v34, %v2011_v23 }
  0xdb   : > { %v7939_v41 = vcombine.low %v21191_v47, %v21196_v21  ;;  %v7940_v22 = vcombine.low %v21209_v38, %v21213_v24  ;;  %v21237_v10 = vsel %vm21027_vm4, %v2014_v29, %v2019_v50  ;;  %v2022_v49 = vshrl.u32 %v21177_v33, 16 }
  0xdc   : > { %27630 = vst [vmem:[#allocation239_spill] sm:$0xff] %v21237_v10  ;;  %v7948_v13 = vrot.slane %v7938_v11, %v19646_v8  ;;  %v7941_v23 = vcombine.low %v21227_v7, %v21237_v10  ;;  %v2035_v48 = vshll.u32 %v19863_v1, 16  ;;  %v2038_v11 = vshrl.u32 %v19863_v1, 16 }
  0xdd   : > { %17857 = vmatmul.mubr.msk.bf16.gmra.mrb[64].mxu0 %vm4355_vm2, %v27629_v19  ;;  %v21242_v19 = vcombine.high %v19847_v51, %v19847_v51  ;;  %v7955_v15 = vrot.slane %v7939_v41, %v19646_v8  ;;  %v2043_v51 = vshll.u32 %v19884_v46, 16  ;;  %v7962_v33 = vrot.slane %v7940_v22, %v19646_v8 }
  0xde   : > { %17860 = vmatprep.mubr.msk.bf16.mxu0 %vm19558_vm1, %v27425_v14  ;;  %v7969_v4 = vrot.slane %v7941_v23, %v19646_v8  ;;  %v2047_v34 = vshrl.u32 %v19878_v18, 16  ;;  %v2076_v41 = vshll.u32 %v19881_v20, 16 }
  0xdf   : > { %27631 = vst [vmem:[#allocation240_spill] sm:$0xff] %v21242_v19  ;;  %v2027_v29 = vshll.u32 %v21242_v19, 16  ;;  %v2030_v50 = vshrl.u32 %v21242_v19, 16  ;;  %v7970_v10 = vcombine.low %v7948_v13, %v7955_v15  ;;  %v2055_v19 = vshrl.u32 %v19894_v61, 16 }
  0xe0   : > { %v21272_v22 = vsel %vm21027_vm4, %v2038_v11, %v2043_v51  ;;  %v21276_v23 = vsel %vm21027_vm4, %v2047_v34, %v2052_v32  ;;  %v2060_v15 = vshll.u32 %v19898_v0, 16  ;;  %v2063_v13 = vshrl.u32 %v19898_v0, 16 }
  0xe1   : > { %v21263_v24 = vsel %vm21027_vm4, %v2022_v49, %v2027_v29  ;;  %v21268_v46 = vsel %vm21027_vm4, %v2030_v50, %v2035_v48  ;;  %27633 = vst [vmem:[#allocation242_spill] sm:$0xff] %v21276_v23  ;;  %v2068_v49 = vshll.u32 %v19918_v6, 16  ;;  %v2071_v29 = vshrl.u32 %v19918_v6, 16 }
  0xe2   : > { %27632 = vst [vmem:[#allocation241_spill] sm:$0xff] %v21268_v46  ;;  %v27634_v48 = vcombine.low %v20821_v5, %v20824_v30  ;;  %v7971_v51 = vcombine.low %v7962_v33, %v7969_v4  ;;  %v21289_v32 = vsel %vm21027_vm4, %v2055_v19, %v2060_v15  ;;  %v2079_v34 = vshrl.u32 %v19881_v20, 16  ;;  %v27639_v15 = vld [vmem:[#allocation51_spill] sm:$0xff] }
  0xe3   : > { %27635 = vst [vmem:[#allocation243_spill] sm:$0xff] %v21289_v32  ;;  %v2084_v0 = vshll.u32 %v19958_v55, 16  ;;  %v21297_v6 = vsel %vm21027_vm4, %v2063_v13, %v2068_v49  ;;  %v21301_v30 = vsel %vm21027_vm4, %v2071_v29, %v2076_v41  ;;  %v7987_v33 = vcombine.low %v21263_v24, %v21268_v46  ;;  %v27643_v5 = vld [vmem:[#allocation47_spill] sm:$0xff] }
  0xe4   : > { %27636 = vst [vmem:[#allocation244_spill] sm:$0xff] %v21297_v6  ;;  %27637 = vst [vmem:[#allocation245_spill] sm:$0xff] %v21301_v30  ;;  %v7988_v4 = vcombine.low %v21272_v22, %v21276_v23  ;;  %v21308_v19 = vrot.slane %v7970_v10, %v19646_v8  ;;  %v7989_v11 = vcombine.low %v21289_v32, %v21297_v6  ;;  %v27641_v10 = vld [vmem:[#allocation52_spill] sm:$0xff]  ;;  %v2092_v20 = vshll.u32 %v27643_v5, 16 }
  0xe5   : > { %17861 = vmatmul.mubr.msk.bf16.gmra.mrb[68].mxu0 %vm4355_vm2, %v27634_v48  ;;  %v21312_v50 = vsel %vm21027_vm4, %v2079_v34, %v2084_v0  ;;  %v21318_v41 = vcombine.high %v27639_v15, %v27639_v15  ;;  %v7997_v49 = vrot.slane %v7987_v33, %v19646_v8  ;;  %v21326_v48 = vcombine.high %v27641_v10, %v27641_v10  ;;  %v27646_v32 = vld [vmem:[#allocation64_spill] sm:$0xff] }
  0xe6   : > { %17864 = vmatprep.mubr.msk.bf16.mxu0 %vm19558_vm1, %v27425_v14  ;;  %27638 = vst [vmem:[#allocation246_spill] sm:$0xff] %v21312_v50  ;;  %v7990_v13 = vcombine.low %v21301_v30, %v21312_v50  ;;  %v8004_v29 = vrot.slane %v7988_v4, %v19646_v8  ;;  %v8011_v34 = vrot.slane %v7989_v11, %v19646_v8  ;;  %v2087_v0 = vshrl.u32 %v19958_v55, 16  ;;  %v27644_v50 = vld [vmem:[#allocation49_spill] sm:$0xff]  ;;  %v27645_v30 = vld [vmem:[#allocation50_spill] sm:$0xff] }
  0xe7   : > { %27640 = vst [vmem:[#allocation247_spill] sm:$0xff] %v21318_v41  ;;  %27642 = vst [vmem:[#allocation248_spill] sm:$0xff] %v21326_v48  ;;  %v2095_v18 = vshrl.u32 %v27643_v5, 16  ;;  %v2100_v6 = vshll.u32 %v27644_v50, 16  ;;  %v2103_v33 = vshrl.u32 %v27644_v50, 16  ;;  %v21336_v4 = vrot.slane %v7971_v51, %v19646_v8 }
  0xe8   : > { %v8018_v61 = vrot.slane %v7990_v13, %v19646_v8  ;;  %v8019_v1 = vcombine.low %v7997_v49, %v8004_v29  ;;  %v2108_v23 = vshll.u32 %v27645_v30, 16  ;;  %v2111_v11 = vshrl.u32 %v27645_v30, 16 }
  0xe9   : > { %v2116_v55 = vshll.u32 %v27646_v32, 16  ;;  %v21343_v5 = vsel %vm21027_vm4, %v2087_v0, %v2092_v20  ;;  %v21347_v13 = vsel %vm21027_vm4, %v2095_v18, %v2100_v6  ;;  %v2120_v50 = vshrl.u32 %v27639_v15, 16  ;;  %v27651_v0 = vld [vmem:[#allocation53_spill] sm:$0xff] }
  0xea   : > { %v8020_v46 = vcombine.low %v8011_v34, %v8018_v61  ;;  %27647 = vst [vmem:[#allocation47_spill] sm:$0xff] %v21347_v13  ;;  %v21354_v51 = vsel %vm21027_vm4, %v2103_v33, %v2108_v23  ;;  %v2125_v20 = vshll.u32 %v27641_v10, 16  ;;  %v2128_v49 = vshrl.u32 %v27641_v10, 16 }
  0xeb   : > { %27648 = vst [vmem:[#allocation49_spill] sm:$0xff] %v21354_v51  ;;  %v21358_v61 = vsel %vm21027_vm4, %v2111_v11, %v2116_v55  ;;  %v21365_v18 = vrot.slane %v8019_v1, %v19646_v8  ;;  %v2133_v6 = vshll.u32 %v21318_v41, 16  ;;  %v2136_v29 = vshrl.u32 %v21318_v41, 16 }
  0xec   : > { %27649 = vst [vmem:[#allocation249_spill] sm:$0xff] %v21358_v61  ;;  %v2141_v23 = vshll.u32 %v21326_v48, 16  ;;  %v21372_v55 = vsel %vm21027_vm4, %v2120_v50, %v2125_v20  ;;  %v2144_v34 = vshrl.u32 %v21326_v48, 16  ;;  %v2149_v33 = vshll.u32 %v27651_v0, 16 }
  0xed   : > { %17865 = vmatmul.mubr.msk.bf16.gmra.mrb[72].mxu0 %vm4355_vm2, %v20969_v62  ;;  %27650 = vst [vmem:[#allocation250_spill] sm:$0xff] %v21372_v55  ;;  %v8036_v11 = vcombine.low %v21343_v5, %v21347_v13  ;;  %v21379_v1 = vrot.slane %v8020_v46, %v19646_v8  ;;  %v21383_v62 = vsel %vm21027_vm4, %v2128_v49, %v2133_v6  ;;  %v27685_v13 = vld [vmem:[#allocation72_spill] sm:$0xff] }
  0xee   : > { %17868 = vmatprep.mubr.msk.bf16.mxu0 %vm19558_vm1, %v27425_v14  ;;  %27652 = vst [vmem:[#allocation251_spill] sm:$0xff] %v21383_v62  ;;  %v21387_v15 = vsel %vm21027_vm4, %v2136_v29, %v2141_v23  ;;  %v8037_v50 = vcombine.low %v21354_v51, %v21358_v61  ;;  %v21393_v20 = vsel %vm21027_vm4, %v2144_v34, %v2149_v33  ;;  %v27656_v23 = vld [vmem:[#allocation57_spill] sm:$0xff]  ;;  %v27658_v34 = vld [vmem:[#allocation54_spill] sm:$0xff]  ;;  %v2254_v51 = vshll.u32 %v27685_v13, 16 }
  0xef   : > { %27653 = vst [vmem:[#allocation252_spill] sm:$0xff] %v21387_v15  ;;  %27654 = vst [vmem:[#allocation253_spill] sm:$0xff] %v21393_v20  ;;  %v8038_v30 = vcombine.low %v21372_v55, %v21383_v62  ;;  %v8046_v46 = vrot.slane %v8036_v11, %v19646_v8  ;;  %v21400_v49 = vcombine.high %v27651_v0, %v27651_v0  ;;  %v2152_v11 = vshrl.u32 %v27651_v0, 16 }
  0xf0   : > { %v8039_v6 = vcombine.low %v21387_v15, %v21393_v20  ;;  %v8053_v29 = vrot.slane %v8037_v50, %v19646_v8  ;;  %v21407_v32 = vcombine.high %v27656_v23, %v27656_v23  ;;  %v1635_v33 = vcombine.high %v27658_v34, %v27658_v34 }
  0xf1   : > { %27655 = vst [vmem:[#allocation254_spill] sm:$0xff] %v21400_v49  ;;  %v8060_v48 = vrot.slane %v8038_v30, %v19646_v8  ;;  %v2157_v10 = vshll.u32 %v27656_v23, 16  ;;  %v2160_v41 = vshrl.u32 %v27656_v23, 16  ;;  %v2165_v15 = vshll.u32 %v21400_v49, 16 }
  0xf2   : > { %27657 = vst [vmem:[#allocation255_spill] sm:$0xff] %v21407_v32  ;;  %v8067_v62 = vrot.slane %v8039_v6, %v19646_v8  ;;  %v8068_v20 = vcombine.low %v8046_v46, %v8053_v29  ;;  %v21417_v50 = vrot.slane %v1635_v33, %v19646_v8  ;;  %v27660_v61 = vcombine.low %v20944_v60, %v20957_v36 }
  0xf3   : > { %v21426_v30 = vsel %vm21027_vm4, %v2152_v11, %v2157_v10  ;;  %v2168_v34 = vshrl.u32 %v21400_v49, 16  ;;  %v2173_v23 = vshll.u32 %v21407_v32, 16  ;;  %v2176_v46 = vshrl.u32 %v21407_v32, 16  ;;  %v27665_v32 = vld [vmem:[#allocation60_spill] sm:$0xff] }
  0xf4   : > { %27659 = vst [vmem:[#allocation54_spill] sm:$0xff] %v21417_v50  ;;  %27661 = vst [vmem:[#allocation256_spill] sm:$0xff] %v21426_v30  ;;  %v8069_v6 = vcombine.low %v8060_v48, %v8067_v62  ;;  %v21434_v29 = vrot.slane %v8068_v20, %v19646_v8  ;;  %v21438_v60 = vsel %vm21027_vm4, %v2160_v41, %v2165_v15  ;;  %v2189_v36 = vshll.u32 %v21417_v50, 16  ;;  %v27667_v15 = vld [vmem:[#allocation61_spill] sm:$0xff] }
  0xf5   : > { %17869 = vmatmul.mubr.msk.bf16.gmra.mrb[76].mxu0 %vm4355_vm2, %v27660_v61  ;;  %27662 = vst [vmem:[#allocation257_spill] sm:$0xff] %v21438_v60  ;;  %v27663_v61 = vld [vmem:[#allocation58_spill] sm:$0xff]  ;;  %v21443_v33 = vsel %vm21027_vm4, %v2168_v34, %v2173_v23  ;;  %v2193_v49 = vshrl.u32 %v27665_v32, 16  ;;  %v2198_v41 = vshll.u32 %v27667_v15, 16  ;;  %v2201_v20 = vshrl.u32 %v27667_v15, 16 }
  0xf6   : > { %17872 = vmatprep.mubr.msk.bf16.mxu0 %vm19558_vm1, %v27425_v14  ;;  %v2181_v10 = vshll.u32 %v27663_v61, 16  ;;  %27664 = vst [vmem:[#allocation258_spill] sm:$0xff] %v21443_v33  ;;  %v2184_v11 = vshrl.u32 %v27663_v61, 16  ;;  %v21449_v62 = vrot.slane %v8069_v6, %v19646_v8  ;;  %v27669_v34 = vld [vmem:[#allocation62_spill] sm:$0xff] }
  0xf7   : > { %v2206_v61 = vshll.u32 %v27669_v34, 16  ;;  %v2209_v50 = vshrl.u32 %v27669_v34, 16  ;;  %v27670_v32 = vld [vmem:[#allocation66_spill] sm:$0xff] }
  0xf8   : > { %v21453_v48 = vsel %vm21027_vm4, %v2176_v46, %v2181_v10  ;;  %v21459_v23 = vsel %vm21027_vm4, %v2184_v11, %v2189_v36  ;;  %v2214_v0 = vshll.u32 %v27670_v32, 16  ;;  %v21468_v46 = vsel %vm21027_vm4, %v2193_v49, %v2198_v41 }
  0xf9   : > { %27666 = vst [vmem:[#allocation259_spill] sm:$0xff] %v21453_v48  ;;  %27668 = vst [vmem:[#allocation260_spill] sm:$0xff] %v21459_v23  ;;  %v8085_v10 = vcombine.low %v21426_v30, %v21438_v60  ;;  %v8086_v36 = vcombine.low %v21443_v33, %v21453_v48  ;;  %v21478_v34 = vsel %vm21027_vm4, %v2201_v20, %v2206_v61  ;;  %v27674_v60 = vld [vmem:[#allocation67_spill] sm:$0xff]  ;;  %v27676_v20 = vld [vmem:[#allocation70_spill] sm:$0xff] }
  0xfa   : > { %27671 = vst [vmem:[#allocation62_spill] sm:$0xff] %v21468_v46  ;;  %27672 = vst [vmem:[#allocation66_spill] sm:$0xff] %v21478_v34  ;;  %v21482_v6 = vsel %vm21027_vm4, %v2209_v50, %v2214_v0  ;;  %v8087_v49 = vcombine.low %v21459_v23, %v21468_v46  ;;  %v1643_v11 = vcombine.high %v27674_v60, %v27674_v60  ;;  %v2217_v50 = vshrl.u32 %v27670_v32, 16 }
  0xfb   : > { %27673 = vst [vmem:[#allocation261_spill] sm:$0xff] %v21482_v6  ;;  %v8088_v41 = vcombine.low %v21478_v34, %v21482_v6  ;;  %v8095_v15 = vrot.slane %v8085_v10, %v19646_v8  ;;  %v8102_v48 = vrot.slane %v8086_v36, %v19646_v8  ;;  %v27675_v61 = vcombine.low %v20992_v52, %v20995_v44  ;;  %v27678_v52 = vld [vmem:[#allocation71_spill] sm:$0xff]  ;;  %v27681_v34 = vld [vmem:[#allocation73_spill] sm:$0xff] }
  0xfc   : > { %v2222_v46 = vshll.u32 %v27676_v20, 16  ;;  %v2225_v6 = vshrl.u32 %v27676_v20, 16  ;;  %v8109_v10 = vrot.slane %v8087_v49, %v19646_v8  ;;  %v21506_v44 = vrot.slane %v1643_v11, %v19646_v8 }
  0xfd   : > { %17873 = vmatmul.mubr.msk.bf16.gmra.mrb[80].mxu0 %vm4355_vm2, %v27675_v61  ;;  %v8116_v60 = vrot.slane %v8088_v41, %v19646_v8  ;;  %v2230_v36 = vshll.u32 %v27678_v52, 16  ;;  %v27679_v61 = vld [vmem:[#allocation75_spill] sm:$0xff]  ;;  %v2233_v32 = vshrl.u32 %v27678_v52, 16  ;;  %v2238_v20 = vshll.u32 %v27681_v34, 16  ;;  %v27683_v41 = vld [vmem:[#allocation74_spill] sm:$0xff] }
  0xfe   : > { %17876 = vmatprep.mubr.msk.bf16.mxu0 %vm19558_vm1, %v27425_v14  ;;  %27677 = vst [vmem:[#allocation67_spill] sm:$0xff] %v21506_v44  ;;  %v21511_v0 = vcombine.high %v27679_v61, %v27679_v61  ;;  %v2241_v23 = vshrl.u32 %v27681_v34, 16  ;;  %v8117_v33 = vcombine.low %v8095_v15, %v8102_v48  ;;  %v21518_v49 = vsel %vm21027_vm4, %v2217_v50, %v2222_v46 }
  0xff   : > { %v21522_v11 = vsel %vm21027_vm4, %v2225_v6, %v2230_v36  ;;  %v2246_v30 = vshll.u32 %v27683_v41, 16  ;;  %v21527_v55 = vsel %vm21027_vm4, %v2233_v32, %v2238_v20  ;;  %v2249_v52 = vshrl.u32 %v27683_v41, 16  ;;  %v27688_v20 = vld [vmem:[#allocation78_spill] sm:$0xff] }
 0x100   : > { %27680 = vst [vmem:[#allocation262_spill] sm:$0xff] %v21511_v0  ;;  %27682 = vst [vmem:[#allocation73_spill] sm:$0xff] %v21522_v11  ;;  %v2257_v48 = vshrl.u32 %v27685_v13, 16  ;;  %v8118_v15 = vcombine.low %v8109_v10, %v8116_v60  ;;  %v2262_v6 = vshll.u32 %v21506_v44, 16  ;;  %v2266_v34 = vshrl.u32 %v27679_v61, 16  ;;  %v27698_v44 = vld [vmem:[#allocation79_spill] sm:$0xff] }
 0x101   : > { %27684 = vst [vmem:[#allocation74_spill] sm:$0xff] %v21527_v55  ;;  %v21534_v46 = vsel %vm21027_vm4, %v2241_v23, %v2246_v30  ;;  %v21540_v50 = vsel %vm21027_vm4, %v2249_v52, %v2254_v51  ;;  %v2271_v36 = vshll.u32 %v27688_v20, 16  ;;  %v2274_v32 = vshrl.u32 %v27688_v20, 16 }
 0x102   : > { %27686 = vst [vmem:[#allocation263_spill] sm:$0xff] %v21534_v46  ;;  %27687 = vst [vmem:[#allocation264_spill] sm:$0xff] %v21540_v50  ;;  %v2279_v41 = vshll.u32 %v21511_v0, 16  ;;  %v21546_v10 = vrot.slane %v8117_v33, %v19646_v8  ;;  %v21550_v30 = vsel %vm21027_vm4, %v2257_v48, %v2262_v6  ;;  %v8134_v23 = vcombine.low %v21518_v49, %v21522_v11  ;;  %v27693_v6 = vld [vmem:[#allocation81_spill] sm:$0xff] }
 0x103   : > { %27689 = vst [vmem:[#allocation265_spill] sm:$0xff] %v21550_v30  ;;  %v8135_v51 = vcombine.low %v21527_v55, %v21534_v46  ;;  %v27690_v60 = vrot.slane %v20998_v56, %v19646_v8  ;;  %v21562_v52 = vsel %vm21027_vm4, %v2266_v34, %v2271_v36  ;;  %v8136_v48 = vcombine.low %v21540_v50, %v21550_v30  ;;  %v27696_v56 = vld [vmem:[#allocation84_spill] sm:$0xff] }
 0x104   : > { %27691 = vst [vmem:[#allocation266_spill] sm:$0xff] %v21562_v52  ;;  %v21566_v33 = vsel %vm21027_vm4, %v2274_v32, %v2279_v41  ;;  %v21572_v61 = vcombine.high %v27693_v6, %v27693_v6  ;;  %v8144_v34 = vrot.slane %v8134_v23, %v19646_v8  ;;  %v21582_v32 = vcombine.high %v27688_v20, %v27688_v20 }
 0x105   : > { %17877 = vmatmul.mubr.msk.bf16.gmra.mrb[84].mxu0 %vm4355_vm2, %v27690_v60  ;;  %27692 = vst [vmem:[#allocation267_spill] sm:$0xff] %v21566_v33  ;;  %v8137_v60 = vcombine.low %v21562_v52, %v21566_v33  ;;  %v8151_v36 = vrot.slane %v8135_v51, %v19646_v8  ;;  %v8158_v41 = vrot.slane %v8136_v48, %v19646_v8  ;;  %v2282_v46 = vshrl.u32 %v21511_v0, 16 }
 0x106   : > { %27694 = vst [vmem:[#allocation268_spill] sm:$0xff] %v21572_v61  ;;  %17882 = vmatprep.mubr.msk.bf16.mxu0 %vm19558_vm1, %v27425_v14  ;;  %27695 = vst [vmem:[#allocation269_spill] sm:$0xff] %v21582_v32  ;;  %v21587_v13 = vcombine.high %v27696_v56, %v27696_v56  ;;  %v1651_v30 = vcombine.high %v27698_v44, %v27698_v44  ;;  %v2287_v51 = vshll.u32 %v21582_v32, 16  ;;  %v2290_v52 = vshrl.u32 %v21582_v32, 16 }
 0x107   : > { %v8165_v33 = vrot.slane %v8137_v60, %v19646_v8  ;;  %v8166_v23 = vcombine.low %v8144_v34, %v8151_v36  ;;  %v2295_v48 = vshll.u32 %v27693_v6, 16  ;;  %v2298_v50 = vshrl.u32 %v27693_v6, 16 }
 0x108   : > { %27697 = vst [vmem:[#allocation270_spill] sm:$0xff] %v21587_v13  ;;  %v21596_v20 = vrot.slane %v1651_v30, %v19646_v8  ;;  %v2303_v11 = vshll.u32 %v27696_v56, 16  ;;  %v21602_v44 = vrot.slane %v8118_v15, %v19646_v8  ;;  %v2306_v34 = vshrl.u32 %v27696_v56, 16 }
 0x109   : > { %v8167_v0 = vcombine.low %v8158_v41, %v8165_v33  ;;  %v21605_v60 = vrot.slane %v8166_v23, %v19646_v8  ;;  %v21610_v36 = vsel %vm21027_vm4, %v2282_v46, %v2287_v51  ;;  %v21614_v30 = vsel %vm21027_vm4, %v2290_v52, %v2295_v48  ;;  %v27703_v23 = vld [vmem:[#allocation83_spill] sm:$0xff] }
 0x10a   : > { %27699 = vst [vmem:[#allocation79_spill] sm:$0xff] %v21596_v20  ;;  %27700 = vst [vmem:[#allocation271_spill] sm:$0xff] %v21610_v36  ;;  %v2311_v32 = vshll.u32 %v21572_v61, 16  ;;  %v2314_v6 = vshrl.u32 %v21572_v61, 16  ;;  %v21620_v15 = vsel %vm21027_vm4, %v2298_v50, %v2303_v11  ;;  %v2319_v33 = vshll.u32 %v21587_v13, 16  ;;  %v27706_v50 = vld [vmem:[#allocation85_spill] sm:$0xff] }
 0x10b   : > { %27701 = vst [vmem:[#allocation272_spill] sm:$0xff] %v21614_v30  ;;  %27702 = vst [vmem:[#allocation273_spill] sm:$0xff] %v21620_v15  ;;  %v2322_v41 = vshrl.u32 %v21587_v13, 16  ;;  %v2327_v56 = vshll.u32 %v27703_v23, 16  ;;  %v27704_v46 = vcombine.low %v21132_v25, %v21143_v42  ;;  %v2330_v51 = vshrl.u32 %v27703_v23, 16 }
 0x10c   : > { %v21631_v52 = vsel %vm21027_vm4, %v2306_v34, %v2311_v32  ;;  %v2335_v11 = vshll.u32 %v21596_v20, 16  ;;  %v2339_v48 = vshrl.u32 %v27706_v50, 16  ;;  %v21640_v13 = vrot.slane %v8167_v0, %v19646_v8  ;;  %v27709_v32 = vld [vmem:[#allocation88_spill] sm:$0xff] }
 0x10d   : > { %17883 = vmatmul.mubr.msk.bf16.vlgmr.msra.gmra.mrb[88].mxu0 %vm4355_vm2, %v27704_v46  ;;  %27705 = vst [vmem:[#allocation274_spill] sm:$0xff] %v21631_v52  ;;  %v21644_v25 = vsel %vm21027_vm4, %v2314_v6, %v2319_v33  ;;  %v21648_v42 = vsel %vm21027_vm4, %v2322_v41, %v2327_v56  ;;  %v2344_v34 = vshll.u32 %v27709_v32, 16  ;;  %v8184_v0 = vcombine.low %v21620_v15, %v21631_v52  ;;  %v6979_v33 = vpop.f32.mrb[0].mxu0  ;;  %v27712_v41 = vld [vmem:[#allocation96_spill] sm:$0xff] }
 0x10e   : > { %17967 = vmatpush3.bf16.msra.mxu0 %v21116_v2  ;;  %17886 = vmatprep.mubr.msk.bf16.mxu0 %vm19558_vm1, %v27425_v14  ;;  %27707 = vst [vmem:[#allocation275_spill] sm:$0xff] %v21644_v25  ;;  %27708 = vst [vmem:[#allocation276_spill] sm:$0xff] %v21648_v42  ;;  %v21653_v46 = vsel %vm21027_vm4, %v2330_v51, %v2335_v11  ;;  %v8183_v2 = vcombine.low %v21610_v36, %v21614_v30  ;;  %v2347_v11 = vshrl.u32 %v27709_v32, 16  ;;  %v27713_v50 = vld [vmem:[#allocation92_spill] sm:$0xff]  ;;  %v17712_v23 = vpop.f32.mrb[1].mxu0 }
 0x10f   : > { %27710 = vst [vmem:[#allocation277_spill] sm:$0xff] %v21653_v46  ;;  %v8185_v6 = vcombine.low %v21644_v25, %v21648_v42  ;;  %18052 = vmatprep.subr.bf16.mxu0 %v27425_v14  ;;  %v21664_v56 = vsel %vm21027_vm4, %v2339_v48, %v2344_v34  ;;  %v1659_v51 = vcombine.high %v27712_v41, %v27712_v41  ;;  %v2352_v20 = vshll.u32 %v27713_v50, 16  ;;  %v6982_v48 = vpop.f32.mrb[2].mxu0  ;;  %v27714_v25 = vld [vmem:[#allocation94_spill] sm:$0xff]  ;;  %v27718_v34 = vld [vmem:[#allocation93_spill] sm:$0xff] }
 0x110   : > { %27711 = vst [vmem:[#allocation278_spill] sm:$0xff] %v21664_v56  ;;  %v8186_v42 = vcombine.low %v21653_v46, %v21664_v56  ;;  %v8193_v33 = vrot.slane %v8183_v2, %v19646_v8  ;;  %v8200_v52 = vrot.slane %v8184_v0, %v19646_v8  ;;  %v2355_v32 = vshrl.u32 %v27713_v50, 16  ;;  %v17713_v30 = vpop.f32.mrb[3].mxu0  ;;  %v27716_v56 = vld [vmem:[#allocation91_spill] sm:$0xff] }
 0x111   : > { %v8207_v41 = vrot.slane %v8185_v6, %v19646_v8  ;;  %v2360_v23 = vshll.u32 %v27714_v25, 16  ;;  %v21683_v15 = vrot.slane %v1659_v51, %v19646_v8  ;;  %v2363_v2 = vshrl.u32 %v27714_v25, 16  ;;  %v27722_v51 = vld [vmem:[#allocation95_spill] sm:$0xff] }
 0x112   : > { %v8214_v61 = vrot.slane %v8186_v42, %v19646_v8  ;;  %v2368_v0 = vshll.u32 %v27716_v56, 16  ;;  %v21689_v48 = vsel %vm21027_vm4, %v2347_v11, %v2352_v20  ;;  %v2371_v6 = vshrl.u32 %v27716_v56, 16 }
 0x113   : > { %27715 = vst [vmem:[#allocation96_spill] sm:$0xff] %v21683_v15  ;;  %27717 = vst [vmem:[#allocation92_spill] sm:$0xff] %v21689_v48  ;;  %v2376_v50 = vshll.u32 %v27718_v34, 16  ;;  %v2379_v46 = vshrl.u32 %v27718_v34, 16  ;;  %v27719_v30 = vcombine.low %v21202_v27, %v21223_v28  ;;  %v8215_v42 = vcombine.low %v8193_v33, %v8200_v52  ;;  %v27724_v27 = vld [vmem:[#allocation97_spill] sm:$0xff] }
 0x114   : > { %v21700_v25 = vsel %vm21027_vm4, %v2355_v32, %v2360_v23  ;;  %v21704_v20 = vsel %vm21027_vm4, %v2363_v2, %v2368_v0  ;;  %v2384_v11 = vshll.u32 %v27722_v51, 16  ;;  %v2387_v28 = vshrl.u32 %v27722_v51, 16  ;;  %v27726_v2 = vld [vmem:[#allocation98_spill] sm:$0xff] }
 0x115   : > { %17887 = vmatmul.mubr.msk.bf16.gmra.mrb[4].mxu0 %vm4355_vm2, %v27719_v30  ;;  %27720 = vst [vmem:[#allocation94_spill] sm:$0xff] %v21700_v25  ;;  %27721 = vst [vmem:[#allocation279_spill] sm:$0xff] %v21704_v20  ;;  %v21711_v56 = vsel %vm21027_vm4, %v2371_v6, %v2376_v50  ;;  %v2392_v52 = vshll.u32 %v27724_v27, 16  ;;  %v2395_v32 = vshrl.u32 %v27724_v27, 16  ;;  %v8216_v33 = vcombine.low %v8207_v41, %v8214_v61 }
 0x116   : > { %17890 = vmatprep.mubr.msk.bf16.mxu0 %vm19558_vm1, %v27425_v14  ;;  %27723 = vst [vmem:[#allocation95_spill] sm:$0xff] %v21711_v56  ;;  %v21718_v23 = vsel %vm21027_vm4, %v2379_v46, %v2384_v11  ;;  %v2400_v0 = vshll.u32 %v27726_v2, 16  ;;  %v2403_v30 = vshrl.u32 %v27726_v2, 16  ;;  %v2408_v6 = vshll.u32 %v21683_v15, 16  ;;  %v27729_v11 = vld [vmem:[#allocation105_spill] sm:$0xff]  ;;  %v27732_v2 = vld [vmem:[#allocation106_spill] sm:$0xff] }
 0x117   : > { %27725 = vst [vmem:[#allocation97_spill] sm:$0xff] %v21718_v23  ;;  %v21724_v34 = vsel %vm21027_vm4, %v2387_v28, %v2392_v52  ;;  %v8232_v50 = vcombine.low %v21689_v48, %v21700_v25  ;;  %v8233_v61 = vcombine.low %v21704_v20, %v21711_v56  ;;  %v21732_v41 = vrot.slane %v8215_v42, %v19646_v8 }
 0x118   : > { %27727 = vst [vmem:[#allocation280_spill] sm:$0xff] %v21724_v34  ;;  %v21736_v46 = vsel %vm21027_vm4, %v2395_v32, %v2400_v0  ;;  %v8234_v51 = vcombine.low %v21718_v23, %v21724_v34  ;;  %v21742_v28 = vcombine.high %v27729_v11, %v27729_v11  ;;  %v21746_v27 = vsel %vm21027_vm4, %v2403_v30, %v2408_v6  ;;  %v27734_v34 = vld [vmem:[#allocation107_spill] sm:$0xff]  ;;  %v27736_v23 = vld [vmem:[#allocation108_spill] sm:$0xff] }
 0x119   : > { %27728 = vst [vmem:[#allocation281_spill] sm:$0xff] %v21736_v46  ;;  %27731 = vst [vmem:[#allocation283_spill] sm:$0xff] %v21746_v27  ;;  %v8242_v52 = vrot.slane %v8232_v50, %v19646_v8  ;;  %v8249_v42 = vrot.slane %v8233_v61, %v19646_v8  ;;  %v21752_v15 = vcombine.high %v27732_v2, %v27732_v2  ;;  %v2412_v50 = vshrl.u32 %v27729_v11, 16 }
 0x11a   : > { %27730 = vst [vmem:[#allocation282_spill] sm:$0xff] %v21742_v28  ;;  %v8235_v32 = vcombine.low %v21736_v46, %v21746_v27  ;;  %v8256_v0 = vrot.slane %v8234_v51, %v19646_v8  ;;  %v21759_v56 = vcombine.high %v27734_v34, %v27734_v34  ;;  %v21763_v30 = vcombine.high %v27736_v23, %v27736_v23 }
 0x11b   : > { %27733 = vst [vmem:[#allocation284_spill] sm:$0xff] %v21752_v15  ;;  %v8264_v6 = vcombine.low %v8242_v52, %v8249_v42  ;;  %v2417_v61 = vshll.u32 %v27734_v34, 16  ;;  %v2420_v25 = vshrl.u32 %v27734_v34, 16  ;;  %v27738_v27 = vcombine.low %v21308_v19, %v21336_v4 }
 0x11c   : > { %27735 = vst [vmem:[#allocation285_spill] sm:$0xff] %v21759_v56  ;;  %27737 = vst [vmem:[#allocation286_spill] sm:$0xff] %v21763_v30  ;;  %v8263_v51 = vrot.slane %v8235_v32, %v19646_v8  ;;  %v2425_v46 = vshll.u32 %v21742_v28, 16  ;;  %v2428_v20 = vshrl.u32 %v21742_v28, 16  ;;  %v2433_v48 = vshll.u32 %v21759_v56, 16 }
 0x11d   : > { %17891 = vmatmul.mubr.msk.bf16.gmra.mrb[8].mxu0 %vm4355_vm2, %v27738_v27  ;;  %v21779_v52 = vrot.slane %v8216_v33, %v19646_v8  ;;  %v21783_v42 = vsel %vm21027_vm4, %v2412_v50, %v2417_v61  ;;  %v2436_v19 = vshrl.u32 %v21759_v56, 16  ;;  %v2441_v4 = vshll.u32 %v27732_v2, 16 }
 0x11e   : > { %17894 = vmatprep.mubr.msk.bf16.mxu0 %vm19558_vm1, %v27425_v14  ;;  %27739 = vst [vmem:[#allocation287_spill] sm:$0xff] %v21783_v42  ;;  %v8265_v27 = vcombine.low %v8256_v0, %v8263_v51  ;;  %v21789_v32 = vsel %vm21027_vm4, %v2420_v25, %v2425_v46  ;;  %v21793_v11 = vsel %vm21027_vm4, %v2428_v20, %v2433_v48  ;;  %v2444_v33 = vshrl.u32 %v27732_v2, 16  ;;  %v417_v46 = vld [vmem:[%s26638_s1 + $0x2] sm:$0x3] }
 0x11f   : > { %27740 = vst [vmem:[#allocation288_spill] sm:$0xff] %v21789_v32  ;;  %27741 = vst [vmem:[#allocation289_spill] sm:$0xff] %v21793_v11  ;;  %v21798_v34 = vsel %vm21027_vm4, %v2436_v19, %v2441_v4  ;;  %v2449_v50 = vshll.u32 %v27736_v23, 16  ;;  %v2452_v61 = vshrl.u32 %v27736_v23, 16  ;;  %v2457_v0 = vshll.u32 %v21752_v15, 16 }
 0x120   : > { %27742 = vst [vmem:[#allocation290_spill] sm:$0xff] %v21798_v34  ;;  %v21804_v51 = vrot.slane %v8264_v6, %v19646_v8  ;;  %v2460_v25 = vshrl.u32 %v21752_v15, 16  ;;  %v2465_v48 = vshll.u32 %v21763_v30, 16  ;;  %v2468_v20 = vshrl.u32 %v21763_v30, 16  ;;  %v27745_v6 = vld [vmem:[#allocation110_spill] sm:$0xff] }
 0x121   : > { %v21814_v19 = vsel %vm21027_vm4, %v2444_v33, %v2449_v50  ;;  %v21818_v4 = vsel %vm21027_vm4, %v2452_v61, %v2457_v0  ;;  %v2473_v23 = vshll.u32 %v27745_v6, 16  ;;  %v8281_v15 = vcombine.low %v21783_v42, %v21789_v32 }
 0x122   : > { %27743 = vst [vmem:[#allocation291_spill] sm:$0xff] %v21814_v19  ;;  %27744 = vst [vmem:[#allocation292_spill] sm:$0xff] %v21818_v4  ;;  %v21824_v56 = vrot.slane %v8265_v27, %v19646_v8  ;;  %v21828_v30 = vsel %vm21027_vm4, %v2460_v25, %v2465_v48  ;;  %v8282_v33 = vcombine.low %v21793_v11, %v21798_v34  ;;  %v4421_v2 = vsel %vm4419_vm0, %v417_v46, 0  ;;  %v27748_v27 = vld [vmem:[#allocation5_spill] sm:$0xff]  ;;  %v27754_v48 = vld [vmem:[#allocation10_spill] sm:$0xff] }
 0x123   : > { %27746 = vst [vmem:[#allocation293_spill] sm:$0xff] %v21828_v30  ;;  %v8283_v50 = vcombine.low %v21814_v19, %v21818_v4  ;;  %v21836_v61 = vsel %vm21027_vm4, %v2468_v20, %v2473_v23  ;;  %v8291_v0 = vrot.slane %v8281_v15, %v19646_v8  ;;  %v1755_v28 = vshrl.u32 %v27748_v27, 16  ;;  %17537 = vmatpush3.bf16.msra.mxu1 %v4421_v2  ;;  %v27750_v20 = vld [vmem:[#allocation9_spill] sm:$0xff]  ;;  %v27751_v27 = vld [vmem:[#allocation11_spill] sm:$0xff] }
 0x124   : > { %27747 = vst [vmem:[#allocation294_spill] sm:$0xff] %v21836_v61  ;;  %v27749_v25 = vcombine.low %v21365_v18, %v21379_v1  ;;  %v8284_v4 = vcombine.low %v21828_v30, %v21836_v61  ;;  %v8298_v23 = vrot.slane %v8282_v33, %v19646_v8  ;;  %v1760_v15 = vshll.u32 %v27750_v20, 16  ;;  %17622 = vmatprep.subr.bf16.mxu1 %v27425_v14 }
 0x125   : > { %v1763_v46 = vshrl.u32 %v27750_v20, 16  ;;  %v1768_v18 = vshll.u32 %v27751_v27, 16  ;;  %v1771_v1 = vshrl.u32 %v27751_v27, 16  ;;  %v21861_v2 = vrot.slane %v8283_v50, %v19646_v8  ;;  %v27753_v27 = vld [vmem:[#allocation6_spill] sm:$0xff] }
 0x126   : > { %17895 = vmatmul.mubr.msk.bf16.gmra.mrb[12].mxu0 %vm4355_vm2, %v27749_v25  ;;  %v27752_v25 = vld [vmem:[#allocation16_spill] sm:$0xff]  ;;  %v21864_v33 = vrot.slane %v8284_v4, %v19646_v8  ;;  %v8313_v20 = vcombine.low %v8291_v0, %v8298_v23  ;;  %v1762_v30 = vsel %vm21027_vm4, %v1755_v28, %v1760_v15  ;;  %v1784_v19 = vshll.u32 %v27753_v27, 16  ;;  %v27756_v15 = vld [vmem:[#allocation17_spill] sm:$0xff] }
 0x127   : > { %17898 = vmatprep.mubr.msk.bf16.mxu0 %vm19558_vm1, %v27425_v14  ;;  %v1776_v34 = vshll.u32 %v27752_v25, 16  ;;  %v1779_v61 = vshrl.u32 %v27752_v25, 16  ;;  %v1787_v32 = vshrl.u32 %v27753_v27, 16  ;;  %v1770_v11 = vsel %vm21027_vm4, %v1763_v46, %v1768_v18  ;;  %v27755_v23 = vld [vmem:[#allocation12_spill] sm:$0xff]  ;;  %v27757_v18 = vld [vmem:[#allocation7_spill] sm:$0xff] }
 0x128   : > { %v1792_v42 = vshll.u32 %v27754_v48, 16  ;;  %v1795_v4 = vshrl.u32 %v27754_v48, 16  ;;  %v1800_v25 = vshll.u32 %v27755_v23, 16  ;;  %v1803_v28 = vshrl.u32 %v27755_v23, 16 }
 0x129   : > { %v1778_v50 = vsel %vm21027_vm4, %v1771_v1, %v1776_v34  ;;  %v1786_v0 = vsel %vm21027_vm4, %v1779_v61, %v1784_v19  ;;  %v1808_v36 = vshll.u32 %v27756_v15, 16  ;;  %v1811_v34 = vshrl.u32 %v27756_v15, 16  ;;  %v27759_v15 = vld [vmem:[#allocation104_spill] sm:$0xff] }
 0x12a   : > { %v1794_v46 = vsel %vm21027_vm4, %v1787_v32, %v1792_v42  ;;  %v1816_v1 = vshll.u32 %v27757_v18, 16  ;;  %v1802_v48 = vsel %vm21027_vm4, %v1795_v4, %v1800_v25  ;;  %v3360_v61 = vcombine.low %v1762_v30, %v1770_v11 }
 0x12b   : > { %v1810_v19 = vsel %vm21027_vm4, %v1803_v28, %v1808_v36  ;;  %v3361_v23 = vcombine.low %v1778_v50, %v1786_v0  ;;  %v27758_v55 = vcombine.low %v21434_v29, %v21449_v62  ;;  %v21897_v27 = vrot.slane %v8313_v20, %v19646_v8  ;;  %v27761_v20 = vld [vmem:[#allocation109_spill] sm:$0xff]  ;;  %v27762_v50 = vld [vmem:[#allocation112_spill] sm:$0xff] }
 0x12c   : > { %v1818_v42 = vsel %vm21027_vm4, %v1811_v34, %v1816_v1  ;;  %v3362_v32 = vcombine.low %v1794_v46, %v1802_v48  ;;  %v1667_v4 = vcombine.high %v27759_v15, %v27759_v15  ;;  %v3370_v11 = vrot.slane %v3360_v61, %v19646_v8  ;;  %v27763_v34 = vld [vmem:[#allocation114_spill] sm:$0xff] }
 0x12d   : > { %v3363_v36 = vcombine.low %v1810_v19, %v1818_v42  ;;  %v3377_v29 = vrot.slane %v3361_v23, %v19646_v8  ;;  %v2485_v48 = vshrl.u32 %v27761_v20, 16  ;;  %v2490_v0 = vshll.u32 %v27762_v50, 16  ;;  %v27764_v42 = vld [vmem:[#allocation119_spill] sm:$0xff] }
 0x12e   : > { %17899 = vmatmul.mubr.msk.bf16.gmra.mrb[16].mxu0 %vm4355_vm2, %v27758_v55  ;;  %v2476_v55 = vshrl.u32 %v27745_v6, 16  ;;  %v3384_v62 = vrot.slane %v3362_v32, %v19646_v8  ;;  %v21910_v30 = vrot.slane %v1667_v4, %v19646_v8  ;;  %v2493_v46 = vshrl.u32 %v27762_v50, 16  ;;  %v27847_v50 = vld [vmem:[#allocation251_spill] sm:$0xff] }
 0x12f   : > { %17902 = vmatprep.mubr.msk.bf16.mxu0 %vm19558_vm1, %v27425_v14  ;;  %v3391_v25 = vrot.slane %v3363_v36, %v19646_v8  ;;  %v3392_v28 = vcombine.low %v3370_v11, %v3377_v29  ;;  %v2498_v1 = vshll.u32 %v27763_v34, 16  ;;  %v21920_v61 = vsel %vm21027_vm4, %v2485_v48, %v2490_v0  ;;  %v27765_v0 = vld [vmem:[#allocation111_spill] sm:$0xff] }
 0x130   : > { %27760 = vst [vmem:[#allocation11_spill] sm:$0xff] %v21910_v30  ;;  %v2481_v19 = vshll.u32 %v21910_v30, 16  ;;  %v2501_v23 = vshrl.u32 %v27763_v34, 16  ;;  %v2506_v32 = vshll.u32 %v27764_v42, 16  ;;  %v2509_v11 = vshrl.u32 %v27764_v42, 16 }
 0x131   : > { %v3393_v15 = vcombine.low %v3384_v62, %v3391_v25  ;;  %v3400_v4 = vrot.slane %v3392_v28, %v19646_v8  ;;  %v21927_v36 = vsel %vm21027_vm4, %v2493_v46, %v2498_v1  ;;  %v2514_v34 = vshll.u32 %v27765_v0, 16  ;;  %v27766_v28 = vld [vmem:[#allocation113_spill] sm:$0xff]  ;;  %v27767_v1 = vld [vmem:[#allocation118_spill] sm:$0xff] }
 0x132   : > { %v21932_v29 = vsel %vm21027_vm4, %v2476_v55, %v2481_v19  ;;  %v21936_v48 = vsel %vm21027_vm4, %v2501_v23, %v2506_v32  ;;  %v2517_v62 = vshrl.u32 %v27765_v0, 16  ;;  %v2522_v30 = vshll.u32 %v27766_v28, 16  ;;  %v27769_v32 = vld [vmem:[#allocation122_spill] sm:$0xff] }
 0x133   : > { %v3407_v25 = vrot.slane %v3393_v15, %v19646_v8  ;;  %v2525_v46 = vshrl.u32 %v27766_v28, 16  ;;  %v2530_v42 = vshll.u32 %v27767_v1, 16  ;;  %v27768_v55 = vcombine.low %v21546_v10, %v21602_v44 }
 0x134   : > { %v21950_v19 = vsel %vm21027_vm4, %v2509_v11, %v2514_v34  ;;  %v2533_v23 = vshrl.u32 %v27767_v1, 16  ;;  %v2538_v0 = vshll.u32 %v27769_v32, 16  ;;  %v8330_v15 = vcombine.low %v21932_v29, %v21920_v61 }
 0x135   : > { %v3408_v28 = vcombine.low %v3400_v4, %v3407_v25  ;;  %v21960_v10 = vsel %vm21027_vm4, %v2517_v62, %v2522_v30  ;;  %v21964_v44 = vsel %vm21027_vm4, %v2525_v46, %v2530_v42  ;;  %v8331_v11 = vcombine.low %v21927_v36, %v21936_v48  ;;  %v7633_v30 = vpop.f32.mrb[20].mxu0 }
 0x136   : > { %17903 = vmatmul.mubr.msk.bf16.gmra.mrb[24].mxu0 %vm4355_vm2, %v27768_v55  ;;  %v21970_v34 = vsel %vm21027_vm4, %v2533_v23, %v2538_v0  ;;  %v8332_v1 = vcombine.low %v21950_v19, %v21960_v10  ;;  %v8340_v4 = vrot.slane %v8330_v15, %v19646_v8  ;;  %v1819_v25 = vshrl.u32 %v27757_v18, 16  ;;  %v17798_v55 = vpop.f32.mrb[21].mxu0  ;;  %v27771_v30 = vld [vmem:[#allocation18_spill] sm:$0xff] }
 0x137   : > { %17906 = vmatprep.mubr.msk.bf16.mxu0 %vm19558_vm1, %v27425_v14  ;;  %17539 = vmatmul.mubr.msk.bf16.vlgmr.msra.gmra.mrb[0].mxu1 %vm4355_vm2, %v3408_v28  ;;  %v8333_v62 = vcombine.low %v21964_v44, %v21970_v34  ;;  %v8347_v46 = vrot.slane %v8331_v11, %v19646_v8  ;;  %v3410_v42 = vcombine.low %v21040_v35, %v21044_v54  ;;  %v27772_v11 = vshll.u32 %v27771_v30, 16  ;;  %v27773_v30 = vld [vmem:[#allocation128_spill] sm:$0xff] }
 0x138   : > { %v3411_v0 = vcombine.low %v21048_v59, %v21052_v57  ;;  %v27770_v23 = vcombine.low %v21861_v2, %v21864_v33  ;;  %v8354_v28 = vrot.slane %v8332_v1, %v19646_v8  ;;  %17542 = vmatprep.mubr.msk.bf16.mxu1 %vm19558_vm1, %v27425_v14  ;;  %v3412_v57 = vcombine.low %v21056_v26, %v21060_v31  ;;  %v7636_v59 = vpop.f32.mrb[22].mxu0 }
 0x139   : > { %v1826_v54 = vsel %vm21027_vm4, %v1819_v25, %v27772_v11  ;;  %v8361_v35 = vrot.slane %v8333_v62, %v19646_v8  ;;  %v8362_v55 = vcombine.low %v8340_v4, %v8347_v46  ;;  %v3426_v33 = vrot.slane %v3410_v42, %v19646_v8  ;;  %v17799_v1 = vpop.f32.mrb[23].mxu0  ;;  %v27775_v25 = vld [vmem:[#allocation129_spill] sm:$0xff]  ;;  %v27777_v62 = vld [vmem:[#allocation130_spill] sm:$0xff]  ;;  %v27779_v46 = vld [vmem:[#allocation123_spill] sm:$0xff] }
 0x13a   : > { %v21988_v15 = vrot.slane %v27770_v23, %v19646_v8  ;;  %v3409_v2 = vcombine.low %v1826_v54, %v21036_v43  ;;  %v3433_v23 = vrot.slane %v3411_v0, %v19646_v8  ;;  %v3440_v18 = vrot.slane %v3412_v57, %v19646_v8  ;;  %v27781_v57 = vld [vmem:[#allocation127_spill] sm:$0xff] }
 0x13b   : > { %v22006_v20 = vcombine.high %v27773_v30, %v27773_v30  ;;  %v22010_v26 = vcombine.high %v27775_v25, %v27775_v25  ;;  %v8363_v31 = vcombine.low %v8354_v28, %v8361_v35  ;;  %v22015_v43 = vcombine.high %v27777_v62, %v27777_v62 }
 0x13c   : > { %v3419_v4 = vrot.slane %v3409_v2, %v19646_v8  ;;  %v1675_v42 = vcombine.high %v27779_v46, %v27779_v46  ;;  %v27780_v0 = vcombine.low %v21605_v60, %v21640_v13  ;;  %v22024_v11 = vrot.slane %v8362_v55, %v19646_v8 }
 0x13d   : > { %27774 = vst [vmem:[#allocation16_spill] sm:$0xff] %v22006_v20  ;;  %27776 = vst [vmem:[#allocation12_spill] sm:$0xff] %v22010_v26  ;;  %v3442_v54 = vcombine.low %v3433_v23, %v3440_v18  ;;  %v2541_v28 = vshrl.u32 %v27769_v32, 16  ;;  %v2546_v59 = vshll.u32 %v27781_v57, 16  ;;  %v2549_v1 = vshrl.u32 %v27781_v57, 16  ;;  %v27783_v57 = vld [vmem:[#allocation133_spill] sm:$0xff] }
 0x13e   : > { %27778 = vst [vmem:[#allocation17_spill] sm:$0xff] %v22015_v43  ;;  %17907 = vmatmul.mubr.msk.bf16.gmra.mrb[28].mxu0 %vm4355_vm2, %v27780_v0  ;;  %v3441_v35 = vcombine.low %v3419_v4, %v3426_v33  ;;  %v22031_v2 = vrot.slane %v1675_v42, %v19646_v8  ;;  %v2558_v13 = vshrl.u32 %v27773_v30, 16  ;;  %v22036_v60 = vrot.slane %v8363_v31, %v19646_v8 }
 0x13f   : > { %17910 = vmatprep.mubr.msk.bf16.mxu0 %vm19558_vm1, %v27425_v14  ;;  %v3456_v18 = vrot.slane %v3442_v54, %v19646_v8  ;;  %v2563_v32 = vshll.u32 %v27777_v62, 16  ;;  %v2566_v55 = vshrl.u32 %v27777_v62, 16  ;;  %v22044_v33 = vsel %vm21027_vm4, %v2541_v28, %v2546_v59 }
 0x140   : > { %27782 = vst [vmem:[#allocation104_spill] sm:$0xff] %v22031_v2  ;;  %v3449_v23 = vrot.slane %v3441_v35, %v19646_v8  ;;  %v2554_v4 = vshll.u32 %v22031_v2, 16  ;;  %v2571_v46 = vshll.u32 %v22006_v20, 16  ;;  %v2574_v42 = vshrl.u32 %v22006_v20, 16 }
 0x141   : > { %v22050_v31 = vsel %vm21027_vm4, %v2558_v13, %v2563_v32  ;;  %v2579_v0 = vshll.u32 %v22015_v43, 16  ;;  %v2582_v54 = vshrl.u32 %v22015_v43, 16  ;;  %v2587_v59 = vshll.u32 %v27775_v25, 16 }
 0x142   : > { %v3457_v30 = vcombine.low %v3449_v23, %v3456_v18  ;;  %v22057_v35 = vsel %vm21027_vm4, %v2549_v1, %v2554_v4  ;;  %v22061_v28 = vsel %vm21027_vm4, %v2566_v55, %v2571_v46  ;;  %v2590_v32 = vshrl.u32 %v27775_v25, 16  ;;  %v27846_v25 = vld [vmem:[#allocation252_spill] sm:$0xff] }
 0x143   : > { %v22066_v13 = vsel %vm21027_vm4, %v2574_v42, %v2579_v0  ;;  %v2595_v2 = vshll.u32 %v27783_v57, 16  ;;  %v2598_v18 = vshrl.u32 %v27783_v57, 16  ;;  %v22074_v1 = vsel %vm21027_vm4, %v2582_v54, %v2587_v59 }
 0x144   : > { %17543 = vmatmul.mubr.msk.bf16.gmra.mrb[4].mxu1 %vm4355_vm2, %v3457_v30  ;;  %v2603_v55 = vshll.u32 %v22010_v26, 16  ;;  %v8379_v23 = vcombine.low %v22044_v33, %v22057_v35  ;;  %v8380_v4 = vcombine.low %v22050_v31, %v22061_v28  ;;  %v27784_v46 = vcombine.low %v21732_v41, %v21779_v52 }
 0x145   : > { %v22087_v30 = vsel %vm21027_vm4, %v2590_v32, %v2595_v2  ;;  %v8381_v42 = vcombine.low %v22066_v13, %v22074_v1  ;;  %17546 = vmatprep.mubr.msk.bf16.mxu1 %vm19558_vm1, %v27425_v14  ;;  %v3458_v0 = vcombine.low %v21064_v58, %v21076_v9  ;;  %v2606_v54 = vshrl.u32 %v22010_v26, 16 }
 0x146   : > { %17911 = vmatmul.mubr.msk.bf16.gmra.mrb[32].mxu0 %vm4355_vm2, %v27784_v46  ;;  %v22100_v41 = vsel %vm21027_vm4, %v2598_v18, %v2603_v55  ;;  %v8389_v52 = vrot.slane %v8379_v23, %v19646_v8  ;;  %v8396_v2 = vrot.slane %v8380_v4, %v19646_v8  ;;  %v3459_v59 = vcombine.low %v21096_v3, %v21100_v37 }
 0x147   : > { %17914 = vmatprep.mubr.msk.bf16.mxu0 %vm19558_vm1, %v27425_v14  ;;  %v8382_v32 = vcombine.low %v22087_v30, %v22100_v41  ;;  %v8403_v58 = vrot.slane %v8381_v42, %v19646_v8  ;;  %v3460_v9 = vcombine.low %v21108_v16, %v21120_v45  ;;  %v3461_v46 = vcombine.low %v21125_v12, %v21136_v17  ;;  %v27789_v45 = vld [vmem:[#allocation131_spill] sm:$0xff] }
 0x148   : > { %v8411_v18 = vcombine.low %v8389_v52, %v8396_v2  ;;  %v3468_v55 = vrot.slane %v3458_v0, %v19646_v8  ;;  %v22115_v23 = vrot.slane %v3459_v59, %v19646_v8  ;;  %v22119_v3 = vcombine.high %v27783_v57, %v27783_v57 }
 0x149   : > { %v8410_v37 = vrot.slane %v8382_v32, %v19646_v8  ;;  %v22123_v4 = vrot.slane %v3460_v9, %v19646_v8  ;;  %v22126_v16 = vrot.slane %v3461_v46, %v19646_v8  ;;  %v1683_v12 = vcombine.high %v27789_v45, %v27789_v45 }
 0x14a   : > { %27785 = vst [vmem:[#allocation114_spill] sm:$0xff] %v22115_v23  ;;  %27786 = vst [vmem:[#allocation119_spill] sm:$0xff] %v22119_v3  ;;  %v8329_v17 = vcombine.low %v21897_v27, %v21988_v15  ;;  %v3490_v42 = vcombine.low %v3468_v55, %v22115_v23  ;;  %v2611_v0 = vshll.u32 %v22119_v3, 16  ;;  %v2614_v52 = vshrl.u32 %v22119_v3, 16  ;;  %v27791_v15 = vld [vmem:[#allocation135_spill] sm:$0xff] }
 0x14b   : > { %27787 = vst [vmem:[#allocation118_spill] sm:$0xff] %v22123_v4  ;;  %27788 = vst [vmem:[#allocation122_spill] sm:$0xff] %v22126_v16  ;;  %v8412_v2 = vcombine.low %v8403_v58, %v8410_v37  ;;  %v3491_v59 = vcombine.low %v22123_v4, %v22126_v16  ;;  %v22140_v9 = vrot.slane %v1683_v12, %v19646_v8  ;;  %v2619_v55 = vshll.u32 %v27791_v15, 16  ;;  %v27796_v3 = vld [vmem:[#allocation143_spill] sm:$0xff] }
 0x14c   : > { %v3498_v27 = vrot.slane %v3490_v42, %v19646_v8  ;;  %v2622_v45 = vshrl.u32 %v27791_v15, 16  ;;  %v27792_v58 = vcombine.low %v21804_v51, %v21824_v56  ;;  %v22152_v37 = vrot.slane %v8411_v18, %v19646_v8  ;;  %v27793_v56 = vld [vmem:[#allocation136_spill] sm:$0xff] }
 0x14d   : > { %27790 = vst [vmem:[#allocation18_spill] sm:$0xff] %v22140_v9  ;;  %v3505_v12 = vrot.slane %v3491_v59, %v19646_v8  ;;  %v22157_v32 = vsel %vm21027_vm4, %v2606_v54, %v2611_v0  ;;  %v2627_v42 = vshll.u32 %v22140_v9, 16  ;;  %v22163_v46 = vrot.slane %v8412_v2, %v19646_v8  ;;  %v27795_v0 = vld [vmem:[#allocation141_spill] sm:$0xff] }
 0x14e   : > { %17915 = vmatmul.mubr.msk.bf16.gmra.mrb[36].mxu0 %vm4355_vm2, %v27792_v58  ;;  %v2631_v51 = vshrl.u32 %v27793_v56, 16  ;;  %v27794_v58 = vld [vmem:[#allocation140_spill] sm:$0xff]  ;;  %v22170_v59 = vsel %vm21027_vm4, %v2614_v52, %v2619_v55  ;;  %v2644_v9 = vshll.u32 %v27795_v0, 16  ;;  %v2647_v56 = vshrl.u32 %v27795_v0, 16  ;;  %v27797_v55 = vld [vmem:[#allocation139_spill] sm:$0xff] }
 0x14f   : > { %17918 = vmatprep.mubr.msk.bf16.mxu0 %vm19558_vm1, %v27425_v14  ;;  %v2636_v4 = vshll.u32 %v27794_v58, 16  ;;  %v2639_v18 = vshrl.u32 %v27794_v58, 16  ;;  %v3506_v23 = vcombine.low %v3498_v27, %v3505_v12  ;;  %v22174_v54 = vsel %vm21027_vm4, %v2622_v45, %v2627_v42  ;;  %v27798_v42 = vld [vmem:[#allocation145_spill] sm:$0xff] }
 0x150   : > { %v2652_v15 = vshll.u32 %v27796_v3, 16  ;;  %v2655_v27 = vshrl.u32 %v27796_v3, 16  ;;  %v2660_v45 = vshll.u32 %v27797_v55, 16  ;;  %v2663_v12 = vshrl.u32 %v27797_v55, 16 }
 0x151   : > { %v22179_v2 = vsel %vm21027_vm4, %v2631_v51, %v2636_v4  ;;  %17547 = vmatmul.mubr.msk.bf16.gmra.mrb[8].mxu1 %vm4355_vm2, %v3506_v23  ;;  %v22187_v52 = vsel %vm21027_vm4, %v2639_v18, %v2644_v9  ;;  %v2668_v58 = vshll.u32 %v27798_v42, 16  ;;  %v8428_v51 = vcombine.low %v22157_v32, %v22170_v59 }
 0x152   : > { %v22194_v4 = vsel %vm21027_vm4, %v2647_v56, %v2652_v15  ;;  %v8429_v23 = vcombine.low %v22174_v54, %v22179_v2  ;;  %17550 = vmatprep.mubr.msk.bf16.mxu1 %vm19558_vm1, %v27425_v14  ;;  %v3507_v3 = vcombine.low %v21147_v63, %v21181_v53  ;;  %v22206_v9 = vsel %vm21027_vm4, %v2655_v27, %v2660_v45  ;;  %v27799_v27 = vld [vmem:[#allocation238_spill] sm:$0xff] }
 0x153   : > { %v22210_v15 = vsel %vm21027_vm4, %v2663_v12, %v2668_v58  ;;  %v8430_v56 = vcombine.low %v22187_v52, %v22194_v4  ;;  %v3508_v18 = vcombine.low %v21187_v40, %v21191_v47  ;;  %v8438_v55 = vrot.slane %v8428_v51, %v19646_v8  ;;  %v27807_v47 = vld [vmem:[#allocation153_spill] sm:$0xff] }
 0x154   : > { %v8431_v0 = vcombine.low %v22206_v9, %v22210_v15  ;;  %v8445_v63 = vrot.slane %v8429_v23, %v19646_v8  ;;  %v3509_v53 = vcombine.low %v21196_v21, %v21209_v38  ;;  %v3510_v45 = vcombine.low %v27799_v27, %v21227_v7 }
 0x155   : > { %v8452_v58 = vrot.slane %v8430_v56, %v19646_v8  ;;  %v22227_v12 = vrot.slane %v3507_v3, %v19646_v8  ;;  %v22230_v40 = vrot.slane %v3508_v18, %v19646_v8  ;;  %v27804_v3 = vld [vmem:[#allocation152_spill] sm:$0xff]  ;;  %v22262_v23 = vcombine.high %v27807_v47, %v27807_v47 }
 0x156   : > { %17919 = vmatmul.mubr.msk.bf16.gmra.mrb[40].mxu0 %vm4355_vm2, %v8329_v17  ;;  %v8459_v21 = vrot.slane %v8431_v0, %v19646_v8  ;;  %v8460_v38 = vcombine.low %v8438_v55, %v8445_v63  ;;  %v22238_v17 = vrot.slane %v3509_v53, %v19646_v8  ;;  %v22241_v7 = vrot.slane %v3510_v45, %v19646_v8  ;;  %v27806_v55 = vld [vmem:[#allocation146_spill] sm:$0xff] }
 0x157   : > { %27800 = vst [vmem:[#allocation123_spill] sm:$0xff] %v22227_v12  ;;  %27801 = vst [vmem:[#allocation131_spill] sm:$0xff] %v22230_v40  ;;  %17922 = vmatprep.mubr.msk.bf16.mxu0 %vm19558_vm1, %v27425_v14  ;;  %v3539_v51 = vcombine.low %v22227_v12, %v22230_v40  ;;  %v22249_v56 = vcombine.high %v27804_v3, %v27804_v3  ;;  %v1691_v63 = vcombine.high %v27806_v55, %v27806_v55  ;;  %v27809_v40 = vld [vmem:[#allocation144_spill] sm:$0xff]  ;;  %v27811_v55 = vld [vmem:[#allocation149_spill] sm:$0xff] }
 0x158   : > { %27802 = vst [vmem:[#allocation141_spill] sm:$0xff] %v22238_v17  ;;  %27803 = vst [vmem:[#allocation143_spill] sm:$0xff] %v22241_v7  ;;  %v8461_v18 = vcombine.low %v8452_v58, %v8459_v21  ;;  %v22252_v0 = vrot.slane %v8460_v38, %v19646_v8  ;;  %v2671_v53 = vshrl.u32 %v27798_v42, 16  ;;  %v3540_v27 = vcombine.low %v22238_v17, %v22241_v7  ;;  %v27812_v42 = vld [vmem:[#allocation150_spill] sm:$0xff] }
 0x159   : > { %27805 = vst [vmem:[#allocation238_spill] sm:$0xff] %v22249_v56  ;;  %v3547_v45 = vrot.slane %v3539_v51, %v19646_v8  ;;  %27808 = vst [vmem:[#allocation146_spill] sm:$0xff] %v22262_v23  ;;  %v2676_v12 = vshll.u32 %v27809_v40, 16  ;;  %v22269_v21 = vrot.slane %v1691_v63, %v19646_v8  ;;  %v2679_v38 = vshrl.u32 %v27809_v40, 16 }
 0x15a   : > { %v22266_v58 = vrot.slane %v8461_v18, %v19646_v8  ;;  %v2684_v16 = vshll.u32 %v27811_v55, 16  ;;  %v3554_v7 = vrot.slane %v3540_v27, %v19646_v8  ;;  %v2687_v17 = vshrl.u32 %v27811_v55, 16 }
 0x15b   : > { %27810 = vst [vmem:[#allocation144_spill] sm:$0xff] %v22269_v21  ;;  %v22276_v51 = vsel %vm21027_vm4, %v2671_v53, %v2676_v12  ;;  %v2692_v62 = vshll.u32 %v27812_v42, 16  ;;  %v2695_v40 = vshrl.u32 %v27812_v42, 16  ;;  %v2700_v20 = vshll.u32 %v22269_v21, 16  ;;  %v27816_v42 = vld [vmem:[#allocation241_spill] sm:$0xff] }
 0x15c   : > { %v22284_v63 = vsel %vm21027_vm4, %v2679_v38, %v2684_v16  ;;  %v27813_v27 = vcombine.low %v22024_v11, %v22036_v60  ;;  %v3555_v12 = vcombine.low %v3547_v45, %v3554_v7  ;;  %v2704_v55 = vshrl.u32 %v27804_v3, 16  ;;  %v27814_v38 = vld [vmem:[#allocation157_spill] sm:$0xff] }
 0x15d   : > { %v22294_v53 = vsel %vm21027_vm4, %v2687_v17, %v2692_v62  ;;  %v2709_v18 = vshll.u32 %v27807_v47, 16  ;;  %v22302_v16 = vsel %vm21027_vm4, %v2695_v40, %v2700_v20  ;;  %v2712_v11 = vshrl.u32 %v27807_v47, 16 }
 0x15e   : > { %17923 = vmatmul.mubr.msk.bf16.gmra.mrb[44].mxu0 %vm4355_vm2, %v27813_v27  ;;  %v2717_v60 = vshll.u32 %v22249_v56, 16  ;;  %v2720_v7 = vshrl.u32 %v22249_v56, 16  ;;  %17551 = vmatmul.mubr.msk.bf16.gmra.mrb[12].mxu1 %vm4355_vm2, %v3555_v12  ;;  %v2725_v17 = vshll.u32 %v22262_v23, 16  ;;  %v2728_v45 = vshrl.u32 %v22262_v23, 16 }
 0x15f   : > { %17926 = vmatprep.mubr.msk.bf16.mxu0 %vm19558_vm1, %v27425_v14  ;;  %v22310_v62 = vsel %vm21027_vm4, %v2704_v55, %v2709_v18  ;;  %v2733_v27 = vshll.u32 %v27814_v38, 16  ;;  %v8477_v40 = vcombine.low %v22276_v51, %v22284_v63  ;;  %v8478_v12 = vcombine.low %v22294_v53, %v22302_v16  ;;  %17554 = vmatprep.mubr.msk.bf16.mxu1 %vm19558_vm1, %v27425_v14  ;;  %v27815_v18 = vld [vmem:[#allocation239_spill] sm:$0xff] }
 0x160   : > { %v22317_v20 = vsel %vm21027_vm4, %v2712_v11, %v2717_v60  ;;  %v3556_v55 = vcombine.low %v27815_v18, %v21263_v24  ;;  %v22329_v3 = vsel %vm21027_vm4, %v2720_v7, %v2725_v17  ;;  %v3557_v21 = vcombine.low %v27816_v42, %v21272_v22  ;;  %v27817_v18 = vld [vmem:[#allocation243_spill] sm:$0xff]  ;;  %v27818_v7 = vld [vmem:[#allocation242_spill] sm:$0xff] }
 0x161   : > { %v22333_v11 = vsel %vm21027_vm4, %v2728_v45, %v2733_v27  ;;  %v8479_v60 = vcombine.low %v22310_v62, %v22317_v20  ;;  %v8487_v47 = vrot.slane %v8477_v40, %v19646_v8  ;;  %v8494_v24 = vrot.slane %v8478_v12, %v19646_v8  ;;  %v27819_v45 = vld [vmem:[#allocation245_spill] sm:$0xff]  ;;  %v27820_v27 = vld [vmem:[#allocation244_spill] sm:$0xff] }
 0x162   : > { %v8480_v23 = vcombine.low %v22329_v3, %v22333_v11  ;;  %v3558_v17 = vcombine.low %v27818_v7, %v27817_v18  ;;  %v3559_v57 = vcombine.low %v27820_v27, %v27819_v45  ;;  %v22349_v26 = vrot.slane %v3556_v55, %v19646_v8 }
 0x163   : > { %v8501_v56 = vrot.slane %v8479_v60, %v19646_v8  ;;  %v22352_v22 = vrot.slane %v3557_v21, %v19646_v8  ;;  %v8509_v43 = vcombine.low %v8487_v47, %v8494_v24  ;;  %v22360_v12 = vcombine.high %v27814_v38, %v27814_v38  ;;  %v27829_v24 = vld [vmem:[#allocation156_spill] sm:$0xff] }
 0x164   : > { %27821 = vst [vmem:[#allocation149_spill] sm:$0xff] %v22349_v26  ;;  %v8508_v42 = vrot.slane %v8480_v23, %v19646_v8  ;;  %v22356_v40 = vrot.slane %v3558_v17, %v19646_v8  ;;  %v27825_v60 = vcombine.low %v22152_v37, %v22163_v46  ;;  %v22367_v55 = vrot.slane %v3559_v57, %v19646_v8  ;;  %v27827_v23 = vld [vmem:[#allocation160_spill] sm:$0xff] }
 0x165   : > { %27822 = vst [vmem:[#allocation239_spill] sm:$0xff] %v22352_v22  ;;  %27824 = vst [vmem:[#allocation243_spill] sm:$0xff] %v22360_v12  ;;  %v3588_v21 = vcombine.low %v22349_v26, %v22352_v22  ;;  %v22373_v47 = vcombine.high %v27827_v23, %v27827_v23  ;;  %v1699_v18 = vcombine.high %v27829_v24, %v27829_v24  ;;  %v2736_v57 = vshrl.u32 %v27814_v38, 16 }
 0x166   : > { %27823 = vst [vmem:[#allocation241_spill] sm:$0xff] %v22356_v40  ;;  %17927 = vmatmul.mubr.msk.bf16.gmra.mrb[48].mxu0 %vm4355_vm2, %v27825_v60  ;;  %27826 = vst [vmem:[#allocation242_spill] sm:$0xff] %v22367_v55  ;;  %v8510_v7 = vcombine.low %v8501_v56, %v8508_v42  ;;  %v22380_v46 = vrot.slane %v8509_v43, %v19646_v8  ;;  %v2741_v37 = vshll.u32 %v27827_v23, 16  ;;  %v2744_v60 = vshrl.u32 %v27827_v23, 16 }
 0x167   : > { %27828 = vst [vmem:[#allocation245_spill] sm:$0xff] %v22373_v47  ;;  %17930 = vmatprep.mubr.msk.bf16.mxu0 %vm19558_vm1, %v27425_v14  ;;  %v3589_v17 = vcombine.low %v22356_v40, %v22367_v55  ;;  %v3596_v45 = vrot.slane %v3588_v21, %v19646_v8  ;;  %v22388_v27 = vrot.slane %v1699_v18, %v19646_v8  ;;  %v2749_v56 = vshll.u32 %v22360_v12, 16  ;;  %v27831_v18 = vld [vmem:[#allocation158_spill] sm:$0xff] }
 0x168   : > { %v8524_v24 = vrot.slane %v8510_v7, %v19646_v8  ;;  %v22394_v43 = vsel %vm21027_vm4, %v2736_v57, %v2741_v37  ;;  %v2752_v42 = vshrl.u32 %v22360_v12, 16  ;;  %v2757_v55 = vshll.u32 %v22373_v47, 16  ;;  %v27833_v12 = vld [vmem:[#allocation161_spill] sm:$0xff] }
 0x169   : > { %27830 = vst [vmem:[#allocation244_spill] sm:$0xff] %v22388_v27  ;;  %v3603_v22 = vrot.slane %v3589_v17, %v19646_v8  ;;  %v2760_v21 = vshrl.u32 %v22373_v47, 16  ;;  %v2765_v40 = vshll.u32 %v27831_v18, 16  ;;  %v22405_v7 = vsel %vm21027_vm4, %v2744_v60, %v2749_v56  ;;  %v27834_v60 = vld [vmem:[#allocation163_spill] sm:$0xff] }
 0x16a   : > { %v8525_v26 = vcombine.low %v22380_v46, %v8524_v24  ;;  %v2768_v57 = vshrl.u32 %v27831_v18, 16  ;;  %v2773_v37 = vshll.u32 %v22388_v27, 16  ;;  %v22411_v17 = vsel %vm21027_vm4, %v2752_v42, %v2757_v55  ;;  %v27835_v27 = vld [vmem:[#allocation164_spill] sm:$0xff] }
 0x16b   : > { %v3604_v23 = vcombine.low %v3596_v45, %v3603_v22  ;;  %v22415_v47 = vsel %vm21027_vm4, %v2760_v21, %v2765_v40  ;;  %v2777_v38 = vshrl.u32 %v27833_v12, 16  ;;  %v2782_v24 = vshll.u32 %v27834_v60, 16  ;;  %v27837_v45 = vld [vmem:[#allocation167_spill] sm:$0xff]  ;;  %v27842_v12 = vld [vmem:[#allocation49_spill] sm:$0xff] }
 0x16c   : > { %27832 = vst [vmem:[#allocation156_spill] sm:$0xff] %v22415_v47  ;;  %v22420_v46 = vsel %vm21027_vm4, %v2768_v57, %v2773_v37  ;;  %v2785_v56 = vshrl.u32 %v27834_v60, 16  ;;  %v2790_v22 = vshll.u32 %v27835_v27, 16  ;;  %v27836_v55 = vcombine.low %v22252_v0, %v22266_v58  ;;  %v27843_v60 = vld [vmem:[#allocation47_spill] sm:$0xff] }
 0x16d   : > { %17555 = vmatmul.mubr.msk.bf16.gmra.mrb[16].mxu1 %vm4355_vm2, %v3604_v23  ;;  %v2793_v40 = vshrl.u32 %v27835_v27, 16  ;;  %v2798_v42 = vshll.u32 %v27837_v45, 16  ;;  %v8526_v21 = vcombine.low %v22394_v43, %v22405_v7  ;;  %v8527_v57 = vcombine.low %v22411_v17, %v22415_v47  ;;  %v27840_v23 = vld [vmem:[#allocation246_spill] sm:$0xff] }
 0x16e   : > { %17931 = vmatmul.mubr.msk.bf16.gmra.mrb[52].mxu0 %vm4355_vm2, %v27836_v55  ;;  %v22440_v0 = vsel %vm21027_vm4, %v2777_v38, %v2782_v24  ;;  %v22444_v58 = vsel %vm21027_vm4, %v2785_v56, %v2790_v22  ;;  %17558 = vmatprep.mubr.msk.bf16.mxu1 %vm19558_vm1, %v27425_v14  ;;  %v3605_v27 = vcombine.low %v27840_v23, %v21343_v5  ;;  %v2801_v37 = vshrl.u32 %v27837_v45, 16  ;;  %v27844_v5 = vld [vmem:[#allocation250_spill] sm:$0xff]  ;;  %v27845_v23 = vld [vmem:[#allocation249_spill] sm:$0xff] }
 0x16f   : > { %17934 = vmatprep.mubr.msk.bf16.mxu0 %vm19558_vm1, %v27425_v14  ;;  %27838 = vst [vmem:[#allocation164_spill] sm:$0xff] %v22440_v0  ;;  %27839 = vst [vmem:[#allocation167_spill] sm:$0xff] %v22444_v58  ;;  %v22453_v55 = vsel %vm21027_vm4, %v2793_v40, %v2798_v42  ;;  %v8528_v38 = vcombine.low %v22420_v46, %v22440_v0  ;;  %v8536_v24 = vrot.slane %v8526_v21, %v19646_v8  ;;  %v27849_v21 = vld [vmem:[#allocation176_spill] sm:$0xff]  ;;  %v27862_v47 = vld [vmem:[#allocation174_spill] sm:$0xff] }
 0x170   : > { %27841 = vst [vmem:[#allocation246_spill] sm:$0xff] %v22453_v55  ;;  %v8543_v56 = vrot.slane %v8527_v57, %v19646_v8  ;;  %v8529_v22 = vcombine.low %v22444_v58, %v22453_v55  ;;  %v3606_v18 = vcombine.low %v27843_v60, %v27842_v12  ;;  %v3607_v45 = vcombine.low %v27845_v23, %v27844_v5 }
 0x171   : > { %v3608_v40 = vcombine.low %v27847_v50, %v27846_v25  ;;  %v8550_v42 = vrot.slane %v8528_v38, %v19646_v8  ;;  %v22469_v0 = vrot.slane %v3605_v27, %v19646_v8  ;;  %v22473_v57 = vcombine.high %v27849_v21, %v27849_v21  ;;  %v27854_v38 = vld [vmem:[#allocation171_spill] sm:$0xff] }
 0x172   : > { %v8558_v6 = vcombine.low %v8536_v24, %v8543_v56  ;;  %v8557_v55 = vrot.slane %v8529_v22, %v19646_v8  ;;  %v22477_v12 = vrot.slane %v3606_v18, %v19646_v8  ;;  %v22480_v60 = vrot.slane %v3607_v45, %v19646_v8  ;;  %v27855_v24 = vld [vmem:[#allocation168_spill] sm:$0xff] }
 0x173   : > { %27848 = vst [vmem:[#allocation49_spill] sm:$0xff] %v22469_v0  ;;  %27850 = vst [vmem:[#allocation47_spill] sm:$0xff] %v22473_v57  ;;  %v22483_v50 = vrot.slane %v3608_v40, %v19646_v8  ;;  %v1707_v27 = vcombine.high %v27854_v38, %v27854_v38  ;;  %v2806_v56 = vshll.u32 %v27855_v24, 16  ;;  %v2809_v5 = vshrl.u32 %v27855_v24, 16  ;;  %v27856_v45 = vld [vmem:[#allocation172_spill] sm:$0xff] }
 0x174   : > { %27851 = vst [vmem:[#allocation250_spill] sm:$0xff] %v22477_v12  ;;  %27852 = vst [vmem:[#allocation249_spill] sm:$0xff] %v22480_v60  ;;  %v8566_v25 = vrot.slane %v8558_v6, %v19646_v8  ;;  %v8559_v23 = vcombine.low %v8550_v42, %v8557_v55  ;;  %v3637_v18 = vcombine.low %v22469_v0, %v22477_v12  ;;  %v2814_v58 = vshll.u32 %v27856_v45, 16  ;;  %v27858_v55 = vld [vmem:[#allocation173_spill] sm:$0xff] }
 0x175   : > { %27853 = vst [vmem:[#allocation252_spill] sm:$0xff] %v22483_v50  ;;  %v3638_v22 = vcombine.low %v22480_v60, %v22483_v50  ;;  %v22497_v6 = vrot.slane %v1707_v27, %v19646_v8  ;;  %v22501_v40 = vsel %vm21027_vm4, %v2801_v37, %v2806_v56  ;;  %v2817_v38 = vshrl.u32 %v27856_v45, 16  ;;  %v27861_v60 = vld [vmem:[#allocation175_spill] sm:$0xff] }
 0x176   : > { %17935 = vmatmul.mubr.msk.bf16.gmra.mrb[56].mxu0 %vm4355_vm2, %v8525_v26  ;;  %v2822_v42 = vshll.u32 %v27858_v55, 16  ;;  %v8573_v50 = vrot.slane %v8559_v23, %v19646_v8  ;;  %v3645_v12 = vrot.slane %v3637_v18, %v19646_v8  ;;  %v22512_v27 = vsel %vm21027_vm4, %v2809_v5, %v2814_v58 }
 0x177   : > { %27857 = vst [vmem:[#allocation251_spill] sm:$0xff] %v22497_v6  ;;  %17938 = vmatprep.mubr.msk.bf16.mxu0 %vm19558_vm1, %v27425_v14  ;;  %v3652_v26 = vrot.slane %v3638_v22, %v19646_v8  ;;  %27859 = vst [vmem:[#allocation171_spill] sm:$0xff] %v22512_v27  ;;  %v2825_v56 = vshrl.u32 %v27858_v55, 16  ;;  %v2830_v0 = vshll.u32 %v27861_v60, 16  ;;  %v2833_v24 = vshrl.u32 %v27861_v60, 16 }
 0x178   : > { %v22516_v37 = vsel %vm21027_vm4, %v2817_v38, %v2822_v42  ;;  %v8574_v45 = vcombine.low %v8566_v25, %v8573_v50  ;;  %v2838_v18 = vshll.u32 %v27862_v47, 16  ;;  %v2841_v22 = vshrl.u32 %v27862_v47, 16  ;;  %v27864_v42 = vld [vmem:[#allocation178_spill] sm:$0xff] }
 0x179   : > { %27860 = vst [vmem:[#allocation173_spill] sm:$0xff] %v22516_v37  ;;  %v3653_v23 = vcombine.low %v3645_v12, %v3652_v26  ;;  %v22525_v58 = vsel %vm21027_vm4, %v2825_v56, %v2830_v0  ;;  %v2846_v5 = vshll.u32 %v22497_v6, 16  ;;  %v2850_v38 = vshrl.u32 %v27849_v21, 16 }
 0x17a   : > { %27863 = vst [vmem:[#allocation175_spill] sm:$0xff] %v22525_v58  ;;  %v2855_v55 = vshll.u32 %v27864_v42, 16  ;;  %v22533_v60 = vsel %vm21027_vm4, %v2833_v24, %v2838_v18  ;;  %v2858_v12 = vshrl.u32 %v27864_v42, 16  ;;  %v2863_v50 = vshll.u32 %v22473_v57, 16  ;;  %v27868_v24 = vld [vmem:[#allocation256_spill] sm:$0xff] }
 0x17b   : > { %17559 = vmatmul.mubr.msk.bf16.gmra.mrb[20].mxu1 %vm4355_vm2, %v3653_v23  ;;  %27865 = vst [vmem:[#allocation295_spill] sm:$0xff] %v22533_v60  ;;  %v8575_v0 = vcombine.low %v22501_v40, %v22512_v27  ;;  %v22541_v25 = vsel %vm21027_vm4, %v2841_v22, %v2846_v5  ;;  %v8576_v56 = vcombine.low %v22516_v37, %v22525_v58  ;;  %v27869_v23 = vld [vmem:[#allocation253_spill] sm:$0xff] }
 0x17c   : > { %27866 = vst [vmem:[#allocation296_spill] sm:$0xff] %v22541_v25  ;;  %v22545_v26 = vsel %vm21027_vm4, %v2850_v38, %v2855_v55  ;;  %17562 = vmatprep.mubr.msk.bf16.mxu1 %vm19558_vm1, %v27425_v14  ;;  %v3654_v18 = vcombine.low %v27869_v23, %v27868_v24  ;;  %v22555_v21 = vsel %vm21027_vm4, %v2858_v12, %v2863_v50  ;;  %v27871_v38 = vld [vmem:[#allocation258_spill] sm:$0xff]  ;;  %v27872_v55 = vld [vmem:[#allocation257_spill] sm:$0xff]  ;;  %v27873_v24 = vld [vmem:[#allocation260_spill] sm:$0xff] }
 0x17d   : > { %27867 = vst [vmem:[#allocation297_spill] sm:$0xff] %v22545_v26  ;;  %27870 = vst [vmem:[#allocation256_spill] sm:$0xff] %v22555_v21  ;;  %v8577_v22 = vcombine.low %v22533_v60, %v22541_v25  ;;  %v8585_v5 = vrot.slane %v8575_v0, %v19646_v8  ;;  %v3655_v47 = vcombine.low %v27872_v55, %v27871_v38  ;;  %v27874_v23 = vld [vmem:[#allocation259_spill] sm:$0xff]  ;;  %v27875_v12 = vld [vmem:[#allocation66_spill] sm:$0xff] }
 0x17e   : > { %17939 = vmatmul.mubr.msk.bf16.gmra.mrb[60].mxu0 %vm4355_vm2, %v8574_v45  ;;  %v8578_v6 = vcombine.low %v22545_v26, %v22555_v21  ;;  %v8592_v58 = vrot.slane %v8576_v56, %v19646_v8  ;;  %v3656_v27 = vcombine.low %v27874_v23, %v27873_v24  ;;  %v27876_v50 = vld [vmem:[#allocation62_spill] sm:$0xff]  ;;  %v22574_v38 = vrot.slane %v3654_v18, %v19646_v8  ;;  %v27879_v55 = vld [vmem:[#allocation183_spill] sm:$0xff]  ;;  %v27886_v25 = vld [vmem:[#allocation181_spill] sm:$0xff] }
 0x17f   : > { %v3657_v37 = vcombine.low %v27876_v50, %v27875_v12  ;;  %17942 = vmatprep.mubr.msk.bf16.mxu0 %vm19558_vm1, %v27425_v14  ;;  %v8599_v0 = vrot.slane %v8577_v22, %v19646_v8  ;;  %v22577_v45 = vrot.slane %v3655_v47, %v19646_v8  ;;  %v22581_v56 = vcombine.high %v27879_v55, %v27879_v55  ;;  %v27884_v22 = vld [vmem:[#allocation186_spill] sm:$0xff] }
 0x180   : > { %27877 = vst [vmem:[#allocation253_spill] sm:$0xff] %v22574_v38  ;;  %v8606_v24 = vrot.slane %v8578_v6, %v19646_v8  ;;  %v8607_v23 = vcombine.low %v8585_v5, %v8592_v58  ;;  %v22585_v12 = vrot.slane %v3656_v27, %v19646_v8  ;;  %v22594_v47 = vcombine.high %v27864_v42, %v27864_v42 }
 0x181   : > { %27878 = vst [vmem:[#allocation258_spill] sm:$0xff] %v22577_v45  ;;  %27880 = vst [vmem:[#allocation257_spill] sm:$0xff] %v22581_v56  ;;  %v22588_v50 = vrot.slane %v3657_v37, %v19646_v8  ;;  %v3686_v18 = vcombine.low %v22574_v38, %v22577_v45  ;;  %v22598_v21 = vcombine.high %v27884_v22, %v27884_v22  ;;  %v2866_v5 = vshrl.u32 %v22473_v57, 16 }
 0x182   : > { %27881 = vst [vmem:[#allocation260_spill] sm:$0xff] %v22585_v12  ;;  %27883 = vst [vmem:[#allocation66_spill] sm:$0xff] %v22594_v47  ;;  %v1715_v6 = vcombine.high %v27886_v25, %v27886_v25  ;;  %v8608_v58 = vcombine.low %v8599_v0, %v8606_v24  ;;  %v8615_v27 = vrot.slane %v8607_v23, %v19646_v8  ;;  %v2871_v42 = vshll.u32 %v22594_v47, 16 }
 0x183   : > { %27882 = vst [vmem:[#allocation259_spill] sm:$0xff] %v22588_v50  ;;  %27885 = vst [vmem:[#allocation62_spill] sm:$0xff] %v22598_v21  ;;  %v3687_v37 = vcombine.low %v22585_v12, %v22588_v50  ;;  %v3694_v45 = vrot.slane %v3686_v18, %v19646_v8  ;;  %v2874_v26 = vshrl.u32 %v22594_v47, 16  ;;  %v2879_v0 = vshll.u32 %v27879_v55, 16 }
 0x184   : > { %v22608_v38 = vrot.slane %v1715_v6, %v19646_v8  ;;  %v8622_v60 = vrot.slane %v8608_v58, %v19646_v8  ;;  %v2882_v24 = vshrl.u32 %v27879_v55, 16  ;;  %v22618_v23 = vsel %vm21027_vm4, %v2866_v5, %v2871_v42 }
 0x185   : > { %v3701_v25 = vrot.slane %v3687_v37, %v19646_v8  ;;  %27888 = vst [vmem:[#allocation298_spill] sm:$0xff] %v22618_v23  ;;  %v2887_v18 = vshll.u32 %v27884_v22, 16  ;;  %v2890_v6 = vshrl.u32 %v27884_v22, 16  ;;  %v2895_v50 = vshll.u32 %v22581_v56, 16 }
 0x186   : > { %27887 = vst [vmem:[#allocation181_spill] sm:$0xff] %v22608_v38  ;;  %v8623_v12 = vcombine.low %v8615_v27, %v8622_v60  ;;  %v22625_v58 = vsel %vm21027_vm4, %v2874_v26, %v2879_v0  ;;  %v2898_v37 = vshrl.u32 %v22581_v56, 16  ;;  %v2903_v5 = vshll.u32 %v22598_v21, 16  ;;  %v27892_v60 = vld [vmem:[#allocation184_spill] sm:$0xff] }
 0x187   : > { %v3702_v47 = vcombine.low %v3694_v45, %v3701_v25  ;;  %27889 = vst [vmem:[#allocation299_spill] sm:$0xff] %v22625_v58  ;;  %v22630_v55 = vsel %vm21027_vm4, %v2882_v24, %v2887_v18  ;;  %v22634_v42 = vsel %vm21027_vm4, %v2890_v6, %v2895_v50  ;;  %v2906_v22 = vshrl.u32 %v22598_v21, 16  ;;  %v27893_v25 = vld [vmem:[#allocation185_spill] sm:$0xff]  ;;  %v27895_v24 = vld [vmem:[#allocation187_spill] sm:$0xff] }
 0x188   : > { %27890 = vst [vmem:[#allocation300_spill] sm:$0xff] %v22630_v55  ;;  %27891 = vst [vmem:[#allocation301_spill] sm:$0xff] %v22634_v42  ;;  %17943 = vmatmul.mubr.msk.bf16.gmra.mrb[64].mxu0 %vm4355_vm2, %v8623_v12  ;;  %v2911_v26 = vshll.u32 %v27892_v60, 16  ;;  %v2914_v45 = vshrl.u32 %v27892_v60, 16  ;;  %v2919_v27 = vshll.u32 %v22608_v38, 16  ;;  %v2923_v0 = vshrl.u32 %v27893_v25, 16 }
 0x189   : > { %17563 = vmatmul.mubr.msk.bf16.gmra.mrb[24].mxu1 %vm4355_vm2, %v3702_v47  ;;  %17946 = vmatprep.mubr.msk.bf16.mxu0 %vm19558_vm1, %v27425_v14  ;;  %v22648_v50 = vsel %vm21027_vm4, %v2898_v37, %v2903_v5  ;;  %v2928_v18 = vshll.u32 %v27895_v24, 16  ;;  %v8624_v12 = vcombine.low %v22618_v23, %v22625_v58  ;;  %v8625_v47 = vcombine.low %v22630_v55, %v22634_v42  ;;  %v27898_v37 = vld [vmem:[#allocation261_spill] sm:$0xff]  ;;  %v27899_v38 = vld [vmem:[#allocation74_spill] sm:$0xff]  ;;  %v27903_v42 = vld [vmem:[#allocation263_spill] sm:$0xff] }
 0x18a   : > { %27894 = vst [vmem:[#allocation302_spill] sm:$0xff] %v22648_v50  ;;  %17566 = vmatprep.mubr.msk.bf16.mxu1 %vm19558_vm1, %v27425_v14  ;;  %v22659_v6 = vsel %vm21027_vm4, %v2906_v22, %v2911_v26  ;;  %v22663_v25 = vsel %vm21027_vm4, %v2914_v45, %v2919_v27  ;;  %v3703_v5 = vcombine.low %v27898_v37, %v21518_v49  ;;  %v27900_v21 = vld [vmem:[#allocation73_spill] sm:$0xff]  ;;  %v27902_v27 = vld [vmem:[#allocation264_spill] sm:$0xff]  ;;  %v27904_v37 = vld [vmem:[#allocation266_spill] sm:$0xff] }
 0x18b   : > { %27896 = vst [vmem:[#allocation303_spill] sm:$0xff] %v22659_v6  ;;  %27897 = vst [vmem:[#allocation304_spill] sm:$0xff] %v22663_v25  ;;  %v3704_v60 = vcombine.low %v27900_v21, %v27899_v38  ;;  %v22671_v56 = vsel %vm21027_vm4, %v2923_v0, %v2928_v18  ;;  %v8626_v57 = vcombine.low %v22648_v50, %v22659_v6  ;;  %v27905_v58 = vld [vmem:[#allocation265_spill] sm:$0xff]  ;;  %v27919_v55 = vld [vmem:[#allocation198_spill] sm:$0xff] }
 0x18c   : > { %27901 = vst [vmem:[#allocation261_spill] sm:$0xff] %v22671_v56  ;;  %v8634_v22 = vrot.slane %v8624_v12, %v19646_v8  ;;  %v8641_v26 = vrot.slane %v8625_v47, %v19646_v8  ;;  %v8627_v45 = vcombine.low %v22663_v25, %v22671_v56  ;;  %v3705_v49 = vcombine.low %v27903_v42, %v27902_v27  ;;  %v27908_v12 = vld [vmem:[#allocation197_spill] sm:$0xff] }
 0x18d   : > { %v3706_v21 = vcombine.low %v27905_v58, %v27904_v37  ;;  %v22684_v38 = vrot.slane %v3703_v5, %v19646_v8  ;;  %v8648_v0 = vrot.slane %v8626_v57, %v19646_v8  ;;  %v22688_v6 = vrot.slane %v3704_v60, %v19646_v8  ;;  %v27913_v37 = vld [vmem:[#allocation194_spill] sm:$0xff] }
 0x18e   : > { %v8656_v18 = vcombine.low %v8634_v22, %v8641_v26  ;;  %v1723_v47 = vcombine.high %v27908_v12, %v27908_v12  ;;  %v8655_v56 = vrot.slane %v8627_v45, %v19646_v8  ;;  %v22694_v25 = vrot.slane %v3705_v49, %v19646_v8  ;;  %v27912_v22 = vld [vmem:[#allocation190_spill] sm:$0xff] }
 0x18f   : > { %27906 = vst [vmem:[#allocation74_spill] sm:$0xff] %v22684_v38  ;;  %27907 = vst [vmem:[#allocation73_spill] sm:$0xff] %v22688_v6  ;;  %v22697_v42 = vrot.slane %v3706_v21, %v19646_v8  ;;  %v2931_v58 = vshrl.u32 %v27895_v24, 16  ;;  %v3735_v57 = vcombine.low %v22684_v38, %v22688_v6  ;;  %v2936_v26 = vshll.u32 %v27912_v22, 16 }
 0x190   : > { %27909 = vst [vmem:[#allocation264_spill] sm:$0xff] %v22694_v25  ;;  %v8664_v5 = vrot.slane %v8656_v18, %v19646_v8  ;;  %v22704_v60 = vrot.slane %v1723_v47, %v19646_v8  ;;  %v8657_v27 = vcombine.low %v8648_v0, %v8655_v56  ;;  %v2939_v49 = vshrl.u32 %v27912_v22, 16  ;;  %v27914_v47 = vld [vmem:[#allocation189_spill] sm:$0xff] }
 0x191   : > { %27910 = vst [vmem:[#allocation263_spill] sm:$0xff] %v22697_v42  ;;  %v3736_v45 = vcombine.low %v22694_v25, %v22697_v42  ;;  %v2944_v21 = vshll.u32 %v27913_v37, 16  ;;  %v3743_v12 = vrot.slane %v3735_v57, %v19646_v8  ;;  %v22714_v18 = vsel %vm21027_vm4, %v2931_v58, %v2936_v26  ;;  %v27917_v58 = vld [vmem:[#allocation195_spill] sm:$0xff]  ;;  %v27918_v42 = vld [vmem:[#allocation196_spill] sm:$0xff] }
 0x192   : > { %27911 = vst [vmem:[#allocation266_spill] sm:$0xff] %v22704_v60  ;;  %v2947_v6 = vshrl.u32 %v27913_v37, 16  ;;  %v2952_v38 = vshll.u32 %v27914_v47, 16  ;;  %v8671_v24 = vrot.slane %v8657_v27, %v19646_v8  ;;  %v2955_v22 = vshrl.u32 %v27914_v47, 16 }
 0x193   : > { %v3750_v56 = vrot.slane %v3736_v45, %v19646_v8  ;;  %v22722_v0 = vsel %vm21027_vm4, %v2939_v49, %v2944_v21  ;;  %v2960_v26 = vshll.u32 %v27917_v58, 16  ;;  %v2963_v37 = vshrl.u32 %v27917_v58, 16  ;;  %v27922_v21 = vld [vmem:[#allocation199_spill] sm:$0xff] }
 0x194   : > { %27915 = vst [vmem:[#allocation265_spill] sm:$0xff] %v22722_v0  ;;  %v22727_v57 = vsel %vm21027_vm4, %v2947_v6, %v2952_v38  ;;  %v2968_v25 = vshll.u32 %v27918_v42, 16  ;;  %v8672_v50 = vcombine.low %v8664_v5, %v8671_v24  ;;  %v2971_v45 = vshrl.u32 %v27918_v42, 16 }
 0x195   : > { %27916 = vst [vmem:[#allocation197_spill] sm:$0xff] %v22727_v57  ;;  %v3751_v27 = vcombine.low %v3743_v12, %v3750_v56  ;;  %v2976_v23 = vshll.u32 %v27919_v55, 16  ;;  %v22736_v49 = vsel %vm21027_vm4, %v2955_v22, %v2960_v26  ;;  %v2979_v38 = vshrl.u32 %v27919_v55, 16  ;;  %v27925_v12 = vld [vmem:[#allocation206_spill] sm:$0xff] }
 0x196   : > { %27920 = vst [vmem:[#allocation190_spill] sm:$0xff] %v22736_v49  ;;  %v22740_v6 = vsel %vm21027_vm4, %v2963_v37, %v2968_v25  ;;  %v2984_v47 = vshll.u32 %v27922_v21, 16  ;;  %17947 = vmatmul.mubr.msk.bf16.gmra.mrb[68].mxu0 %vm4355_vm2, %v8672_v50  ;;  %v2987_v42 = vshrl.u32 %v27922_v21, 16  ;;  %v2992_v5 = vshll.u32 %v22704_v60, 16  ;;  %v27927_v37 = vld [vmem:[#allocation271_spill] sm:$0xff] }
 0x197   : > { %27921 = vst [vmem:[#allocation194_spill] sm:$0xff] %v22740_v6  ;;  %17567 = vmatmul.mubr.msk.bf16.gmra.mrb[28].mxu1 %vm4355_vm2, %v3751_v27  ;;  %v22748_v24 = vsel %vm21027_vm4, %v2971_v45, %v2976_v23  ;;  %v8673_v25 = vcombine.low %v22714_v18, %v22722_v0  ;;  %17950 = vmatprep.mubr.msk.bf16.mxu0 %vm19558_vm1, %v27425_v14  ;;  %v2996_v56 = vshrl.u32 %v27925_v12, 16  ;;  %v27929_v45 = vld [vmem:[#allocation273_spill] sm:$0xff] }
 0x198   : > { %27923 = vst [vmem:[#allocation196_spill] sm:$0xff] %v22748_v24  ;;  %v22758_v55 = vsel %vm21027_vm4, %v2979_v38, %v2984_v47  ;;  %v8674_v50 = vcombine.low %v22727_v57, %v22736_v49  ;;  %v8675_v23 = vcombine.low %v22740_v6, %v22748_v24  ;;  %17570 = vmatprep.mubr.msk.bf16.mxu1 %vm19558_vm1, %v27425_v14  ;;  %v27928_v47 = vld [vmem:[#allocation267_spill] sm:$0xff]  ;;  %v27930_v38 = vld [vmem:[#allocation272_spill] sm:$0xff]  ;;  %v27932_v6 = vld [vmem:[#allocation274_spill] sm:$0xff] }
 0x199   : > { %27924 = vst [vmem:[#allocation198_spill] sm:$0xff] %v22758_v55  ;;  %v22769_v22 = vsel %vm21027_vm4, %v2987_v42, %v2992_v5  ;;  %v8683_v26 = vrot.slane %v8673_v25, %v19646_v8  ;;  %v3752_v27 = vcombine.low %v27928_v47, %v27927_v37  ;;  %v3753_v21 = vcombine.low %v27930_v38, %v27929_v45  ;;  %v27931_v49 = vld [vmem:[#allocation275_spill] sm:$0xff]  ;;  %v27933_v42 = vld [vmem:[#allocation277_spill] sm:$0xff]  ;;  %v27934_v5 = vld [vmem:[#allocation276_spill] sm:$0xff] }
 0x19a   : > { %27926 = vst [vmem:[#allocation305_spill] sm:$0xff] %v22769_v22  ;;  %v8676_v60 = vcombine.low %v22758_v55, %v22769_v22  ;;  %v8690_v58 = vrot.slane %v8674_v50, %v19646_v8  ;;  %v8697_v24 = vrot.slane %v8675_v23, %v19646_v8  ;;  %v3754_v0 = vcombine.low %v27932_v6, %v27931_v49  ;;  %v27939_v49 = vld [vmem:[#allocation207_spill] sm:$0xff]  ;;  %v27942_v38 = vld [vmem:[#allocation208_spill] sm:$0xff] }
 0x19b   : > { %v3755_v57 = vcombine.low %v27934_v5, %v27933_v42  ;;  %v22785_v25 = vrot.slane %v3752_v27, %v19646_v8  ;;  %v22788_v37 = vrot.slane %v3753_v21, %v19646_v8  ;;  %v22792_v47 = vcombine.high %v27925_v12, %v27925_v12  ;;  %v27944_v5 = vld [vmem:[#allocation210_spill] sm:$0xff] }
 0x19c   : > { %v8704_v50 = vrot.slane %v8676_v60, %v19646_v8  ;;  %v8705_v45 = vcombine.low %v8683_v26, %v8690_v58  ;;  %v22796_v23 = vrot.slane %v3754_v0, %v19646_v8  ;;  %v22800_v6 = vcombine.high %v27939_v49, %v27939_v49 }
 0x19d   : > { %27935 = vst [vmem:[#allocation271_spill] sm:$0xff] %v22785_v25  ;;  %27936 = vst [vmem:[#allocation267_spill] sm:$0xff] %v22788_v37  ;;  %v22803_v27 = vrot.slane %v3755_v57, %v19646_v8  ;;  %v3784_v21 = vcombine.low %v22785_v25, %v22788_v37  ;;  %v22809_v42 = vcombine.high %v27942_v38, %v27942_v38  ;;  %v3001_v26 = vshll.u32 %v27942_v38, 16 }
 0x19e   : > { %27937 = vst [vmem:[#allocation273_spill] sm:$0xff] %v22792_v47  ;;  %27938 = vst [vmem:[#allocation272_spill] sm:$0xff] %v22796_v23  ;;  %v22813_v60 = vcombine.high %v27944_v5, %v27944_v5  ;;  %v8706_v0 = vcombine.low %v8697_v24, %v8704_v50  ;;  %v8713_v58 = vrot.slane %v8705_v45, %v19646_v8  ;;  %v3004_v12 = vshrl.u32 %v27942_v38, 16 }
 0x19f   : > { %27940 = vst [vmem:[#allocation275_spill] sm:$0xff] %v22800_v6  ;;  %27941 = vst [vmem:[#allocation274_spill] sm:$0xff] %v22803_v27  ;;  %v3785_v57 = vcombine.low %v22796_v23, %v22803_v27  ;;  %v3792_v37 = vrot.slane %v3784_v21, %v19646_v8  ;;  %v3009_v25 = vshll.u32 %v22792_v47, 16  ;;  %v3012_v22 = vshrl.u32 %v22792_v47, 16 }
 0x1a0   : > { %27943 = vst [vmem:[#allocation277_spill] sm:$0xff] %v22809_v42  ;;  %27945 = vst [vmem:[#allocation276_spill] sm:$0xff] %v22813_v60  ;;  %v8720_v55 = vrot.slane %v8706_v0, %v19646_v8  ;;  %v22826_v24 = vsel %vm21027_vm4, %v2996_v56, %v3001_v26  ;;  %v3017_v50 = vshll.u32 %v22809_v42, 16  ;;  %v3020_v45 = vshrl.u32 %v22809_v42, 16 }
 0x1a1   : > { %v3799_v38 = vrot.slane %v3785_v57, %v19646_v8  ;;  %v22833_v27 = vsel %vm21027_vm4, %v3004_v12, %v3009_v25  ;;  %v3025_v21 = vshll.u32 %v27939_v49, 16  ;;  %v3028_v23 = vshrl.u32 %v27939_v49, 16  ;;  %v27958_v49 = vld [vmem:[#allocation97_spill] sm:$0xff] }
 0x1a2   : > { %27946 = vst [vmem:[#allocation306_spill] sm:$0xff] %v22833_v27  ;;  %v8721_v47 = vcombine.low %v8713_v58, %v8720_v55  ;;  %v22839_v0 = vsel %vm21027_vm4, %v3012_v22, %v3017_v50  ;;  %v3033_v56 = vshll.u32 %v27944_v5, 16  ;;  %v3036_v26 = vshrl.u32 %v27944_v5, 16  ;;  %v27950_v50 = vld [vmem:[#allocation211_spill] sm:$0xff] }
 0x1a3   : > { %27947 = vst [vmem:[#allocation307_spill] sm:$0xff] %v22839_v0  ;;  %v3800_v42 = vcombine.low %v3792_v37, %v3799_v38  ;;  %v22845_v57 = vsel %vm21027_vm4, %v3020_v45, %v3025_v21  ;;  %v3041_v12 = vshll.u32 %v22800_v6, 16  ;;  %v3044_v25 = vshrl.u32 %v22800_v6, 16  ;;  %v27957_v6 = vld [vmem:[#allocation94_spill] sm:$0xff] }
 0x1a4   : > { %27948 = vst [vmem:[#allocation308_spill] sm:$0xff] %v22845_v57  ;;  %17951 = vmatmul.mubr.msk.bf16.gmra.mrb[72].mxu0 %vm4355_vm2, %v8721_v47  ;;  %v22852_v55 = vsel %vm21027_vm4, %v3028_v23, %v3033_v56  ;;  %v3049_v22 = vshll.u32 %v22813_v60, 16  ;;  %v3052_v58 = vshrl.u32 %v22813_v60, 16  ;;  %v3057_v37 = vshll.u32 %v27950_v50, 16 }
 0x1a5   : > { %27949 = vst [vmem:[#allocation309_spill] sm:$0xff] %v22852_v55  ;;  %17571 = vmatmul.mubr.msk.bf16.gmra.mrb[32].mxu1 %vm4355_vm2, %v3800_v42  ;;  %17954 = vmatprep.mubr.msk.bf16.mxu0 %vm19558_vm1, %v27425_v14  ;;  %v22862_v38 = vsel %vm21027_vm4, %v3036_v26, %v3041_v12  ;;  %v8722_v47 = vcombine.low %v22826_v24, %v22833_v27  ;;  %v3060_v45 = vshrl.u32 %v27950_v50, 16  ;;  %v27954_v26 = vld [vmem:[#allocation92_spill] sm:$0xff]  ;;  %v27955_v12 = vld [vmem:[#allocation278_spill] sm:$0xff] }
 0x1a6   : > { %27951 = vst [vmem:[#allocation310_spill] sm:$0xff] %v22862_v38  ;;  %v8723_v23 = vcombine.low %v22839_v0, %v22845_v57  ;;  %v22871_v21 = vsel %vm21027_vm4, %v3044_v25, %v3049_v22  ;;  %v22875_v42 = vsel %vm21027_vm4, %v3052_v58, %v3057_v37  ;;  %v8724_v56 = vcombine.low %v22852_v55, %v22862_v38  ;;  %v27956_v22 = vld [vmem:[#allocation279_spill] sm:$0xff]  ;;  %v27960_v55 = vld [vmem:[#allocation281_spill] sm:$0xff]  ;;  %v27961_v27 = vld [vmem:[#allocation280_spill] sm:$0xff] }
 0x1a7   : > { %27952 = vst [vmem:[#allocation311_spill] sm:$0xff] %v22871_v21  ;;  %27953 = vst [vmem:[#allocation312_spill] sm:$0xff] %v22875_v42  ;;  %17574 = vmatprep.mubr.msk.bf16.mxu1 %vm19558_vm1, %v27425_v14  ;;  %v3801_v60 = vcombine.low %v27955_v12, %v27954_v26  ;;  %v8725_v50 = vcombine.low %v22871_v21, %v22875_v42  ;;  %v8732_v5 = vrot.slane %v8722_v47, %v19646_v8  ;;  %v27959_v38 = vld [vmem:[#allocation95_spill] sm:$0xff] }
 0x1a8   : > { %v8739_v25 = vrot.slane %v8723_v23, %v19646_v8  ;;  %v3802_v58 = vcombine.low %v27957_v6, %v27956_v22  ;;  %v8746_v37 = vrot.slane %v8724_v56, %v19646_v8  ;;  %v3803_v57 = vcombine.low %v27959_v38, %v27958_v49  ;;  %v27964_v23 = vld [vmem:[#allocation205_spill] sm:$0xff] }
 0x1a9   : > { %v3804_v0 = vcombine.low %v27961_v27, %v27960_v55  ;;  %v22895_v26 = vrot.slane %v3801_v60, %v19646_v8  ;;  %v8753_v12 = vrot.slane %v8725_v50, %v19646_v8  ;;  %v1731_v6 = vcombine.high %v27964_v23, %v27964_v23  ;;  %v27967_v38 = vld [vmem:[#allocation209_spill] sm:$0xff]  ;;  %v27971_v23 = vld [vmem:[#allocation216_spill] sm:$0xff] }
 0x1aa   : > { %v8754_v42 = vcombine.low %v8732_v5, %v8739_v25  ;;  %v22899_v47 = vrot.slane %v3802_v58, %v19646_v8  ;;  %v22904_v56 = vrot.slane %v3803_v57, %v19646_v8  ;;  %v3142_v27 = vshrl.u32 %v27967_v38, 16  ;;  %v27968_v55 = vld [vmem:[#allocation213_spill] sm:$0xff] }
 0x1ab   : > { %27962 = vst [vmem:[#allocation92_spill] sm:$0xff] %v22895_v26  ;;  %v22907_v49 = vrot.slane %v3804_v0, %v19646_v8  ;;  %v3147_v60 = vshll.u32 %v27968_v55, 16  ;;  %v8755_v22 = vcombine.low %v8746_v37, %v8753_v12  ;;  %v22915_v25 = vrot.slane %v1731_v6, %v19646_v8 }
 0x1ac   : > { %27963 = vst [vmem:[#allocation278_spill] sm:$0xff] %v22899_v47  ;;  %27965 = vst [vmem:[#allocation279_spill] sm:$0xff] %v22904_v56  ;;  %v8762_v50 = vrot.slane %v8754_v42, %v19646_v8  ;;  %v3833_v5 = vcombine.low %v22895_v26, %v22899_v47  ;;  %v3150_v58 = vshrl.u32 %v27968_v55, 16  ;;  %v3155_v38 = vshll.u32 %v27971_v23, 16 }
 0x1ad   : > { %27966 = vst [vmem:[#allocation94_spill] sm:$0xff] %v22907_v49  ;;  %27969 = vst [vmem:[#allocation97_spill] sm:$0xff] %v22915_v25  ;;  %v3834_v57 = vcombine.low %v22904_v56, %v22907_v49  ;;  %v22921_v0 = vsel %vm21027_vm4, %v3142_v27, %v3147_v60  ;;  %v8769_v37 = vrot.slane %v8755_v22, %v19646_v8  ;;  %v3065_v12 = vshll.u32 %v22915_v25, 16  ;;  %v27973_v27 = vld [vmem:[#allocation220_spill] sm:$0xff] }
 0x1ae   : > { %27970 = vst [vmem:[#allocation95_spill] sm:$0xff] %v22921_v0  ;;  %v3841_v42 = vrot.slane %v3833_v5, %v19646_v8  ;;  %v3158_v6 = vshrl.u32 %v27971_v23, 16  ;;  %v22932_v49 = vsel %vm21027_vm4, %v3150_v58, %v3155_v38  ;;  %v3163_v60 = vshll.u32 %v27973_v27, 16  ;;  %v27975_v5 = vld [vmem:[#allocation212_spill] sm:$0xff]  ;;  %v27977_v38 = vld [vmem:[#allocation215_spill] sm:$0xff] }
 0x1af   : > { %v3848_v47 = vrot.slane %v3834_v57, %v19646_v8  ;;  %27972 = vst [vmem:[#allocation281_spill] sm:$0xff] %v22932_v49  ;;  %v3166_v56 = vshrl.u32 %v27973_v27, 16  ;;  %v8770_v26 = vcombine.low %v8762_v50, %v8769_v37  ;;  %v22938_v22 = vsel %vm21027_vm4, %v3060_v45, %v3065_v12  ;;  %v27979_v45 = vld [vmem:[#allocation219_spill] sm:$0xff] }
 0x1b0   : > { %27974 = vst [vmem:[#allocation280_spill] sm:$0xff] %v22938_v22  ;;  %v3171_v55 = vshll.u32 %v27975_v5, 16  ;;  %v3174_v25 = vshrl.u32 %v27975_v5, 16  ;;  %v22944_v57 = vsel %vm21027_vm4, %v3158_v6, %v3163_v60  ;;  %v3179_v58 = vshll.u32 %v27977_v38, 16  ;;  %v27984_v60 = vld [vmem:[#allocation221_spill] sm:$0xff] }
 0x1b1   : > { %v3849_v23 = vcombine.low %v3841_v42, %v3848_v47  ;;  %27976 = vst [vmem:[#allocation205_spill] sm:$0xff] %v22944_v57  ;;  %v3182_v21 = vshrl.u32 %v27977_v38, 16  ;;  %17955 = vmatmul.mubr.msk.bf16.gmra.mrb[76].mxu0 %vm4355_vm2, %v8770_v26  ;;  %v3187_v37 = vshll.u32 %v27979_v45, 16  ;;  %v3190_v12 = vshrl.u32 %v27979_v45, 16  ;;  %v27991_v5 = vld [vmem:[#allocation293_spill] sm:$0xff] }
 0x1b2   : > { %v22951_v50 = vsel %vm21027_vm4, %v3166_v56, %v3171_v55  ;;  %v8771_v47 = vcombine.low %v22938_v22, %v22921_v0  ;;  %17958 = vmatprep.mubr.msk.bf16.mxu0 %vm19558_vm1, %v27425_v14  ;;  %v22962_v42 = vsel %vm21027_vm4, %v3174_v25, %v3179_v58  ;;  %v8772_v26 = vcombine.low %v22932_v49, %v22944_v57  ;;  %v27981_v56 = vld [vmem:[#allocation287_spill] sm:$0xff]  ;;  %v27990_v49 = vld [vmem:[#allocation290_spill] sm:$0xff] }
 0x1b3   : > { %27978 = vst [vmem:[#allocation216_spill] sm:$0xff] %v22951_v50  ;;  %17575 = vmatmul.mubr.msk.bf16.gmra.mrb[36].mxu1 %vm4355_vm2, %v3849_v23  ;;  %27980 = vst [vmem:[#allocation220_spill] sm:$0xff] %v22962_v42  ;;  %v27982_v55 = vld [vmem:[#allocation283_spill] sm:$0xff]  ;;  %v22970_v27 = vsel %vm21027_vm4, %v3182_v21, %v3187_v37  ;;  %v27985_v45 = vshll.u32 %v27984_v60, 16  ;;  %v8773_v25 = vcombine.low %v22951_v50, %v22962_v42  ;;  %v27987_v37 = vld [vmem:[#allocation289_spill] sm:$0xff]  ;;  %v3198_v38 = vshrl.u32 %v27984_v60, 16 }
 0x1b4   : > { %v3850_v6 = vcombine.low %v27982_v55, %v27981_v56  ;;  %27983 = vst [vmem:[#allocation219_spill] sm:$0xff] %v22970_v27  ;;  %v8781_v58 = vrot.slane %v8771_v47, %v19646_v8  ;;  %17578 = vmatprep.mubr.msk.bf16.mxu1 %vm19558_vm1, %v27425_v14  ;;  %v8788_v21 = vrot.slane %v8772_v26, %v19646_v8  ;;  %v27988_v55 = vld [vmem:[#allocation288_spill] sm:$0xff]  ;;  %v27989_v0 = vld [vmem:[#allocation291_spill] sm:$0xff] }
 0x1b5   : > { %v22976_v23 = vsel %vm21027_vm4, %v3190_v12, %v27985_v45  ;;  %v3851_v57 = vcombine.low %v27988_v55, %v27987_v37  ;;  %v3852_v12 = vcombine.low %v27990_v49, %v27989_v0  ;;  %v8795_v45 = vrot.slane %v8773_v25, %v19646_v8  ;;  %v27992_v42 = vld [vmem:[#allocation292_spill] sm:$0xff]  ;;  %v27997_v0 = vld [vmem:[#allocation222_spill] sm:$0xff] }
 0x1b6   : > { %27986 = vst [vmem:[#allocation287_spill] sm:$0xff] %v22976_v23  ;;  %v8774_v56 = vcombine.low %v22970_v27, %v22976_v23  ;;  %v3853_v50 = vcombine.low %v27992_v42, %v27991_v5  ;;  %v22994_v47 = vrot.slane %v3850_v6, %v19646_v8  ;;  %v8803_v22 = vcombine.low %v8781_v58, %v8788_v21  ;;  %v27998_v42 = vld [vmem:[#allocation228_spill] sm:$0xff] }
 0x1b7   : > { %v22999_v26 = vrot.slane %v3851_v57, %v19646_v8  ;;  %v23002_v37 = vrot.slane %v3852_v12, %v19646_v8  ;;  %v3133_v5 = vcombine.high %v27997_v0, %v27997_v0  ;;  %v3203_v6 = vshll.u32 %v27998_v42, 16 }
 0x1b8   : > { %27993 = vst [vmem:[#allocation283_spill] sm:$0xff] %v22994_v47  ;;  %v8802_v27 = vrot.slane %v8774_v56, %v19646_v8  ;;  %v23005_v49 = vrot.slane %v3853_v50, %v19646_v8  ;;  %v8811_v60 = vrot.slane %v8803_v22, %v19646_v8  ;;  %v3206_v21 = vshrl.u32 %v27998_v42, 16  ;;  %v28158_v42 = vld [vmem:[#allocation9_spill] sm:$0xff] }
 0x1b9   : > { %27994 = vst [vmem:[#allocation221_spill] sm:$0xff] %v22999_v26  ;;  %27995 = vst [vmem:[#allocation289_spill] sm:$0xff] %v23002_v37  ;;  %v3882_v58 = vcombine.low %v22994_v47, %v22999_v26  ;;  %v23016_v56 = vrot.slane %v3133_v5, %v19646_v8  ;;  %v23020_v50 = vsel %vm21027_vm4, %v3198_v38, %v3203_v6  ;;  %v28001_v5 = vld [vmem:[#allocation294_spill] sm:$0xff]  ;;  %v28104_v26 = vld [vmem:[#allocation72_spill] sm:$0xff] }
 0x1ba   : > { %27996 = vst [vmem:[#allocation288_spill] sm:$0xff] %v23005_v49  ;;  %v8804_v25 = vcombine.low %v8795_v45, %v8802_v27  ;;  %v3883_v57 = vcombine.low %v23002_v37, %v23005_v49  ;;  %28000 = vst [vmem:[#allocation290_spill] sm:$0xff] %v23020_v50  ;;  %v3899_v49 = vcombine.low %v28001_v5, %v21932_v29 }
 0x1bb   : > { %27999 = vst [vmem:[#allocation291_spill] sm:$0xff] %v23016_v56  ;;  %v3890_v27 = vrot.slane %v3882_v58, %v19646_v8  ;;  %v3211_v45 = vshll.u32 %v23016_v56, 16  ;;  %v3900_v38 = vcombine.low %v21920_v61, %v21927_v36  ;;  %v3901_v6 = vcombine.low %v21936_v48, %v21950_v19  ;;  %v28006_v48 = vld [vmem:[#allocation224_spill] sm:$0xff]  ;;  %v28007_v19 = vld [vmem:[#allocation14_spill] sm:$0xff]  ;;  %v28159_v56 = vld [vmem:[#allocation5_spill] sm:$0xff] }
 0x1bc   : > { %v8818_v55 = vrot.slane %v8804_v25, %v19646_v8  ;;  %v3897_v12 = vrot.slane %v3883_v57, %v19646_v8  ;;  %v23045_v29 = vrot.slane %v3899_v49, %v19646_v8  ;;  %v3951_v22 = vcombine.low %v22074_v1, %v22087_v30  ;;  %v28021_v30 = vld [vmem:[#allocation23_spill] sm:$0xff] }
 0x1bd   : > { %v23037_v58 = vsel %vm21027_vm4, %v3206_v21, %v3211_v45  ;;  %v23048_v61 = vrot.slane %v3900_v38, %v19646_v8  ;;  %v23054_v36 = vrot.slane %v3901_v6, %v19646_v8  ;;  %v4673_v21 = vcombine.low %v28007_v19, %v28006_v48  ;;  %v28011_v45 = vld [vmem:[#allocation230_spill] sm:$0xff]  ;;  %v422_v38 = vld [vmem:[%s26638_s1 + $0xc] sm:$0x3]  ;;  %v28014_v48 = vld [vmem:[#allocation232_spill] sm:$0xff] }
 0x1be   : > { %v8819_v0 = vcombine.low %v8811_v60, %v8818_v55  ;;  %v3898_v25 = vcombine.low %v3890_v27, %v3897_v12  ;;  %28002 = vst [vmem:[#allocation293_spill] sm:$0xff] %v23037_v58  ;;  %v8820_v57 = vcombine.low %v23020_v50, %v23037_v58  ;;  %v3902_v60 = vcombine.low %v21960_v10, %v21964_v44  ;;  %v28008_v55 = vld [vmem:[#allocation13_spill] sm:$0xff]  ;;  %v28009_v27 = vld [vmem:[#allocation231_spill] sm:$0xff] }
 0x1bf   : > { %28003 = vst [vmem:[#allocation292_spill] sm:$0xff] %v23045_v29  ;;  %28004 = vst [vmem:[#allocation222_spill] sm:$0xff] %v23048_v61  ;;  %v4674_v10 = vcombine.low %v28009_v27, %v28008_v55  ;;  %v3931_v12 = vcombine.low %v23045_v29, %v23048_v61  ;;  %v23074_v6 = vrot.slane %v4673_v21, %v19646_v8  ;;  %v28016_v58 = vld [vmem:[#allocation19_spill] sm:$0xff] }
 0x1c0   : > { %17959 = vmatmul.mubr.msk.bf16.gmra.mrb[80].mxu0 %vm4355_vm2, %v8819_v0  ;;  %17579 = vmatmul.mubr.msk.bf16.gmra.mrb[40].mxu1 %vm4355_vm2, %v3898_v25  ;;  %28005 = vst [vmem:[#allocation294_spill] sm:$0xff] %v23054_v36  ;;  %v8827_v44 = vrot.slane %v8820_v57, %v19646_v8  ;;  %v23064_v49 = vrot.slane %v3902_v60, %v19646_v8  ;;  %v28012_v0 = vld [vmem:[#allocation15_spill] sm:$0xff]  ;;  %v28013_v57 = vld [vmem:[#allocation22_spill] sm:$0xff] }
 0x1c1   : > { %17962 = vmatprep.mubr.msk.bf16.mxu0 %vm19558_vm1, %v27425_v14  ;;  %17582 = vmatprep.mubr.msk.bf16.mxu1 %vm19558_vm1, %v27425_v14  ;;  %v4675_v5 = vcombine.low %v28012_v0, %v28011_v45  ;;  %v23077_v25 = vrot.slane %v4674_v10, %v19646_v8  ;;  %v4721_v60 = vcombine.low %v28014_v48, %v28013_v57  ;;  %v10247_v10 = vsel %vm4419_vm0, %v422_v38, 0  ;;  %v28015_v38 = vld [vmem:[#allocation21_spill] sm:$0xff]  ;;  %v28039_v50 = vld [vmem:[#allocation35_spill] sm:$0xff] }
 0x1c2   : > { %28010 = vst [vmem:[#allocation224_spill] sm:$0xff] %v23064_v49  ;;  %v8834_v19 = vrot.slane %v8827_v44, %v19646_v8  ;;  %v3932_v55 = vcombine.low %v23054_v36, %v23064_v49  ;;  %v3939_v27 = vrot.slane %v3931_v12, %v19646_v8  ;;  %v3948_v44 = vcombine.low %v21970_v34, %v22044_v33  ;;  %v28103_v29 = vld [vmem:[#allocation67_spill] sm:$0xff] }
 0x1c3   : > { %v23086_v45 = vrot.slane %v4675_v5, %v19646_v8  ;;  %v23089_v0 = vrot.slane %v4721_v60, %v19646_v8  ;;  %v9142_v21 = vcombine.low %v23074_v6, %v23077_v25  ;;  %v3949_v48 = vcombine.low %v22057_v35, %v22050_v31 }
 0x1c4   : > { %v3946_v57 = vrot.slane %v3932_v55, %v19646_v8  ;;  %v3950_v12 = vcombine.low %v22061_v28, %v22066_v13  ;;  %v4722_v55 = vcombine.low %v28016_v58, %v28015_v38  ;;  %v23110_v33 = vrot.slane %v3948_v44, %v19646_v8 }
 0x1c5   : > { %v9143_v5 = vcombine.low %v23086_v45, %v23089_v0  ;;  %v9150_v60 = vrot.slane %v9142_v21, %v19646_v8  ;;  %v23113_v31 = vrot.slane %v3949_v48, %v19646_v8  ;;  %v23122_v13 = vrot.slane %v3951_v22, %v19646_v8  ;;  %v28023_v22 = vld [vmem:[#allocation25_spill] sm:$0xff] }
 0x1c6   : > { %v3947_v34 = vcombine.low %v3939_v27, %v3946_v57  ;;  %28017 = vst [vmem:[#allocation14_spill] sm:$0xff] %v23110_v33  ;;  %v23116_v35 = vrot.slane %v3950_v12, %v19646_v8  ;;  %v16830_v1 = vcombine.high %v28016_v58, %v28015_v38  ;;  %v23132_v57 = vrot.slane %v4722_v55, %v19646_v8 }
 0x1c7   : > { %28018 = vst [vmem:[#allocation13_spill] sm:$0xff] %v23113_v31  ;;  %v9157_v28 = vrot.slane %v9143_v5, %v19646_v8  ;;  %28020 = vst [vmem:[#allocation230_spill] sm:$0xff] %v23122_v13  ;;  %v3980_v21 = vcombine.low %v23110_v33, %v23113_v31  ;;  %v9159_v48 = vcombine.low %v28023_v22, %v28015_v38  ;;  %v28088_v33 = vld [vmem:[#allocation300_spill] sm:$0xff] }
 0x1c8   : > { %17963 = vmatmul.mubr.msk.bf16.gmra.mrb[92].mxu0 %vm4355_vm2, %v8834_v19  ;;  %28019 = vst [vmem:[#allocation231_spill] sm:$0xff] %v23116_v35  ;;  %v28022_v19 = vld [vmem:[#allocation20_spill] sm:$0xff]  ;;  %17583 = vmatmul.mubr.msk.bf16.gmra.mrb[44].mxu1 %vm4355_vm2, %v3947_v34  ;;  %v3981_v58 = vcombine.low %v23116_v35, %v23122_v13  ;;  %v23143_v5 = vrot.slane %v16830_v1, %v19646_v8  ;;  %v28076_v13 = vld [vmem:[#allocation57_spill] sm:$0xff] }
 0x1c9   : > { %17968 = vmatprep.mubr.msk.bf16.mxu0 %vm19558_vm1, %v27425_v14  ;;  %v4724_v27 = vcombine.low %v28022_v19, %v28021_v30  ;;  %v16831_v44 = vcombine.high %v28022_v19, %v28021_v30  ;;  %v9158_v12 = vcombine.low %v9150_v60, %v9157_v28  ;;  %17586 = vmatprep.mubr.msk.bf16.mxu1 %vm19558_vm1, %v27425_v14 }
 0x1ca   : > { %v3988_v55 = vrot.slane %v3980_v21, %v19646_v8  ;;  %v9166_v38 = vrot.slane %v9159_v48, %v19646_v8  ;;  %v3997_v60 = vcombine.low %v22100_v41, %v22157_v32  ;;  %v3995_v28 = vrot.slane %v3981_v58, %v19646_v8  ;;  %v416_v32 = vld [vmem:[%s26638_s1] sm:$0x3]  ;;  %v28030_v58 = vld [vmem:[#allocation235_spill] sm:$0xff] }
 0x1cb   : > { %v23146_v34 = vrot.slane %v4724_v27, %v19646_v8  ;;  %v23150_v30 = vrot.slane %v16831_v44, %v19646_v8  ;;  %v9964_v19 = vcombine.low %v23132_v57, %v23143_v5  ;;  %v3998_v1 = vcombine.low %v22170_v59, %v22174_v54 }
 0x1cc   : > { %v3999_v27 = vcombine.low %v22179_v2, %v22187_v52  ;;  %v9167_v21 = vcombine.low %v9166_v38, %v23143_v5  ;;  %v4000_v22 = vcombine.low %v22194_v4, %v22206_v9  ;;  %v23168_v41 = vrot.slane %v3997_v60, %v19646_v8 }
 0x1cd   : > { %v9168_v44 = vcombine.low %v23146_v34, %v23150_v30  ;;  %v3996_v48 = vcombine.low %v3988_v55, %v3995_v28  ;;  %v23174_v59 = vrot.slane %v9964_v19, %v19646_v8  ;;  %v23177_v54 = vrot.slane %v3998_v1, %v19646_v8  ;;  %v28031_v55 = vld [vmem:[#allocation33_spill] sm:$0xff]  ;;  %v28032_v28 = vld [vmem:[#allocation32_spill] sm:$0xff] }
 0x1ce   : > { %28024 = vst [vmem:[#allocation15_spill] sm:$0xff] %v23168_v41  ;;  %v23180_v2 = vrot.slane %v3999_v27, %v19646_v8  ;;  %v9175_v52 = vrot.slane %v9167_v21, %v19646_v8  ;;  %v23188_v9 = vrot.slane %v4000_v22, %v19646_v8  ;;  %v4772_v38 = vcombine.low %v28031_v55, %v28030_v58  ;;  %v28034_v1 = vld [vmem:[#allocation237_spill] sm:$0xff]  ;;  %v28035_v27 = vld [vmem:[#allocation34_spill] sm:$0xff] }
 0x1cf   : > { %28025 = vst [vmem:[#allocation22_spill] sm:$0xff] %v23174_v59  ;;  %28026 = vst [vmem:[#allocation232_spill] sm:$0xff] %v23177_v54  ;;  %v23185_v4 = vrot.slane %v9168_v44, %v19646_v8  ;;  %v4029_v60 = vcombine.low %v23168_v41, %v23177_v54  ;;  %v4819_v21 = vcombine.low %v28035_v27, %v28034_v1  ;;  %v5682_v44 = vsel %vm4419_vm0, %v416_v32, 0  ;;  %v28072_v54 = vld [vmem:[#allocation297_spill] sm:$0xff] }
 0x1d0   : > { %28027 = vst [vmem:[#allocation21_spill] sm:$0xff] %v23180_v2  ;;  %17969 = vmatmul.mubr.msk.bf16.vlgmr.msra.gmra.mrb[96].mxu0 %vm4355_vm2, %v9158_v12  ;;  %28029 = vst [vmem:[#allocation23_spill] sm:$0xff] %v23188_v9  ;;  %v28033_v12 = vld [vmem:[#allocation236_spill] sm:$0xff]  ;;  %17587 = vmatmul.mubr.msk.bf16.gmra.mrb[48].mxu1 %vm4355_vm2, %v3996_v48  ;;  %v4030_v58 = vcombine.low %v23180_v2, %v23188_v9  ;;  %v23208_v55 = vrot.slane %v4772_v38, %v19646_v8  ;;  %v28066_v9 = vld [vmem:[#allocation50_spill] sm:$0xff] }
 0x1d1   : > { %28028 = vst [vmem:[#allocation19_spill] sm:$0xff] %v23185_v4  ;;  %18053 = vmatpush3.bf16.msra.mxu0 %v10247_v10  ;;  %17972 = vmatprep.mubr.msk.bf16.mxu0 %vm19558_vm1, %v27425_v14  ;;  %v4773_v19 = vcombine.low %v28033_v12, %v28032_v28  ;;  %v9183_v22 = vcombine.low %v9175_v52, %v23185_v4  ;;  %v28037_v52 = vld [vmem:[#allocation30_spill] sm:$0xff]  ;;  %v28038_v12 = vld [vmem:[#allocation24_spill] sm:$0xff] }
 0x1d2   : > { %28036 = vst [vmem:[#allocation20_spill] sm:$0xff] %v23208_v55  ;;  %17590 = vmatprep.mubr.msk.bf16.mxu1 %vm19558_vm1, %v27425_v14  ;;  %v4037_v28 = vrot.slane %v4029_v60, %v19646_v8  ;;  %v23217_v48 = vrot.slane %v4819_v21, %v19646_v8  ;;  %v9184_v1 = vcombine.low %v28038_v12, %v28037_v52 }
 0x1d3   : > { %v23214_v32 = vrot.slane %v4773_v19, %v19646_v8  ;;  %v4044_v27 = vrot.slane %v4030_v58, %v19646_v8  ;;  %v4046_v38 = vcombine.low %v22210_v15, %v22276_v51  ;;  %v4047_v10 = vcombine.low %v22284_v63, %v22294_v53  ;;  %17623 = vmatpush3.bf16.msra.mxu1 %v5682_v44  ;;  %v28040_v58 = vld [vmem:[#allocation240_spill] sm:$0xff] }
 0x1d4   : > { %v4048_v60 = vcombine.low %v22302_v16, %v22310_v62  ;;  %v9191_v19 = vrot.slane %v9184_v1, %v19646_v8  ;;  %v4049_v52 = vcombine.low %v22317_v20, %v22329_v3  ;;  %v4820_v23 = vcombine.low %v28040_v58, %v28039_v50  ;;  %18138 = vmatprep.subr.bf16.mxu0 %v27425_v14  ;;  %v28046_v20 = vld [vmem:[#allocation42_spill] sm:$0xff]  ;;  %v28047_v50 = vld [vmem:[#allocation39_spill] sm:$0xff]  ;;  %v28049_v1 = vld [vmem:[#allocation48_spill] sm:$0xff] }
 0x1d5   : > { %v9193_v21 = vcombine.low %v23214_v32, %v23217_v48  ;;  %v4045_v15 = vcombine.low %v4037_v28, %v4044_v27  ;;  %v23237_v51 = vrot.slane %v4046_v38, %v19646_v8  ;;  %v23240_v63 = vrot.slane %v4047_v10, %v19646_v8  ;;  %18616 = vmatprep.subr.bf16.mxu1 %v27425_v14  ;;  %v28050_v27 = vld [vmem:[#allocation40_spill] sm:$0xff] }
 0x1d6   : > { %v23243_v53 = vrot.slane %v4048_v60, %v19646_v8  ;;  %v9192_v16 = vcombine.low %v9191_v19, %v23208_v55  ;;  %v23251_v62 = vrot.slane %v4049_v52, %v19646_v8  ;;  %v16832_v44 = vcombine.high %v28047_v50, %v28046_v20  ;;  %v28051_v60 = vld [vmem:[#allocation41_spill] sm:$0xff] }
 0x1d7   : > { %28041 = vst [vmem:[#allocation25_spill] sm:$0xff] %v23237_v51  ;;  %28042 = vst [vmem:[#allocation235_spill] sm:$0xff] %v23240_v63  ;;  %v23248_v3 = vrot.slane %v9193_v21, %v19646_v8  ;;  %v4078_v10 = vcombine.low %v23237_v51, %v23240_v63  ;;  %v23259_v28 = vrot.slane %v4820_v23, %v19646_v8 }
 0x1d8   : > { %28043 = vst [vmem:[#allocation33_spill] sm:$0xff] %v23243_v53  ;;  %28045 = vst [vmem:[#allocation236_spill] sm:$0xff] %v23251_v62  ;;  %17973 = vmatmul.mubr.msk.bf16.gmra.mrb[4].mxu0 %vm4355_vm2, %v9183_v22  ;;  %v4868_v38 = vcombine.low %v28050_v27, %v28049_v1  ;;  %v9209_v19 = vcombine.low %v28051_v60, %v28046_v20  ;;  %v9200_v21 = vrot.slane %v9192_v16, %v19646_v8 }
 0x1d9   : > { %28044 = vst [vmem:[#allocation32_spill] sm:$0xff] %v23248_v3  ;;  %28048 = vst [vmem:[#allocation237_spill] sm:$0xff] %v23259_v28  ;;  %17976 = vmatprep.mubr.msk.bf16.mxu0 %vm19558_vm1, %v27425_v14  ;;  %v4079_v22 = vcombine.low %v23243_v53, %v23251_v62  ;;  %v23271_v52 = vrot.slane %v16832_v44, %v19646_v8  ;;  %v4095_v23 = vcombine.low %v22333_v11, %v22394_v43  ;;  %v28052_v11 = vld [vmem:[#allocation156_spill] sm:$0xff] }
 0x1da   : > { %17591 = vmatmul.mubr.msk.bf16.gmra.mrb[52].mxu1 %vm4355_vm2, %v4045_v15  ;;  %v4086_v58 = vrot.slane %v4078_v10, %v19646_v8  ;;  %v23278_v60 = vrot.slane %v4868_v38, %v19646_v8  ;;  %v9216_v39 = vrot.slane %v9209_v19, %v19646_v8  ;;  %v4096_v16 = vcombine.low %v22405_v7, %v22411_v17  ;;  %v28053_v15 = vld [vmem:[#allocation167_spill] sm:$0xff]  ;;  %v28054_v10 = vld [vmem:[#allocation164_spill] sm:$0xff] }
 0x1db   : > { %v9208_v62 = vcombine.low %v9200_v21, %v23248_v3  ;;  %17594 = vmatprep.mubr.msk.bf16.mxu1 %vm19558_vm1, %v27425_v14  ;;  %v4093_v44 = vrot.slane %v4079_v22, %v19646_v8  ;;  %v4097_v43 = vcombine.low %v28052_v11, %v22420_v46  ;;  %v4098_v63 = vcombine.low %v28054_v10, %v28053_v15  ;;  %v7793_v21 = vpop.f32.mrb[84].mxu0  ;;  %v28060_v10 = vld [vmem:[#allocation247_spill] sm:$0xff] }
 0x1dc   : > { %v9217_v38 = vcombine.low %v23259_v28, %v9216_v39  ;;  %v9218_v19 = vcombine.low %v23271_v52, %v23278_v60  ;;  %v23295_v7 = vrot.slane %v4095_v23, %v19646_v8  ;;  %v23298_v17 = vrot.slane %v4096_v16, %v19646_v8  ;;  %v17878_v11 = vpop.f32.mrb[85].mxu0 }
 0x1dd   : > { %v4094_v53 = vcombine.low %v4086_v58, %v4093_v44  ;;  %v23301_v22 = vrot.slane %v4097_v43, %v19646_v8  ;;  %v23304_v46 = vrot.slane %v4098_v63, %v19646_v8  ;;  %v16833_v39 = vcombine.high %v28050_v27, %v28049_v1  ;;  %v28061_v58 = vld [vmem:[#allocation52_spill] sm:$0xff]  ;;  %v7796_v43 = vpop.f32.mrb[86].mxu0  ;;  %v28063_v1 = vld [vmem:[#allocation53_spill] sm:$0xff] }
 0x1de   : > { %28055 = vst [vmem:[#allocation34_spill] sm:$0xff] %v23295_v7  ;;  %28056 = vst [vmem:[#allocation30_spill] sm:$0xff] %v23298_v17  ;;  %v9225_v15 = vrot.slane %v9217_v38, %v19646_v8  ;;  %v23310_v23 = vrot.slane %v9218_v19, %v19646_v8  ;;  %v4127_v16 = vcombine.low %v23295_v7, %v23298_v17  ;;  %v28064_v27 = vld [vmem:[#allocation248_spill] sm:$0xff]  ;;  %v17879_v51 = vpop.f32.mrb[87].mxu0  ;;  %v28067_v43 = vld [vmem:[#allocation246_spill] sm:$0xff] }
 0x1df   : > { %28057 = vst [vmem:[#allocation24_spill] sm:$0xff] %v23301_v22  ;;  %28058 = vst [vmem:[#allocation35_spill] sm:$0xff] %v23304_v46  ;;  %v4871_v44 = vcombine.low %v28061_v58, %v28060_v10  ;;  %v4128_v63 = vcombine.low %v23301_v22, %v23304_v46  ;;  %v23319_v21 = vrot.slane %v16833_v39, %v19646_v8  ;;  %v28065_v38 = vld [vmem:[#allocation64_spill] sm:$0xff] }
 0x1e0   : > { %28059 = vst [vmem:[#allocation240_spill] sm:$0xff] %v23310_v23  ;;  %v4917_v11 = vcombine.low %v28064_v27, %v28063_v1  ;;  %v9234_v19 = vcombine.low %v28066_v9, %v28065_v38  ;;  %17977 = vmatmul.mubr.msk.bf16.gmra.mrb[8].mxu0 %vm4355_vm2, %v9208_v62  ;;  %v4135_v17 = vrot.slane %v4127_v16, %v19646_v8  ;;  %v28068_v27 = vld [vmem:[#allocation173_spill] sm:$0xff]  ;;  %v28069_v62 = vld [vmem:[#allocation171_spill] sm:$0xff] }
 0x1e1   : > { %28062 = vst [vmem:[#allocation42_spill] sm:$0xff] %v23319_v21  ;;  %v23328_v10 = vrot.slane %v4871_v44, %v19646_v8  ;;  %v4144_v46 = vcombine.low %v28067_v43, %v22501_v40  ;;  %17980 = vmatprep.mubr.msk.bf16.mxu0 %vm19558_vm1, %v27425_v14  ;;  %v4142_v39 = vrot.slane %v4128_v63, %v19646_v8  ;;  %v28070_v16 = vld [vmem:[#allocation295_spill] sm:$0xff]  ;;  %v28073_v40 = vld [vmem:[#allocation296_spill] sm:$0xff]  ;;  %v28075_v63 = vld [vmem:[#allocation254_spill] sm:$0xff] }
 0x1e2   : > { %v23336_v1 = vrot.slane %v4917_v11, %v19646_v8  ;;  %v9241_v51 = vrot.slane %v9234_v19, %v19646_v8  ;;  %v4145_v22 = vcombine.low %v28069_v62, %v28068_v27  ;;  %17595 = vmatmul.mubr.msk.bf16.gmra.mrb[56].mxu1 %vm4355_vm2, %v4094_v53  ;;  %v28071_v44 = vld [vmem:[#allocation175_spill] sm:$0xff]  ;;  %v4147_v43 = vcombine.low %v28073_v40, %v28072_v54  ;;  %v28082_v40 = vld [vmem:[#allocation61_spill] sm:$0xff] }
 0x1e3   : > { %v4146_v7 = vcombine.low %v28071_v44, %v28070_v16  ;;  %v23347_v2 = vrot.slane %v4144_v46, %v19646_v8  ;;  %v4918_v11 = vcombine.low %v28076_v13, %v28075_v63  ;;  %v9233_v41 = vcombine.low %v9225_v15, %v23310_v23  ;;  %17598 = vmatprep.mubr.msk.bf16.mxu1 %vm19558_vm1, %v27425_v14  ;;  %v28080_v13 = vld [vmem:[#allocation58_spill] sm:$0xff]  ;;  %v28081_v62 = vld [vmem:[#allocation255_spill] sm:$0xff]  ;;  %v8935_v16 = vpop.f32.mrb[88].mxu0  ;;  %v28083_v63 = vld [vmem:[#allocation60_spill] sm:$0xff] }
 0x1e4   : > { %v9242_v19 = vcombine.low %v23319_v21, %v9241_v51  ;;  %v23356_v53 = vrot.slane %v4145_v22, %v19646_v8  ;;  %v9243_v27 = vcombine.low %v23328_v10, %v23336_v1  ;;  %v23364_v46 = vrot.slane %v4147_v43, %v19646_v8  ;;  %v17884_v35 = vpop.f32.mrb[89].mxu0  ;;  %v28106_v38 = vld [vmem:[#allocation197_spill] sm:$0xff] }
 0x1e5   : > { %28074 = vst [vmem:[#allocation39_spill] sm:$0xff] %v23347_v2  ;;  %v23361_v54 = vrot.slane %v4146_v7, %v19646_v8  ;;  %v4919_v15 = vcombine.low %v28081_v62, %v28080_v13  ;;  %v4143_v44 = vcombine.low %v4135_v17, %v4142_v39  ;;  %v23371_v22 = vrot.slane %v4918_v11, %v19646_v8  ;;  %v28084_v62 = vld [vmem:[#allocation54_spill] sm:$0xff]  ;;  %v28086_v39 = vld [vmem:[#allocation256_spill] sm:$0xff]  ;;  %v28089_v35 = vld [vmem:[#allocation299_spill] sm:$0xff] }
 0x1e6   : > { %28077 = vst [vmem:[#allocation48_spill] sm:$0xff] %v23356_v53  ;;  %28079 = vst [vmem:[#allocation41_spill] sm:$0xff] %v23364_v46  ;;  %v4176_v51 = vcombine.low %v23347_v2, %v23356_v53  ;;  %v16834_v31 = vcombine.high %v28083_v63, %v28082_v40  ;;  %v9259_v16 = vcombine.low %v28084_v62, %v28082_v40  ;;  %v28085_v17 = vld [vmem:[#allocation298_spill] sm:$0xff]  ;;  %v8938_v53 = vpop.f32.mrb[90].mxu0 }
 0x1e7   : > { %28078 = vst [vmem:[#allocation40_spill] sm:$0xff] %v23361_v54  ;;  %v4177_v7 = vcombine.low %v23361_v54, %v23364_v46  ;;  %v23378_v43 = vrot.slane %v4919_v15, %v19646_v8  ;;  %v4193_v49 = vcombine.low %v28086_v39, %v28085_v17  ;;  %v9250_v11 = vrot.slane %v9242_v19, %v19646_v8  ;;  %v17885_v36 = vpop.f32.mrb[91].mxu0  ;;  %v28091_v17 = vld [vmem:[#allocation302_spill] sm:$0xff]  ;;  %v28092_v53 = vld [vmem:[#allocation301_spill] sm:$0xff]  ;;  %v28093_v19 = vld [vmem:[#allocation304_spill] sm:$0xff] }
 0x1e8   : > { %v23386_v2 = vrot.slane %v16834_v31, %v19646_v8  ;;  %v4194_v61 = vcombine.low %v28089_v35, %v28088_v33  ;;  %17981 = vmatmul.mubr.msk.bf16.gmra.mrb[12].mxu0 %vm4355_vm2, %v9233_v41  ;;  %v23392_v15 = vrot.slane %v9243_v27, %v19646_v8  ;;  %v4184_v46 = vrot.slane %v4176_v51, %v19646_v8  ;;  %v28094_v33 = vld [vmem:[#allocation303_spill] sm:$0xff] }
 0x1e9   : > { %v9266_v54 = vrot.slane %v9259_v16, %v19646_v8  ;;  %v4195_v39 = vcombine.low %v28092_v53, %v28091_v17  ;;  %17984 = vmatprep.mubr.msk.bf16.mxu0 %vm19558_vm1, %v27425_v14  ;;  %v4191_v31 = vrot.slane %v4177_v7, %v19646_v8  ;;  %v4196_v36 = vcombine.low %v28094_v33, %v28093_v19  ;;  %v28098_v7 = vld [vmem:[#allocation71_spill] sm:$0xff]  ;;  %v28099_v17 = vld [vmem:[#allocation70_spill] sm:$0xff] }
 0x1ea   : > { %28087 = vst [vmem:[#allocation156_spill] sm:$0xff] %v23386_v2  ;;  %28090 = vst [vmem:[#allocation167_spill] sm:$0xff] %v23392_v15  ;;  %v23404_v41 = vrot.slane %v4193_v49, %v19646_v8  ;;  %v23407_v27 = vrot.slane %v4194_v61, %v19646_v8  ;;  %17599 = vmatmul.mubr.msk.bf16.gmra.mrb[60].mxu1 %vm4355_vm2, %v4143_v44  ;;  %v9267_v51 = vcombine.low %v23371_v22, %v23378_v43  ;;  %v28101_v19 = vld [vmem:[#allocation262_spill] sm:$0xff] }
 0x1eb   : > { %v9268_v16 = vcombine.low %v9266_v54, %v23386_v2  ;;  %v23414_v35 = vrot.slane %v4195_v39, %v19646_v8  ;;  %v4967_v53 = vcombine.low %v28099_v17, %v28098_v7  ;;  %17602 = vmatprep.mubr.msk.bf16.mxu1 %vm19558_vm1, %v27425_v14  ;;  %v23421_v49 = vrot.slane %v4196_v36, %v19646_v8  ;;  %v28102_v39 = vld [vmem:[#allocation78_spill] sm:$0xff]  ;;  %v28105_v36 = vld [vmem:[#allocation261_spill] sm:$0xff] }
 0x1ec   : > { %28095 = vst [vmem:[#allocation164_spill] sm:$0xff] %v23404_v41  ;;  %28096 = vst [vmem:[#allocation247_spill] sm:$0xff] %v23407_v27  ;;  %v16835_v61 = vcombine.high %v28099_v17, %v28098_v7  ;;  %v9258_v44 = vcombine.low %v9250_v11, %v23392_v15  ;;  %v4225_v54 = vcombine.low %v23404_v41, %v23407_v27  ;;  %v28107_v7 = vld [vmem:[#allocation265_spill] sm:$0xff]  ;;  %v28109_v41 = vld [vmem:[#allocation194_spill] sm:$0xff] }
 0x1ed   : > { %28097 = vst [vmem:[#allocation53_spill] sm:$0xff] %v23414_v35  ;;  %28100 = vst [vmem:[#allocation248_spill] sm:$0xff] %v23421_v49  ;;  %v5015_v33 = vcombine.low %v28102_v39, %v28101_v19  ;;  %v9284_v37 = vcombine.low %v28104_v26, %v28103_v29  ;;  %v4192_v47 = vcombine.low %v4184_v46, %v4191_v31  ;;  %v28110_v29 = vld [vmem:[#allocation190_spill] sm:$0xff]  ;;  %v28125_v39 = vld [vmem:[#allocation79_spill] sm:$0xff] }
 0x1ee   : > { %v4226_v13 = vcombine.low %v23414_v35, %v23421_v49  ;;  %v4242_v62 = vcombine.low %v28105_v36, %v22714_v18  ;;  %v4243_v17 = vcombine.low %v28107_v7, %v28106_v38  ;;  %v23439_v11 = vrot.slane %v9267_v51, %v19646_v8  ;;  %v28112_v38 = vld [vmem:[#allocation198_spill] sm:$0xff]  ;;  %v28113_v36 = vld [vmem:[#allocation196_spill] sm:$0xff] }
 0x1ef   : > { %v9282_v27 = vrot.slane %v9268_v16, %v19646_v8  ;;  %v23443_v19 = vrot.slane %v4967_v53, %v19646_v8  ;;  %v4244_v46 = vcombine.low %v28110_v29, %v28109_v41  ;;  %v23448_v31 = vrot.slane %v16835_v61, %v19646_v8 }
 0x1f0   : > { %28108 = vst [vmem:[#allocation50_spill] sm:$0xff] %v23439_v11  ;;  %v23451_v49 = vrot.slane %v5015_v33, %v19646_v8  ;;  %v9291_v18 = vrot.slane %v9284_v37, %v19646_v8  ;;  %v4245_v51 = vcombine.low %v28113_v36, %v28112_v38  ;;  %17985 = vmatmul.mubr.msk.bf16.gmra.mrb[16].mxu0 %vm4355_vm2, %v9258_v44  ;;  %v28119_v33 = vld [vmem:[#allocation269_spill] sm:$0xff]  ;;  %v28122_v36 = vld [vmem:[#allocation83_spill] sm:$0xff] }
 0x1f1   : > { %v4233_v16 = vrot.slane %v4225_v54, %v19646_v8  ;;  %v4240_v53 = vrot.slane %v4226_v13, %v19646_v8  ;;  %17988 = vmatprep.mubr.msk.bf16.mxu0 %vm19558_vm1, %v27425_v14  ;;  %v23462_v29 = vrot.slane %v4242_v62, %v19646_v8  ;;  %v23465_v41 = vrot.slane %v4243_v17, %v19646_v8  ;;  %v28118_v54 = vld [vmem:[#allocation81_spill] sm:$0xff]  ;;  %v28120_v17 = vld [vmem:[#allocation268_spill] sm:$0xff] }
 0x1f2   : > { %28111 = vst [vmem:[#allocation246_spill] sm:$0xff] %v23451_v49  ;;  %v23468_v37 = vrot.slane %v4244_v46, %v19646_v8  ;;  %v23471_v61 = vrot.slane %v4245_v51, %v19646_v8  ;;  %17603 = vmatmul.mubr.msk.bf16.gmra.mrb[64].mxu1 %vm4355_vm2, %v4192_v47  ;;  %v9283_v44 = vcombine.low %v23439_v11, %v9282_v27  ;;  %v28121_v46 = vld [vmem:[#allocation84_spill] sm:$0xff]  ;;  %v28123_v51 = vld [vmem:[#allocation270_spill] sm:$0xff] }
 0x1f3   : > { %28114 = vst [vmem:[#allocation173_spill] sm:$0xff] %v23462_v29  ;;  %28115 = vst [vmem:[#allocation171_spill] sm:$0xff] %v23465_v41  ;;  %17606 = vmatprep.mubr.msk.bf16.mxu1 %vm19558_vm1, %v27425_v14  ;;  %v9292_v13 = vcombine.low %v23443_v19, %v23448_v31  ;;  %v9293_v62 = vcombine.low %v9291_v18, %v23451_v49  ;;  %v5016_v7 = vcombine.low %v28119_v33, %v28118_v54  ;;  %v28124_v47 = vld [vmem:[#allocation88_spill] sm:$0xff]  ;;  %v28126_v18 = vld [vmem:[#allocation305_spill] sm:$0xff] }
 0x1f4   : > { %28116 = vst [vmem:[#allocation295_spill] sm:$0xff] %v23468_v37  ;;  %28117 = vst [vmem:[#allocation175_spill] sm:$0xff] %v23471_v61  ;;  %v5017_v38 = vcombine.low %v28121_v46, %v28120_v17  ;;  %v5018_v35 = vcombine.low %v28123_v51, %v28122_v36  ;;  %v9309_v27 = vcombine.low %v28125_v39, %v28124_v47  ;;  %v28127_v54 = vld [vmem:[#allocation307_spill] sm:$0xff]  ;;  %v28128_v33 = vld [vmem:[#allocation306_spill] sm:$0xff] }
 0x1f5   : > { %v4241_v58 = vcombine.low %v4233_v16, %v4240_v53  ;;  %v4274_v11 = vcombine.low %v23462_v29, %v23465_v41  ;;  %v4275_v15 = vcombine.low %v23468_v37, %v23471_v61  ;;  %v4291_v23 = vcombine.low %v28126_v18, %v22826_v24  ;;  %v28129_v17 = vld [vmem:[#allocation309_spill] sm:$0xff]  ;;  %v28130_v46 = vld [vmem:[#allocation308_spill] sm:$0xff]  ;;  %v28131_v51 = vld [vmem:[#allocation311_spill] sm:$0xff] }
 0x1f6   : > { %v4292_v3 = vcombine.low %v28128_v33, %v28127_v54  ;;  %v4293_v4 = vcombine.low %v28130_v46, %v28129_v17  ;;  %v28132_v36 = vld [vmem:[#allocation310_spill] sm:$0xff]  ;;  %v23501_v16 = vrot.slane %v9292_v13, %v19646_v8  ;;  %v9307_v53 = vrot.slane %v9293_v62, %v19646_v8  ;;  %v28142_v33 = vld [vmem:[#allocation96_spill] sm:$0xff] }
 0x1f7   : > { %v4294_v59 = vcombine.low %v28132_v36, %v28131_v51  ;;  %v23506_v61 = vrot.slane %v5016_v7, %v19646_v8  ;;  %v23509_v24 = vrot.slane %v5017_v38, %v19646_v8  ;;  %v23512_v18 = vrot.slane %v5018_v35, %v19646_v8  ;;  %v28143_v17 = vld [vmem:[#allocation98_spill] sm:$0xff] }
 0x1f8   : > { %28133 = vst [vmem:[#allocation297_spill] sm:$0xff] %v23501_v16  ;;  %17989 = vmatmul.mubr.msk.bf16.gmra.mrb[24].mxu0 %vm4355_vm2, %v9283_v44  ;;  %v9316_v54 = vrot.slane %v9309_v27, %v19646_v8  ;;  %v4282_v13 = vrot.slane %v4274_v11, %v19646_v8  ;;  %v4289_v62 = vrot.slane %v4275_v15, %v19646_v8  ;;  %v28139_v15 = vld [vmem:[#allocation85_spill] sm:$0xff] }
 0x1f9   : > { %28134 = vst [vmem:[#allocation296_spill] sm:$0xff] %v23512_v18  ;;  %17992 = vmatprep.mubr.msk.bf16.mxu0 %vm19558_vm1, %v27425_v14  ;;  %v23521_v44 = vrot.slane %v4291_v23, %v19646_v8  ;;  %v23524_v7 = vrot.slane %v4292_v3, %v19646_v8  ;;  %v23527_v35 = vrot.slane %v4293_v4, %v19646_v8  ;;  %v28140_v11 = vld [vmem:[#allocation93_spill] sm:$0xff]  ;;  %v28141_v23 = vld [vmem:[#allocation91_spill] sm:$0xff] }
 0x1fa   : > { %17607 = vmatmul.mubr.msk.bf16.gmra.mrb[68].mxu1 %vm4355_vm2, %v4241_v58  ;;  %v23530_v38 = vrot.slane %v4294_v59, %v19646_v8  ;;  %v9308_v36 = vcombine.low %v23501_v16, %v9307_v53  ;;  %v16836_v58 = vcombine.high %v28139_v15, %v28124_v47  ;;  %v5066_v27 = vcombine.low %v28141_v23, %v28140_v11 }
 0x1fb   : > { %28135 = vst [vmem:[#allocation254_spill] sm:$0xff] %v23521_v44  ;;  %28136 = vst [vmem:[#allocation57_spill] sm:$0xff] %v23524_v7  ;;  %17610 = vmatprep.mubr.msk.bf16.mxu1 %vm19558_vm1, %v27425_v14  ;;  %v9317_v3 = vcombine.low %v23506_v61, %v23509_v24  ;;  %v9318_v4 = vcombine.low %v23512_v18, %v9316_v54  ;;  %v16837_v59 = vcombine.high %v28141_v23, %v28140_v11 }
 0x1fc   : > { %28137 = vst [vmem:[#allocation255_spill] sm:$0xff] %v23527_v35  ;;  %28138 = vst [vmem:[#allocation61_spill] sm:$0xff] %v23530_v38  ;;  %v9334_v46 = vcombine.low %v28143_v17, %v28142_v33  ;;  %v4290_v51 = vcombine.low %v4282_v13, %v4289_v62  ;;  %v4323_v53 = vcombine.low %v23521_v44, %v23524_v7  ;;  %v28152_v7 = vld [vmem:[#allocation106_spill] sm:$0xff]  ;;  %v28155_v33 = vld [vmem:[#allocation108_spill] sm:$0xff] }
 0x1fd   : > { %v4324_v41 = vcombine.low %v23527_v35, %v23530_v38  ;;  %v23551_v37 = vrot.slane %v16836_v58, %v19646_v8  ;;  %v23554_v29 = vrot.slane %v5066_v27, %v19646_v8  ;;  %v23558_v54 = vrot.slane %v9317_v3, %v19646_v8  ;;  %v28149_v27 = vld [vmem:[#allocation312_spill] sm:$0xff]  ;;  %v28153_v35 = vld [vmem:[#allocation285_spill] sm:$0xff] }
 0x1fe   : > { %v9332_v11 = vrot.slane %v9318_v4, %v19646_v8  ;;  %v23562_v13 = vrot.slane %v16837_v59, %v19646_v8  ;;  %v9341_v62 = vrot.slane %v9334_v46, %v19646_v8  ;;  %v4331_v58 = vrot.slane %v4323_v53, %v19646_v8  ;;  %v28150_v59 = vld [vmem:[#allocation282_spill] sm:$0xff]  ;;  %v28151_v46 = vld [vmem:[#allocation107_spill] sm:$0xff] }
 0x1ff   : > { %28144 = vst [vmem:[#allocation60_spill] sm:$0xff] %v23551_v37  ;;  %28145 = vst [vmem:[#allocation298_spill] sm:$0xff] %v23554_v29  ;;  %v4338_v23 = vrot.slane %v4324_v41, %v19646_v8  ;;  %v9342_v4 = vcombine.low %v23551_v37, %v23554_v29  ;;  %v5114_v38 = vcombine.low %v28151_v46, %v28150_v59 }
 0x200   : > { %17993 = vmatmul.mubr.msk.bf16.gmra.mrb[28].mxu0 %vm4355_vm2, %v9308_v36  ;;  %28146 = vst [vmem:[#allocation256_spill] sm:$0xff] %v23558_v54  ;;  %28147 = vst [vmem:[#allocation300_spill] sm:$0xff] %v23562_v13  ;;  %v28148_v36 = vld [vmem:[#allocation280_spill] sm:$0xff]  ;;  %v5115_v44 = vcombine.low %v28153_v35, %v28152_v7  ;;  %v9333_v41 = vcombine.low %v23558_v54, %v9332_v11  ;;  %v9343_v39 = vcombine.low %v23562_v13, %v9341_v62  ;;  %v28162_v11 = vld [vmem:[#allocation6_spill] sm:$0xff] }
 0x201   : > { %17996 = vmatprep.mubr.msk.bf16.mxu0 %vm19558_vm1, %v27425_v14  ;;  %v4340_v3 = vcombine.low %v28149_v27, %v28148_v36  ;;  %v28156_v36 = vld [vmem:[#allocation110_spill] sm:$0xff]  ;;  %v4623_v17 = vcombine.low %v28159_v56, %v28158_v42  ;;  %v16828_v37 = vcombine.high %v28159_v56, %v28158_v42  ;;  %v4339_v7 = vcombine.low %v4331_v58, %v4338_v23  ;;  %v28173_v54 = vld [vmem:[#allocation8_spill] sm:$0xff] }
 0x202   : > { %17611 = vmatmul.mubr.msk.bf16.gmra.mrb[72].mxu1 %vm4355_vm2, %v4290_v51  ;;  %v28154_v51 = vld [vmem:[#allocation284_spill] sm:$0xff]  ;;  %v28157_v27 = vld [vmem:[#allocation286_spill] sm:$0xff]  ;;  %v23606_v42 = vrot.slane %v5115_v44, %v19646_v8  ;;  %v9357_v58 = vrot.slane %v9343_v39, %v19646_v8  ;;  %v28172_v39 = vld [vmem:[#allocation11_spill] sm:$0xff] }
 0x203   : > { %17614 = vmatprep.mubr.msk.bf16.mxu1 %vm19558_vm1, %v27425_v14  ;;  %v5116_v53 = vcombine.low %v28155_v33, %v28154_v51  ;;  %v5162_v16 = vcombine.low %v28157_v27, %v28156_v36  ;;  %v23593_v35 = vrot.slane %v4340_v3, %v19646_v8  ;;  %v28161_v33 = vld [vmem:[#allocation10_spill] sm:$0xff]  ;;  %v23600_v27 = vrot.slane %v9342_v4, %v19646_v8  ;;  %v28168_v4 = vld [vmem:[#allocation112_spill] sm:$0xff] }
 0x204   : > { %v4625_v51 = vcombine.low %v28162_v11, %v28161_v33  ;;  %v16829_v62 = vcombine.high %v28162_v11, %v28161_v33  ;;  %v23603_v36 = vrot.slane %v5114_v38, %v19646_v8  ;;  %28165 = vst [vmem:[#allocation304_spill] sm:$0xff] %v23606_v42  ;;  %v4633_v3 = vrot.slane %v4623_v17, %v19646_v8  ;;  %v28169_v33 = vld [vmem:[#allocation109_spill] sm:$0xff]  ;;  %v28180_v13 = vld [vmem:[#allocation130_spill] sm:$0xff] }
 0x205   : > { %28160 = vst [vmem:[#allocation299_spill] sm:$0xff] %v23593_v35  ;;  %28163 = vst [vmem:[#allocation302_spill] sm:$0xff] %v23600_v27  ;;  %v23609_v56 = vrot.slane %v5116_v53, %v19646_v8  ;;  %v23614_v23 = vrot.slane %v5162_v16, %v19646_v8  ;;  %v16838_v11 = vcombine.high %v28169_v33, %v28168_v4  ;;  %v28170_v38 = vld [vmem:[#allocation113_spill] sm:$0xff]  ;;  %v28171_v53 = vld [vmem:[#allocation111_spill] sm:$0xff] }
 0x206   : > { %28164 = vst [vmem:[#allocation301_spill] sm:$0xff] %v23603_v36  ;;  %v4640_v44 = vrot.slane %v16828_v37, %v19646_v8  ;;  %v5165_v59 = vcombine.low %v28171_v53, %v28170_v38  ;;  %v9376_v16 = vcombine.low %v28172_v39, %v28168_v4  ;;  %v4647_v17 = vrot.slane %v4625_v51, %v19646_v8  ;;  %v28174_v33 = vld [vmem:[#allocation7_spill] sm:$0xff]  ;;  %v28178_v4 = vld [vmem:[#allocation133_spill] sm:$0xff] }
 0x207   : > { %28166 = vst [vmem:[#allocation303_spill] sm:$0xff] %v23609_v56  ;;  %28167 = vst [vmem:[#allocation71_spill] sm:$0xff] %v23614_v23  ;;  %v4654_v46 = vrot.slane %v16829_v62, %v19646_v8  ;;  %v4672_v29 = vcombine.low %v28174_v33, %v28173_v54  ;;  %v4754_v37 = vcombine.low %v23143_v5, %v23146_v34 }
 0x208   : > { %17997 = vmatmul.mubr.msk.bf16.gmra.mrb[32].mxu0 %vm4355_vm2, %v9333_v41  ;;  %v16839_v41 = vcombine.high %v28171_v53, %v28170_v38  ;;  %v9358_v38 = vcombine.low %v23600_v27, %v9357_v58  ;;  %v9359_v53 = vcombine.low %v23603_v36, %v23606_v42  ;;  %v23643_v51 = vrot.slane %v16838_v11, %v19646_v8  ;;  %v28175_v27 = vld [vmem:[#allocation129_spill] sm:$0xff]  ;;  %v28177_v11 = vld [vmem:[#allocation12_spill] sm:$0xff] }
 0x209   : > { %18000 = vmatprep.mubr.msk.bf16.mxu0 %vm19558_vm1, %v27425_v14  ;;  %v23646_v62 = vrot.slane %v5165_v59, %v19646_v8  ;;  %v9383_v5 = vrot.slane %v9376_v16, %v19646_v8  ;;  %v4354_v34 = vrot.slane %v23593_v35, %v19646_v8  ;;  %v4655_v58 = vcombine.low %v4633_v3, %v4640_v44  ;;  %v28181_v3 = vld [vmem:[#allocation104_spill] sm:$0xff] }
 0x20a   : > { %17615 = vmatmul.mubr.msk.bf16.gmra.mrb[76].mxu1 %vm4355_vm2, %v4339_v7  ;;  %v9360_v7 = vcombine.low %v23609_v56, %v23614_v23  ;;  %v23649_v54 = vrot.slane %v16839_v41, %v19646_v8  ;;  %v4656_v33 = vcombine.low %v4647_v17, %v4654_v46  ;;  %v4682_v39 = vrot.slane %v4672_v29, %v19646_v8  ;;  %v28176_v23 = vld [vmem:[#allocation17_spill] sm:$0xff]  ;;  %v4457_v59 = vpop.f32.mrb[0].mxu1  ;;  %v28179_v56 = vld [vmem:[#allocation16_spill] sm:$0xff]  ;;  %v28182_v46 = vld [vmem:[#allocation127_spill] sm:$0xff] }
 0x20b   : > { %17618 = vmatprep.mubr.msk.bf16.mxu1 %vm19558_vm1, %v27425_v14  ;;  %v5214_v36 = vcombine.low %v28176_v23, %v28175_v27  ;;  %v5260_v42 = vcombine.low %v28178_v4, %v28177_v11  ;;  %v9367_v41 = vrot.slane %v9359_v53, %v19646_v8  ;;  %v5213_v35 = vcombine.low %v28180_v13, %v28179_v56  ;;  %v17540_v29 = vpop.f32.mrb[1].mxu1 }
 0x20c   : > { %v9374_v16 = vrot.slane %v9360_v7, %v19646_v8  ;;  %v9401_v44 = vcombine.low %v28182_v46, %v28181_v3  ;;  %v9384_v27 = vcombine.low %v9383_v5, %v23643_v51  ;;  %v9385_v23 = vcombine.low %v23646_v62, %v23649_v54  ;;  %v4460_v4 = vpop.f32.mrb[2].mxu1 }
 0x20d   : > { %v4663_v17 = vrot.slane %v4655_v58, %v19646_v8  ;;  %v4704_v56 = vcombine.low %v4682_v39, %v23074_v6  ;;  %v17541_v53 = vpop.f32.mrb[3].mxu1  ;;  %v23678_v7 = vrot.slane %v5214_v36, %v19646_v8  ;;  %v23681_v5 = vrot.slane %v5260_v42, %v19646_v8  ;;  %v28190_v4 = vld [vmem:[#allocation140_spill] sm:$0xff] }
 0x20e   : > { %v4821_v11 = vcombine.low %v28047_v50, %v28046_v20  ;;  %v23687_v58 = vcombine.low %v9367_v41, %v9374_v16  ;;  %v23690_v6 = vrot.slane %v5213_v35, %v19646_v8  ;;  %v9408_v39 = vrot.slane %v9401_v44, %v19646_v8 }
 0x20f   : > { %v23695_v36 = vrot.slane %v9385_v23, %v19646_v8  ;;  %v4712_v20 = vrot.slane %v4704_v56, %v19646_v8  ;;  %v4753_v35 = vcombine.low %v23089_v0, %v23132_v57  ;;  %v9410_v41 = vcombine.low %v23678_v7, %v23681_v5  ;;  %v28188_v57 = vld [vmem:[#allocation135_spill] sm:$0xff] }
 0x210   : > { %18001 = vmatmul.mubr.msk.bf16.gmra.mrb[36].mxu0 %vm4355_vm2, %v9358_v38  ;;  %v4670_v38 = vrot.slane %v4656_v33, %v19646_v8  ;;  %28183 = vst [vmem:[#allocation70_spill] sm:$0xff] %v23687_v58  ;;  %v9392_v33 = vrot.slane %v9384_v27, %v19646_v8  ;;  %v23698_v42 = vrot.slane %v4821_v11, %v19646_v8  ;;  %v28187_v27 = vld [vmem:[#allocation51_spill] sm:$0xff] }
 0x211   : > { %18004 = vmatprep.mubr.msk.bf16.mxu0 %vm19558_vm1, %v27425_v14  ;;  %28184 = vst [vmem:[#allocation262_spill] sm:$0xff] %v23695_v36  ;;  %v9409_v29 = vcombine.low %v9408_v39, %v23690_v6  ;;  %v23733_v53 = vrot.slane %v4753_v35, %v19646_v8  ;;  %v28193_v39 = vld [vmem:[#allocation145_spill] sm:$0xff]  ;;  %v28196_v35 = vld [vmem:[#allocation31_spill] sm:$0xff] }
 0x212   : > { %17619 = vmatmul.mubr.msk.bf16.gmra.mrb[80].mxu1 %vm4355_vm2, %v4354_v34  ;;  %v4851_v34 = vcombine.low %v23217_v48, %v23259_v28  ;;  %28185 = vst [vmem:[#allocation72_spill] sm:$0xff] %v23698_v42  ;;  %v4671_v59 = vcombine.low %v4663_v17, %v4670_v38  ;;  %v28186_v48 = vcombine.low %v23077_v25, %v23086_v45  ;;  %v28191_v17 = vld [vmem:[#allocation136_spill] sm:$0xff]  ;;  %v28233_v28 = vld [vmem:[#allocation303_spill] sm:$0xff] }
 0x213   : > { %17624 = vmatprep.mubr.msk.bf16.mxu1 %vm19558_vm1, %v27425_v14  ;;  %v4852_v16 = vcombine.low %v23698_v42, %v23271_v52  ;;  %v4870_v25 = vcombine.low %v28066_v9, %v28187_v27  ;;  %v4900_v45 = vcombine.low %v23278_v60, %v23319_v21  ;;  %v9400_v0 = vcombine.low %v9392_v33, %v23695_v36  ;;  %v28189_v52 = vld [vmem:[#allocation119_spill] sm:$0xff] }
 0x214   : > { %v4719_v50 = vrot.slane %v28186_v48, %v19646_v8  ;;  %v23712_v44 = vrot.slane %v4851_v34, %v19646_v8  ;;  %v5261_v23 = vcombine.low %v28189_v52, %v28188_v57  ;;  %v16840_v38 = vcombine.high %v28191_v17, %v28190_v4  ;;  %v28194_v33 = vld [vmem:[#allocation139_spill] sm:$0xff] }
 0x215   : > { %v23729_v56 = vrot.slane %v4852_v16, %v19646_v8  ;;  %v23736_v60 = vrot.slane %v4754_v37, %v19646_v8  ;;  %v23739_v11 = vrot.slane %v4870_v25, %v19646_v8  ;;  %v23744_v34 = vrot.slane %v9410_v41, %v19646_v8  ;;  %v28197_v25 = vld [vmem:[#allocation2_spill] sm:$0xff] }
 0x216   : > { %v4720_v9 = vcombine.low %v4712_v20, %v4719_v50  ;;  %v5309_v48 = vcombine.low %v28194_v33, %v28193_v39  ;;  %v9417_v37 = vrot.slane %v9409_v29, %v19646_v8  ;;  %v4771_v16 = vcombine.low %v28038_v12, %v28196_v35  ;;  %v28209_v50 = vld [vmem:[#allocation245_spill] sm:$0xff] }
 0x217   : > { %28192 = vst [vmem:[#allocation261_spill] sm:$0xff] %v23739_v11  ;;  %v4901_v27 = vcombine.low %v23739_v11, %v23328_v10  ;;  %v23758_v41 = vrot.slane %v4900_v45, %v19646_v8  ;;  %v23762_v52 = vrot.slane %v5261_v23, %v19646_v8  ;;  %v4803_v57 = vcombine.low %v23208_v55, %v23214_v32  ;;  %v28241_v55 = vld [vmem:[#allocation301_spill] sm:$0xff] }
 0x218   : > { %18005 = vmatmul.mubr.msk.bf16.gmra.mrb[40].mxu0 %vm4355_vm2, %v23687_v58  ;;  %v4920_v29 = vcombine.low %v28083_v63, %v28082_v40  ;;  %v4949_v12 = vcombine.low %v23336_v1, %v23371_v22  ;;  %v4769_v10 = vcombine.low %v23733_v53, %v23736_v60  ;;  %v23773_v45 = vrot.slane %v16840_v38, %v19646_v8  ;;  %v28198_v63 = vld [vmem:[#allocation238_spill] sm:$0xff]  ;;  %v28202_v60 = vld [vmem:[#allocation157_spill] sm:$0xff] }
 0x219   : > { %18008 = vmatprep.mubr.msk.bf16.mxu0 %vm19558_vm1, %v27425_v14  ;;  %v16841_v35 = vcombine.high %v28194_v33, %v28193_v39  ;;  %v23778_v23 = vrot.slane %v4901_v27, %v19646_v8  ;;  %v23781_v32 = vrot.slane %v5309_v48, %v19646_v8  ;;  %v9425_v38 = vcombine.low %v9417_v37, %v23744_v34  ;;  %v28203_v39 = vld [vmem:[#allocation146_spill] sm:$0xff]  ;;  %v28204_v27 = vld [vmem:[#allocation144_spill] sm:$0xff] }
 0x21a   : > { %17625 = vmatmul.mubr.msk.bf16.vlgmr.msra.gmra.mrb[84].mxu1 %vm4355_vm2, %v4671_v59  ;;  %v28195_v59 = vld [vmem:[#allocation18_spill] sm:$0xff]  ;;  %v23787_v22 = vrot.slane %v4920_v29, %v19646_v8  ;;  %v23792_v53 = vrot.slane %v4771_v16, %v19646_v8  ;;  %v5358_v33 = vcombine.low %v28203_v39, %v28202_v60  ;;  %v23808_v16 = vrot.slane %v4949_v12, %v19646_v8  ;;  %v28207_v60 = vld [vmem:[#allocation160_spill] sm:$0xff]  ;;  %v28211_v12 = vld [vmem:[#allocation163_spill] sm:$0xff] }
 0x21b   : > { %17628 = vmatprep.mubr.msk.bf16.mxu1 %vm19558_vm1, %v27425_v14  ;;  %v9426_v20 = vcombine.low %v28195_v59, %v28190_v4  ;;  %18617 = vmatpush3.bf16.msra.mxu1 %v28197_v25  ;;  %v28199_v25 = vld [vmem:[#allocation153_spill] sm:$0xff]  ;;  %v28205_v29 = vld [vmem:[#allocation150_spill] sm:$0xff]  ;;  %v28210_v59 = vld [vmem:[#allocation75_spill] sm:$0xff] }
 0x21c   : > { %v5312_v1 = vcombine.low %v28199_v25, %v28198_v63  ;;  %28200 = vst [vmem:[#allocation197_spill] sm:$0xff] %v23787_v22  ;;  %28201 = vst [vmem:[#allocation265_spill] sm:$0xff] %v23792_v53  ;;  %v4950_v37 = vcombine.low %v23378_v43, %v23787_v22  ;;  %v28206_v63 = vld [vmem:[#allocation243_spill] sm:$0xff]  ;;  %v28208_v48 = vld [vmem:[#allocation158_spill] sm:$0xff]  ;;  %v23822_v43 = vrot.slane %v16841_v35, %v19646_v8 }
 0x21d   : > { %v9433_v40 = vrot.slane %v9426_v20, %v19646_v8  ;;  %v23801_v20 = vrot.slane %v4803_v57, %v19646_v8  ;;  %v5359_v39 = vcombine.low %v28207_v60, %v28206_v63  ;;  %v5360_v25 = vcombine.low %v28209_v50, %v28208_v48  ;;  %v28213_v63 = vld [vmem:[#allocation244_spill] sm:$0xff]  ;;  %v28218_v58 = vld [vmem:[#allocation178_spill] sm:$0xff] }
 0x21e   : > { %v4969_v57 = vcombine.low %v28104_v26, %v28210_v59  ;;  %v9476_v60 = vcombine.low %v28213_v63, %v28211_v12  ;;  %v23829_v50 = vrot.slane %v4950_v37, %v19646_v8  ;;  %v4802_v59 = vcombine.low %v23150_v30, %v23792_v53 }
 0x21f   : > { %v9434_v26 = vcombine.low %v23762_v52, %v9433_v40  ;;  %v23840_v48 = vrot.slane %v5312_v1, %v19646_v8  ;;  %v23843_v13 = vrot.slane %v5358_v33, %v19646_v8  ;;  %v23849_v63 = vrot.slane %v5359_v39, %v19646_v8  ;;  %v28222_v40 = vld [vmem:[#allocation298_spill] sm:$0xff] }
 0x220   : > { %18009 = vmatmul.mubr.msk.bf16.gmra.mrb[44].mxu0 %vm4355_vm2, %v9400_v0  ;;  %v9451_v0 = vcombine.low %v28205_v29, %v28204_v27  ;;  %v4998_v27 = vcombine.low %v23386_v2, %v23443_v19  ;;  %v9435_v19 = vcombine.low %v23773_v45, %v23781_v32  ;;  %v23837_v35 = vrot.slane %v4969_v57, %v19646_v8 }
 0x221   : > { %18012 = vmatprep.mubr.msk.bf16.mxu0 %vm19558_vm1, %v27425_v14  ;;  %v23852_v36 = vrot.slane %v5360_v25, %v19646_v8  ;;  %v5047_v57 = vcombine.low %v23451_v49, %v23506_v61  ;;  %v5048_v39 = vcombine.low %v23509_v24, %v23512_v18  ;;  %v9442_v25 = vrot.slane %v9434_v26, %v19646_v8  ;;  %v28219_v18 = vld [vmem:[#allocation251_spill] sm:$0xff] }
 0x222   : > { %17629 = vmatmul.mubr.msk.bf16.gmra.mrb[4].mxu1 %vm4355_vm2, %v4720_v9  ;;  %v28212_v9 = vld [vmem:[#allocation161_spill] sm:$0xff]  ;;  %28214 = vst [vmem:[#allocation194_spill] sm:$0xff] %v23837_v35  ;;  %v9458_v37 = vrot.slane %v9451_v0, %v19646_v8  ;;  %v4999_v30 = vcombine.low %v23448_v31, %v23837_v35  ;;  %v23857_v1 = vrot.slane %v4998_v27, %v19646_v8  ;;  %v28220_v35 = vld [vmem:[#allocation174_spill] sm:$0xff] }
 0x223   : > { %17632 = vmatprep.mubr.msk.bf16.mxu1 %vm19558_vm1, %v27425_v14  ;;  %v16842_v3 = vcombine.high %v28212_v9, %v28211_v12  ;;  %v9483_v0 = vrot.slane %v9476_v60, %v19646_v8  ;;  %v23870_v31 = vrot.slane %v9435_v19, %v19646_v8  ;;  %v4810_v27 = vrot.slane %v4802_v59, %v19646_v8  ;;  %v28215_v19 = vld [vmem:[#allocation172_spill] sm:$0xff] }
 0x224   : > { %v9459_v61 = vcombine.low %v23822_v43, %v9458_v37  ;;  %v9460_v24 = vcombine.low %v23840_v48, %v23843_v13  ;;  %v23885_v60 = vrot.slane %v5048_v39, %v19646_v8  ;;  %v9484_v26 = vcombine.low %v23849_v63, %v23852_v36  ;;  %v28216_v59 = vld [vmem:[#allocation168_spill] sm:$0xff]  ;;  %v28217_v39 = vld [vmem:[#allocation47_spill] sm:$0xff] }
 0x225   : > { %v23860_v33 = vrot.slane %v16842_v3, %v19646_v8  ;;  %v23874_v3 = vrot.slane %v4999_v30, %v19646_v8  ;;  %v5408_v30 = vcombine.low %v28216_v59, %v28215_v19  ;;  %v16843_v37 = vcombine.high %v28216_v59, %v28215_v19  ;;  %v28221_v59 = vld [vmem:[#allocation300_spill] sm:$0xff] }
 0x226   : > { %v9501_v49 = vcombine.low %v28220_v35, %v28219_v18  ;;  %v9450_v2 = vcombine.low %v9442_v25, %v23870_v31  ;;  %v5064_v19 = vcombine.low %v28139_v15, %v28124_v47  ;;  %v5097_v21 = vcombine.low %v28222_v40, %v28221_v59 }
 0x227   : > { %v4818_v11 = vcombine.low %v4810_v27, %v23801_v20  ;;  %v23916_v18 = vrot.slane %v5408_v30, %v19646_v8  ;;  %v23919_v22 = vrot.slane %v16843_v37, %v19646_v8  ;;  %v23925_v47 = vrot.slane %v9484_v26, %v19646_v8  ;;  %v28225_v27 = vld [vmem:[#allocation183_spill] sm:$0xff]  ;;  %v28227_v30 = vld [vmem:[#allocation257_spill] sm:$0xff]  ;;  %v28228_v37 = vld [vmem:[#allocation186_spill] sm:$0xff] }
 0x228   : > { %18013 = vmatmul.mubr.msk.bf16.gmra.mrb[48].mxu0 %vm4355_vm2, %v9425_v38  ;;  %v23882_v38 = vrot.slane %v5047_v57, %v19646_v8  ;;  %v9485_v57 = vcombine.low %v9483_v0, %v23860_v33  ;;  %v23912_v0 = vrot.slane %v9460_v24, %v19646_v8  ;;  %v23922_v25 = vrot.slane %v5064_v19, %v19646_v8 }
 0x229   : > { %18016 = vmatprep.mubr.msk.bf16.mxu0 %vm19558_vm1, %v27425_v14  ;;  %v9508_v40 = vrot.slane %v9501_v49, %v19646_v8  ;;  %v5458_v19 = vcombine.low %v28228_v37, %v28227_v30  ;;  %v23942_v59 = vrot.slane %v5097_v21, %v19646_v8  ;;  %v28235_v21 = vld [vmem:[#allocation112_spill] sm:$0xff]  ;;  %v28236_v30 = vld [vmem:[#allocation109_spill] sm:$0xff] }
 0x22a   : > { %17633 = vmatmul.mubr.msk.bf16.gmra.mrb[8].mxu1 %vm4355_vm2, %v4769_v10  ;;  %v5456_v10 = vcombine.low %v28218_v58, %v28217_v39  ;;  %v9467_v39 = vrot.slane %v9459_v61, %v19646_v8  ;;  %28223 = vst [vmem:[#allocation190_spill] sm:$0xff] %v23922_v25  ;;  %v23928_v15 = vrot.slane %v9485_v57, %v19646_v8  ;;  %v28226_v61 = vld [vmem:[#allocation66_spill] sm:$0xff]  ;;  %v28229_v58 = vld [vmem:[#allocation60_spill] sm:$0xff]  ;;  %v28231_v57 = vld [vmem:[#allocation105_spill] sm:$0xff] }
 0x22b   : > { %17636 = vmatprep.mubr.msk.bf16.mxu1 %vm19558_vm1, %v27425_v14  ;;  %v5457_v24 = vcombine.low %v28226_v61, %v28225_v27  ;;  %v5096_v26 = vcombine.low %v23922_v25, %v28229_v58  ;;  %28230 = vst [vmem:[#allocation196_spill] sm:$0xff] %v23942_v59  ;;  %v9509_v61 = vcombine.low %v23916_v18, %v23919_v22 }
 0x22c   : > { %v23931_v20 = vrot.slane %v5456_v10, %v19646_v8  ;;  %v28232_v10 = vld [vmem:[#allocation98_spill] sm:$0xff]  ;;  %v9475_v27 = vcombine.low %v9467_v39, %v23912_v0  ;;  %v5163_v37 = vcombine.low %v28236_v30, %v28235_v21  ;;  %v23973_v25 = vrot.slane %v5458_v19, %v19646_v8  ;;  %v28243_v21 = vld [vmem:[#allocation71_spill] sm:$0xff] }
 0x22d   : > { %v5113_v49 = vcombine.low %v28232_v10, %v28231_v57  ;;  %v23955_v58 = vrot.slane %v5096_v26, %v19646_v8  ;;  %v9500_v57 = vcombine.low %v23925_v47, %v23928_v15  ;;  %v28238_v10 = vld [vmem:[#allocation62_spill] sm:$0xff]  ;;  %v23970_v26 = vrot.slane %v5457_v24, %v19646_v8  ;;  %v28239_v15 = vld [vmem:[#allocation187_spill] sm:$0xff] }
 0x22e   : > { %28224 = vst [vmem:[#allocation198_spill] sm:$0xff] %v23931_v20  ;;  %v23978_v30 = vrot.slane %v5163_v37, %v19646_v8  ;;  %v5195_v24 = vcombine.low %v23643_v51, %v23646_v62  ;;  %v23990_v19 = vrot.slane %v9509_v61, %v19646_v8  ;;  %v28244_v37 = vld [vmem:[#allocation128_spill] sm:$0xff] }
 0x22f   : > { %v5212_v59 = vcombine.low %v28182_v46, %v28244_v37  ;;  %v28250_v37 = vld [vmem:[#allocation189_spill] sm:$0xff] }
 0x230   : > { %18017 = vmatmul.mubr.msk.bf16.gmra.mrb[52].mxu0 %vm4355_vm2, %v9450_v2  ;;  %v28234_v2 = vld [vmem:[#allocation304_spill] sm:$0xff]  ;;  %28242 = vst [vmem:[#allocation81_spill] sm:$0xff] %v23990_v19  ;;  %v24008_v61 = vrot.slane %v5195_v24, %v19646_v8 }
 0x231   : > { %18020 = vmatprep.mubr.msk.bf16.mxu0 %vm19558_vm1, %v27425_v14  ;;  %v5146_v42 = vcombine.low %v28234_v2, %v28233_v28  ;;  %v9510_v28 = vcombine.low %v9508_v40, %v23931_v20  ;;  %v23967_v2 = vrot.slane %v5113_v49, %v19646_v8  ;;  %v28240_v40 = vld [vmem:[#allocation181_spill] sm:$0xff]  ;;  %v28247_v24 = vld [vmem:[#allocation152_spill] sm:$0xff] }
 0x232   : > { %17637 = vmatmul.mubr.msk.bf16.gmra.mrb[12].mxu1 %vm4355_vm2, %v4818_v11  ;;  %v28237_v11 = vld [vmem:[#allocation184_spill] sm:$0xff]  ;;  %v9526_v53 = vcombine.low %v28240_v40, %v28239_v15  ;;  %v5244_v40 = vcombine.low %v23690_v6, %v23678_v7  ;;  %v24017_v7 = vrot.slane %v5212_v59, %v19646_v8  ;;  %v28246_v59 = vcombine.low %v23712_v44, %v23729_v56  ;;  %v28249_v56 = vld [vmem:[#allocation195_spill] sm:$0xff] }
 0x233   : > { %17640 = vmatprep.mubr.msk.bf16.mxu1 %vm19558_vm1, %v27425_v14  ;;  %v5459_v39 = vcombine.low %v28238_v10, %v28237_v11  ;;  %v5145_v10 = vcombine.low %v23967_v2, %v28241_v55  ;;  %v23985_v49 = vrot.slane %v5146_v42, %v19646_v8  ;;  %v5194_v11 = vcombine.low %v28243_v21, %v23978_v30 }
 0x234   : > { %v23999_v55 = vrot.slane %v9510_v28, %v19646_v8  ;;  %v5262_v28 = vcombine.low %v28191_v17, %v28190_v4  ;;  %v5243_v17 = vcombine.low %v23649_v54, %v24017_v7  ;;  %v16845_v4 = vcombine.high %v28250_v37, %v28249_v56 }
 0x235   : > { %v24002_v42 = vrot.slane %v5459_v39, %v19646_v8  ;;  %v24005_v62 = vrot.slane %v5145_v10, %v19646_v8  ;;  %v24014_v21 = vrot.slane %v5194_v11, %v19646_v8  ;;  %v24024_v39 = vrot.slane %v9526_v53, %v19646_v8 }
 0x236   : > { %v24029_v10 = vrot.slane %v5244_v40, %v19646_v8  ;;  %v5292_v11 = vcombine.low %v23681_v5, %v23762_v52  ;;  %v24042_v53 = vrot.slane %v5262_v28, %v19646_v8  ;;  %v5311_v40 = vcombine.low %v28205_v29, %v28247_v24  ;;  %v28248_v5 = vld [vmem:[#allocation185_spill] sm:$0xff] }
 0x237   : > { %28245 = vst [vmem:[#allocation269_spill] sm:$0xff] %v24002_v42  ;;  %v16844_v44 = vcombine.high %v28248_v5, %v28239_v15  ;;  %v5341_v54 = vcombine.low %v23781_v32, %v23822_v43  ;;  %v24057_v28 = vrot.slane %v5243_v17, %v19646_v8  ;;  %v9525_v46 = vcombine.low %v23990_v19, %v23999_v55 }
 0x238   : > { %18021 = vmatmul.mubr.msk.bf16.gmra.mrb[56].mxu0 %vm4355_vm2, %v9475_v27  ;;  %v5293_v29 = vcombine.low %v24042_v53, %v23773_v45  ;;  %v24062_v24 = vrot.slane %v5292_v11, %v19646_v8  ;;  %v24065_v27 = vrot.slane %v5311_v40, %v19646_v8  ;;  %v5361_v32 = vcombine.low %v28212_v9, %v28211_v12  ;;  %v28251_v9 = vld [vmem:[#allocation176_spill] sm:$0xff]  ;;  %v28255_v45 = vld [vmem:[#allocation210_spill] sm:$0xff] }
 0x239   : > { %18024 = vmatprep.mubr.msk.bf16.mxu0 %vm19558_vm1, %v27425_v14  ;;  %v5390_v17 = vcombine.low %v23843_v13, %v23849_v63  ;;  %v24083_v55 = vrot.slane %v5341_v54, %v19646_v8  ;;  %v24089_v12 = vrot.slane %v16845_v4, %v19646_v8  ;;  %v5410_v63 = vcombine.low %v28220_v35, %v28251_v9 }
 0x23a   : > { %17641 = vmatmul.mubr.msk.bf16.gmra.mrb[16].mxu1 %vm4355_vm2, %v28246_v59  ;;  %v5507_v59 = vcombine.low %v28250_v37, %v28249_v56  ;;  %v9535_v56 = vcombine.low %v24002_v42, %v24024_v39  ;;  %v24078_v11 = vrot.slane %v5293_v29, %v19646_v8  ;;  %v5342_v40 = vcombine.low %v24065_v27, %v23840_v48  ;;  %v28252_v37 = vld [vmem:[#allocation207_spill] sm:$0xff]  ;;  %v28253_v29 = vld [vmem:[#allocation277_spill] sm:$0xff] }
 0x23b   : > { %17644 = vmatprep.mubr.msk.bf16.mxu1 %vm19558_vm1, %v27425_v14  ;;  %v24092_v13 = vrot.slane %v5361_v32, %v19646_v8  ;;  %v5556_v48 = vcombine.low %v28253_v29, %v28252_v37  ;;  %v5439_v4 = vcombine.low %v23860_v33, %v23916_v18  ;;  %v28254_v32 = vld [vmem:[#allocation275_spill] sm:$0xff]  ;;  %v24113_v9 = vrot.slane %v5390_v17, %v19646_v8  ;;  %v28258_v18 = vld [vmem:[#allocation266_spill] sm:$0xff] }
 0x23c   : > { %v24086_v39 = vrot.slane %v5507_v59, %v19646_v8  ;;  %v24102_v59 = vrot.slane %v5342_v40, %v19646_v8  ;;  %v5557_v35 = vcombine.low %v28255_v45, %v28254_v32  ;;  %v24116_v37 = vrot.slane %v5410_v63, %v19646_v8  ;;  %v28259_v29 = vld [vmem:[#allocation199_spill] sm:$0xff]  ;;  %v28260_v63 = vld [vmem:[#allocation273_spill] sm:$0xff]  ;;  %v28261_v32 = vld [vmem:[#allocation208_spill] sm:$0xff] }
 0x23d   : > { %v28257_v40 = vcombine.low %v23758_v41, %v23778_v23  ;;  %v9551_v54 = vcombine.low %v28259_v29, %v28258_v18  ;;  %v5489_v17 = vcombine.low %v23973_v25, %v24002_v42  ;;  %v5555_v41 = vcombine.low %v28261_v32, %v28260_v63  ;;  %v28263_v32 = vld [vmem:[#allocation206_spill] sm:$0xff] }
 0x23e   : > { %28256 = vst [vmem:[#allocation268_spill] sm:$0xff] %v24116_v37  ;;  %v24140_v45 = vrot.slane %v5439_v4, %v19646_v8  ;;  %v5578_v18 = vrot.slane %v5556_v48, %v19646_v8  ;;  %v5505_v63 = vcombine.low %v28248_v5, %v28239_v15  ;;  %v5538_v48 = vcombine.low %v24086_v39, %v24089_v12 }
 0x23f   : > { %v24147_v42 = vrot.slane %v5489_v17, %v19646_v8  ;;  %v28262_v4 = vcombine.low %v23970_v26, %v23973_v25  ;;  %v5522_v17 = vrot.slane %v16844_v44, %v19646_v8  ;;  %v9558_v25 = vrot.slane %v9551_v54, %v19646_v8 }
 0x240   : > { %18025 = vmatmul.mubr.msk.bf16.gmra.mrb[60].mxu0 %vm4355_vm2, %v9500_v57  ;;  %v5391_v57 = vcombine.low %v23852_v36, %v24092_v13  ;;  %v5488_v36 = vcombine.low %v23931_v20, %v23970_v26  ;;  %v24169_v5 = vrot.slane %v5505_v63, %v19646_v8  ;;  %v24180_v44 = vrot.slane %v5538_v48, %v19646_v8 }
 0x241   : > { %18028 = vmatprep.mubr.msk.bf16.mxu0 %vm19558_vm1, %v27425_v14  ;;  %v9559_v54 = vcombine.low %v5522_v17, %v24086_v39  ;;  %v10054_v48 = vcombine.low %v23762_v52, %v24042_v53  ;;  %v28265_v39 = vld [vmem:[#allocation211_spill] sm:$0xff] }
 0x242   : > { %17645 = vmatmul.mubr.msk.bf16.gmra.mrb[20].mxu1 %vm4355_vm2, %v28257_v40  ;;  %v24135_v23 = vrot.slane %v5391_v57, %v19646_v8  ;;  %v5440_v40 = vcombine.low %v23919_v22, %v24116_v37  ;;  %v24144_v19 = vrot.slane %v5488_v36, %v19646_v8  ;;  %v5585_v57 = vrot.slane %v5557_v35, %v19646_v8 }
 0x243   : > { %17648 = vmatprep.mubr.msk.bf16.mxu1 %vm19558_vm1, %v27425_v14  ;;  %v24163_v36 = vrot.slane %v28262_v4, %v19646_v8  ;;  %v9549_v35 = vrot.slane %v9535_v56, %v19646_v8  ;;  %v5554_v37 = vcombine.low %v28259_v29, %v28263_v32  ;;  %v5537_v26 = vcombine.low %v24169_v5, %v5522_v17 }
 0x244   : > { %v24155_v22 = vrot.slane %v5440_v40, %v19646_v8  ;;  %v5587_v20 = vcombine.low %v5578_v18, %v5585_v57  ;;  %v5571_v56 = vrot.slane %v5555_v41, %v19646_v8  ;;  %v10045_v29 = vcombine.low %v24017_v7, %v23690_v6 }
 0x245   : > { %v24186_v63 = vrot.slane %v5554_v37, %v19646_v8  ;;  %v24196_v32 = vrot.slane %v5537_v26, %v19646_v8  ;;  %v9550_v41 = vcombine.low %v24163_v36, %v9549_v35  ;;  %v28266_v37 = vld [vmem:[#allocation276_spill] sm:$0xff]  ;;  %v24216_v53 = vrot.slane %v10054_v48, %v19646_v8 }
 0x246   : > { %v5455_v40 = vcombine.low %v24140_v45, %v24155_v22  ;;  %v24205_v7 = vrot.slane %v5587_v20, %v19646_v8  ;;  %v5603_v4 = vcombine.low %v28266_v37, %v28265_v39  ;;  %v24229_v26 = vrot.slane %v9559_v54, %v19646_v8  ;;  %v28271_v20 = vld [vmem:[#allocation215_spill] sm:$0xff] }
 0x247   : > { %v5586_v6 = vcombine.low %v24186_v63, %v5571_v56  ;;  %v28267_v48 = vcombine.low %v23857_v1, %v23874_v3  ;;  %v9576_v54 = vcombine.low %v5571_v56, %v5578_v18  ;;  %v28310_v22 = vcombine.low %v24144_v19, %v24147_v42  ;;  %v28314_v42 = vld [vmem:[#allocation302_spill] sm:$0xff] }
 0x248   : > { %18029 = vmatmul.mubr.msk.bf16.gmra.mrb[64].mxu0 %vm4355_vm2, %v9525_v46  ;;  %v28264_v46 = vcombine.low %v23808_v16, %v23829_v50  ;;  %v24208_v16 = vrot.slane %v10045_v29, %v19646_v8  ;;  %v9560_v50 = vcombine.low %v24089_v12, %v9558_v25  ;;  %v28272_v25 = vld [vmem:[#allocation212_spill] sm:$0xff]  ;;  %v28313_v19 = vcombine.low %v24196_v32, %v24180_v44 }
 0x249   : > { %18032 = vmatprep.mubr.msk.bf16.mxu0 %vm19558_vm1, %v27425_v14  ;;  %v24219_v17 = vrot.slane %v5586_v6, %v19646_v8  ;;  %v10063_v6 = vcombine.low %v23822_v43, %v24065_v27  ;;  %v9595_v52 = vcombine.low %v28272_v25, %v28271_v20  ;;  %v16949_v43 = vcombine.high %v28272_v25, %v28271_v20 }
 0x24a   : > { %17649 = vmatmul.mubr.msk.bf16.gmra.mrb[24].mxu1 %vm4355_vm2, %v28264_v46  ;;  %v9574_v29 = vrot.slane %v9560_v50, %v19646_v8  ;;  %v24233_v46 = vrot.slane %v5603_v4, %v19646_v8  ;;  %v28269_v50 = vld [vmem:[#allocation97_spill] sm:$0xff]  ;;  %v9584_v56 = vrot.slane %v9576_v54, %v19646_v8  ;;  %v28273_v25 = vcombine.low %v23882_v38, %v23885_v60  ;;  %v28274_v60 = vld [vmem:[#allocation196_spill] sm:$0xff] }
 0x24b   : > { %17652 = vmatprep.mubr.msk.bf16.mxu1 %vm19558_vm1, %v27425_v14  ;;  %v28270_v4 = vld [vmem:[#allocation209_spill] sm:$0xff]  ;;  %v24256_v27 = vrot.slane %v10063_v6, %v19646_v8  ;;  %v9624_v20 = vrot.slane %v16949_v43, %v19646_v8  ;;  %v10072_v6 = vcombine.low %v24092_v13, %v23860_v33  ;;  %v28275_v13 = vcombine.low %v23955_v58, %v28274_v60  ;;  %v28277_v43 = vld [vmem:[#allocation228_spill] sm:$0xff] }
 0x24c   : > { %v9575_v1 = vcombine.low %v24229_v26, %v9574_v29  ;;  %v9577_v3 = vcombine.low %v5585_v57, %v24233_v46  ;;  %v9617_v57 = vrot.slane %v9595_v52, %v19646_v8  ;;  %v28278_v58 = vcombine.low %v24005_v62, %v23985_v49  ;;  %v423_v49 = vld [vmem:[%s26638_s1 + $0xe] sm:$0x3]  ;;  %v28280_v62 = vld [vmem:[#allocation20_spill] sm:$0xff] }
 0x24d   : > { %v10071_v18 = vcombine.low %v24256_v27, %v23912_v0  ;;  %v28317_v44 = vcombine.low %v24219_v17, %v24205_v7  ;;  %v10036_v32 = vcombine.low %v23978_v30, %v23643_v51  ;;  %v28322_v30 = vld [vmem:[#allocation262_spill] sm:$0xff]  ;;  %v28341_v27 = vld [vmem:[#allocation11_spill] sm:$0xff] }
 0x24e   : > { %v9591_v15 = vrot.slane %v9577_v3, %v19646_v8  ;;  %v9626_v54 = vcombine.low %v9617_v57, %v9624_v20  ;;  %v28276_v3 = vld [vmem:[#allocation291_spill] sm:$0xff]  ;;  %v28279_v20 = vcombine.low %v24014_v21, %v24008_v61  ;;  %v28285_v21 = vcombine.low %v24057_v28, %v24029_v10  ;;  %v28290_v28 = vld [vmem:[#allocation240_spill] sm:$0xff] }
 0x24f   : > { %v28289_v10 = vcombine.low %v24062_v24, %v24078_v11  ;;  %v28293_v24 = vcombine.low %v24083_v55, %v24102_v59  ;;  %v28294_v11 = vld [vmem:[#allocation167_spill] sm:$0xff]  ;;  %v28297_v55 = vcombine.low %v24113_v9, %v24135_v23  ;;  %v28298_v59 = vld [vmem:[#allocation50_spill] sm:$0xff]  ;;  %v10043_v7 = vrot.slane %v10036_v32, %v19646_v8 }
 0x250   : > { %18033 = vmatmul.mubr.msk.bf16.gmra.mrb[68].mxu0 %vm4355_vm2, %v9550_v41  ;;  %v28268_v41 = vld [vmem:[#allocation213_spill] sm:$0xff]  ;;  %v24291_v33 = vrot.slane %v9626_v54, %v19646_v8  ;;  %v28282_v54 = vld [vmem:[#allocation22_spill] sm:$0xff] }
 0x251   : > { %18036 = vmatprep.mubr.msk.bf16.mxu0 %vm19558_vm1, %v27425_v14  ;;  %v9593_v37 = vcombine.low %v28269_v50, %v28268_v41  ;;  %v16948_v35 = vcombine.high %v28270_v4, %v28268_v41  ;;  %v28333_v32 = vld [vmem:[#allocation90_spill] sm:$0xff] }
 0x252   : > { %17653 = vmatmul.mubr.msk.bf16.gmra.mrb[28].mxu1 %vm4355_vm2, %v28267_v48 }
 0x253   : > { %17656 = vmatprep.mubr.msk.bf16.mxu1 %vm19558_vm1, %v27425_v14  ;;  %v9603_v48 = vrot.slane %v9593_v37, %v19646_v8  ;;  %v24265_v29 = vrot.slane %v16948_v35, %v19646_v8  ;;  %v24279_v35 = vcombine.low %v9584_v56, %v9591_v15  ;;  %v24283_v37 = vrot.slane %v10072_v6, %v19646_v8 }
 0x254   : > { %v9642_v56 = vcombine.low %v28277_v43, %v28276_v3 }
 0x255   : > { %v9625_v52 = vcombine.low %v9603_v48, %v24265_v29 }
 0x256   : > { %v9649_v48 = vrot.slane %v9642_v56, %v19646_v8  ;;  %v28287_v56 = vld [vmem:[#allocation72_spill] sm:$0xff] }
 0x257   : > { %v9633_v38 = vrot.slane %v9625_v52, %v19646_v8  ;;  %v10973_v52 = vsel %vm4419_vm0, %v423_v49, 0  ;;  %v28291_v49 = vld [vmem:[#allocation261_spill] sm:$0xff] }
 0x258   : > { %18037 = vmatmul.mubr.msk.bf16.gmra.mrb[72].mxu0 %vm4355_vm2, %v9575_v1  ;;  %v10080_v1 = vcombine.low %v23925_v47, %v24283_v37  ;;  %v9656_v57 = vrot.slane %v9649_v48, %v19646_v8  ;;  %v28288_v48 = vld [vmem:[#allocation237_spill] sm:$0xff] }
 0x259   : > { %18040 = vmatprep.mubr.msk.bf16.mxu0 %vm19558_vm1, %v27425_v14  ;;  %v9641_v15 = vcombine.low %v9633_v38, %v24291_v33  ;;  %v28283_v38 = vld [vmem:[#allocation19_spill] sm:$0xff]  ;;  %v28345_v37 = vld [vmem:[#allocation269_spill] sm:$0xff] }
 0x25a   : > { %17657 = vmatmul.mubr.msk.bf16.gmra.mrb[32].mxu1 %vm4355_vm2, %v28273_v25  ;;  %v28281_v25 = vld [vmem:[#allocation265_spill] sm:$0xff]  ;;  %v28284_v60 = vcombine.low %v28282_v54, %v28283_v38  ;;  %v28295_v54 = vld [vmem:[#allocation156_spill] sm:$0xff] }
 0x25b   : > { %17660 = vmatprep.mubr.msk.bf16.mxu1 %vm19558_vm1, %v27425_v14  ;;  %v9973_v6 = vcombine.low %v28281_v25, %v28280_v62  ;;  %v28292_v62 = vld [vmem:[#allocation42_spill] sm:$0xff]  ;;  %v28296_v38 = vld [vmem:[#allocation197_spill] sm:$0xff] }
 0x25c   : > { %v9991_v25 = vcombine.low %v28292_v62, %v28291_v49 }
 0x25d   : > { %v9980_v61 = vrot.slane %v9973_v6, %v19646_v8 }
 0x25e   : > { %v9998_v6 = vrot.slane %v9991_v25, %v19646_v8 }
 0x260   : > { %18041 = vmatmul.mubr.msk.bf16.gmra.mrb[76].mxu0 %vm4355_vm2, %v24279_v35 }
 0x261   : > { %18044 = vmatprep.mubr.msk.bf16.mxu0 %vm19558_vm1, %v27425_v14 }
 0x262   : > { %17661 = vmatmul.mubr.msk.bf16.gmra.mrb[36].mxu1 %vm4355_vm2, %v28275_v13  ;;  %v28286_v13 = vld [vmem:[#allocation32_spill] sm:$0xff] }
 0x263   : > { %17664 = vmatprep.mubr.msk.bf16.mxu1 %vm19558_vm1, %v27425_v14 }
 0x268   : > { %18045 = vmatmul.mubr.msk.bf16.gmra.mrb[80].mxu0 %vm4355_vm2, %v9641_v15  ;;  %v9981_v15 = vcombine.low %v9980_v61, %v28286_v13  ;;  %v28299_v13 = vld [vmem:[#allocation246_spill] sm:$0xff] }
 0x269   : > { %18048 = vmatprep.mubr.msk.bf16.mxu0 %vm19558_vm1, %v27425_v14 }
 0x26a   : > { %17665 = vmatmul.mubr.msk.bf16.gmra.mrb[40].mxu1 %vm4355_vm2, %v28278_v58  ;;  %v9982_v58 = vcombine.low %v28288_v48, %v28287_v56  ;;  %v28301_v48 = vld [vmem:[#allocation114_spill] sm:$0xff] }
 0x26b   : > { %17668 = vmatprep.mubr.msk.bf16.mxu1 %vm19558_vm1, %v27425_v14 }
 0x270   : > { %18049 = vmatmul.mubr.msk.bf16.gmra.mrb[100].mxu0 %vm4355_vm2, %v9656_v57  ;;  %v9989_v57 = vrot.slane %v9982_v58, %v19646_v8  ;;  %v28302_v58 = vld [vmem:[#allocation118_spill] sm:$0xff] }
 0x271   : > { %18054 = vmatprep.mubr.msk.bf16.mxu0 %vm19558_vm1, %v27425_v14 }
 0x272   : > { %17669 = vmatmul.mubr.msk.bf16.gmra.mrb[44].mxu1 %vm4355_vm2, %v28279_v20  ;;  %v9990_v20 = vcombine.low %v9989_v57, %v28290_v28  ;;  %v28303_v57 = vcombine.low %v28301_v48, %v28302_v58  ;;  %v28304_v28 = vld [vmem:[#allocation122_spill] sm:$0xff] }
 0x273   : > { %17672 = vmatprep.mubr.msk.bf16.mxu1 %vm19558_vm1, %v27425_v14 }
 0x278   : > { %18055 = vmatmul.mubr.msk.bf16.vlgmr.msra.gmra.mrb[104].mxu0 %vm4355_vm2, %v28284_v60  ;;  %v10000_v60 = vcombine.low %v28296_v38, %v28295_v54  ;;  %v28309_v54 = vld [vmem:[#allocation296_spill] sm:$0xff] }
 0x279   : > { %18139 = vmatpush3.bf16.msra.mxu0 %v10973_v52  ;;  %18058 = vmatprep.mubr.msk.bf16.mxu0 %vm19558_vm1, %v27425_v14  ;;  %v9999_v52 = vcombine.low %v9998_v6, %v28294_v11 }
 0x27a   : > { %17673 = vmatmul.mubr.msk.bf16.gmra.mrb[48].mxu1 %vm4355_vm2, %v28285_v21  ;;  %18224 = vmatprep.subr.bf16.mxu0 %v27425_v14  ;;  %v10007_v61 = vrot.slane %v10000_v60, %v19646_v8 }
 0x27b   : > { %17676 = vmatprep.mubr.msk.bf16.mxu1 %vm19558_vm1, %v27425_v14 }
 0x27c   : > { %v10008_v21 = vcombine.low %v28298_v59, %v10007_v61  ;;  %v28311_v59 = vld [vmem:[#allocation256_spill] sm:$0xff] }
 0x280   : > { %18059 = vmatmul.mubr.msk.bf16.gmra.mrb[4].mxu0 %vm4355_vm2, %v9981_v15  ;;  %v28300_v15 = vld [vmem:[#allocation194_spill] sm:$0xff] }
 0x281   : > { %18062 = vmatprep.mubr.msk.bf16.mxu0 %vm19558_vm1, %v27425_v14  ;;  %v10009_v56 = vcombine.low %v28300_v15, %v28299_v13  ;;  %v28312_v13 = vld [vmem:[#allocation300_spill] sm:$0xff] }
 0x282   : > { %17677 = vmatmul.mubr.msk.bf16.gmra.mrb[52].mxu1 %vm4355_vm2, %v28289_v10  ;;  %v24390_v10 = vrot.slane %v28303_v57, %v19646_v8  ;;  %v10027_v15 = vcombine.low %v28312_v13, %v23967_v2  ;;  %v28315_v2 = vld [vmem:[#allocation52_spill] sm:$0xff] }
 0x283   : > { %17680 = vmatprep.mubr.msk.bf16.mxu1 %vm19558_vm1, %v27425_v14  ;;  %v10016_v49 = vrot.slane %v10009_v56, %v19646_v8  ;;  %v28327_v13 = vld [vmem:[#allocation76_spill] sm:$0xff] }
 0x284   : > { %v10034_v58 = vrot.slane %v10027_v15, %v19646_v8 }
 0x286   : > { %v10035_v57 = vcombine.low %v28314_v42, %v10034_v58  ;;  %v28329_v58 = vld [vmem:[#allocation79_spill] sm:$0xff] }
 0x288   : > { %18063 = vmatmul.mubr.msk.bf16.gmra.mrb[8].mxu0 %vm4355_vm2, %v9990_v20  ;;  %v28305_v20 = vld [vmem:[#allocation123_spill] sm:$0xff] }
 0x289   : > { %18066 = vmatprep.mubr.msk.bf16.mxu0 %vm19558_vm1, %v27425_v14  ;;  %v28306_v9 = vcombine.low %v28304_v28, %v28305_v20  ;;  %v28316_v28 = vld [vmem:[#allocation64_spill] sm:$0xff] }
 0x28a   : > { %17681 = vmatmul.mubr.msk.bf16.gmra.mrb[56].mxu1 %vm4355_vm2, %v28293_v24  ;;  %v28307_v24 = vld [vmem:[#allocation297_spill] sm:$0xff]  ;;  %v6131_v20 = vcombine.low %v28316_v28, %v28315_v2 }
 0x28b   : > { %17684 = vmatprep.mubr.msk.bf16.mxu1 %vm19558_vm1, %v27425_v14  ;;  %v24396_v23 = vrot.slane %v28306_v9, %v19646_v8  ;;  %v10017_v11 = vcombine.low %v28307_v24, %v10016_v49  ;;  %v28318_v49 = vld [vmem:[#allocation59_spill] sm:$0xff]  ;;  %v28319_v24 = vld [vmem:[#allocation54_spill] sm:$0xff] }
 0x28c   : > { %v24443_v9 = vrot.slane %v6131_v20, %v19646_v8  ;;  %v28332_v20 = vld [vmem:[#allocation86_spill] sm:$0xff] }
 0x28d   : > { %v10506_v62 = vcombine.low %v24390_v10, %v24396_v23  ;;  %v28393_v10 = vld [vmem:[#allocation241_spill] sm:$0xff]  ;;  %v28394_v23 = vld [vmem:[#allocation239_spill] sm:$0xff] }
 0x290   : > { %18067 = vmatmul.mubr.msk.bf16.gmra.mrb[12].mxu0 %vm4355_vm2, %v9999_v52  ;;  %v28308_v52 = vld [vmem:[#allocation190_spill] sm:$0xff] }
 0x291   : > { %18070 = vmatprep.mubr.msk.bf16.mxu0 %vm19558_vm1, %v27425_v14  ;;  %v10018_v38 = vcombine.low %v28309_v54, %v28308_v52  ;;  %v28321_v54 = vld [vmem:[#allocation70_spill] sm:$0xff] }
 0x292   : > { %17685 = vmatmul.mubr.msk.bf16.gmra.mrb[60].mxu1 %vm4355_vm2, %v28297_v55 }
 0x293   : > { %17688 = vmatprep.mubr.msk.bf16.mxu1 %vm19558_vm1, %v27425_v14  ;;  %v10025_v45 = vrot.slane %v10018_v38, %v19646_v8  ;;  %v28323_v38 = vld [vmem:[#allocation68_spill] sm:$0xff] }
 0x298   : > { %18071 = vmatmul.mubr.msk.bf16.gmra.mrb[16].mxu0 %vm4355_vm2, %v10008_v21  ;;  %v10026_v21 = vcombine.low %v28311_v59, %v10025_v45 }
 0x299   : > { %18074 = vmatprep.mubr.msk.bf16.mxu0 %vm19558_vm1, %v27425_v14 }
 0x29a   : > { %17689 = vmatmul.mubr.msk.bf16.gmra.mrb[64].mxu1 %vm4355_vm2, %v5455_v40 }
 0x29b   : > { %v9095_v25 = vpop.f32.mrb[92].mxu0  ;;  %17692 = vmatprep.mubr.msk.bf16.mxu1 %vm19558_vm1, %v27425_v14 }
 0x29c   : > { %v17964_v6 = vpop.f32.mrb[93].mxu0  ;;  %v6162_v25 = vcombine.low %v24443_v9, %v28318_v49 }
 0x29d   : > { %v9098_v60 = vpop.f32.mrb[94].mxu0  ;;  %v5617_v6 = vrot.slane %v24233_v46, %v19646_v8  ;;  %v10044_v46 = vcombine.low %v10043_v7, %v28322_v30  ;;  %v28339_v7 = vld [vmem:[#allocation268_spill] sm:$0xff]  ;;  %v28340_v30 = vld [vmem:[#allocation115_spill] sm:$0xff] }
 0x29e   : > { %v17965_v61 = vpop.f32.mrb[95].mxu0  ;;  %v6176_v17 = vrot.slane %v6162_v25, %v19646_v8 }
 0x29f   : > { %v28324_v61 = vld [vmem:[#allocation69_spill] sm:$0xff] }
 0x2a0   : > { %18075 = vmatmul.mubr.msk.bf16.gmra.mrb[24].mxu0 %vm4355_vm2, %v10017_v11  ;;  %v28320_v11 = vld [vmem:[#allocation58_spill] sm:$0xff]  ;;  %v6177_v60 = vcombine.low %v28323_v38, %v6176_v17 }
 0x2a1   : > { %18078 = vmatprep.mubr.msk.bf16.mxu0 %vm19558_vm1, %v27425_v14  ;;  %v6180_v52 = vcombine.low %v28320_v11, %v28319_v24  ;;  %v28336_v11 = vld [vmem:[#allocation107_spill] sm:$0xff] }
 0x2a2   : > { %17693 = vmatmul.mubr.msk.bf16.gmra.mrb[68].mxu1 %vm4355_vm2, %v28310_v22  ;;  %v28325_v22 = vld [vmem:[#allocation78_spill] sm:$0xff] }
 0x2a3   : > { %v9757_v40 = vpop.f32.mrb[96].mxu0  ;;  %17696 = vmatprep.mubr.msk.bf16.mxu1 %vm19558_vm1, %v27425_v14  ;;  %v24467_v51 = vrot.slane %v6180_v52, %v19646_v8  ;;  %v28337_v52 = vld [vmem:[#allocation96_spill] sm:$0xff] }
 0x2a4   : > { %v17970_v55 = vpop.f32.mrb[97].mxu0  ;;  %v28326_v40 = vld [vmem:[#allocation67_spill] sm:$0xff] }
 0x2a5   : > { %v9760_v56 = vpop.f32.mrb[98].mxu0  ;;  %v6211_v45 = vcombine.low %v24467_v51, %v28324_v61  ;;  %v6230_v55 = vcombine.low %v28326_v40, %v28325_v22  ;;  %v28344_v40 = vld [vmem:[#allocation81_spill] sm:$0xff] }
 0x2a6   : > { %v17971_v48 = vpop.f32.mrb[99].mxu0  ;;  %v28328_v56 = vld [vmem:[#allocation82_spill] sm:$0xff] }
 0x2a7   : > { %v6225_v59 = vrot.slane %v6211_v45, %v19646_v8 }
 0x2a8   : > { %18079 = vmatmul.mubr.msk.bf16.gmra.mrb[28].mxu0 %vm4355_vm2, %v10026_v21  ;;  %v24483_v21 = vrot.slane %v6230_v55, %v19646_v8  ;;  %v373_v55 = vld [vmem:[%s19643_s10 + $0x1c8] sm:$0xff] }
 0x2a9   : > { %18082 = vmatprep.mubr.msk.bf16.mxu0 %vm19558_vm1, %v27425_v14  ;;  %v6226_v15 = vcombine.low %v28327_v13, %v6225_v59  ;;  %v374_v59 = vld [vmem:[%s19643_s10 + $0x1d0] sm:$0xff] }
 0x2aa   : > { %17697 = vmatmul.mubr.msk.bf16.gmra.mrb[72].mxu1 %vm4355_vm2, %v28313_v19  ;;  %v6260_v48 = vcombine.low %v28328_v56, %v24483_v21  ;;  %v28330_v19 = vld [vmem:[#allocation83_spill] sm:$0xff] }
 0x2ab   : > { %17700 = vmatprep.mubr.msk.bf16.mxu1 %vm19558_vm1, %v27425_v14  ;;  %v6279_v42 = vcombine.low %v28330_v19, %v28329_v58  ;;  %v28347_v58 = vld [vmem:[#allocation120_spill] sm:$0xff] }
 0x2ac   : > { %v6274_v2 = vrot.slane %v6260_v48, %v19646_v8 }
 0x2ad   : > { %v24501_v28 = vrot.slane %v6279_v42, %v19646_v8  ;;  %v28348_v42 = vld [vmem:[#allocation130_spill] sm:$0xff] }
 0x2b0   : > { %18083 = vmatmul.mubr.msk.bf16.gmra.mrb[32].mxu0 %vm4355_vm2, %v10035_v57  ;;  %v28331_v57 = vcombine.low %v24208_v16, %v23744_v34  ;;  %v6309_v34 = vcombine.low %v28333_v32, %v24501_v28  ;;  %v28334_v16 = vcombine.low %v24216_v53, %v23870_v31  ;;  %v28338_v53 = vld [vmem:[#allocation198_spill] sm:$0xff] }
 0x2b1   : > { %18086 = vmatprep.mubr.msk.bf16.mxu0 %vm19558_vm1, %v27425_v14  ;;  %v10081_v17 = vcombine.low %v28339_v7, %v28338_v53  ;;  %v28350_v7 = vld [vmem:[#allocation132_spill] sm:$0xff] }
 0x2b2   : > { %17701 = vmatmul.mubr.msk.bf16.gmra.mrb[76].mxu1 %vm4355_vm2, %v28317_v44  ;;  %v6275_v44 = vcombine.low %v28332_v20, %v6274_v2  ;;  %v6323_v25 = vrot.slane %v6309_v34, %v19646_v8  ;;  %v414_v34 = vpack.c.bf16 %v374_v59, %v373_v55  ;;  %v10108_v55 = vcombine.low %v28270_v4, %v28268_v41 }
 0x2b3   : > { %17704 = vmatprep.mubr.msk.bf16.mxu1 %vm19558_vm1, %v27425_v14  ;;  %v10088_v38 = vrot.slane %v10081_v17, %v19646_v8 }
 0x2b4   : > { %v10115_v4 = vrot.slane %v10108_v55, %v19646_v8 }
 0x2b5   : > { %v10089_v47 = vcombine.low %v28344_v40, %v10088_v38 }
 0x2b8   : > { %18087 = vmatmul.mubr.msk.bf16.gmra.mrb[36].mxu0 %vm4355_vm2, %v28321_v54  ;;  %v6374_v54 = vcombine.low %v28337_v52, %v28336_v11  ;;  %v3223_v11 = vrot.slane %v414_v34, %v19646_v8  ;;  %v28361_v34 = vld [vmem:[#allocation144_spill] sm:$0xff] }
 0x2b9   : > { %18090 = vmatprep.mubr.msk.bf16.mxu0 %vm19558_vm1, %v27425_v14 }
 0x2ba   : > { %17705 = vmatmul.mubr.msk.bf16.gmra.mrb[88].mxu1 %vm4355_vm2, %v5617_v6  ;;  %v28335_v6 = vld [vmem:[#allocation102_spill] sm:$0xff]  ;;  %v24529_v31 = vrot.slane %v6374_v54, %v19646_v8  ;;  %v10099_v54 = vcombine.low %v24089_v12, %v24186_v63 }
 0x2bb   : > { %17730 = vmatprep.mubr.msk.bf16.mxu1 %vm19558_vm1, %v27425_v14  ;;  %v6324_v24 = vcombine.low %v28335_v6, %v6323_v25 }
 0x2bc   : > { %v6406_v0 = vcombine.low %v24529_v31, %v28340_v30 }
 0x2be   : > { %v6414_v45 = vrot.slane %v6406_v0, %v19646_v8  ;;  %v28351_v0 = vld [vmem:[#allocation134_spill] sm:$0xff] }
 0x2c0   : > { %18091 = vmatmul.mubr.msk.bf16.gmra.mrb[40].mxu0 %vm4355_vm2, %v10044_v46 }
 0x2c1   : > { %18094 = vmatprep.mubr.msk.bf16.mxu0 %vm19558_vm1, %v27425_v14 }
 0x2c2   : > { %17731 = vmatmul.mubr.msk.bf16.vlgmr.msra.gmra.mrb[20].mxu1 %vm4355_vm2, %v6177_v60  ;;  %v28343_v60 = vld [vmem:[#allocation121_spill] sm:$0xff] }
 0x2c3   : > { %17734 = vmatprep.mubr.msk.bf16.mxu1 %vm19558_vm1, %v27425_v14 }
 0x2c8   : > { %18095 = vmatmul.mubr.msk.bf16.gmra.mrb[44].mxu0 %vm4355_vm2, %v28331_v57  ;;  %v28349_v57 = vld [vmem:[#allocation104_spill] sm:$0xff] }
 0x2c9   : > { %18098 = vmatprep.mubr.msk.bf16.mxu0 %vm19558_vm1, %v27425_v14  ;;  %v6473_v2 = vcombine.low %v28349_v57, %v28348_v42  ;;  %v28358_v42 = vld [vmem:[#allocation147_spill] sm:$0xff] }
 0x2ca   : > { %17735 = vmatmul.mubr.msk.bf16.gmra.mrb[24].mxu1 %vm4355_vm2, %v6226_v15  ;;  %v28346_v15 = vld [vmem:[#allocation126_spill] sm:$0xff] }
 0x2cb   : > { %17738 = vmatprep.mubr.msk.bf16.mxu1 %vm19558_vm1, %v27425_v14  ;;  %v6422_v48 = vcombine.low %v6414_v45, %v28346_v15  ;;  %v24571_v6 = vrot.slane %v6473_v2, %v19646_v8  ;;  %v28359_v2 = vld [vmem:[#allocation142_spill] sm:$0xff] }
 0x2d0   : > { %18099 = vmatmul.mubr.msk.bf16.gmra.mrb[48].mxu0 %vm4355_vm2, %v28334_v16 }
 0x2d1   : > { %18102 = vmatprep.mubr.msk.bf16.mxu0 %vm19558_vm1, %v27425_v14 }
 0x2d2   : > { %17739 = vmatmul.mubr.msk.bf16.gmra.mrb[28].mxu1 %vm4355_vm2, %v6275_v44 }
 0x2d3   : > { %17742 = vmatprep.mubr.msk.bf16.mxu1 %vm19558_vm1, %v27425_v14 }
 0x2d8   : > { %18103 = vmatmul.mubr.msk.bf16.gmra.mrb[52].mxu0 %vm4355_vm2, %v10071_v18  ;;  %v28342_v18 = vld [vmem:[#allocation110_spill] sm:$0xff] }
 0x2d9   : > { %18106 = vmatprep.mubr.msk.bf16.mxu0 %vm19558_vm1, %v27425_v14  ;;  %v6423_v46 = vcombine.low %v28342_v18, %v28341_v27  ;;  %v6504_v27 = vcombine.low %v28351_v0, %v24571_v6  ;;  %v28352_v18 = vld [vmem:[#allocation18_spill] sm:$0xff] }
 0x2da   : > { %17743 = vmatmul.mubr.msk.bf16.gmra.mrb[32].mxu1 %vm4355_vm2, %v6324_v24  ;;  %v16797_v24 = vpack.c.bf16 %v374_v59, %v374_v59 }
 0x2db   : > { %17746 = vmatprep.mubr.msk.bf16.mxu1 %vm19558_vm1, %v27425_v14  ;;  %v24550_v22 = vrot.slane %v6423_v46, %v19646_v8  ;;  %v28353_v46 = vld [vmem:[#allocation135_spill] sm:$0xff]  ;;  %v6512_v12 = vrot.slane %v6504_v27, %v19646_v8 }
 0x2dc   : > { %v6522_v38 = vcombine.low %v28353_v46, %v28352_v18  ;;  %v3230_v40 = vrot.slane %v16797_v24, %v19646_v8 }
 0x2dd   : > { %v6455_v19 = vcombine.low %v24550_v22, %v28347_v58  ;;  %v6520_v57 = vcombine.low %v6512_v12, %v28358_v42 }
 0x2de   : > { %v24592_v63 = vrot.slane %v6522_v38, %v19646_v8  ;;  %v3232_v15 = vcombine.high %v3230_v40, %v3230_v40  ;;  %v375_v38 = vld [vmem:[%s19643_s10 + $0x1d8] sm:$0xf] }
 0x2e0   : > { %18107 = vmatmul.mubr.msk.bf16.gmra.mrb[56].mxu0 %vm4355_vm2, %v10080_v1  ;;  %v10090_v1 = vcombine.low %v28345_v37, %v24169_v5  ;;  %v6463_v5 = vrot.slane %v6455_v19, %v19646_v8 }
 0x2e1   : > { %18110 = vmatprep.mubr.msk.bf16.mxu0 %vm19558_vm1, %v27425_v14 }
 0x2e2   : > { %17747 = vmatmul.mubr.msk.bf16.gmra.mrb[36].mxu1 %vm4355_vm2, %v28343_v60  ;;  %v10097_v16 = vrot.slane %v10090_v1, %v19646_v8  ;;  %v6471_v17 = vcombine.low %v6463_v5, %v28350_v7  ;;  %v24595_v1 = vrot.slane %v3223_v11, %v19646_v8  ;;  %v10116_v7 = vcombine.low %v10115_v4, %v24265_v29 }
 0x2e3   : > { %17750 = vmatprep.mubr.msk.bf16.mxu1 %vm19558_vm1, %v27425_v14 }
 0x2e4   : > { %v10098_v52 = vcombine.low %v24163_v36, %v10097_v16  ;;  %v10106_v36 = vrot.slane %v10099_v54, %v19646_v8  ;;  %28354 = vst [vmem:[#allocation84_spill] sm:$0xff] %v24595_v1  ;;  %v10123_v55 = vrot.slane %v10116_v7, %v19646_v8 }
 0x2e5   : > { %v4617_v13 = vpop.f32.mrb[80].mxu1 }
 0x2e6   : > { %v17620_v20 = vpop.f32.mrb[81].mxu1  ;;  %v10107_v13 = vcombine.low %v24229_v26, %v10106_v36  ;;  %v24618_v26 = vrot.slane %v3232_v15, %v19646_v8  ;;  %v28367_v36 = vld [vmem:[#allocation244_spill] sm:$0xff] }
 0x2e7   : > { %v4620_v44 = vpop.f32.mrb[82].mxu1  ;;  %v6553_v20 = vcombine.low %v28359_v2, %v24592_v63 }
 0x2e8   : > { %18111 = vmatmul.mubr.msk.bf16.gmra.mrb[60].mxu0 %vm4355_vm2, %v10089_v47  ;;  %v17621_v25 = vpop.f32.mrb[83].mxu1  ;;  %v3231_v47 = vcombine.high %v3223_v11, %v3223_v11  ;;  %v28360_v44 = vld [vmem:[#allocation153_spill] sm:$0xff]  ;;  %28362 = vst [vmem:[#allocation307_spill] sm:$0xff] %v24618_v26 }
 0x2e9   : > { %18114 = vmatprep.mubr.msk.bf16.mxu0 %vm19558_vm1, %v27425_v14  ;;  %v6572_v16 = vcombine.low %v28361_v34, %v28360_v44  ;;  %v24622_v25 = vcombine.high %v24595_v1, %v24595_v1  ;;  %v6561_v54 = vrot.slane %v6553_v20, %v19646_v8  ;;  %v415_v20 = vpack.c.bf16 %v375_v38, %v375_v38  ;;  %v28373_v38 = vld [vmem:[#allocation178_spill] sm:$0xff] }
 0x2ea   : > { %17751 = vmatmul.mubr.msk.bf16.gmra.mrb[40].mxu1 %vm4355_vm2, %v6422_v48  ;;  %v24602_v59 = vrot.slane %v3231_v47, %v19646_v8  ;;  %v24606_v48 = vrot.slane %v3230_v40, %v19646_v8  ;;  %v28366_v47 = vld [vmem:[#allocation162_spill] sm:$0xff] }
 0x2eb   : > { %17754 = vmatprep.mubr.msk.bf16.mxu1 %vm19558_vm1, %v27425_v14  ;;  %v3301_v3 = vshll.u32 %v24622_v25, 16 }
 0x2ec   : > { %28355 = vst [vmem:[#allocation270_spill] sm:$0xff] %v24602_v59  ;;  %28356 = vst [vmem:[#allocation88_spill] sm:$0xff] %v24606_v48  ;;  %v24626_v5 = vcombine.high %v24606_v48, %v24606_v48  ;;  %v24630_v24 = vcombine.high %v24602_v59, %v24602_v59  ;;  %v10126_v27 = vcombine.low %v24602_v59, %v24622_v25 }
 0x2ed   : > { %v5718_v53 = vpop.f32.mrb[84].mxu1 }
 0x2ee   : > { %v17626_v60 = vpop.f32.mrb[85].mxu1  ;;  %v24639_v53 = vrot.slane %v6572_v16, %v19646_v8  ;;  %v10127_v18 = vcombine.low %v24630_v24, %v24606_v48  ;;  %v10128_v46 = vcombine.low %v24618_v26, %v24626_v5  ;;  %v10142_v15 = vrot.slane %v10126_v27, %v19646_v8 }
 0x2ef   : > { %v5721_v45 = vpop.f32.mrb[86].mxu1 }
 0x2f0   : > { %18115 = vmatmul.mubr.msk.bf16.gmra.mrb[64].mxu0 %vm4355_vm2, %v10098_v52  ;;  %v17627_v37 = vpop.f32.mrb[87].mxu1  ;;  %v28365_v45 = vld [vmem:[#allocation159_spill] sm:$0xff]  ;;  %v6603_v29 = vcombine.low %v24639_v53, %v28366_v47  ;;  %v10149_v42 = vrot.slane %v10127_v18, %v19646_v8  ;;  %v28372_v18 = vld [vmem:[#allocation170_spill] sm:$0xff] }
 0x2f1   : > { %18118 = vmatprep.mubr.msk.bf16.mxu0 %vm19558_vm1, %v27425_v14  ;;  %v6569_v40 = vcombine.low %v6561_v54, %v28365_v45  ;;  %v28368_v37 = vld [vmem:[#allocation158_spill] sm:$0xff]  ;;  %v24680_v54 = vrot.slane %v415_v20, %v19646_v8  ;;  %v28374_v45 = vld [vmem:[#allocation251_spill] sm:$0xff] }
 0x2f2   : > { %17755 = vmatmul.mubr.msk.bf16.gmra.mrb[44].mxu1 %vm4355_vm2, %v6471_v17  ;;  %v10125_v17 = vcombine.low %v28277_v43, %v24595_v1  ;;  %v6621_v43 = vcombine.low %v28368_v37, %v28367_v36  ;;  %v6617_v16 = vrot.slane %v6603_v29, %v19646_v8  ;;  %v24694_v37 = vcombine.high %v24618_v26, %v24618_v26 }
 0x2f3   : > { %17758 = vmatprep.mubr.msk.bf16.mxu1 %vm19558_vm1, %v27425_v14 }
 0x2f5   : > { %v24608_v19 = vpop.f32.mrb[4].mxu1 }
 0x2f6   : > { %28357 = vst [vmem:[#allocation305_spill] sm:$0xff] %v24608_v19  ;;  %v17630_v41 = vpop.f32.mrb[5].mxu1 }
 0x2f7   : > { %v24632_v11 = vpop.f32.mrb[6].mxu1  ;;  %v24674_v41 = vrot.slane %v6621_v43, %v19646_v8  ;;  %v24698_v43 = vrot.slane %v24680_v54, %v19646_v8 }
 0x2f8   : > { %18119 = vmatmul.mubr.msk.bf16.gmra.mrb[68].mxu0 %vm4355_vm2, %v10107_v13  ;;  %28363 = vst [vmem:[#allocation306_spill] sm:$0xff] %v24632_v11  ;;  %v17631_v52 = vpop.f32.mrb[7].mxu1  ;;  %v10135_v13 = vrot.slane %v10125_v17, %v19646_v8  ;;  %v28371_v17 = vld [vmem:[#allocation169_spill] sm:$0xff]  ;;  %v28473_v11 = vld [vmem:[#allocation220_spill] sm:$0xff] }
 0x2f9   : > { %18122 = vmatprep.mubr.msk.bf16.mxu0 %vm19558_vm1, %v27425_v14  ;;  %v6618_v27 = vcombine.low %v28371_v17, %v6617_v16  ;;  %28375 = vst [vmem:[#allocation310_spill] sm:$0xff] %v24698_v43  ;;  %v28381_v17 = vld [vmem:[#allocation184_spill] sm:$0xff] }
 0x2fa   : > { %17759 = vmatmul.mubr.msk.bf16.gmra.mrb[48].mxu1 %vm4355_vm2, %v6520_v57  ;;  %v10156_v57 = vrot.slane %v10128_v46, %v19646_v8  ;;  %v10157_v4 = vcombine.low %v10135_v13, %v10142_v15  ;;  %v6652_v46 = vcombine.low %v24674_v41, %v28372_v18 }
 0x2fb   : > { %17762 = vmatprep.mubr.msk.bf16.mxu1 %vm19558_vm1, %v27425_v14 }
 0x2fc   : > { %v10158_v52 = vcombine.low %v10149_v42, %v10156_v57  ;;  %v6666_v13 = vrot.slane %v6652_v46, %v19646_v8  ;;  %v10174_v57 = vcombine.low %v24694_v37, %v24698_v43 }
 0x2fd   : > { %v24653_v60 = vpop.f32.mrb[8].mxu1 }
 0x2fe   : > { %28364 = vst [vmem:[#allocation309_spill] sm:$0xff] %v24653_v60  ;;  %v17634_v12 = vpop.f32.mrb[9].mxu1  ;;  %v10172_v36 = vrot.slane %v10158_v52, %v19646_v8  ;;  %v28380_v52 = vld [vmem:[#allocation181_spill] sm:$0xff]  ;;  %v28472_v60 = vld [vmem:[#allocation219_spill] sm:$0xff] }
 0x2ff   : > { %v24667_v44 = vpop.f32.mrb[10].mxu1  ;;  %v10798_v19 = vcombine.low %v28473_v11, %v28472_v60  ;;  %v3328_v11 = vshrl.u32 %v24618_v26, 16  ;;  %v3333_v60 = vshll.u32 %v24626_v5, 16 }
 0x300   : > { %18123 = vmatmul.mubr.msk.bf16.gmra.mrb[72].mxu0 %vm4355_vm2, %v24279_v35  ;;  %28369 = vst [vmem:[#allocation308_spill] sm:$0xff] %v24667_v44  ;;  %v17635_v34 = vpop.f32.mrb[11].mxu1  ;;  %v10124_v35 = vcombine.low %v10123_v55, %v24291_v33  ;;  %v10165_v33 = vrot.slane %v10157_v4, %v19646_v8 }
 0x301   : > { %18126 = vmatprep.mubr.msk.bf16.mxu0 %vm19558_vm1, %v27425_v14  ;;  %v28378_v34 = vld [vmem:[#allocation180_spill] sm:$0xff] }
 0x302   : > { %17763 = vmatmul.mubr.msk.bf16.gmra.mrb[52].mxu1 %vm4355_vm2, %v6569_v40  ;;  %v6671_v40 = vcombine.low %v28374_v45, %v28373_v38  ;;  %v10173_v42 = vcombine.low %v10165_v33, %v10172_v36  ;;  %v6667_v16 = vcombine.low %v28378_v34, %v6666_v13  ;;  %v10181_v38 = vrot.slane %v10174_v57, %v19646_v8 }
 0x303   : > { %17766 = vmatprep.mubr.msk.bf16.mxu1 %vm19558_vm1, %v27425_v14 }
 0x304   : > { %v24707_v15 = vrot.slane %v6671_v40, %v19646_v8  ;;  %v10188_v36 = vrot.slane %v10181_v38, %v19646_v8 }
 0x305   : > { %v24682_v7 = vpop.f32.mrb[12].mxu1 }
 0x306   : > { %28370 = vst [vmem:[#allocation311_spill] sm:$0xff] %v24682_v7  ;;  %v17638_v29 = vpop.f32.mrb[13].mxu1 }
 0x307   : > { %v24700_v12 = vpop.f32.mrb[14].mxu1 }
 0x308   : > { %18127 = vmatmul.mubr.msk.bf16.gmra.mrb[76].mxu0 %vm4355_vm2, %v10124_v35  ;;  %28376 = vst [vmem:[#allocation85_spill] sm:$0xff] %v24700_v12  ;;  %v17639_v55 = vpop.f32.mrb[15].mxu1  ;;  %v28379_v35 = vld [vmem:[#allocation182_spill] sm:$0xff] }
 0x309   : > { %18130 = vmatprep.mubr.msk.bf16.mxu0 %vm19558_vm1, %v27425_v14  ;;  %v6701_v4 = vcombine.low %v28379_v35, %v24707_v15  ;;  %v28383_v55 = vld [vmem:[#allocation191_spill] sm:$0xff]  ;;  %v28421_v12 = vld [vmem:[#allocation274_spill] sm:$0xff] }
 0x30a   : > { %17767 = vmatmul.mubr.msk.bf16.gmra.mrb[56].mxu1 %vm4355_vm2, %v6618_v27  ;;  %v6720_v27 = vcombine.low %v28381_v17, %v28380_v52  ;;  %v28386_v52 = vld [vmem:[#allocation131_spill] sm:$0xff] }
 0x30b   : > { %17770 = vmatprep.mubr.msk.bf16.mxu1 %vm19558_vm1, %v27425_v14  ;;  %v6715_v29 = vrot.slane %v6701_v4, %v19646_v8  ;;  %v28385_v4 = vld [vmem:[#allocation141_spill] sm:$0xff] }
 0x30c   : > { %v24729_v33 = vrot.slane %v6720_v27, %v19646_v8  ;;  %v10507_v17 = vcombine.low %v28386_v52, %v28385_v4  ;;  %v28387_v27 = vld [vmem:[#allocation149_spill] sm:$0xff]  ;;  %v28396_v52 = vld [vmem:[#allocation242_spill] sm:$0xff] }
 0x30d   : > { %v24713_v20 = vpop.f32.mrb[16].mxu1  ;;  %v6716_v13 = vcombine.low %v28383_v55, %v6715_v29  ;;  %v28389_v29 = vld [vmem:[#allocation201_spill] sm:$0xff]  ;;  %v28390_v55 = vld [vmem:[#allocation208_spill] sm:$0xff] }
 0x30e   : > { %28377 = vst [vmem:[#allocation93_spill] sm:$0xff] %v24713_v20  ;;  %v17642_v46 = vpop.f32.mrb[17].mxu1  ;;  %v28395_v4 = vld [vmem:[#allocation49_spill] sm:$0xff] }
 0x30f   : > { %v24722_v45 = vpop.f32.mrb[18].mxu1  ;;  %v28388_v46 = vld [vmem:[#allocation143_spill] sm:$0xff] }
 0x310   : > { %18131 = vmatmul.mubr.msk.bf16.gmra.mrb[80].mxu0 %vm4355_vm2, %v10173_v42  ;;  %28382 = vst [vmem:[#allocation91_spill] sm:$0xff] %v24722_v45  ;;  %v17643_v40 = vpop.f32.mrb[19].mxu1  ;;  %v28384_v42 = vld [vmem:[#allocation193_spill] sm:$0xff]  ;;  %v10508_v38 = vcombine.low %v28388_v46, %v28387_v27  ;;  %v10515_v45 = vrot.slane %v10507_v17, %v19646_v8  ;;  %v10525_v17 = vcombine.low %v28396_v52, %v28395_v4  ;;  %v28397_v27 = vld [vmem:[#allocation214_spill] sm:$0xff] }
 0x311   : > { %18134 = vmatprep.mubr.msk.bf16.mxu0 %vm19558_vm1, %v27425_v14  ;;  %v6750_v57 = vcombine.low %v28384_v42, %v24729_v33 }
 0x312   : > { %17771 = vmatmul.mubr.msk.bf16.gmra.mrb[60].mxu1 %vm4355_vm2, %v6667_v16  ;;  %v424_v16 = vld [vmem:[%s26638_s1 + $0x10] sm:$0x3]  ;;  %v10522_v20 = vrot.slane %v10508_v38, %v19646_v8 }
 0x313   : > { %17774 = vmatprep.mubr.msk.bf16.mxu1 %vm19558_vm1, %v27425_v14  ;;  %v6764_v34 = vrot.slane %v6750_v57, %v19646_v8  ;;  %v11667_v40 = vsel %vm4419_vm0, %v424_v16, 0 }
 0x314   : > { %v10523_v16 = vcombine.low %v10515_v45, %v10522_v20 }
 0x318   : > { %18135 = vmatmul.mubr.msk.bf16.gmra.mrb[108].mxu0 %vm4355_vm2, %v10188_v36  ;;  %v6765_v36 = vcombine.low %v28389_v29, %v6764_v34  ;;  %v28398_v29 = vld [vmem:[#allocation229_spill] sm:$0xff] }
 0x319   : > { %18140 = vmatprep.mubr.msk.bf16.mxu0 %vm19558_vm1, %v27425_v14 }
 0x31a   : > { %17775 = vmatmul.mubr.msk.bf16.gmra.mrb[64].mxu1 %vm4355_vm2, %v6716_v13  ;;  %v28391_v13 = vld [vmem:[#allocation266_spill] sm:$0xff] }
 0x31b   : > { %17778 = vmatprep.mubr.msk.bf16.mxu1 %vm19558_vm1, %v27425_v14  ;;  %v6815_v57 = vcombine.low %v28391_v13, %v28390_v55  ;;  %v28400_v55 = vld [vmem:[#allocation250_spill] sm:$0xff] }
 0x31d   : > { %v24765_v34 = vrot.slane %v6815_v57, %v19646_v8  ;;  %v28401_v57 = vld [vmem:[#allocation253_spill] sm:$0xff] }
 0x31f   : > { %28392 = vst [vmem:[#allocation280_spill] sm:$0xff] %v24765_v34  ;;  %v6847_v46 = vcombine.low %v24765_v34, %v28397_v27  ;;  %v28476_v27 = vld [vmem:[#allocation287_spill] sm:$0xff]  ;;  %v28477_v34 = vld [vmem:[#allocation290_spill] sm:$0xff] }
 0x320   : > { %18141 = vmatmul.mubr.msk.bf16.vlgmr.msra.gmra.mrb[112].mxu0 %vm4355_vm2, %v10506_v62  ;;  %v10524_v62 = vcombine.low %v28394_v23, %v28393_v10  ;;  %v28403_v23 = vld [vmem:[#allocation225_spill] sm:$0xff] }
 0x321   : > { %18225 = vmatpush3.bf16.msra.mxu0 %v11667_v40  ;;  %18144 = vmatprep.mubr.msk.bf16.mxu0 %vm19558_vm1, %v27425_v14  ;;  %v10539_v40 = vrot.slane %v10525_v17, %v19646_v8  ;;  %v6855_v20 = vrot.slane %v6847_v46, %v19646_v8  ;;  %v28404_v46 = vld [vmem:[#allocation260_spill] sm:$0xff] }
 0x322   : > { %17779 = vmatmul.mubr.msk.bf16.gmra.mrb[68].mxu1 %vm4355_vm2, %v6765_v36  ;;  %v10532_v38 = vrot.slane %v10524_v62, %v19646_v8  ;;  %v28399_v36 = vld [vmem:[#allocation249_spill] sm:$0xff] }
 0x323   : > { %17782 = vmatprep.mubr.msk.bf16.mxu1 %vm19558_vm1, %v27425_v14  ;;  %v10541_v13 = vcombine.low %v28400_v55, %v28399_v36  ;;  %v6863_v62 = vcombine.low %v6855_v20, %v28403_v23  ;;  %v28407_v20 = vld [vmem:[#allocation259_spill] sm:$0xff] }
 0x324   : > { %v10540_v45 = vcombine.low %v10532_v38, %v10539_v40  ;;  %v28405_v38 = vld [vmem:[#allocation258_spill] sm:$0xff]  ;;  %v28410_v23 = vld [vmem:[#allocation271_spill] sm:$0xff] }
 0x325   : > { %v10549_v4 = vrot.slane %v10541_v13, %v19646_v8  ;;  %v10558_v40 = vcombine.low %v28405_v38, %v28404_v46  ;;  %v28412_v46 = vld [vmem:[#allocation26_spill] sm:$0xff]  ;;  %v28413_v38 = vld [vmem:[#allocation27_spill] sm:$0xff] }
 0x328   : > { %18145 = vmatmul.mubr.msk.bf16.gmra.mrb[4].mxu0 %vm4355_vm2, %v10523_v16  ;;  %v28402_v16 = vld [vmem:[#allocation252_spill] sm:$0xff] }
 0x329   : > { %18148 = vmatprep.mubr.msk.bf16.mxu0 %vm19558_vm1, %v27425_v14  ;;  %v10542_v10 = vcombine.low %v28402_v16, %v28401_v57  ;;  %v28408_v57 = vld [vmem:[#allocation264_spill] sm:$0xff]  ;;  %v28409_v16 = vld [vmem:[#allocation73_spill] sm:$0xff] }
 0x32a   : > { %17783 = vmatmul.mubr.msk.bf16.gmra.mrb[72].mxu1 %vm4355_vm2, %v28398_v29  ;;  %v28406_v29 = vld [vmem:[#allocation74_spill] sm:$0xff] }
 0x32b   : > { %17786 = vmatprep.mubr.msk.bf16.mxu1 %vm19558_vm1, %v27425_v14  ;;  %v10556_v52 = vrot.slane %v10542_v10, %v19646_v8  ;;  %v10559_v36 = vcombine.low %v28407_v20, %v28406_v29  ;;  %v10575_v10 = vcombine.low %v28409_v16, %v28408_v57  ;;  %v28415_v20 = vld [vmem:[#allocation28_spill] sm:$0xff] }
 0x32d   : > { %v10557_v17 = vcombine.low %v10549_v4, %v10556_v52  ;;  %v10573_v55 = vrot.slane %v10559_v36, %v19646_v8  ;;  %v10583_v52 = vrot.slane %v10575_v10, %v19646_v8  ;;  %v28416_v36 = vld [vmem:[#allocation29_spill] sm:$0xff]  ;;  %v28418_v10 = vld [vmem:[#allocation272_spill] sm:$0xff] }
 0x330   : > { %18149 = vmatmul.mubr.msk.bf16.gmra.mrb[8].mxu0 %vm4355_vm2, %v10540_v45  ;;  %v10566_v45 = vrot.slane %v10558_v40, %v19646_v8  ;;  %v28414_v40 = vcombine.low %v28412_v46, %v28413_v38 }
 0x331   : > { %18152 = vmatprep.mubr.msk.bf16.mxu0 %vm19558_vm1, %v27425_v14 }
 0x332   : > { %17787 = vmatmul.mubr.msk.bf16.gmra.mrb[76].mxu1 %vm4355_vm2, %v6863_v62  ;;  %v10574_v13 = vcombine.low %v10566_v45, %v10573_v55  ;;  %v28411_v62 = vld [vmem:[#allocation263_spill] sm:$0xff]  ;;  %v24818_v29 = vrot.slane %v28414_v40, %v19646_v8  ;;  %v28417_v45 = vcombine.low %v28415_v20, %v28416_v36 }
 0x333   : > { %17790 = vmatprep.mubr.msk.bf16.mxu1 %vm19558_vm1, %v27425_v14  ;;  %v10576_v4 = vcombine.low %v28411_v62, %v28410_v23  ;;  %v28419_v23 = vld [vmem:[#allocation267_spill] sm:$0xff] }
 0x334   : > { %v24824_v55 = vrot.slane %v28417_v45, %v19646_v8  ;;  %v10592_v62 = vcombine.low %v28419_v23, %v28418_v10  ;;  %v28424_v10 = vld [vmem:[#allocation283_spill] sm:$0xff]  ;;  %v28425_v23 = vld [vmem:[#allocation94_spill] sm:$0xff] }
 0x336   : > { %v10600_v20 = vrot.slane %v10592_v62, %v19646_v8 }
 0x338   : > { %18153 = vmatmul.mubr.msk.bf16.gmra.mrb[12].mxu0 %vm4355_vm2, %v10557_v17  ;;  %v10590_v17 = vrot.slane %v10576_v4, %v19646_v8  ;;  %v28420_v4 = vld [vmem:[#allocation92_spill] sm:$0xff] }
 0x339   : > { %18156 = vmatprep.mubr.msk.bf16.mxu0 %vm19558_vm1, %v27425_v14  ;;  %v10593_v46 = vcombine.low %v28421_v12, %v28420_v4  ;;  %v10610_v4 = vcombine.low %v28425_v23, %v28424_v10  ;;  %v28430_v23 = vld [vmem:[#allocation294_spill] sm:$0xff] }
 0x33a   : > { %v10591_v16 = vcombine.low %v10583_v52, %v10590_v17 }
 0x33b   : > { %v10607_v36 = vrot.slane %v10593_v46, %v19646_v8  ;;  %v10624_v62 = vrot.slane %v10610_v4, %v19646_v8  ;;  %v28431_v4 = vld [vmem:[#allocation222_spill] sm:$0xff] }
 0x33d   : > { %v10608_v45 = vcombine.low %v10600_v20, %v10607_v36  ;;  %v28427_v20 = vld [vmem:[#allocation221_spill] sm:$0xff] }
 0x340   : > { %18157 = vmatmul.mubr.msk.bf16.gmra.mrb[16].mxu0 %vm4355_vm2, %v10574_v13 }
 0x341   : > { %18160 = vmatprep.mubr.msk.bf16.mxu0 %vm19558_vm1, %v27425_v14 }
 0x343   : > { %v9917_v13 = vpop.f32.mrb[100].mxu0 }
 0x344   : > { %v18050_v57 = vpop.f32.mrb[101].mxu0  ;;  %v28422_v13 = vld [vmem:[#allocation279_spill] sm:$0xff] }
 0x345   : > { %v9920_v38 = vpop.f32.mrb[102].mxu0  ;;  %v28423_v57 = vld [vmem:[#allocation278_spill] sm:$0xff] }
 0x346   : > { %v18051_v7 = vpop.f32.mrb[103].mxu0  ;;  %v10609_v12 = vcombine.low %v28423_v57, %v28422_v13  ;;  %v28429_v13 = vld [vmem:[#allocation288_spill] sm:$0xff] }
 0x348   : > { %18161 = vmatmul.mubr.msk.bf16.gmra.mrb[24].mxu0 %vm4355_vm2, %v10591_v16  ;;  %v10617_v16 = vrot.slane %v10609_v12, %v19646_v8 }
 0x349   : > { %18164 = vmatprep.mubr.msk.bf16.mxu0 %vm19558_vm1, %v27425_v14 }
 0x34a   : > { %v10625_v46 = vcombine.low %v10617_v16, %v10624_v62  ;;  %v28433_v16 = vld [vmem:[#allocation224_spill] sm:$0xff] }
 0x34b   : > { %v10283_v52 = vpop.f32.mrb[104].mxu0 }
 0x34c   : > { %v18056_v17 = vpop.f32.mrb[105].mxu0  ;;  %v28426_v52 = vld [vmem:[#allocation289_spill] sm:$0xff] }
 0x34d   : > { %v10286_v38 = vpop.f32.mrb[106].mxu0  ;;  %v10626_v36 = vcombine.low %v28427_v20, %v28426_v52  ;;  %v28428_v17 = vld [vmem:[#allocation292_spill] sm:$0xff] }
 0x34e   : > { %v18057_v7 = vpop.f32.mrb[107].mxu0  ;;  %v10627_v57 = vcombine.low %v28429_v13, %v28428_v17  ;;  %v10643_v38 = vcombine.low %v28431_v4, %v28430_v23  ;;  %v28435_v17 = vld [vmem:[#allocation13_spill] sm:$0xff] }
 0x34f   : > { %v10634_v10 = vrot.slane %v10626_v36, %v19646_v8  ;;  %v28432_v7 = vld [vmem:[#allocation14_spill] sm:$0xff]  ;;  %v28434_v36 = vld [vmem:[#allocation231_spill] sm:$0xff] }
 0x350   : > { %18165 = vmatmul.mubr.msk.bf16.gmra.mrb[28].mxu0 %vm4355_vm2, %v10608_v45  ;;  %v10641_v45 = vrot.slane %v10627_v57, %v19646_v8  ;;  %v10644_v62 = vcombine.low %v28433_v16, %v28432_v7  ;;  %v10651_v52 = vrot.slane %v10643_v38, %v19646_v8  ;;  %v10660_v13 = vcombine.low %v28435_v17, %v28434_v36  ;;  %v28436_v57 = vld [vmem:[#allocation15_spill] sm:$0xff]  ;;  %v28438_v38 = vld [vmem:[#allocation21_spill] sm:$0xff]  ;;  %v28439_v7 = vld [vmem:[#allocation232_spill] sm:$0xff] }
 0x351   : > { %18168 = vmatprep.mubr.msk.bf16.mxu0 %vm19558_vm1, %v27425_v14  ;;  %v10677_v16 = vcombine.low %v28439_v7, %v28438_v38 }
 0x352   : > { %v10642_v12 = vcombine.low %v10634_v10, %v10641_v45  ;;  %v28437_v10 = vld [vmem:[#allocation230_spill] sm:$0xff]  ;;  %v10668_v23 = vrot.slane %v10660_v13, %v19646_v8  ;;  %v28442_v13 = vld [vmem:[#allocation33_spill] sm:$0xff] }
 0x353   : > { %v10661_v45 = vcombine.low %v28437_v10, %v28436_v57  ;;  %v10685_v36 = vrot.slane %v10677_v16, %v19646_v8  ;;  %v28443_v57 = vld [vmem:[#allocation235_spill] sm:$0xff]  ;;  %v28446_v16 = vld [vmem:[#allocation24_spill] sm:$0xff] }
 0x354   : > { %v10694_v10 = vcombine.low %v28443_v57, %v28442_v13 }
 0x356   : > { %v10702_v38 = vrot.slane %v10694_v10, %v19646_v8  ;;  %v28450_v10 = vld [vmem:[#allocation40_spill] sm:$0xff] }
 0x358   : > { %18169 = vmatmul.mubr.msk.bf16.gmra.mrb[32].mxu0 %vm4355_vm2, %v10625_v46  ;;  %v10658_v46 = vrot.slane %v10644_v62, %v19646_v8  ;;  %v28440_v62 = vld [vmem:[#allocation25_spill] sm:$0xff] }
 0x359   : > { %18172 = vmatprep.mubr.msk.bf16.mxu0 %vm19558_vm1, %v27425_v14 }
 0x35a   : > { %v10659_v20 = vcombine.low %v10651_v52, %v10658_v46  ;;  %v28441_v52 = vld [vmem:[#allocation23_spill] sm:$0xff] }
 0x35b   : > { %v10678_v46 = vcombine.low %v28441_v52, %v28440_v62  ;;  %v28447_v62 = vld [vmem:[#allocation30_spill] sm:$0xff] }
 0x35c   : > { %v10711_v52 = vcombine.low %v28447_v62, %v28446_v16 }
 0x35e   : > { %v10719_v13 = vrot.slane %v10711_v52, %v19646_v8  ;;  %v28454_v52 = vld [vmem:[#allocation53_spill] sm:$0xff] }
 0x360   : > { %18173 = vmatmul.mubr.msk.bf16.gmra.mrb[36].mxu0 %vm4355_vm2, %v10642_v12  ;;  %v10675_v12 = vrot.slane %v10661_v45, %v19646_v8  ;;  %v28444_v45 = vld [vmem:[#allocation34_spill] sm:$0xff] }
 0x361   : > { %18176 = vmatprep.mubr.msk.bf16.mxu0 %vm19558_vm1, %v27425_v14 }
 0x362   : > { %v10676_v4 = vcombine.low %v10668_v23, %v10675_v12  ;;  %v28445_v23 = vld [vmem:[#allocation236_spill] sm:$0xff] }
 0x363   : > { %v10695_v12 = vcombine.low %v28445_v23, %v28444_v45  ;;  %v28451_v45 = vld [vmem:[#allocation48_spill] sm:$0xff] }
 0x364   : > { %v10728_v23 = vcombine.low %v28451_v45, %v28450_v10 }
 0x366   : > { %v10736_v16 = vrot.slane %v10728_v23, %v19646_v8 }
 0x368   : > { %18177 = vmatmul.mubr.msk.bf16.gmra.mrb[40].mxu0 %vm4355_vm2, %v10659_v20  ;;  %v10692_v20 = vrot.slane %v10678_v46, %v19646_v8  ;;  %v28448_v46 = vld [vmem:[#allocation39_spill] sm:$0xff] }
 0x369   : > { %18180 = vmatprep.mubr.msk.bf16.mxu0 %vm19558_vm1, %v27425_v14 }
 0x36a   : > { %v10693_v17 = vcombine.low %v10685_v36, %v10692_v20  ;;  %v28449_v36 = vld [vmem:[#allocation35_spill] sm:$0xff] }
 0x36b   : > { %v10712_v20 = vcombine.low %v28449_v36, %v28448_v46  ;;  %v28455_v46 = vld [vmem:[#allocation247_spill] sm:$0xff] }
 0x36c   : > { %v10745_v36 = vcombine.low %v28455_v46, %v28454_v52  ;;  %v28461_v52 = vld [vmem:[#allocation175_spill] sm:$0xff] }
 0x36e   : > { %v10753_v23 = vrot.slane %v10745_v36, %v19646_v8 }
 0x370   : > { %18181 = vmatmul.mubr.msk.bf16.gmra.mrb[44].mxu0 %vm4355_vm2, %v10676_v4  ;;  %v10709_v4 = vrot.slane %v10695_v12, %v19646_v8  ;;  %v28452_v12 = vld [vmem:[#allocation164_spill] sm:$0xff] }
 0x371   : > { %18184 = vmatprep.mubr.msk.bf16.mxu0 %vm19558_vm1, %v27425_v14 }
 0x372   : > { %v10710_v7 = vcombine.low %v10702_v38, %v10709_v4  ;;  %v28453_v38 = vld [vmem:[#allocation41_spill] sm:$0xff] }
 0x373   : > { %v10729_v4 = vcombine.low %v28453_v38, %v28452_v12  ;;  %v28458_v38 = vld [vmem:[#allocation295_spill] sm:$0xff] }
 0x378   : > { %18185 = vmatmul.mubr.msk.bf16.gmra.mrb[48].mxu0 %vm4355_vm2, %v10693_v17  ;;  %v10726_v17 = vrot.slane %v10712_v20, %v19646_v8  ;;  %v28456_v20 = vld [vmem:[#allocation173_spill] sm:$0xff] }
 0x379   : > { %18188 = vmatprep.mubr.msk.bf16.mxu0 %vm19558_vm1, %v27425_v14 }
 0x37a   : > { %v10727_v57 = vcombine.low %v10719_v13, %v10726_v17  ;;  %v28457_v13 = vld [vmem:[#allocation248_spill] sm:$0xff] }
 0x37b   : > { %v10746_v17 = vcombine.low %v28457_v13, %v28456_v20 }
 0x37d   : > { %v10760_v12 = vrot.slane %v10746_v17, %v19646_v8 }
 0x37f   : > { %v10761_v20 = vcombine.low %v10753_v23, %v10760_v12  ;;  %v28464_v12 = vld [vmem:[#allocation255_spill] sm:$0xff] }
 0x380   : > { %18189 = vmatmul.mubr.msk.bf16.gmra.mrb[52].mxu0 %vm4355_vm2, %v10710_v7  ;;  %v10743_v7 = vrot.slane %v10729_v4, %v19646_v8  ;;  %v28459_v4 = vld [vmem:[#allocation171_spill] sm:$0xff] }
 0x381   : > { %18192 = vmatprep.mubr.msk.bf16.mxu0 %vm19558_vm1, %v27425_v14 }
 0x382   : > { %v10744_v62 = vcombine.low %v10736_v16, %v10743_v7  ;;  %v10762_v16 = vcombine.low %v28459_v4, %v28458_v38  ;;  %v28460_v7 = vld [vmem:[#allocation254_spill] sm:$0xff]  ;;  %v3341_v38 = vshll.u32 %v24694_v37, 16  ;;  %v28465_v4 = vld [vmem:[#allocation57_spill] sm:$0xff] }
 0x383   : > { %v10763_v46 = vcombine.low %v28461_v52, %v28460_v7  ;;  %v28466_v7 = vld [vmem:[#allocation299_spill] sm:$0xff]  ;;  %v28467_v52 = vld [vmem:[#allocation61_spill] sm:$0xff] }
 0x388   : > { %18193 = vmatmul.mubr.msk.bf16.gmra.mrb[56].mxu0 %vm4355_vm2, %v10727_v57 }
 0x389   : > { %18196 = vmatprep.mubr.msk.bf16.mxu0 %vm19558_vm1, %v27425_v14 }
 0x38d   : > { %v5878_v10 = vpop.f32.mrb[88].mxu1 }
 0x38e   : > { %v17706_v45 = vpop.f32.mrb[89].mxu1 }
 0x38f   : > { %v5881_v40 = vpop.f32.mrb[90].mxu1  ;;  %v3288_v45 = vshrl.u32 %v24595_v1, 16  ;;  %v3296_v1 = vshrl.u32 %v24602_v59, 16 }
 0x390   : > { %18197 = vmatmul.mubr.msk.bf16.gmra.mrb[60].mxu0 %vm4355_vm2, %v10744_v62  ;;  %v17707_v57 = vpop.f32.mrb[91].mxu1  ;;  %v10770_v40 = vrot.slane %v10762_v16, %v19646_v8  ;;  %v10777_v62 = vrot.slane %v10763_v46, %v19646_v8  ;;  %v10779_v16 = vcombine.low %v28465_v4, %v28464_v12  ;;  %v10780_v46 = vcombine.low %v28467_v52, %v28466_v7 }
 0x391   : > { %18200 = vmatprep.mubr.msk.bf16.mxu0 %vm19558_vm1, %v27425_v14  ;;  %v3293_v57 = vshll.u32 %v24602_v59, 16  ;;  %v3312_v12 = vshrl.u32 %v24630_v24, 16  ;;  %v3317_v4 = vshll.u32 %v24606_v48, 16  ;;  %v3336_v52 = vshrl.u32 %v24626_v5, 16 }
 0x392   : > { %v10778_v23 = vcombine.low %v10770_v40, %v10777_v62  ;;  %v3304_v40 = vshrl.u32 %v24622_v25, 16  ;;  %v3309_v62 = vshll.u32 %v24630_v24, 16  ;;  %v10787_v50 = vrot.slane %v10779_v16, %v19646_v8 }
 0x393   : > { %v3295_v25 = vsel %vm21027_vm4, %v3288_v45, %v3293_v57  ;;  %v10794_v45 = vrot.slane %v10780_v46, %v19646_v8  ;;  %v3303_v57 = vsel %vm21027_vm4, %v3296_v1, %v3301_v3 }
 0x395   : > { %v24924_v13 = vpop.f32.mrb[20].mxu1  ;;  %v10795_v46 = vcombine.low %v10787_v50, %v10794_v45  ;;  %v3349_v45 = vshll.u32 %v24698_v43, 16 }
 0x396   : > { %28462 = vst [vmem:[#allocation312_spill] sm:$0xff] %v24924_v13  ;;  %v17732_v10 = vpop.f32.mrb[21].mxu1  ;;  %v28471_v13 = vld [vmem:[#allocation205_spill] sm:$0xff] }
 0x397   : > { %v24928_v36 = vpop.f32.mrb[22].mxu1  ;;  %v28468_v10 = vld [vmem:[#allocation281_spill] sm:$0xff] }
 0x398   : > { %28463 = vst [vmem:[#allocation282_spill] sm:$0xff] %v24928_v36  ;;  %18201 = vmatmul.mubr.msk.bf16.gmra.mrb[64].mxu0 %vm4355_vm2, %v10761_v20  ;;  %v17733_v17 = vpop.f32.mrb[23].mxu1  ;;  %v28469_v36 = vld [vmem:[#allocation95_spill] sm:$0xff] }
 0x399   : > { %18204 = vmatprep.mubr.msk.bf16.mxu0 %vm19558_vm1, %v27425_v14  ;;  %v10796_v20 = vcombine.low %v28469_v36, %v28468_v10  ;;  %v28470_v17 = vld [vmem:[#allocation216_spill] sm:$0xff]  ;;  %v3320_v36 = vshrl.u32 %v24606_v48, 16 }
 0x39a   : > { %v10797_v44 = vcombine.low %v28471_v13, %v28470_v17  ;;  %v3325_v13 = vshll.u32 %v24618_v26, 16  ;;  %v28478_v26 = vcombine.low %v28476_v27, %v28477_v34  ;;  %v3335_v34 = vsel %vm21027_vm4, %v3328_v11, %v3333_v60 }
 0x39b   : > { %v10806_v24 = vrot.slane %v10796_v20, %v19646_v8  ;;  %v3343_v27 = vsel %vm21027_vm4, %v3336_v52, %v3341_v38 }
 0x39c   : > { %v10813_v48 = vrot.slane %v10797_v44, %v19646_v8  ;;  %v10827_v39 = vrot.slane %v28478_v26, %v19646_v8  ;;  %v3311_v44 = vsel %vm21027_vm4, %v3304_v40, %v3309_v62  ;;  %v3327_v26 = vsel %vm21027_vm4, %v3320_v36, %v3325_v13 }
 0x39d   : > { %v24953_v7 = vpop.f32.mrb[24].mxu1  ;;  %v10846_v20 = vcombine.low %v3303_v57, %v3311_v44  ;;  %v10848_v62 = vcombine.low %v3335_v34, %v3343_v27  ;;  %v3352_v57 = vshrl.u32 %v24698_v43, 16 }
 0x39e   : > { %28474 = vst [vmem:[#allocation106_spill] sm:$0xff] %v24953_v7  ;;  %v17736_v17 = vpop.f32.mrb[25].mxu1  ;;  %v10820_v7 = vrot.slane %v10798_v19, %v19646_v8  ;;  %v3319_v19 = vsel %vm21027_vm4, %v3312_v12, %v3317_v4  ;;  %v10828_v1 = vcombine.low %v10806_v24, %v10813_v48  ;;  %v3279_v12 = vcombine.high %v24680_v54, %v24680_v54 }
 0x39f   : > { %v24961_v59 = vpop.f32.mrb[26].mxu1  ;;  %v10847_v40 = vcombine.low %v3319_v19, %v3327_v26  ;;  %v10862_v50 = vrot.slane %v10846_v20, %v19646_v8  ;;  %v10876_v11 = vrot.slane %v10848_v62, %v19646_v8 }
 0x3a0   : > { %18205 = vmatmul.mubr.msk.bf16.gmra.mrb[68].mxu0 %vm4355_vm2, %v10778_v23  ;;  %v17737_v5 = vpop.f32.mrb[27].mxu1  ;;  %v28479_v23 = vld [vmem:[#allocation293_spill] sm:$0xff]  ;;  %v10829_v16 = vcombine.low %v10820_v7, %v10827_v39  ;;  %v10836_v13 = vrot.slane %v10828_v1, %v19646_v8  ;;  %v25004_v54 = vrot.slane %v3279_v12, %v19646_v8 }
 0x3a1   : > { %18208 = vmatprep.mubr.msk.bf16.mxu0 %vm19558_vm1, %v27425_v14  ;;  %v10845_v3 = vcombine.low %v28479_v23, %v3295_v25  ;;  %v10869_v7 = vrot.slane %v10847_v40, %v19646_v8  ;;  %v3344_v5 = vshrl.u32 %v24694_v37, 16 }
 0x3a2   : > { %v10843_v38 = vrot.slane %v10829_v16, %v19646_v8  ;;  %28480 = vst [vmem:[#allocation285_spill] sm:$0xff] %v25004_v54  ;;  %v3357_v44 = vshll.u32 %v25004_v54, 16 }
 0x3a3   : > { %v10855_v39 = vrot.slane %v10845_v3, %v19646_v8  ;;  %v10878_v25 = vcombine.low %v10869_v7, %v10876_v11  ;;  %v3351_v37 = vsel %vm21027_vm4, %v3344_v5, %v3349_v45  ;;  %v28483_v11 = vld [vmem:[#allocation43_spill] sm:$0xff] }
 0x3a4   : > { %v10844_v60 = vcombine.low %v10836_v13, %v10843_v38  ;;  %v3359_v3 = vsel %vm21027_vm4, %v3352_v57, %v3357_v44  ;;  %v28485_v57 = vcombine.low %v24818_v29, %v24824_v55 }
 0x3a5   : > { %v24988_v17 = vpop.f32.mrb[28].mxu1  ;;  %v10877_v52 = vcombine.low %v10855_v39, %v10862_v50  ;;  %v10892_v23 = vrot.slane %v10878_v25, %v19646_v8  ;;  %v10894_v16 = vcombine.low %v3351_v37, %v3359_v3  ;;  %v28481_v39 = vld [vmem:[#allocation37_spill] sm:$0xff]  ;;  %v28482_v50 = vld [vmem:[#allocation36_spill] sm:$0xff] }
 0x3a6   : > { %v17740_v4 = vpop.f32.mrb[29].mxu1  ;;  %v11233_v7 = vcombine.low %v28482_v50, %v28481_v39  ;;  %v28487_v37 = vld [vmem:[#allocation44_spill] sm:$0xff] }
 0x3a7   : > { %v24992_v36 = vpop.f32.mrb[30].mxu1  ;;  %v10885_v27 = vrot.slane %v10877_v52, %v19646_v8  ;;  %v10901_v12 = vrot.slane %v10894_v16, %v19646_v8  ;;  %v28489_v16 = vld [vmem:[#allocation46_spill] sm:$0xff]  ;;  %v28490_v39 = vld [vmem:[#allocation56_spill] sm:$0xff] }
 0x3a8   : > { %18209 = vmatmul.mubr.msk.bf16.gmra.mrb[72].mxu0 %vm4355_vm2, %v10795_v46  ;;  %v17741_v48 = vpop.f32.mrb[31].mxu1  ;;  %v11267_v50 = vcombine.low %v28490_v39, %v24443_v9  ;;  %v28492_v9 = vld [vmem:[#allocation65_spill] sm:$0xff] }
 0x3a9   : > { %18212 = vmatprep.mubr.msk.bf16.mxu0 %vm19558_vm1, %v27425_v14  ;;  %v10893_v1 = vcombine.low %v10885_v27, %v10892_v23  ;;  %v10908_v4 = vrot.slane %v10901_v12, %v19646_v8  ;;  %v28486_v23 = vld [vmem:[#allocation45_spill] sm:$0xff] }
 0x3aa   : > { %v11250_v3 = vcombine.low %v28487_v37, %v28486_v23 }
 0x3ad   : > { %v25006_v24 = vpop.f32.mrb[32].mxu1 }
 0x3ae   : > { %v17744_v19 = vpop.f32.mrb[33].mxu1 }
 0x3af   : > { %v25012_v26 = vpop.f32.mrb[34].mxu1  ;;  %v11241_v19 = vrot.slane %v11233_v7, %v19646_v8  ;;  %v28491_v7 = vld [vmem:[#allocation63_spill] sm:$0xff] }
 0x3b0   : > { %18213 = vmatmul.mubr.msk.bf16.gmra.mrb[76].mxu0 %vm4355_vm2, %v10844_v60  ;;  %v17745_v34 = vpop.f32.mrb[35].mxu1  ;;  %v28484_v60 = vld [vmem:[#allocation38_spill] sm:$0xff] }
 0x3b1   : > { %18216 = vmatprep.mubr.msk.bf16.mxu0 %vm19558_vm1, %v27425_v14  ;;  %v11234_v52 = vcombine.low %v28484_v60, %v28483_v11  ;;  %v11268_v11 = vcombine.low %v28318_v49, %v28491_v7  ;;  %v28493_v49 = vld [vmem:[#allocation77_spill] sm:$0xff] }
 0x3b2   : > { %v11285_v23 = vcombine.low %v28324_v61, %v28493_v49 }
 0x3b3   : > { %v11248_v34 = vrot.slane %v11234_v52, %v19646_v8 }
 0x3b5   : > { %v25023_v46 = vpop.f32.mrb[36].mxu1  ;;  %v11249_v27 = vcombine.low %v11241_v19, %v11248_v34  ;;  %v11282_v19 = vrot.slane %v11268_v11, %v19646_v8 }
 0x3b6   : > { %v17748_v20 = vpop.f32.mrb[37].mxu1 }
 0x3b7   : > { %v25025_v40 = vpop.f32.mrb[38].mxu1 }
 0x3b8   : > { %18217 = vmatmul.mubr.msk.bf16.gmra.mrb[80].mxu0 %vm4355_vm2, %v10893_v1  ;;  %v17749_v62 = vpop.f32.mrb[39].mxu1  ;;  %v28488_v1 = vld [vmem:[#allocation55_spill] sm:$0xff] }
 0x3b9   : > { %18220 = vmatprep.mubr.msk.bf16.mxu0 %vm19558_vm1, %v27425_v14  ;;  %v11251_v20 = vcombine.low %v28489_v16, %v28488_v1 }
 0x3bd   : > { %v25032_v13 = vpop.f32.mrb[40].mxu1 }
 0x3be   : > { %v17752_v10 = vpop.f32.mrb[41].mxu1 }
 0x3bf   : > { %v25034_v38 = vpop.f32.mrb[42].mxu1  ;;  %v11265_v10 = vrot.slane %v11251_v20, %v19646_v8 }
 0x3c0   : > { %18221 = vmatmul.mubr.msk.bf16.gmra.mrb[116].mxu0 %vm4355_vm2, %v10908_v4  ;;  %v17753_v48 = vpop.f32.mrb[43].mxu1  ;;  %v11258_v4 = vrot.slane %v11250_v3, %v19646_v8 }
 0x3c1   : > { %18226 = vmatprep.mubr.msk.bf16.mxu0 %vm19558_vm1, %v27425_v14 }
 0x3c2   : > { %v11266_v48 = vcombine.low %v11258_v4, %v11265_v10  ;;  %v28494_v4 = vld [vmem:[#allocation80_spill] sm:$0xff] }
 0x3c3   : > { %v11301_v10 = vcombine.low %v28494_v4, %v28328_v56 }
 0x3c5   : > { %v25043_v25 = vpop.f32.mrb[44].mxu1 }
 0x3c6   : > { %v17756_v5 = vpop.f32.mrb[45].mxu1 }
 0x3c7   : > { %v25045_v45 = vpop.f32.mrb[46].mxu1 }
 0x3c8   : > { %18227 = vmatmul.mubr.msk.bf16.vlgmr.msra.gmra.mrb[120].mxu0 %vm4355_vm2, %v28485_v57  ;;  %v17757_v44 = vpop.f32.mrb[47].mxu1 }
 0x3c9   : > { %18230 = vmatprep.mubr.msk.bf16.mxu0 %vm19558_vm1, %v27425_v14  ;;  %v11275_v44 = vrot.slane %v11267_v50, %v19646_v8 }
 0x3cb   : > { %v11283_v34 = vcombine.low %v11275_v44, %v11282_v19 }
 0x3cd   : > { %v25059_v62 = vpop.f32.mrb[48].mxu1 }
 0x3ce   : > { %v17760_v29 = vpop.f32.mrb[49].mxu1 }
 0x3cf   : > { %v25061_v55 = vpop.f32.mrb[50].mxu1  ;;  %v11299_v29 = vrot.slane %v11285_v23, %v19646_v8 }
 0x3d0   : > { %18231 = vmatmul.mubr.msk.bf16.gmra.mrb[4].mxu0 %vm4355_vm2, %v11249_v27  ;;  %v17761_v12 = vpop.f32.mrb[51].mxu1  ;;  %v11284_v27 = vcombine.low %v28492_v9, %v24467_v51 }
 0x3d1   : > { %18234 = vmatprep.mubr.msk.bf16.mxu0 %vm19558_vm1, %v27425_v14  ;;  %v13948_v12 = vld [vmem:[%s26641_s4 + $0x2] sm:$0x3] }
 0x3d2   : > { %v11292_v20 = vrot.slane %v11284_v27, %v19646_v8  ;;  %19443 = vmatprep.subr.msk.bf16.mxu1 %vm4419_vm0, %v13948_v12  ;;  %v14313_v51 = vsel %vm4419_vm0, %v13948_v12, 0  ;;  %v28497_v27 = vld [vmem:[#allocation99_spill] sm:$0xff] }
 0x3d3   : > { %18311 = vmatpush3.bf16.msra.mxu1 %v14313_v51  ;;  %v11319_v49 = vcombine.low %v24501_v28, %v28497_v27 }
 0x3d4   : > { %v11300_v61 = vcombine.low %v11292_v20, %v11299_v29 }
 0x3d5   : > { %v25072_v60 = vpop.f32.mrb[52].mxu1 }
 0x3d6   : > { %v17764_v52 = vpop.f32.mrb[53].mxu1 }
 0x3d7   : > { %v25074_v5 = vpop.f32.mrb[54].mxu1 }
 0x3d8   : > { %18235 = vmatmul.mubr.msk.bf16.gmra.mrb[8].mxu0 %vm4355_vm2, %v11266_v48  ;;  %v17765_v57 = vpop.f32.mrb[55].mxu1  ;;  %v28495_v48 = vld [vmem:[#allocation87_spill] sm:$0xff] }
 0x3d9   : > { %18238 = vmatprep.mubr.msk.bf16.mxu0 %vm19558_vm1, %v27425_v14  ;;  %v11302_v39 = vcombine.low %v24483_v21, %v28495_v48  ;;  %v11309_v57 = vrot.slane %v11301_v10, %v19646_v8  ;;  %v28496_v21 = vld [vmem:[#allocation89_spill] sm:$0xff]  ;;  %v28499_v48 = vld [vmem:[#allocation100_spill] sm:$0xff] }
 0x3da   : > { %v11318_v9 = vcombine.low %v28496_v21, %v28333_v32  ;;  %v28498_v10 = vld [vmem:[#allocation101_spill] sm:$0xff] }
 0x3db   : > { %v11316_v44 = vrot.slane %v11302_v39, %v19646_v8  ;;  %v11335_v39 = vcombine.low %v28499_v48, %v28498_v10 }
 0x3dc   : > { %v11326_v51 = vrot.slane %v11318_v9, %v19646_v8 }
 0x3dd   : > { %v25085_v37 = vpop.f32.mrb[56].mxu1  ;;  %v11343_v9 = vrot.slane %v11335_v39, %v19646_v8 }
 0x3de   : > { %v17768_v3 = vpop.f32.mrb[57].mxu1 }
 0x3df   : > { %v25087_v1 = vpop.f32.mrb[58].mxu1 }
 0x3e0   : > { %18239 = vmatmul.mubr.msk.bf16.gmra.mrb[12].mxu0 %vm4355_vm2, %v11283_v34  ;;  %v17769_v16 = vpop.f32.mrb[59].mxu1  ;;  %v11317_v34 = vcombine.low %v11309_v57, %v11316_v44 }
 0x3e1   : > { %18242 = vmatprep.mubr.msk.bf16.mxu0 %vm19558_vm1, %v27425_v14 }
 0x3e5   : > { %v25103_v50 = vpop.f32.mrb[60].mxu1 }
 0x3e6   : > { %v17772_v7 = vpop.f32.mrb[61].mxu1 }
 0x3e7   : > { %v25105_v11 = vpop.f32.mrb[62].mxu1  ;;  %v28500_v7 = vld [vmem:[#allocation103_spill] sm:$0xff] }
 0x3e8   : > { %18243 = vmatmul.mubr.msk.bf16.gmra.mrb[16].mxu0 %vm4355_vm2, %v11300_v61  ;;  %v17773_v52 = vpop.f32.mrb[63].mxu1  ;;  %v11333_v61 = vrot.slane %v11319_v49, %v19646_v8 }
 0x3e9   : > { %18246 = vmatprep.mubr.msk.bf16.mxu0 %vm19558_vm1, %v27425_v14  ;;  %v11336_v52 = vcombine.low %v28500_v7, %v24529_v31 }
 0x3ea   : > { %v11334_v28 = vcombine.low %v11326_v51, %v11333_v61 }
 0x3eb   : > { %v10443_v19 = vpop.f32.mrb[108].mxu0  ;;  %v11350_v27 = vrot.slane %v11336_v52, %v19646_v8 }
 0x3ec   : > { %v18136_v56 = vpop.f32.mrb[109].mxu0 }
 0x3ed   : > { %v10446_v23 = vpop.f32.mrb[110].mxu0  ;;  %v25116_v3 = vpop.f32.mrb[64].mxu1  ;;  %v11351_v49 = vcombine.low %v11343_v9, %v11350_v27  ;;  %v28505_v27 = vld [vmem:[#allocation137_spill] sm:$0xff] }
 0x3ee   : > { %v18137_v16 = vpop.f32.mrb[111].mxu0  ;;  %v17776_v20 = vpop.f32.mrb[65].mxu1  ;;  %v28501_v23 = vld [vmem:[#allocation116_spill] sm:$0xff] }
 0x3ef   : > { %v25118_v29 = vpop.f32.mrb[66].mxu1  ;;  %v11352_v31 = vcombine.low %v28340_v30, %v28501_v23  ;;  %v28502_v16 = vld [vmem:[#allocation117_spill] sm:$0xff]  ;;  %v28503_v30 = vld [vmem:[#allocation124_spill] sm:$0xff] }
 0x3f0   : > { %18247 = vmatmul.mubr.msk.bf16.gmra.mrb[24].mxu0 %vm4355_vm2, %v11317_v34  ;;  %v17777_v12 = vpop.f32.mrb[67].mxu1  ;;  %v11353_v20 = vcombine.low %v28502_v16, %v24550_v22  ;;  %v11369_v48 = vcombine.low %v28347_v58, %v28503_v30  ;;  %v28504_v22 = vld [vmem:[#allocation125_spill] sm:$0xff]  ;;  %v11386_v58 = vcombine.low %v24571_v6, %v28505_v27  ;;  %v28510_v30 = vld [vmem:[#allocation155_spill] sm:$0xff] }
 0x3f1   : > { %18250 = vmatprep.mubr.msk.bf16.mxu0 %vm19558_vm1, %v27425_v14  ;;  %v11370_v39 = vcombine.low %v28504_v22, %v28351_v0  ;;  %v28506_v0 = vld [vmem:[#allocation138_spill] sm:$0xff]  ;;  %v28511_v22 = vld [vmem:[#allocation165_spill] sm:$0xff] }
 0x3f2   : > { %v11394_v23 = vrot.slane %v11386_v58, %v19646_v8  ;;  %v28514_v58 = vld [vmem:[#allocation179_spill] sm:$0xff] }
 0x3f3   : > { %v11009_v32 = vpop.f32.mrb[112].mxu0 }
 0x3f4   : > { %v18142_v4 = vpop.f32.mrb[113].mxu0 }
 0x3f5   : > { %v11012_v57 = vpop.f32.mrb[114].mxu0  ;;  %v25129_v44 = vpop.f32.mrb[68].mxu1  ;;  %v11360_v4 = vrot.slane %v11352_v31, %v19646_v8 }
 0x3f6   : > { %v18143_v19 = vpop.f32.mrb[115].mxu0  ;;  %v17780_v56 = vpop.f32.mrb[69].mxu1 }
 0x3f7   : > { %v25131_v34 = vpop.f32.mrb[70].mxu1  ;;  %v11377_v56 = vrot.slane %v11369_v48, %v19646_v8  ;;  %v11420_v48 = vcombine.low %v28510_v30, %v24639_v53  ;;  %v28521_v30 = vld [vmem:[#allocation202_spill] sm:$0xff] }
 0x3f8   : > { %18251 = vmatmul.mubr.msk.bf16.gmra.mrb[28].mxu0 %vm4355_vm2, %v11334_v28  ;;  %v17781_v21 = vpop.f32.mrb[71].mxu1  ;;  %v11367_v28 = vrot.slane %v11353_v20, %v19646_v8  ;;  %v28507_v20 = vld [vmem:[#allocation148_spill] sm:$0xff] }
 0x3f9   : > { %18254 = vmatprep.mubr.msk.bf16.mxu0 %vm19558_vm1, %v27425_v14  ;;  %v11384_v21 = vrot.slane %v11370_v39, %v19646_v8  ;;  %v11421_v39 = vcombine.low %v28366_v47, %v28511_v22  ;;  %v28523_v22 = vld [vmem:[#allocation204_spill] sm:$0xff] }
 0x3fa   : > { %v11368_v10 = vcombine.low %v11360_v4, %v11367_v28  ;;  %v28509_v4 = vld [vmem:[#allocation151_spill] sm:$0xff] }
 0x3fb   : > { %v11385_v9 = vcombine.low %v11377_v56, %v11384_v21  ;;  %v28513_v21 = vld [vmem:[#allocation177_spill] sm:$0xff] }
 0x3fd   : > { %v25142_v12 = vpop.f32.mrb[72].mxu1 }
 0x3fe   : > { %v17784_v51 = vpop.f32.mrb[73].mxu1 }
 0x3ff   : > { %v25144_v61 = vpop.f32.mrb[74].mxu1  ;;  %v11403_v51 = vcombine.low %v24592_v63, %v28507_v20  ;;  %v11428_v63 = vrot.slane %v11420_v48, %v19646_v8 }
 0x400   : > { %18255 = vmatmul.mubr.msk.bf16.gmra.mrb[32].mxu0 %vm4355_vm2, %v11351_v49  ;;  %v17785_v32 = vpop.f32.mrb[75].mxu1  ;;  %v11387_v49 = vcombine.low %v28506_v0, %v28359_v2  ;;  %v11454_v0 = vcombine.low %v28514_v58, %v28379_v35 }
 0x401   : > { %18258 = vmatprep.mubr.msk.bf16.mxu0 %vm19558_vm1, %v27425_v14  ;;  %v28508_v32 = vld [vmem:[#allocation154_spill] sm:$0xff]  ;;  %v11411_v6 = vrot.slane %v11403_v51, %v19646_v8  ;;  %v28517_v51 = vld [vmem:[#allocation200_spill] sm:$0xff] }
 0x402   : > { %v11401_v31 = vrot.slane %v11387_v49, %v19646_v8  ;;  %v11404_v28 = vcombine.low %v28509_v4, %v28508_v32  ;;  %v28515_v49 = vld [vmem:[#allocation188_spill] sm:$0xff]  ;;  %v11472_v32 = vcombine.low %v24729_v33, %v28517_v51  ;;  %v28518_v4 = vld [vmem:[#allocation97_spill] sm:$0xff] }
 0x404   : > { %v11402_v16 = vcombine.low %v11394_v23, %v11401_v31  ;;  %v11418_v2 = vrot.slane %v11404_v28, %v19646_v8  ;;  %v11455_v23 = vcombine.low %v24707_v15, %v28515_v49  ;;  %v11486_v35 = vrot.slane %v11472_v32, %v19646_v8  ;;  %v28519_v28 = vld [vmem:[#allocation211_spill] sm:$0xff]  ;;  %v28532_v32 = vld [vmem:[#allocation270_spill] sm:$0xff] }
 0x405   : > { %v25155_v7 = vpop.f32.mrb[76].mxu1 }
 0x406   : > { %v17788_v52 = vpop.f32.mrb[77].mxu1 }
 0x407   : > { %v7134_v57 = vpop.f32.mrb[78].mxu1  ;;  %v11435_v52 = vrot.slane %v11421_v39, %v19646_v8 }
 0x408   : > { %18259 = vmatmul.mubr.msk.bf16.gmra.mrb[36].mxu0 %vm4355_vm2, %v11368_v10  ;;  %v17789_v19 = vpop.f32.mrb[79].mxu1  ;;  %v11419_v10 = vcombine.low %v11411_v6, %v11418_v2  ;;  %v6864_v6 = vcombine.low %v28519_v28, %v28518_v4  ;;  %v28534_v4 = vld [vmem:[#allocation84_spill] sm:$0xff] }
 0x409   : > { %18262 = vmatprep.mubr.msk.bf16.mxu0 %vm19558_vm1, %v27425_v14  ;;  %v11436_v57 = vcombine.low %v11428_v63, %v11435_v52  ;;  %v28512_v19 = vld [vmem:[#allocation166_spill] sm:$0xff]  ;;  %v17013_v28 = vcombine.high %v28534_v4, %v28532_v32 }
 0x40a   : > { %v11437_v56 = vcombine.low %v28512_v19, %v24674_v41  ;;  %v11462_v41 = vrot.slane %v11454_v0, %v19646_v8  ;;  %v6871_v33 = vrot.slane %v6864_v6, %v19646_v8  ;;  %v28524_v19 = vld [vmem:[#allocation217_spill] sm:$0xff]  ;;  %v19560_v0 = vmov 0   ;;  %v28535_v6 = vld [vmem:[#allocation307_spill] sm:$0xff] }
 0x40b   : > { %v25235_v49 = vrot.slane %v19560_v0, 1 }
 0x40c   : > { %v11445_v53 = vrot.slane %v11437_v56, %v19646_v8  ;;  %v6878_v63 = vrot.slane %v6871_v33, %v19646_v8  ;;  %v28525_v56 = vld [vmem:[#allocation214_spill] sm:$0xff] }
 0x40d   : > { %28527 = vst [vmem:[#allocation284_spill] sm:$0xff] %v25235_v49 }
 0x40e   : > { %17791 = vmatmul.mubr.msk.bf16.gmra.mrb[92].mxu1 %vm4355_vm2, %v6878_v63 }
 0x40f   : > { %18312 = vmatprep.mubr.msk.bf16.mxu1 %vm4355_vm2, %v25235_v49 }
 0x410   : > { %18263 = vmatmul.mubr.msk.bf16.gmra.mrb[40].mxu0 %vm4355_vm2, %v11385_v9  ;;  %v11438_v9 = vcombine.low %v28372_v18, %v28513_v21  ;;  %v11469_v18 = vrot.slane %v11455_v23, %v19646_v8  ;;  %v11505_v21 = vcombine.low %v28525_v56, %v28524_v19 }
 0x411   : > { %18266 = vmatprep.mubr.msk.bf16.mxu0 %vm19558_vm1, %v27425_v14 }
 0x412   : > { %v11452_v47 = vrot.slane %v11438_v9, %v19646_v8  ;;  %v11470_v31 = vcombine.low %v11462_v41, %v11469_v18  ;;  %v28526_v9 = vld [vmem:[#allocation218_spill] sm:$0xff]  ;;  %v28529_v18 = vld [vmem:[#allocation223_spill] sm:$0xff] }
 0x413   : > { %v28528_v41 = vld [vmem:[#allocation226_spill] sm:$0xff] }
 0x414   : > { %v11453_v27 = vcombine.low %v11445_v53, %v11452_v47  ;;  %v11506_v53 = vcombine.low %v28526_v9, %v6871_v33 }
 0x416   : > { %v11520_v58 = vrot.slane %v11506_v53, %v19646_v8 }
 0x418   : > { %18267 = vmatmul.mubr.msk.bf16.gmra.mrb[44].mxu0 %vm4355_vm2, %v11402_v16  ;;  %v28516_v16 = vld [vmem:[#allocation192_spill] sm:$0xff] }
 0x419   : > { %18270 = vmatprep.mubr.msk.bf16.mxu0 %vm19558_vm1, %v27425_v14  ;;  %v11471_v20 = vcombine.low %v28516_v16, %v28384_v42  ;;  %v28522_v42 = vld [vmem:[#allocation280_spill] sm:$0xff]  ;;  %v28530_v16 = vld [vmem:[#allocation233_spill] sm:$0xff] }
 0x41a   : > { %v11489_v39 = vcombine.low %v28523_v22, %v28522_v42 }
 0x41b   : > { %v11479_v15 = vrot.slane %v11471_v20, %v19646_v8  ;;  %v28531_v20 = vld [vmem:[#allocation227_spill] sm:$0xff] }
 0x41c   : > { %v11523_v51 = vcombine.low %v28531_v20, %v28530_v16 }
 0x41d   : > { %v11487_v2 = vcombine.low %v11479_v15, %v11486_v35  ;;  %v28533_v15 = vld [vmem:[#allocation291_spill] sm:$0xff] }
 0x41e   : > { %v11539_v35 = vcombine.low %v28533_v15, %v28532_v32  ;;  %v11537_v42 = vrot.slane %v11523_v51, %v19646_v8  ;;  %v25274_v51 = vld [vmem:[%s26639_s2] ss:$0 sm:$0xff]  ;;  %v28537_v32 = vld [vmem:[#allocation305_spill] sm:$0xff] }
 0x420   : > { %18271 = vmatmul.mubr.msk.bf16.gmra.mrb[48].mxu0 %vm4355_vm2, %v11419_v10  ;;  %v28520_v10 = vld [vmem:[#allocation203_spill] sm:$0xff]  ;;  %v11549_v22 = vrot.slane %v11539_v35, %v19646_v8 }
 0x421   : > { %18274 = vmatprep.mubr.msk.bf16.mxu0 %vm19558_vm1, %v27425_v14  ;;  %v11488_v48 = vcombine.low %v28521_v30, %v28520_v10 }
 0x423   : > { %v11496_v52 = vrot.slane %v11488_v48, %v19646_v8 }
 0x428   : > { %18275 = vmatmul.mubr.msk.bf16.gmra.mrb[52].mxu0 %vm4355_vm2, %v11436_v57  ;;  %v11503_v57 = vrot.slane %v11489_v39, %v19646_v8  ;;  %v11556_v39 = vrot.slane %v17013_v28, %v19646_v8 }
 0x429   : > { %18278 = vmatprep.mubr.msk.bf16.mxu0 %vm19558_vm1, %v27425_v14 }
 0x42a   : > { %v11504_v47 = vcombine.low %v11496_v52, %v11503_v57  ;;  %v11571_v57 = vcombine.low %v11549_v22, %v11556_v39  ;;  %v28539_v22 = vld [vmem:[#allocation3_spill] sm:$0xff] }
 0x42b   : > { %vm12951_vm6 = vcmp.ge.s32.totalorder %v28539_v22, 1 }
 0x42c   : > { %v11579_v56 = vrot.slane %v11571_v57, %v19646_v8 }
 0x430   : > { %18279 = vmatmul.mubr.msk.bf16.gmra.mrb[56].mxu0 %vm4355_vm2, %v11453_v27  ;;  %v11513_v27 = vrot.slane %v11505_v21, %v19646_v8 }
 0x431   : > { %18282 = vmatprep.mubr.msk.bf16.mxu0 %vm19558_vm1, %v27425_v14 }
 0x432   : > { %v11521_v23 = vcombine.low %v11513_v27, %v11520_v58 }
 0x438   : > { %18283 = vmatmul.mubr.msk.bf16.gmra.mrb[60].mxu0 %vm4355_vm2, %v11470_v31  ;;  %v11522_v31 = vcombine.low %v28529_v18, %v28528_v41 }
 0x439   : > { %18286 = vmatprep.mubr.msk.bf16.mxu0 %vm19558_vm1, %v27425_v14 }
 0x43a   : > { %v11530_v48 = vrot.slane %v11522_v31, %v19646_v8  ;;  %v19561_v31 = vmov 1983009808  }
 0x43b   : > { %v12206_v16 = vunpack.c.l.s4 %v19561_v31  ;;  %v25295_v31 = vadd.s32 16, %v28539_v22 }
 0x43c   : > { %v11538_v52 = vcombine.low %v11530_v48, %v11537_v42 }
 0x43d   : > { %v12207_v4 = vunpack.c.0.s8 %v12206_v16  ;;  %vm13010_vm8 = vcmp.le.s32.totalorder %v25295_v31, 16 }
 0x43f   : > { %v25287_v39 = vsub.s32 %v12207_v4, %v28539_v22 }
 0x440   : > { %18287 = vmatmul.mubr.msk.bf16.gmra.mrb[64].mxu0 %vm4355_vm2, %v11487_v2  ;;  %v28536_v2 = vld [vmem:[#allocation88_spill] sm:$0xff] }
 0x441   : > { %18290 = vmatprep.mubr.msk.bf16.mxu0 %vm19558_vm1, %v27425_v14  ;;  %v11541_v10 = vcombine.low %v28536_v2, %v28535_v6  ;;  %v17014_v30 = vcombine.high %v28536_v2, %v28535_v6  ;;  %v28538_v2 = vld [vmem:[#allocation306_spill] sm:$0xff] }
 0x443   : > { %v11563_v33 = vrot.slane %v11541_v10, %v19646_v8  ;;  %v11570_v63 = vrot.slane %v17014_v30, %v19646_v8 }
 0x445   : > { %v11572_v19 = vcombine.low %v11563_v33, %v11570_v63 }
 0x447   : > { %v11586_v21 = vrot.slane %v11572_v19, %v19646_v8 }
 0x448   : > { %18291 = vmatmul.mubr.msk.bf16.gmra.mrb[68].mxu0 %vm4355_vm2, %v11504_v47 }
 0x449   : > { %18294 = vmatprep.mubr.msk.bf16.mxu0 %vm19558_vm1, %v27425_v14  ;;  %v11587_v9 = vcombine.low %v11579_v56, %v11586_v21  ;;  %v28540_v56 = vld [vmem:[#allocation309_spill] sm:$0xff] }
 0x450   : > { %18295 = vmatmul.mubr.msk.bf16.gmra.mrb[72].mxu0 %vm4355_vm2, %v11521_v23 }
 0x451   : > { %18298 = vmatprep.mubr.msk.bf16.mxu0 %vm19558_vm1, %v27425_v14 }
 0x458   : > { %18299 = vmatmul.mubr.msk.bf16.gmra.mrb[76].mxu0 %vm4355_vm2, %v11538_v52 }
 0x459   : > { %18302 = vmatprep.mubr.msk.bf16.mxu0 %vm19558_vm1, %v27425_v14 }
 0x460   : > { %18303 = vmatmul.mubr.msk.bf16.gmra.mrb[80].mxu0 %vm4355_vm2, %v11587_v9 }
 0x461   : > { %18306 = vmatprep.mubr.msk.bf16.mxu0 %vm19558_vm1, %v27425_v14  ;;  %v25280_v14 = vld [vmem:[%s26640_s3] ss:$0 sm:$0xff] }
 0x493   : > { %v11169_v53 = vpop.f32.mrb[116].mxu0 }
 0x494   : > { %v18222_v47 = vpop.f32.mrb[117].mxu0 }
 0x495   : > { %v11172_v27 = vpop.f32.mrb[118].mxu0 }
 0x496   : > { %v18223_v58 = vpop.f32.mrb[119].mxu0 }
 0x49b   : > { %v11703_v0 = vpop.f32.mrb[120].mxu0 }
 0x49c   : > { %v18228_v23 = vpop.f32.mrb[121].mxu0 }
 0x49d   : > { %v11706_v41 = vpop.f32.mrb[122].mxu0  ;;  %v28541_v23 = vld [vmem:[#allocation308_spill] sm:$0xff] }
 0x49e   : > { %v18229_v18 = vpop.f32.mrb[123].mxu0 }
 0x4a3   : > { %v11711_v20 = vpop.f32.mrb[4].mxu0 }
 0x4a4   : > { %v18618_v15 = vadd.f32 %v11711_v20, %v28537_v32  ;;  %v18232_v35 = vpop.f32.mrb[5].mxu0 }
 0x4a5   : > { %v11714_v28 = vpop.f32.mrb[6].mxu0 }
 0x4a6   : > { %v11919_v6 = vmul.f32 %v18618_v15, %v25274_v51  ;;  %v18619_v10 = vadd.f32 %v11714_v28, %v28538_v2  ;;  %v18233_v30 = vpop.f32.mrb[7].mxu0 }
 0x4a8   : > { %v11967_v48 = vadd.f32 %v25280_v14, %v11919_v6  ;;  %v11920_v42 = vmul.f32 %v18619_v10, %v25274_v51 }
 0x4aa   : > { %vm12008_vm1 = vcmp.gt.f32.partialorder %v11967_v48, 0.0  ;;  %v12049_v33 = vmul.f32 0.1, %v11967_v48  ;;  %v11968_v63 = vadd.f32 %v25280_v14, %v11920_v42 }
 0x4ab   : > { %v11719_v52 = vpop.f32.mrb[8].mxu0 }
 0x4ac   : > { %v12090_v57 = vsel %vm12008_vm1, %v11967_v48, %v12049_v33  ;;  %vm12009_vm5 = vcmp.gt.f32.partialorder %v11968_v63, 0.0  ;;  %v12050_v19 = vmul.f32 0.1, %v11968_v63  ;;  %v18620_v21 = vadd.f32 %v11719_v52, %v28540_v56  ;;  %v18236_v9 = vpop.f32.mrb[9].mxu0  ;;  %v28542_v56 = vld [vmem:[#allocation311_spill] sm:$0xff] }
 0x4ad   : > { %v12204_v53 = vcombine.high %v12090_v57, %v12090_v57  ;;  %v12211_v47 = vrot.slane %v12090_v57, %v25287_v39  ;;  %v11722_v27 = vpop.f32.mrb[10].mxu0 }
 0x4ae   : > { %v12091_v58 = vsel %vm12009_vm5, %v11968_v63, %v12050_v19  ;;  %v11921_v0 = vmul.f32 %v18620_v21, %v25274_v51  ;;  %v18621_v41 = vadd.f32 %v11722_v27, %v28541_v23  ;;  %v18237_v18 = vpop.f32.mrb[11].mxu0 }
 0x4af   : > { %v12218_v16 = vrot.slane %v12204_v53, %v25287_v39  ;;  %v12219_v20 = vcombine.high %v12211_v47, %v12211_v47  ;;  %v12221_v32 = vcombine.high %v12091_v58, %v12091_v58  ;;  %v12228_v15 = vrot.slane %v12091_v58, %v25287_v39 }
 0x4b0   : > { %v11969_v35 = vadd.f32 %v25280_v14, %v11921_v0  ;;  %v11922_v4 = vmul.f32 %v18621_v41, %v25274_v51 }
 0x4b1   : > { %v13106_v28 = vcombine.low %v12219_v20, %v12218_v16  ;;  %v12220_v6 = vcombine.high %v12218_v16, %v12218_v16  ;;  %v12235_v2 = vrot.slane %v12221_v32, %v25287_v39  ;;  %v12236_v10 = vcombine.high %v12228_v15, %v12228_v15  ;;  %v28543_v16 = vld [vmem:[#allocation85_spill] sm:$0xff] }
 0x4b2   : > { %vm12010_vm7 = vcmp.gt.f32.partialorder %v11969_v35, 0.0  ;;  %v12051_v30 = vmul.f32 0.1, %v11969_v35  ;;  %v11970_v48 = vadd.f32 %v25280_v14, %v11922_v4 }
 0x4b3   : > { %v13114_v42 = vrot.slane %v13106_v28, %v25287_v39  ;;  %v13107_v33 = vcombine.low %v12220_v6, %v12228_v15  ;;  %v13123_v63 = vcombine.low %v12236_v10, %v12235_v2  ;;  %v11727_v52 = vpop.f32.mrb[12].mxu0  ;;  %v12237_v47 = vcombine.high %v12235_v2, %v12235_v2  ;;  %v25315_v15 = vld [vmem:[%s26641_s4] sm:$0x3] }
 0x4b4   : > { %v12092_v57 = vsel %vm12010_vm7, %v11969_v35, %v12051_v30  ;;  %vm12011_vm9 = vcmp.gt.f32.partialorder %v11970_v48, 0.0  ;;  %v12052_v19 = vmul.f32 0.1, %v11970_v48  ;;  %v18622_v21 = vadd.f32 %v11727_v52, %v28542_v56  ;;  %v18240_v9 = vpop.f32.mrb[13].mxu0  ;;  %19444 = vmatprep.subr.msk.bf16.mxu1 %vm4419_vm0, %v25315_v15 }
 0x4b5   : > { %v13121_v53 = vrot.slane %v13107_v33, %v25287_v39  ;;  %v12238_v27 = vcombine.high %v12092_v57, %v12092_v57  ;;  %v12245_v58 = vrot.slane %v12092_v57, %v25287_v39  ;;  %v11730_v0 = vpop.f32.mrb[14].mxu0  ;;  %v13131_v23 = vrot.slane %v13123_v63, %v25287_v39 }
 0x4b6   : > { %v12093_v41 = vsel %vm12011_vm9, %v11970_v48, %v12052_v19  ;;  %v11923_v18 = vmul.f32 %v18622_v21, %v25274_v51  ;;  %v18623_v20 = vadd.f32 %v11730_v0, %v28543_v16  ;;  %v18241_v32 = vpop.f32.mrb[15].mxu0 }
 0x4b7   : > { %v13122_v35 = vcombine.low %v13114_v42, %v13121_v53  ;;  %v12252_v4 = vrot.slane %v12238_v27, %v25287_v39  ;;  %v12253_v28 = vcombine.high %v12245_v58, %v12245_v58  ;;  %v13124_v6 = vcombine.low %v12237_v47, %v12245_v58 }
 0x4b8   : > { %v12255_v2 = vcombine.high %v12093_v41, %v12093_v41  ;;  %v12262_v10 = vrot.slane %v12093_v41, %v25287_v39  ;;  %v11971_v30 = vadd.f32 %v25280_v14, %v11923_v18  ;;  %v11924_v48 = vmul.f32 %v18623_v20, %v25274_v51  ;;  %v28544_v18 = vld [vmem:[#allocation93_spill] sm:$0xff] }
 0x4b9   : > { %v13860_v33 = vsel %vm12951_vm6, %v13122_v35, 0.0  ;;  %v12254_v63 = vcombine.high %v12252_v4, %v12252_v4  ;;  %v13138_v42 = vrot.slane %v13124_v6, %v25287_v39  ;;  %v13146_v52 = vrot.slane %v12253_v28, %v25287_v39 }
 0x4ba   : > { %v12269_v57 = vrot.slane %v12255_v2, %v25287_v39  ;;  %v12270_v19 = vcombine.high %v12262_v10, %v12262_v10  ;;  %vm12012_vm10 = vcmp.gt.f32.partialorder %v11971_v30, 0.0  ;;  %v12053_v56 = vmul.f32 0.1, %v11971_v30 }
 0x4bb   : > { %v13139_v21 = vcombine.low %v13131_v23, %v13138_v42  ;;  %v13147_v9 = vcombine.low %v12252_v4, %v12254_v63  ;;  %v11972_v53 = vadd.f32 %v25280_v14, %v11924_v48  ;;  %v11735_v47 = vpop.f32.mrb[16].mxu0  ;;  %v13862_v27 = vsel %vm13010_vm8, %v13146_v52, 0.0  ;;  %v28546_v52 = vld [vmem:[#allocation91_spill] sm:$0xff] }
 0x4bc   : > { %v12271_v58 = vcombine.high %v12269_v57, %v12269_v57  ;;  %v13148_v0 = vcombine.low %v12262_v10, %v12270_v19  ;;  %v12094_v41 = vsel %vm12012_vm10, %v11971_v30, %v12053_v56  ;;  %v18624_v16 = vadd.f32 %v11735_v47, %v28544_v18  ;;  %v18244_v20 = vpop.f32.mrb[17].mxu0 }
 0x4bd   : > { %v13155_v32 = vrot.slane %v13147_v9, %v25287_v39  ;;  %v25333_v35 = vpack.c.bf16 %v13139_v21, %v13860_v33  ;;  %v12272_v28 = vcombine.high %v12094_v41, %v12094_v41  ;;  %v12279_v23 = vrot.slane %v12094_v41, %v25287_v39  ;;  %v11738_v4 = vpop.f32.mrb[18].mxu0 }
 0x4be   : > { %v13162_v6 = vrot.slane %v13148_v0, %v25287_v39  ;;  %v13164_v2 = vcombine.low %v12269_v57, %v12271_v58  ;;  %vm12013_vm11 = vcmp.gt.f32.partialorder %v11972_v53, 0.0  ;;  %v12054_v48 = vmul.f32 0.1, %v11972_v53  ;;  %v18245_v63 = vpop.f32.mrb[19].mxu0 }
 0x4bf   : > { %28545 = vst [vmem:[#allocation108_spill] sm:$0xff] %v25333_v35  ;;  %v25338_v10 = vrot.slane %v12272_v28, %v25287_v39  ;;  %v12287_v30 = vcombine.high %v12279_v23, %v12279_v23  ;;  %v11925_v42 = vmul.f32 %v18624_v16, %v25274_v51  ;;  %v18625_v19 = vadd.f32 %v11738_v4, %v28546_v52 }
 0x4c0   : > { %v13163_v33 = vcombine.low %v13155_v32, %v13162_v6  ;;  %v13172_v56 = vrot.slane %v13164_v2, %v25287_v39  ;;  %v12095_v21 = vsel %vm12013_vm11, %v11972_v53, %v12054_v48  ;;  %v25343_v9 = vpack.c.bf16 %v13862_v27, %v13862_v27  ;;  %v28548_v2 = vld [vmem:[#allocation312_spill] sm:$0xff] }
 0x4c1   : > { %v13165_v47 = vcombine.low %v12279_v23, %v12287_v30  ;;  %v12288_v57 = vcombine.high %v25338_v10, %v25338_v10  ;;  %v12289_v58 = vcombine.high %v12095_v21, %v12095_v21  ;;  %v12296_v0 = vrot.slane %v12095_v21, %v25287_v39 }
 0x4c2   : > { %28547 = vst [vmem:[#allocation286_spill] sm:$0xff] %v25343_v9  ;;  %v13863_v41 = vsel %vm12951_vm6, %v13163_v33, 0.0  ;;  %v11973_v18 = vadd.f32 %v25280_v14, %v11925_v42  ;;  %v11926_v16 = vmul.f32 %v18625_v19, %v25274_v51  ;;  %v13970_v20 = vshrl.u32 %v25333_v35, 16 }
 0x4c3   : > { %v13179_v53 = vrot.slane %v13165_v47, %v25287_v39  ;;  %v12303_v27 = vrot.slane %v12289_v58, %v25287_v39  ;;  %v12304_v32 = vcombine.high %v12296_v0, %v12296_v0  ;;  %v13188_v28 = vcombine.low %v12288_v57, %v12296_v0  ;;  %v11743_v23 = vpop.f32.mrb[24].mxu0 }
 0x4c4   : > { %vm12014_vm12 = vcmp.gt.f32.partialorder %v11973_v18, 0.0  ;;  %v12055_v4 = vmul.f32 0.1, %v11973_v18  ;;  %v11974_v6 = vadd.f32 %v25280_v14, %v11926_v16  ;;  %v18626_v48 = vadd.f32 %v11743_v23, %v28548_v2  ;;  %v18248_v63 = vpop.f32.mrb[25].mxu0 }
 0x4c5   : > { %v13180_v30 = vcombine.low %v13172_v56, %v13179_v53  ;;  %v13189_v42 = vcombine.low %v12304_v32, %v12303_v27  ;;  %v13196_v52 = vrot.slane %v13188_v28, %v25287_v39  ;;  %v12305_v19 = vcombine.high %v12303_v27, %v12303_v27  ;;  %v11746_v33 = vpop.f32.mrb[26].mxu0  ;;  %v28549_v53 = vld [vmem:[#allocation282_spill] sm:$0xff] }
 0x4c6   : > { %v12096_v21 = vsel %vm12014_vm12, %v11973_v18, %v12055_v4  ;;  %vm12015_vm13 = vcmp.gt.f32.partialorder %v11974_v6, 0.0  ;;  %v12056_v47 = vmul.f32 0.1, %v11974_v6  ;;  %v11927_v58 = vmul.f32 %v18626_v48, %v25274_v51  ;;  %v18249_v57 = vpop.f32.mrb[27].mxu0 }
 0x4c7   : > { %v25359_v0 = vpack.c.bf16 %v13180_v30, %v13863_v41  ;;  %v13203_v49 = vrot.slane %v13189_v42, %v25287_v39  ;;  %v12306_v16 = vcombine.high %v12096_v21, %v12096_v21  ;;  %v12313_v23 = vrot.slane %v12096_v21, %v25287_v39 }
 0x4c8   : > { %v12097_v2 = vsel %vm12015_vm13, %v11974_v6, %v12056_v47  ;;  %v11975_v56 = vadd.f32 %v25280_v14, %v11927_v58  ;;  %v18627_v32 = vadd.f32 %v11746_v33, %v28549_v53  ;;  %v13972_v27 = vshll.u32 %v25333_v35, 16 }
 0x4c9   : > { %v13204_v18 = vcombine.low %v13196_v52, %v13203_v49  ;;  %v25367_v28 = vrot.slane %v12306_v16, %v25287_v39  ;;  %v12321_v4 = vcombine.high %v12313_v23, %v12313_v23  ;;  %v13205_v48 = vcombine.low %v12305_v19, %v12313_v23 }
 0x4ca   : > { %v12323_v41 = vcombine.high %v12097_v2, %v12097_v2  ;;  %v12330_v63 = vrot.slane %v12097_v2, %v25287_v39  ;;  %vm12016_vm15 = vcmp.gt.f32.partialorder %v11975_v56, 0.0  ;;  %v12057_v30 = vmul.f32 0.1, %v11975_v56 }
 0x4cb   : > { %v13866_v6 = vsel %vm12951_vm6, %v13204_v18, 0.0  ;;  %v13206_v33 = vcombine.low %v12321_v4, %v25367_v28  ;;  %v13213_v49 = vrot.slane %v13205_v48, %v25287_v39  ;;  %v11751_v52 = vpop.f32.mrb[28].mxu0  ;;  %v11928_v58 = vmul.f32 %v18627_v32, %v25274_v51 }
 0x4cc   : > { %v12337_v21 = vrot.slane %v12323_v41, %v25287_v39  ;;  %v12338_v19 = vcombine.high %v12330_v63, %v12330_v63  ;;  %v12098_v47 = vsel %vm12016_vm15, %v11975_v56, %v12057_v30  ;;  %v18252_v57 = vpop.f32.mrb[29].mxu0  ;;  %v13974_v53 = vrot.slane %v13972_v27, 1 }
 0x4cd   : > { %v13220_v16 = vrot.slane %v13206_v33, %v25287_v39  ;;  %v12340_v23 = vcombine.high %v12098_v47, %v12098_v47  ;;  %v12347_v2 = vrot.slane %v12098_v47, %v25287_v39  ;;  %v11754_v18 = vpop.f32.mrb[30].mxu0  ;;  %v11976_v4 = vadd.f32 %v25280_v14, %v11928_v58 }
 0x4ce   : > { %v12339_v42 = vcombine.high %v12337_v21, %v12337_v21  ;;  %v13229_v8 = vcombine.low %v12330_v63, %v12338_v19  ;;  %v13977_v48 = vshll.u32 %v25343_v9, 16  ;;  %v18253_v43 = vpop.f32.mrb[31].mxu0  ;;  %v13975_v32 = vor.u32 %v13974_v53, %v13970_v20  ;;  %v28550_v9 = vld [vmem:[#allocation106_spill] sm:$0xff] }
 0x4cf   : > { %v13221_v41 = vcombine.low %v13213_v49, %v13220_v16  ;;  %v12354_v56 = vrot.slane %v12340_v23, %v25287_v39  ;;  %v12355_v30 = vcombine.high %v12347_v2, %v12347_v2  ;;  %vm12017_vm3 = vcmp.gt.f32.partialorder %v11976_v4, 0.0 }
 0x4d0   : > { %v13230_v57 = vcombine.low %v12337_v21, %v12339_v42  ;;  %v13237_v33 = vrot.slane %v13229_v8, %v25287_v39  ;;  %v12058_v54 = vmul.f32 0.1, %v11976_v4  ;;  %v13979_v63 = vrot.slane %v13977_v48, 1 }
 0x4d1   : > { %v25384_v47 = vpack.c.bf16 %v13221_v41, %v13866_v6  ;;  %v12356_v27 = vcombine.high %v12354_v56, %v12354_v56  ;;  %v13246_v35 = vcombine.low %v12347_v2, %v12355_v30  ;;  %v18628_v43 = vadd.f32 %v11751_v52, %v28550_v9 }
 0x4d2   : > { %v13244_v19 = vrot.slane %v13230_v57, %v25287_v39  ;;  %v12099_v58 = vsel %vm12017_vm3, %v11976_v4, %v12058_v54  ;;  %v18629_v49 = vadd.f32 %v11754_v18, %v24961_v59  ;;  %v25394_v23 = vsel %vm13956_vm14, %v13975_v32, %v13979_v63 }
 0x4d3   : > { %v13247_v16 = vcombine.low %v12354_v56, %v12356_v27  ;;  %v13254_v20 = vrot.slane %v13246_v35, %v25287_v39  ;;  %v12357_v42 = vcombine.high %v12099_v58, %v12099_v58  ;;  %v25391_v8 = vrot.slane %v12099_v58, %v25287_v39  ;;  %v11759_v21 = vpop.f32.mrb[32].mxu0  ;;  %28551 = vst [vmem:[#allocation9_spill] sm:$0xff] %v25394_v23 }
 0x4d4   : > { %v13245_v6 = vcombine.low %v13237_v33, %v13244_v19  ;;  %v11929_v2 = vmul.f32 %v18628_v43, %v25274_v51  ;;  %v11930_v54 = vmul.f32 %v18629_v49, %v25274_v51  ;;  %v18256_v53 = vpop.f32.mrb[33].mxu0  ;;  %18313 = vmatmul.mubr.msk.bf16.vlgmr.msra.gmra.mrb[96].mxu1 %vm4355_vm2, %v25394_v23  ;;  %v13187_v56 = vrot.slane %v25338_v10, %v25287_v39 }
 0x4d5   : > { %v13261_v9 = vrot.slane %v13247_v16, %v25287_v39  ;;  %v12371_v59 = vrot.slane %v12357_v42, %v25287_v39  ;;  %v12372_v35 = vcombine.high %v25391_v8, %v25391_v8  ;;  %v11762_v18 = vpop.f32.mrb[34].mxu0  ;;  %v13982_v27 = vshrl.u32 %v25359_v0, 16 }
 0x4d6   : > { %v13869_v4 = vsel %vm12951_vm6, %v13245_v6, 0.0  ;;  %v11977_v48 = vadd.f32 %v25280_v14, %v11929_v2  ;;  %v11978_v41 = vadd.f32 %v25280_v14, %v11930_v54  ;;  %v18257_v30 = vpop.f32.mrb[35].mxu0  ;;  %v13865_v49 = vsel %vm13010_vm8, %v13187_v56, 0.0 }
 0x4d7   : > { %v13262_v32 = vcombine.low %v13254_v20, %v13261_v9  ;;  %v13270_v57 = vcombine.low %v12372_v35, %v12371_v59  ;;  %v12373_v33 = vcombine.high %v12371_v59, %v12371_v59  ;;  %v13984_v16 = vshll.u32 %v25359_v0, 16 }
 0x4d8   : > { %vm12018_vm4 = vcmp.gt.f32.partialorder %v11977_v48, 0.0  ;;  %v12059_v63 = vmul.f32 0.1, %v11977_v48  ;;  %vm12019_vm1 = vcmp.gt.f32.partialorder %v11978_v41, 0.0  ;;  %v12060_v19 = vmul.f32 0.1, %v11978_v41 }
 0x4d9   : > { %v25413_v58 = vpack.c.bf16 %v13262_v32, %v13869_v4  ;;  %v13278_v43 = vrot.slane %v13270_v57, %v25287_v39  ;;  %v25419_v20 = vpack.c.bf16 %v13865_v49, %v13865_v49  ;;  %v18630_v6 = vadd.f32 %v11759_v21, %v24988_v17 }
 0x4da   : > { %v12100_v10 = vsel %vm12018_vm4, %v11977_v48, %v12059_v63  ;;  %v12101_v42 = vsel %vm12019_vm1, %v11978_v41, %v12060_v19  ;;  %v13986_v35 = vrot.slane %v13984_v16, 1  ;;  %v18631_v48 = vadd.f32 %v11762_v18, %v24992_v36 }
 0x4db   : > { %v12374_v2 = vcombine.high %v12100_v10, %v12100_v10  ;;  %v12381_v54 = vrot.slane %v12100_v10, %v25287_v39  ;;  %v12391_v53 = vcombine.high %v12101_v42, %v12101_v42  ;;  %v25424_v9 = vrot.slane %v12101_v42, %v25287_v39  ;;  %v11767_v59 = vpop.f32.mrb[36].mxu0 }
 0x4dc   : > { %v13989_v4 = vshll.u32 %v25419_v20, 16  ;;  %v11931_v56 = vmul.f32 %v18630_v6, %v25274_v51  ;;  %v18260_v41 = vpop.f32.mrb[37].mxu0  ;;  %v13987_v19 = vor.u32 %v13986_v35, %v13982_v27 }
 0x4dd   : > { %v12388_v30 = vrot.slane %v12374_v2, %v25287_v39  ;;  %v12389_v32 = vcombine.high %v12381_v54, %v12381_v54  ;;  %v13271_v17 = vcombine.low %v12373_v33, %v12381_v54  ;;  %v12405_v21 = vrot.slane %v12391_v53, %v25287_v39  ;;  %v11770_v57 = vpop.f32.mrb[38].mxu0 }
 0x4de   : > { %v13991_v49 = vrot.slane %v13989_v4, 1  ;;  %v11979_v16 = vadd.f32 %v25280_v14, %v11931_v56  ;;  %v18261_v10 = vpop.f32.mrb[39].mxu0  ;;  %v11932_v54 = vmul.f32 %v18631_v48, %v25274_v51 }
 0x4df   : > { %v13285_v42 = vrot.slane %v13271_v17, %v25287_v39  ;;  %v13287_v6 = vcombine.low %v12389_v32, %v12388_v30  ;;  %v12390_v36 = vcombine.high %v12388_v30, %v12388_v30  ;;  %v12407_v18 = vcombine.high %v12405_v21, %v12405_v21 }
 0x4e0   : > { %v25436_v2 = vsel %vm13956_vm14, %v13987_v19, %v13991_v49  ;;  %vm12020_vm5 = vcmp.gt.f32.partialorder %v11979_v16, 0.0  ;;  %v12061_v33 = vmul.f32 0.1, %v11979_v16  ;;  %v11980_v56 = vadd.f32 %v25280_v14, %v11932_v54 }
 0x4e1   : > { %28552 = vst [vmem:[#allocation5_spill] sm:$0xff] %v25436_v2  ;;  %v13286_v53 = vcombine.low %v13278_v43, %v13285_v42  ;;  %v13295_v41 = vrot.slane %v13287_v6, %v25287_v39  ;;  %v13288_v27 = vcombine.low %v12390_v36, %v25424_v9  ;;  %v13311_v35 = vcombine.low %v12405_v21, %v12407_v18 }
 0x4e2   : > { %18316 = vmatprep.mubr.msk.bf16.mxu1 %vm4355_vm2, %v25436_v2  ;;  %v12102_v4 = vsel %vm12020_vm5, %v11979_v16, %v12061_v33  ;;  %v28553_v30 = vcombine.high %v25367_v28, %v25367_v28  ;;  %v13994_v17 = vshrl.u32 %v25384_v47, 16  ;;  %vm12021_vm7 = vcmp.gt.f32.partialorder %v11980_v56, 0.0 }
 0x4e3   : > { %v13872_v43 = vsel %vm12951_vm6, %v13286_v53, 0.0  ;;  %v13302_v48 = vrot.slane %v13288_v27, %v25287_v39  ;;  %v13319_v21 = vrot.slane %v13311_v35, %v25287_v39  ;;  %v12408_v19 = vcombine.high %v12102_v4, %v12102_v4  ;;  %v25453_v49 = vpop.f32.mrb[40].mxu0 }
 0x4e4   : > { %v13228_v32 = vrot.slane %v28553_v30, %v25287_v39  ;;  %v12415_v16 = vrot.slane %v12102_v4, %v25287_v39  ;;  %v12062_v10 = vmul.f32 0.1, %v11980_v56  ;;  %v18264_v42 = vpop.f32.mrb[41].mxu0  ;;  %v13996_v33 = vshll.u32 %v25384_v47, 16 }
 0x4e5   : > { %v13303_v6 = vcombine.low %v13295_v41, %v13302_v48  ;;  %v12422_v36 = vrot.slane %v12408_v19, %v25287_v39  ;;  %v25462_v54 = vpop.f32.mrb[42].mxu0  ;;  %v18632_v35 = vadd.f32 %v11767_v59, %v25006_v24  ;;  %v18633_v4 = vadd.f32 %v11770_v57, %v25012_v26 }
 0x4e6   : > { %v13868_v28 = vsel %vm13010_vm8, %v13228_v32, 0.0  ;;  %v12423_v53 = vcombine.high %v12415_v16, %v12415_v16  ;;  %v12103_v27 = vsel %vm12021_vm7, %v11980_v56, %v12062_v10  ;;  %v18265_v30 = vpop.f32.mrb[43].mxu0  ;;  %v13998_v19 = vrot.slane %v13996_v33, 1 }
 0x4e7   : > { %v25459_v18 = vpack.c.bf16 %v13868_v28, %v13868_v28  ;;  %v25466_v63 = vpack.c.bf16 %v13303_v6, %v13872_v43  ;;  %v12424_v32 = vcombine.high %v12422_v36, %v12422_v36  ;;  %v12425_v42 = vcombine.high %v12103_v27, %v12103_v27 }
 0x4e8   : > { %v12432_v41 = vrot.slane %v12103_v27, %v25287_v39  ;;  %v13312_v48 = vcombine.low %v12415_v16, %v12423_v53  ;;  %v11933_v52 = vmul.f32 %v18632_v35, %v25274_v51  ;;  %v11934_v26 = vmul.f32 %v18633_v4, %v25274_v51 }
 0x4e9   : > { %v14001_v28 = vshll.u32 %v25459_v18, 16  ;;  %v13328_v2 = vcombine.low %v12422_v36, %v12424_v32  ;;  %v25472_v56 = vrot.slane %v12425_v42, %v25287_v39  ;;  %v13999_v57 = vor.u32 %v13998_v19, %v13994_v17 }
 0x4ea   : > { %v12440_v24 = vcombine.high %v12432_v41, %v12432_v41  ;;  %v13326_v59 = vrot.slane %v13312_v48, %v25287_v39  ;;  %v11981_v10 = vadd.f32 %v25280_v14, %v11933_v52  ;;  %v11982_v36 = vadd.f32 %v25280_v14, %v11934_v26 }
 0x4eb   : > { %v14003_v43 = vrot.slane %v14001_v28, 1  ;;  %v13336_v16 = vrot.slane %v13328_v2, %v25287_v39  ;;  %v12441_v33 = vcombine.high %v25472_v56, %v25472_v56  ;;  %v11783_v53 = vpop.f32.mrb[44].mxu0  ;;  %v28555_v2 = vrot.slane %v25391_v8, %v25287_v39 }
 0x4ec   : > { %v13329_v6 = vcombine.low %v12432_v41, %v12440_v24  ;;  %v13327_v27 = vcombine.low %v13319_v21, %v13326_v59  ;;  %vm12022_vm9 = vcmp.gt.f32.partialorder %v11981_v10, 0.0  ;;  %v12063_v4 = vmul.f32 0.1, %v11981_v10  ;;  %v18268_v30 = vpop.f32.mrb[45].mxu0 }
 0x4ed   : > { %v25482_v35 = vsel %vm13956_vm14, %v13999_v57, %v14003_v43  ;;  %vm12023_vm10 = vcmp.gt.f32.partialorder %v11982_v36, 0.0  ;;  %v12064_v52 = vmul.f32 0.1, %v11982_v36  ;;  %v13871_v32 = vsel %vm13010_vm8, %v28555_v2, 0.0  ;;  %v11786_v21 = vpop.f32.mrb[46].mxu0 }
 0x4ee   : > { %28554 = vst [vmem:[#allocation10_spill] sm:$0xff] %v25482_v35  ;;  %v13343_v17 = vrot.slane %v13329_v6, %v25287_v39  ;;  %18317 = vmatmul.mubr.msk.bf16.gmra.mrb[100].mxu1 %vm4355_vm2, %v25482_v35  ;;  %v13875_v42 = vsel %vm12951_vm6, %v13327_v27, 0.0  ;;  %v12104_v41 = vsel %vm12022_vm9, %v11981_v10, %v12063_v4  ;;  %v25494_v48 = vpack.c.bf16 %v13871_v32, %v13871_v32  ;;  %v18269_v28 = vpop.f32.mrb[47].mxu0 }
 0x4ef   : > { %v14006_v19 = vshrl.u32 %v25413_v58, 16  ;;  %v12442_v26 = vcombine.high %v12104_v41, %v12104_v41  ;;  %v12449_v59 = vrot.slane %v12104_v41, %v25287_v39  ;;  %v12105_v57 = vsel %vm12023_vm10, %v11982_v36, %v12064_v52 }
 0x4f0   : > { %28556 = vst [vmem:[#allocation6_spill] sm:$0xff] %v25494_v48  ;;  %v13344_v24 = vcombine.low %v13336_v16, %v13343_v17  ;;  %v12459_v43 = vcombine.high %v12105_v57, %v12105_v57  ;;  %v12466_v8 = vrot.slane %v12105_v57, %v25287_v39  ;;  %v14008_v6 = vshll.u32 %v25413_v58, 16 }
 0x4f1   : > { %v14013_v30 = vshll.u32 %v25494_v48, 16  ;;  %v12456_v10 = vrot.slane %v12442_v26, %v25287_v39  ;;  %v12457_v27 = vcombine.high %v12449_v59, %v12449_v59  ;;  %v13352_v4 = vcombine.low %v12441_v33, %v12449_v59 }
 0x4f2   : > { %v25501_v2 = vpack.c.bf16 %v13344_v24, %v13875_v42  ;;  %v25505_v32 = vrot.slane %v12459_v43, %v25287_v39  ;;  %v12474_v16 = vcombine.high %v12466_v8, %v12466_v8  ;;  %v14010_v17 = vrot.slane %v14008_v6, 1 }
 0x4f3   : > { %v14015_v41 = vrot.slane %v14013_v30, 1  ;;  %v13353_v36 = vcombine.low %v12457_v27, %v12456_v10  ;;  %v13360_v52 = vrot.slane %v13352_v4, %v25287_v39  ;;  %v12458_v28 = vcombine.high %v12456_v10, %v12456_v10  ;;  %v25510_v35 = vpop.f32.mrb[48].mxu0 }
 0x4f4   : > { %v18634_v57 = vadd.f32 %v25453_v49, %v25023_v46  ;;  %v13370_v33 = vcombine.low %v12474_v16, %v25505_v32  ;;  %v14011_v24 = vor.u32 %v14010_v17, %v14006_v19  ;;  %v18635_v26 = vadd.f32 %v25462_v54, %v25025_v40  ;;  %v18272_v59 = vpop.f32.mrb[49].mxu0 }
 0x4f5   : > { %v13367_v43 = vrot.slane %v13353_v36, %v25287_v39  ;;  %v13369_v6 = vcombine.low %v12458_v28, %v12466_v8  ;;  %v28557_v46 = vcombine.high %v25424_v9, %v25424_v9  ;;  %v25523_v10 = vpop.f32.mrb[50].mxu0  ;;  %v14018_v54 = vshrl.u32 %v25466_v63, 16 }
 0x4f6   : > { %v11935_v30 = vmul.f32 %v18634_v57, %v25274_v51  ;;  %v13384_v27 = vrot.slane %v13370_v33, %v25287_v39  ;;  %v25527_v19 = vsel %vm13956_vm14, %v14011_v24, %v14015_v41  ;;  %v11936_v40 = vmul.f32 %v18635_v26, %v25274_v51  ;;  %v18273_v4 = vpop.f32.mrb[51].mxu0 }
 0x4f7   : > { %v13310_v49 = vrot.slane %v28557_v46, %v25287_v39  ;;  %28558 = vst [vmem:[#allocation113_spill] sm:$0xff] %v25527_v19  ;;  %v13368_v8 = vcombine.low %v13360_v52, %v13367_v43  ;;  %v13377_v16 = vrot.slane %v13369_v6, %v25287_v39  ;;  %18320 = vmatprep.mubr.msk.bf16.mxu1 %vm4355_vm2, %v25527_v19  ;;  %v14020_v28 = vshll.u32 %v25466_v63, 16 }
 0x4f8   : > { %v11983_v9 = vadd.f32 %v25280_v14, %v11935_v30  ;;  %v11984_v36 = vadd.f32 %v25280_v14, %v11936_v40  ;;  %v18636_v57 = vadd.f32 %v11783_v53, %v25032_v13 }
 0x4f9   : > { %v13874_v17 = vsel %vm13010_vm8, %v13310_v49, 0.0  ;;  %v13878_v52 = vsel %vm12951_vm6, %v13368_v8, 0.0  ;;  %v13385_v33 = vcombine.low %v13377_v16, %v13384_v27  ;;  %v14022_v59 = vrot.slane %v14020_v28, 1 }
 0x4fa   : > { %v25538_v41 = vpack.c.bf16 %v13874_v17, %v13874_v17  ;;  %vm12024_vm11 = vcmp.gt.f32.partialorder %v11983_v9, 0.0  ;;  %v12065_v24 = vmul.f32 0.1, %v11983_v9  ;;  %vm12025_vm12 = vcmp.gt.f32.partialorder %v11984_v36, 0.0 }
 0x4fb   : > { %v12066_v26 = vmul.f32 0.1, %v11984_v36  ;;  %v25545_v6 = vpack.c.bf16 %v13385_v33, %v13878_v52  ;;  %v11937_v46 = vmul.f32 %v18636_v57, %v25274_v51  ;;  %v18637_v49 = vadd.f32 %v11786_v21, %v25034_v38  ;;  %v25549_v40 = vpop.f32.mrb[52].mxu0 }
 0x4fc   : > { %28559 = vst [vmem:[#allocation111_spill] sm:$0xff] %v25538_v41  ;;  %v14025_v43 = vshll.u32 %v25538_v41, 16  ;;  %v12106_v30 = vsel %vm12024_vm11, %v11983_v9, %v12065_v24  ;;  %v14023_v4 = vor.u32 %v14022_v59, %v14018_v54  ;;  %v18276_v8 = vpop.f32.mrb[53].mxu0  ;;  %v13351_v21 = vrot.slane %v25472_v56, %v25287_v39 }
 0x4fd   : > { %v12476_v13 = vcombine.high %v12106_v30, %v12106_v30  ;;  %v12483_v53 = vrot.slane %v12106_v30, %v25287_v39  ;;  %v12107_v27 = vsel %vm12025_vm12, %v11984_v36, %v12066_v26  ;;  %v11985_v52 = vadd.f32 %v25280_v14, %v11937_v46  ;;  %v25554_v33 = vpop.f32.mrb[54].mxu0 }
 0x4fe   : > { %v12493_v16 = vcombine.high %v12107_v27, %v12107_v27  ;;  %v12500_v17 = vrot.slane %v12107_v27, %v25287_v39  ;;  %v14027_v28 = vrot.slane %v14025_v43, 1  ;;  %v11938_v38 = vmul.f32 %v18637_v49, %v25274_v51  ;;  %v18277_v24 = vpop.f32.mrb[55].mxu0 }
 0x4ff   : > { %v12490_v9 = vrot.slane %v12476_v13, %v25287_v39  ;;  %v12491_v57 = vcombine.high %v12483_v53, %v12483_v53  ;;  %vm12026_vm13 = vcmp.gt.f32.partialorder %v11985_v52, 0.0  ;;  %v12067_v30 = vmul.f32 0.1, %v11985_v52 }
 0x500   : > { %v12507_v54 = vrot.slane %v12493_v16, %v25287_v39  ;;  %v12508_v36 = vcombine.high %v12500_v17, %v12500_v17  ;;  %v25562_v26 = vsel %vm13956_vm14, %v14023_v4, %v14027_v28  ;;  %v11986_v46 = vadd.f32 %v25280_v14, %v11938_v38 }
 0x501   : > { %28560 = vst [vmem:[#allocation8_spill] sm:$0xff] %v25562_v26  ;;  %v12492_v59 = vcombine.high %v12490_v9, %v12490_v9  ;;  %v13393_v43 = vcombine.low %v12483_v53, %v12491_v57  ;;  %18321 = vmatmul.mubr.msk.bf16.gmra.mrb[104].mxu1 %vm4355_vm2, %v25562_v26  ;;  %v13877_v56 = vsel %vm13010_vm8, %v13351_v21, 0.0  ;;  %v14030_v27 = vshrl.u32 %v25501_v2, 16 }
 0x502   : > { %v12509_v49 = vcombine.high %v12507_v54, %v12507_v54  ;;  %v13410_v13 = vcombine.low %v12500_v17, %v12508_v36  ;;  %v12108_v16 = vsel %vm12026_vm13, %v11985_v52, %v12067_v30  ;;  %vm12027_vm15 = vcmp.gt.f32.partialorder %v11986_v46, 0.0 }
 0x503   : > { %v13394_v8 = vcombine.low %v12490_v9, %v12492_v59  ;;  %v13401_v4 = vrot.slane %v13393_v43, %v25287_v39  ;;  %v12510_v57 = vcombine.high %v12108_v16, %v12108_v16  ;;  %v25573_v24 = vrot.slane %v12108_v16, %v25287_v39  ;;  %v25575_v38 = vpop.f32.mrb[56].mxu0 }
 0x504   : > { %v13411_v28 = vcombine.low %v12507_v54, %v12509_v49  ;;  %v13418_v53 = vrot.slane %v13410_v13, %v25287_v39  ;;  %v12068_v36 = vmul.f32 0.1, %v11986_v46  ;;  %v25578_v21 = vpack.c.bf16 %v13877_v56, %v13877_v56  ;;  %v18280_v59 = vpop.f32.mrb[57].mxu0 }
 0x505   : > { %v13408_v17 = vrot.slane %v13394_v8, %v25287_v39  ;;  %v14032_v9 = vshll.u32 %v25501_v2, 16  ;;  %v12524_v54 = vrot.slane %v12510_v57, %v25287_v39  ;;  %v12525_v43 = vcombine.high %v25573_v24, %v25573_v24  ;;  %v25587_v49 = vpop.f32.mrb[58].mxu0 }
 0x506   : > { %v13425_v52 = vrot.slane %v13411_v28, %v25287_v39  ;;  %v12109_v8 = vsel %vm12027_vm15, %v11986_v46, %v12068_v36  ;;  %v14037_v16 = vshll.u32 %v25578_v21, 16  ;;  %v18281_v42 = vpop.f32.mrb[59].mxu0 }
 0x507   : > { %v13409_v13 = vcombine.low %v13401_v4, %v13408_v17  ;;  %v14034_v56 = vrot.slane %v14032_v9, 1  ;;  %v13434_v26 = vcombine.low %v12525_v43, %v12524_v54  ;;  %v12526_v28 = vcombine.high %v12524_v54, %v12524_v54 }
 0x508   : > { %v13426_v59 = vcombine.low %v13418_v53, %v13425_v52  ;;  %v12527_v19 = vcombine.high %v12109_v8, %v12109_v8  ;;  %v12534_v23 = vrot.slane %v12109_v8, %v25287_v39  ;;  %v14039_v30 = vrot.slane %v14037_v16, 1 }
 0x509   : > { %v13881_v57 = vsel %vm12951_vm6, %v13409_v13, 0.0  ;;  %v14035_v41 = vor.u32 %v14034_v56, %v14030_v27  ;;  %v13442_v4 = vrot.slane %v13434_v26, %v25287_v39  ;;  %v18638_v42 = vadd.f32 %v25510_v35, %v25043_v25 }
 0x50a   : > { %v25594_v48 = vpack.c.bf16 %v13426_v59, %v13881_v57  ;;  %v12541_v46 = vrot.slane %v12527_v19, %v25287_v39  ;;  %v12542_v53 = vcombine.high %v12534_v23, %v12534_v23  ;;  %v13435_v17 = vcombine.low %v12526_v28, %v12534_v23 }
 0x50b   : > { %v25601_v36 = vsel %vm13956_vm14, %v14035_v41, %v14039_v30  ;;  %v18639_v9 = vadd.f32 %v25523_v10, %v25045_v45  ;;  %v11939_v27 = vmul.f32 %v18638_v42, %v25274_v51  ;;  %v28561_v19 = vcombine.high %v25505_v32, %v25505_v32  ;;  %v25613_v23 = vpop.f32.mrb[60].mxu0 }
 0x50c   : > { %18324 = vmatprep.mubr.msk.bf16.mxu1 %vm4355_vm2, %v25601_v36  ;;  %v12543_v52 = vcombine.high %v12541_v46, %v12541_v46  ;;  %v14042_v25 = vshrl.u32 %v25545_v6, 16  ;;  %v13449_v35 = vrot.slane %v13435_v17, %v25287_v39  ;;  %v13451_v41 = vcombine.low %v12542_v53, %v12541_v46  ;;  %v18284_v54 = vpop.f32.mrb[61].mxu0 }
 0x50d   : > { %v13392_v26 = vrot.slane %v28561_v19, %v25287_v39  ;;  %v11940_v45 = vmul.f32 %v18639_v9, %v25274_v51  ;;  %v14044_v10 = vshll.u32 %v25545_v6, 16  ;;  %v11987_v43 = vadd.f32 %v25280_v14, %v11939_v27  ;;  %v25625_v8 = vpop.f32.mrb[62].mxu0 }
 0x50e   : > { %v18640_v32 = vadd.f32 %v25549_v40, %v25059_v62  ;;  %v18641_v13 = vadd.f32 %v25554_v33, %v25061_v55  ;;  %v13450_v56 = vcombine.low %v13442_v4, %v13449_v35  ;;  %v13459_v16 = vrot.slane %v13451_v41, %v25287_v39  ;;  %v18285_v57 = vpop.f32.mrb[63].mxu0 }
 0x50f   : > { %v13880_v30 = vsel %vm13010_vm8, %v13392_v26, 0.0  ;;  %v11988_v59 = vadd.f32 %v25280_v14, %v11940_v45  ;;  %vm12028_vm3 = vcmp.gt.f32.partialorder %v11987_v43, 0.0  ;;  %v12069_v46 = vmul.f32 0.1, %v11987_v43 }
 0x510   : > { %v25629_v28 = vpack.c.bf16 %v13880_v30, %v13880_v30  ;;  %v14046_v42 = vrot.slane %v14044_v10, 1  ;;  %v11941_v53 = vmul.f32 %v18640_v32, %v25274_v51  ;;  %v13884_v62 = vsel %vm12951_vm6, %v13450_v56, 0.0 }
 0x511   : > { %vm12029_vm4 = vcmp.gt.f32.partialorder %v11988_v59, 0.0  ;;  %v12070_v55 = vmul.f32 0.1, %v11988_v59  ;;  %v12110_v33 = vsel %vm12028_vm3, %v11987_v43, %v12069_v46  ;;  %v11942_v9 = vmul.f32 %v18641_v13, %v25274_v51  ;;  %v7139_v13 = vpop.f32.mrb[92].mxu1 }
 0x512   : > { %v14049_v40 = vshll.u32 %v25629_v28, 16  ;;  %v14047_v4 = vor.u32 %v14046_v42, %v14042_v25  ;;  %v11989_v17 = vadd.f32 %v25280_v14, %v11941_v53  ;;  %v12544_v27 = vcombine.high %v12110_v33, %v12110_v33  ;;  %v17792_v53 = vpop.f32.mrb[93].mxu1 }
 0x513   : > { %v25638_v19 = vrot.slane %v12110_v33, %v25287_v39  ;;  %v12111_v26 = vsel %vm12029_vm4, %v11988_v59, %v12070_v55  ;;  %v25641_v54 = vpop.f32.mrb[64].mxu0  ;;  %v11990_v46 = vadd.f32 %v25280_v14, %v11942_v9 }
 0x514   : > { %v14051_v35 = vrot.slane %v14049_v40, 1  ;;  %v12561_v41 = vcombine.high %v12111_v26, %v12111_v26  ;;  %v12568_v45 = vrot.slane %v12111_v26, %v25287_v39  ;;  %vm12030_vm1 = vcmp.gt.f32.partialorder %v11989_v17, 0.0  ;;  %v18288_v32 = vpop.f32.mrb[65].mxu0 }
 0x515   : > { %v12071_v10 = vmul.f32 0.1, %v11989_v17  ;;  %v12558_v43 = vrot.slane %v12544_v27, %v25287_v39  ;;  %v12559_v25 = vcombine.high %v25638_v19, %v25638_v19  ;;  %v13452_v51 = vcombine.low %v12543_v52, %v25638_v19  ;;  %v25654_v42 = vpop.f32.mrb[66].mxu0  ;;  %v7142_v27 = vpop.f32.mrb[94].mxu1 }
 0x516   : > { %v25648_v30 = vsel %vm13956_vm14, %v14047_v4, %v14051_v35  ;;  %v12575_v56 = vrot.slane %v12561_v41, %v25287_v39  ;;  %v12576_v59 = vcombine.high %v12568_v45, %v12568_v45  ;;  %v18289_v4 = vpop.f32.mrb[67].mxu0  ;;  %vm12031_vm5 = vcmp.gt.f32.partialorder %v11990_v46, 0.0  ;;  %v17793_v32 = vpop.f32.mrb[95].mxu1 }
 0x517   : > { %18325 = vmatmul.mubr.msk.bf16.gmra.mrb[108].mxu1 %vm4355_vm2, %v25648_v30  ;;  %v12112_v57 = vsel %vm12030_vm1, %v11989_v17, %v12071_v10  ;;  %v12560_v55 = vcombine.high %v12558_v43, %v12558_v43  ;;  %v13466_v52 = vrot.slane %v13452_v51, %v25287_v39  ;;  %v12072_v41 = vmul.f32 0.1, %v11990_v46 }
 0x518   : > { %v12578_v40 = vcombine.high %v12112_v57, %v12112_v57  ;;  %v12585_v33 = vrot.slane %v12112_v57, %v25287_v39  ;;  %v12577_v26 = vcombine.high %v12575_v56, %v12575_v56  ;;  %v13476_v35 = vcombine.low %v12568_v45, %v12576_v59 }
 0x519   : > { %v13467_v13 = vcombine.low %v13459_v16, %v13466_v52  ;;  %v13475_v17 = vcombine.low %v12558_v43, %v12560_v55  ;;  %v12113_v51 = vsel %vm12031_vm5, %v11990_v46, %v12072_v41  ;;  %v18642_v57 = vadd.f32 %v25575_v38, %v25072_v60 }
 0x51a   : > { %v25659_v14 = vrot.slane %v12578_v40, %v25287_v39  ;;  %v12593_v9 = vcombine.high %v12585_v33, %v12585_v33  ;;  %v13490_v10 = vrot.slane %v13476_v35, %v25287_v39  ;;  %v13492_v53 = vcombine.low %v12575_v56, %v12577_v26  ;;  %v25674_v56 = vld [vmem:[%s26639_s2] ss:$0 sm:$0xff] }
 0x51b   : > { %v13483_v4 = vrot.slane %v13475_v17, %v25287_v39  ;;  %v25665_v27 = vpack.c.bf16 %v13467_v13, %v13884_v62  ;;  %v12595_v59 = vcombine.high %v12113_v51, %v12113_v51  ;;  %v12602_v55 = vrot.slane %v12113_v51, %v25287_v39  ;;  %v25677_v38 = vpop.f32.mrb[68].mxu0  ;;  %v25690_v13 = vld [vmem:[%s26640_s3] ss:$0 sm:$0xff] }
 0x51c   : > { %v13493_v45 = vcombine.low %v12585_v33, %v12593_v9  ;;  %v12594_v16 = vcombine.high %v25659_v14, %v25659_v14  ;;  %v13500_v43 = vrot.slane %v13492_v53, %v25287_v39  ;;  %v11943_v60 = vmul.f32 %v25674_v56, %v18642_v57  ;;  %v18292_v26 = vpop.f32.mrb[69].mxu0 }
 0x51d   : > { %v13491_v62 = vcombine.low %v13483_v4, %v13490_v10  ;;  %v28562_v52 = vrot.slane %v25573_v24, %v25287_v39  ;;  %v14054_v33 = vshrl.u32 %v25594_v48, 16  ;;  %v12609_v35 = vrot.slane %v12595_v59, %v25287_v39  ;;  %v25693_v9 = vpop.f32.mrb[70].mxu0 }
 0x51e   : > { %v13507_v46 = vrot.slane %v13493_v45, %v25287_v39  ;;  %v12610_v41 = vcombine.high %v12602_v55, %v12602_v55  ;;  %v13516_v32 = vcombine.low %v12594_v16, %v12602_v55  ;;  %v11991_v17 = vadd.f32 %v25690_v13, %v11943_v60  ;;  %v18293_v57 = vpop.f32.mrb[71].mxu0 }
 0x51f   : > { %v13883_v40 = vsel %vm13010_vm8, %v28562_v52, 0.0  ;;  %v13887_v24 = vsel %vm12951_vm6, %v13491_v62, 0.0  ;;  %v14056_v51 = vshll.u32 %v25594_v48, 16  ;;  %v12611_v55 = vcombine.high %v12609_v35, %v12609_v35 }
 0x520   : > { %v13508_v10 = vcombine.low %v13500_v43, %v13507_v46  ;;  %v25697_v53 = vpack.c.bf16 %v13883_v40, %v13883_v40  ;;  %v13517_v4 = vcombine.low %v12610_v41, %v12609_v35  ;;  %v13524_v45 = vrot.slane %v13516_v32, %v25287_v39  ;;  %v25707_v43 = vld [vmem:[%s26641_s4 + $0x4] sm:$0x3] }
 0x521   : > { %vm12032_vm7 = vcmp.gt.f32.partialorder %v11991_v17, 0.0  ;;  %v12073_v16 = vmul.f32 0.1, %v11991_v17  ;;  %v14058_v60 = vrot.slane %v14056_v51, 1  ;;  %v18643_v40 = vadd.f32 %v25587_v49, %v25074_v5 }
 0x522   : > { %v25701_v59 = vpack.c.bf16 %v13508_v10, %v13887_v24  ;;  %v14061_v52 = vshll.u32 %v25697_v53, 16  ;;  %v13531_v62 = vrot.slane %v13517_v4, %v25287_v39  ;;  %v14509_v26 = vsel %vm4419_vm0, %v25315_v15, 0 }
 0x523   : > { %v12114_v46 = vsel %vm12032_vm7, %v11991_v17, %v12073_v16  ;;  %v14059_v32 = vor.u32 %v14058_v60, %v14054_v33  ;;  %18345 = vmatpush3.bf16.msra.mxu1 %v14509_v26  ;;  %v11944_v51 = vmul.f32 %v25674_v56, %v18643_v40  ;;  %v18644_v57 = vadd.f32 %v25613_v23, %v25085_v37  ;;  %v25720_v4 = vpop.f32.mrb[72].mxu0 }
 0x524   : > { %v12612_v41 = vcombine.high %v12114_v46, %v12114_v46  ;;  %v12619_v35 = vrot.slane %v12114_v46, %v25287_v39  ;;  %v14063_v24 = vrot.slane %v14061_v52, 1  ;;  %v13532_v10 = vcombine.low %v13524_v45, %v13531_v62  ;;  %19445 = vmatprep.subr.msk.bf16.mxu1 %vm4419_vm0, %v25707_v43  ;;  %v18296_v45 = vpop.f32.mrb[73].mxu0 }
 0x525   : > { %v18645_v17 = vadd.f32 %v25625_v8, %v25087_v1  ;;  %v11992_v37 = vadd.f32 %v25690_v13, %v11944_v51  ;;  %v11945_v1 = vmul.f32 %v25674_v56, %v18644_v57  ;;  %v25735_v8 = vpop.f32.mrb[74].mxu0  ;;  %v13474_v52 = vrot.slane %v12559_v25, %v25287_v39 }
 0x526   : > { %v25725_v5 = vrot.slane %v12612_v41, %v25287_v39  ;;  %v12627_v15 = vcombine.high %v12619_v35, %v12619_v35  ;;  %v13533_v49 = vcombine.low %v12611_v55, %v12619_v35  ;;  %v25728_v33 = vsel %vm13956_vm14, %v14059_v32, %v14063_v24  ;;  %v18297_v62 = vpop.f32.mrb[75].mxu0 }
 0x527   : > { %18328 = vmatprep.mubr.msk.bf16.mxu1 %vm4355_vm2, %v25728_v33  ;;  %v11946_v23 = vmul.f32 %v25674_v56, %v18645_v17  ;;  %v13890_v16 = vsel %vm12951_vm6, %v13532_v10, 0.0  ;;  %vm12033_vm9 = vcmp.gt.f32.partialorder %v11992_v37, 0.0  ;;  %v12074_v46 = vmul.f32 0.1, %v11992_v37 }
 0x528   : > { %v13534_v55 = vcombine.low %v12627_v15, %v25725_v5  ;;  %v13541_v60 = vrot.slane %v13533_v49, %v25287_v39  ;;  %v11993_v40 = vadd.f32 %v25690_v13, %v11945_v1  ;;  %v13886_v35 = vsel %vm13010_vm8, %v13474_v52, 0.0 }
 0x529   : > { %v11994_v26 = vadd.f32 %v25690_v13, %v11946_v23  ;;  %v14066_v32 = vshrl.u32 %v25665_v27, 16  ;;  %v14068_v24 = vshll.u32 %v25665_v27, 16  ;;  %v12115_v10 = vsel %vm12033_vm9, %v11992_v37, %v12074_v46 }
 0x52a   : > { %v13548_v41 = vrot.slane %v13534_v55, %v25287_v39  ;;  %vm12034_vm10 = vcmp.gt.f32.partialorder %v11993_v40, 0.0  ;;  %v12075_v19 = vmul.f32 0.1, %v11993_v40  ;;  %v12629_v51 = vcombine.high %v12115_v10, %v12115_v10 }
 0x52b   : > { %vm12035_vm11 = vcmp.gt.f32.partialorder %v11994_v26, 0.0  ;;  %v12636_v57 = vrot.slane %v12115_v10, %v25287_v39  ;;  %v12076_v17 = vmul.f32 0.1, %v11994_v26  ;;  %v25753_v49 = vpack.c.bf16 %v13886_v35, %v13886_v35  ;;  %v25757_v23 = vpop.f32.mrb[76].mxu0 }
 0x52c   : > { %v13549_v25 = vcombine.low %v13541_v60, %v13548_v41  ;;  %v12116_v15 = vsel %vm12034_vm10, %v11993_v40, %v12075_v19  ;;  %v14070_v45 = vrot.slane %v14068_v24, 1  ;;  %v18646_v1 = vadd.f32 %v25641_v54, %v25103_v50  ;;  %v18300_v60 = vpop.f32.mrb[77].mxu0 }
 0x52d   : > { %v12643_v37 = vrot.slane %v12629_v51, %v25287_v39  ;;  %v12644_v52 = vcombine.high %v12636_v57, %v12636_v57  ;;  %v12646_v62 = vcombine.high %v12116_v15, %v12116_v15  ;;  %v12653_v46 = vrot.slane %v12116_v15, %v25287_v39  ;;  %v25765_v24 = vpop.f32.mrb[78].mxu0 }
 0x52e   : > { %v25759_v55 = vpack.c.bf16 %v13549_v25, %v13890_v16  ;;  %v12117_v41 = vsel %vm12035_vm11, %v11994_v26, %v12076_v17  ;;  %v14071_v40 = vor.u32 %v14070_v45, %v14066_v32  ;;  %v14073_v35 = vshll.u32 %v25753_v49, 16  ;;  %v18301_v19 = vpop.f32.mrb[79].mxu0 }
 0x52f   : > { %v12645_v10 = vcombine.high %v12643_v37, %v12643_v37  ;;  %v13557_v50 = vcombine.low %v12636_v57, %v12644_v52  ;;  %v12660_v54 = vrot.slane %v12646_v62, %v25287_v39  ;;  %v12663_v16 = vcombine.high %v12117_v41, %v12117_v41 }
 0x530   : > { %v12661_v25 = vcombine.high %v12653_v46, %v12653_v46  ;;  %v25769_v51 = vrot.slane %v12117_v41, %v25287_v39  ;;  %v14075_v60 = vrot.slane %v14073_v35, 1  ;;  %v11947_v15 = vmul.f32 %v25674_v56, %v18646_v1 }
 0x531   : > { %v12628_v26 = vcombine.high %v25725_v5, %v25725_v5  ;;  %v13558_v32 = vcombine.low %v12643_v37, %v12645_v10  ;;  %v12662_v17 = vcombine.high %v12660_v54, %v12660_v54  ;;  %v12677_v45 = vrot.slane %v12663_v16, %v25287_v39 }
 0x532   : > { %v13565_v57 = vrot.slane %v13557_v50, %v25287_v39  ;;  %v13574_v52 = vcombine.low %v12653_v46, %v12661_v25  ;;  %v12678_v62 = vcombine.high %v25769_v51, %v25769_v51  ;;  %v25779_v19 = vsel %vm13956_vm14, %v14071_v40, %v14075_v60 }
 0x533   : > { %28563 = vst [vmem:[#allocation7_spill] sm:$0xff] %v25779_v19  ;;  %v13572_v41 = vrot.slane %v13558_v32, %v25287_v39  ;;  %v13575_v35 = vcombine.low %v12660_v54, %v12662_v17  ;;  %18329 = vmatmul.mubr.msk.bf16.gmra.mrb[112].mxu1 %vm4355_vm2, %v25779_v19  ;;  %v11995_v5 = vadd.f32 %v25690_v13, %v11947_v15  ;;  %v25790_v40 = vpop.f32.mrb[80].mxu0 }
 0x534   : > { %v12679_v1 = vcombine.high %v12677_v45, %v12677_v45  ;;  %v13582_v37 = vrot.slane %v13574_v52, %v25287_v39  ;;  %v13598_v10 = vcombine.low %v12678_v62, %v12677_v45  ;;  %v18647_v46 = vadd.f32 %v25654_v42, %v25105_v11  ;;  %v18304_v60 = vpop.f32.mrb[81].mxu0 }
 0x535   : > { %v13515_v50 = vrot.slane %v25659_v14, %v25287_v39  ;;  %v13573_v16 = vcombine.low %v13565_v57, %v13572_v41  ;;  %v13589_v54 = vrot.slane %v13575_v35, %v25287_v39  ;;  %vm12036_vm12 = vcmp.gt.f32.partialorder %v11995_v5, 0.0  ;;  %v11858_v42 = vpop.f32.mrb[82].mxu0 }
 0x536   : > { %v12077_v25 = vmul.f32 0.1, %v11995_v5  ;;  %v13606_v15 = vrot.slane %v13598_v10, %v25287_v39  ;;  %v11948_v32 = vmul.f32 %v25674_v56, %v18647_v46  ;;  %v14078_v11 = vshrl.u32 %v25701_v59, 16  ;;  %v18305_v62 = vpop.f32.mrb[83].mxu0 }
 0x537   : > { %v13889_v17 = vsel %vm13010_vm8, %v13515_v50, 0.0  ;;  %v13893_v14 = vsel %vm12951_vm6, %v13573_v16, 0.0  ;;  %v13590_v45 = vcombine.low %v13582_v37, %v13589_v54  ;;  %v14080_v46 = vshll.u32 %v25701_v59, 16 }
 0x538   : > { %v12118_v57 = vsel %vm12036_vm12, %v11995_v5, %v12077_v25  ;;  %v25800_v52 = vpack.c.bf16 %v13889_v17, %v13889_v17  ;;  %v11996_v10 = vadd.f32 %v25690_v13, %v11948_v32  ;;  %v18648_v42 = vadd.f32 %v25677_v38, %v25116_v3 }
 0x539   : > { %v12680_v41 = vcombine.high %v12118_v57, %v12118_v57  ;;  %v12687_v35 = vrot.slane %v12118_v57, %v25287_v39  ;;  %v25805_v60 = vpack.c.bf16 %v13590_v45, %v13893_v14  ;;  %v18649_v5 = vadd.f32 %v25693_v9, %v25118_v29 }
 0x53a   : > { %v14085_v50 = vshll.u32 %v25800_v52, 16  ;;  %vm12037_vm13 = vcmp.gt.f32.partialorder %v11996_v10, 0.0  ;;  %v12078_v25 = vmul.f32 0.1, %v11996_v10  ;;  %v14082_v17 = vrot.slane %v14080_v46, 1 }
 0x53b   : > { %v12694_v37 = vrot.slane %v12680_v41, %v25287_v39  ;;  %v12695_v16 = vcombine.high %v12687_v35, %v12687_v35  ;;  %v13599_v54 = vcombine.low %v12679_v1, %v12687_v35  ;;  %v11949_v57 = vmul.f32 %v25674_v56, %v18648_v42 }
 0x53c   : > { %v14087_v32 = vrot.slane %v14085_v50, 1  ;;  %v11950_v19 = vmul.f32 %v25674_v56, %v18649_v5  ;;  %v12119_v3 = vsel %vm12037_vm13, %v11996_v10, %v12078_v25  ;;  %v14083_v38 = vor.u32 %v14082_v17, %v14078_v11 }
 0x53d   : > { %v13613_v14 = vrot.slane %v13599_v54, %v25287_v39  ;;  %v13615_v45 = vcombine.low %v12695_v16, %v12694_v37  ;;  %v12696_v62 = vcombine.high %v12694_v37, %v12694_v37  ;;  %v11997_v29 = vadd.f32 %v25690_v13, %v11949_v57 }
 0x53e   : > { %v13556_v9 = vrot.slane %v12628_v26, %v25287_v39  ;;  %v13597_v1 = vrot.slane %v25769_v51, %v25287_v39  ;;  %v12697_v35 = vcombine.high %v12119_v3, %v12119_v3  ;;  %v25821_v46 = vrot.slane %v12119_v3, %v25287_v39 }
 0x53f   : > { %v13614_v41 = vcombine.low %v13606_v15, %v13613_v14  ;;  %v25824_v50 = vsel %vm13956_vm14, %v14083_v38, %v14087_v32  ;;  %vm12038_vm15 = vcmp.gt.f32.partialorder %v11997_v29, 0.0  ;;  %v12079_v42 = vmul.f32 0.1, %v11997_v29 }
 0x540   : > { %v11998_v10 = vadd.f32 %v25690_v13, %v11950_v19  ;;  %v13623_v11 = vrot.slane %v13615_v45, %v25287_v39  ;;  %v12711_v5 = vrot.slane %v12697_v35, %v25287_v39  ;;  %v13616_v51 = vcombine.low %v12696_v62, %v25821_v46  ;;  %18332 = vmatprep.mubr.msk.bf16.mxu1 %vm4355_vm2, %v25824_v50 }
 0x541   : > { %v13896_v26 = vsel %vm12951_vm6, %v13614_v41, 0.0  ;;  %v12120_v15 = vsel %vm12038_vm15, %v11997_v29, %v12079_v42  ;;  %v13892_v16 = vsel %vm13010_vm8, %v13556_v9, 0.0  ;;  %v14090_v14 = vshrl.u32 %v25759_v55, 16 }
 0x542   : > { %vm12039_vm3 = vcmp.gt.f32.partialorder %v11998_v10, 0.0  ;;  %v12080_v37 = vmul.f32 0.1, %v11998_v10  ;;  %v12713_v54 = vcombine.high %v12711_v5, %v12711_v5  ;;  %v13630_v19 = vrot.slane %v13616_v51, %v25287_v39 }
 0x543   : > { %v12714_v25 = vcombine.high %v12120_v15, %v12120_v15  ;;  %v12721_v17 = vrot.slane %v12120_v15, %v25287_v39  ;;  %v25838_v57 = vpack.c.bf16 %v13892_v16, %v13892_v16  ;;  %v14092_v45 = vshll.u32 %v25759_v55, 16 }
 0x544   : > { %v12121_v32 = vsel %vm12039_vm3, %v11998_v10, %v12080_v37  ;;  %v13631_v62 = vcombine.low %v13623_v11, %v13630_v19  ;;  %v13639_v3 = vcombine.low %v12711_v5, %v12713_v54  ;;  %v12712_v10 = vcombine.high %v25821_v46, %v25821_v46 }
 0x545   : > { %v12728_v38 = vrot.slane %v12714_v25, %v25287_v39  ;;  %v12729_v29 = vcombine.high %v12721_v17, %v12721_v17  ;;  %v12731_v41 = vcombine.high %v12121_v32, %v12121_v32  ;;  %v12738_v9 = vrot.slane %v12121_v32, %v25287_v39 }
 0x546   : > { %v14094_v35 = vrot.slane %v14092_v45, 1  ;;  %v14097_v42 = vshll.u32 %v25838_v57, 16  ;;  %v25847_v51 = vpack.c.bf16 %v13631_v62, %v13896_v26  ;;  %v13647_v16 = vrot.slane %v13639_v3, %v25287_v39 }
 0x547   : > { %v12730_v15 = vcombine.high %v12728_v38, %v12728_v38  ;;  %v13640_v37 = vcombine.low %v12721_v17, %v12729_v29  ;;  %v12746_v11 = vcombine.high %v12738_v9, %v12738_v9  ;;  %v18650_v32 = vadd.f32 %v25720_v4, %v25129_v44 }
 0x548   : > { %v14095_v5 = vor.u32 %v14094_v35, %v14090_v14  ;;  %v14099_v54 = vrot.slane %v14097_v42, 1  ;;  %v18651_v45 = vadd.f32 %v25735_v8, %v25131_v34  ;;  %v25856_v46 = vrot.slane %v12731_v41, %v25287_v39 }
 0x549   : > { %v13654_v19 = vrot.slane %v13640_v37, %v25287_v39  ;;  %v13656_v25 = vcombine.low %v12728_v38, %v12730_v15  ;;  %v13657_v26 = vcombine.low %v12738_v9, %v12746_v11  ;;  %v13895_v14 = vsel %vm13010_vm8, %v13597_v1, 0.0 }
 0x54a   : > { %v25859_v17 = vsel %vm13956_vm14, %v14095_v5, %v14099_v54  ;;  %v11951_v44 = vmul.f32 %v25674_v56, %v18650_v32  ;;  %v11952_v34 = vmul.f32 %v25674_v56, %v18651_v45  ;;  %v25869_v8 = vpack.c.bf16 %v13895_v14, %v13895_v14 }
 0x54b   : > { %v13655_v62 = vcombine.low %v13647_v16, %v13654_v19  ;;  %v13664_v3 = vrot.slane %v13656_v25, %v25287_v39  ;;  %18333 = vmatmul.mubr.msk.bf16.gmra.mrb[116].mxu1 %vm4355_vm2, %v25859_v17  ;;  %v13671_v4 = vrot.slane %v13657_v26, %v25287_v39  ;;  %v14102_v38 = vshrl.u32 %v25805_v60, 16 }
 0x54c   : > { %v14104_v29 = vshll.u32 %v25805_v60, 16  ;;  %v11999_v41 = vadd.f32 %v25690_v13, %v11951_v44  ;;  %v12000_v9 = vadd.f32 %v25690_v13, %v11952_v34  ;;  %v18652_v35 = vadd.f32 %v25757_v23, %v25142_v12 }
 0x54d   : > { %v13899_v1 = vsel %vm12951_vm6, %v13655_v62, 0.0  ;;  %v13672_v42 = vcombine.low %v13664_v3, %v13671_v4  ;;  %v14109_v37 = vshll.u32 %v25869_v8, 16  ;;  %v18653_v16 = vadd.f32 %v25765_v24, %v25144_v61 }
 0x54e   : > { %v14106_v15 = vrot.slane %v14104_v29, 1  ;;  %vm12040_vm4 = vcmp.gt.f32.partialorder %v11999_v41, 0.0  ;;  %v12081_v11 = vmul.f32 0.1, %v11999_v41  ;;  %vm12041_vm1 = vcmp.gt.f32.partialorder %v12000_v9, 0.0 }
 0x54f   : > { %v12082_v5 = vmul.f32 0.1, %v12000_v9  ;;  %v25882_v54 = vpack.c.bf16 %v13672_v42, %v13899_v1  ;;  %v12747_v19 = vcombine.high %v25856_v46, %v25856_v46  ;;  %v11953_v32 = vmul.f32 %v25674_v56, %v18652_v35 }
 0x550   : > { %v14107_v25 = vor.u32 %v14106_v15, %v14102_v38  ;;  %v12122_v12 = vsel %vm12040_vm4, %v11999_v41, %v12081_v11  ;;  %v14111_v45 = vrot.slane %v14109_v37, 1  ;;  %v13638_v26 = vrot.slane %v12712_v10, %v25287_v39 }
 0x551   : > { %v12123_v23 = vsel %vm12041_vm1, %v12000_v9, %v12082_v5  ;;  %v12748_v14 = vcombine.high %v12122_v12, %v12122_v12  ;;  %v12755_v61 = vrot.slane %v12122_v12, %v25287_v39  ;;  %v12001_v44 = vadd.f32 %v25690_v13, %v11953_v32 }
 0x552   : > { %v12765_v24 = vcombine.high %v12123_v23, %v12123_v23  ;;  %v12772_v62 = vrot.slane %v12123_v23, %v25287_v39  ;;  %v25891_v3 = vsel %vm13956_vm14, %v14107_v25, %v14111_v45  ;;  %v11954_v34 = vmul.f32 %v25674_v56, %v18653_v16 }
 0x553   : > { %v13898_v4 = vsel %vm13010_vm8, %v13638_v26, 0.0  ;;  %v12762_v38 = vrot.slane %v12748_v14, %v25287_v39  ;;  %v12763_v29 = vcombine.high %v12755_v61, %v12755_v61  ;;  %v13680_v10 = vcombine.low %v12747_v19, %v12755_v61  ;;  %18336 = vmatprep.mubr.msk.bf16.mxu1 %vm4355_vm2, %v25891_v3 }
 0x554   : > { %v12779_v1 = vrot.slane %v12765_v24, %v25287_v39  ;;  %v12780_v41 = vcombine.high %v12772_v62, %v12772_v62  ;;  %v12083_v42 = vmul.f32 0.1, %v12001_v44  ;;  %vm12042_vm5 = vcmp.gt.f32.partialorder %v12001_v44, 0.0 }
 0x555   : > { %v13681_v9 = vcombine.low %v12763_v29, %v12762_v38  ;;  %v12764_v35 = vcombine.high %v12762_v38, %v12762_v38  ;;  %v25901_v37 = vpack.c.bf16 %v13898_v4, %v13898_v4  ;;  %v13688_v16 = vrot.slane %v13680_v10, %v25287_v39 }
 0x556   : > { %v13698_v15 = vcombine.low %v12780_v41, %v12779_v1  ;;  %v12002_v19 = vadd.f32 %v25690_v13, %v11954_v34  ;;  %v14116_v32 = vshll.u32 %v25847_v51, 16  ;;  %v12124_v45 = vsel %vm12042_vm5, %v12001_v44, %v12083_v42 }
 0x557   : > { %v13695_v11 = vrot.slane %v13681_v9, %v25287_v39  ;;  %v13697_v5 = vcombine.low %v12764_v35, %v12772_v62  ;;  %v14114_v26 = vshrl.u32 %v25847_v51, 16  ;;  %v14121_v61 = vshll.u32 %v25901_v37, 16 }
 0x558   : > { %v13712_v25 = vrot.slane %v13698_v15, %v25287_v39  ;;  %v14118_v14 = vrot.slane %v14116_v32, 1  ;;  %vm12043_vm7 = vcmp.gt.f32.partialorder %v12002_v19, 0.0  ;;  %v12084_v62 = vmul.f32 0.1, %v12002_v19 }
 0x559   : > { %v13696_v12 = vcombine.low %v13688_v16, %v13695_v11  ;;  %v13705_v23 = vrot.slane %v13697_v5, %v25287_v39  ;;  %v12781_v34 = vcombine.high %v12779_v1, %v12779_v1  ;;  %v12782_v38 = vcombine.high %v12124_v45, %v12124_v45 }
 0x55a   : > { %v14119_v29 = vor.u32 %v14118_v14, %v14114_v26  ;;  %v14123_v10 = vrot.slane %v14121_v61, 1  ;;  %v18654_v44 = vadd.f32 %v25790_v40, %v25155_v7  ;;  %v13679_v35 = vrot.slane %v25856_v46, %v25287_v39 }
 0x55b   : > { %v13902_v24 = vsel %vm12951_vm6, %v13696_v12, 0.0  ;;  %v13713_v4 = vcombine.low %v13705_v23, %v13712_v25  ;;  %v12125_v42 = vsel %vm12043_vm7, %v12002_v19, %v12084_v62  ;;  %v14128_v15 = vshll.u32 %v25882_v54, 16 }
 0x55c   : > { %v25918_v9 = vsel %vm13956_vm14, %v14119_v29, %v14123_v10  ;;  %v11955_v1 = vmul.f32 %v25674_v56, %v18654_v44  ;;  %v12796_v16 = vrot.slane %v12782_v38, %v25287_v39  ;;  %v13901_v11 = vsel %vm13010_vm8, %v13679_v35, 0.0 }
 0x55d   : > { %v25913_v41 = vpack.c.bf16 %v13713_v4, %v13902_v24  ;;  %18337 = vmatmul.mubr.msk.bf16.gmra.mrb[120].mxu1 %vm4355_vm2, %v25918_v9  ;;  %v13720_v7 = vrot.slane %v12781_v34, %v25287_v39  ;;  %v25931_v5 = vpack.c.bf16 %v13901_v11, %v13901_v11  ;;  %v14126_v46 = vshrl.u32 %v25882_v54, 16 }
 0x55e   : > { %v12003_v40 = vadd.f32 %v25690_v13, %v11955_v1  ;;  %v14130_v19 = vrot.slane %v14128_v15, 1  ;;  %v12799_v25 = vcombine.high %v12125_v42, %v12125_v42  ;;  %v12789_v12 = vrot.slane %v12124_v45, %v25287_v39 }
 0x55f   : > { %v13904_v56 = vsel %vm13010_vm8, %v13720_v7, 0.0  ;;  %v14140_v32 = vshll.u32 %v25913_v41, 16  ;;  %v14133_v14 = vshll.u32 %v25931_v5, 16  ;;  %v14138_v13 = vshrl.u32 %v25913_v41, 16 }
 0x560   : > { %v12085_v23 = vmul.f32 0.1, %v12003_v40  ;;  %v14131_v26 = vor.u32 %v14130_v19, %v14126_v46  ;;  %vm12044_vm9 = vcmp.gt.f32.partialorder %v12003_v40, 0.0  ;;  %v25939_v61 = vpack.c.bf16 %v13904_v56, %v13904_v56 }
 0x561   : > { %v14142_v24 = vrot.slane %v14140_v32, 1  ;;  %v12798_v4 = vcombine.high %v12796_v16, %v12796_v16  ;;  %v14135_v62 = vrot.slane %v14133_v14, 1  ;;  %v12806_v34 = vrot.slane %v12125_v42, %v25287_v39 }
 0x562   : > { %v12813_v38 = vrot.slane %v12799_v25, %v25287_v39  ;;  %v14145_v10 = vshll.u32 %v25939_v61, 16  ;;  %v12797_v45 = vcombine.high %v12789_v12, %v12789_v12  ;;  %v12126_v44 = vsel %vm12044_vm9, %v12003_v40, %v12085_v23 }
 0x563   : > { %v14143_v29 = vor.u32 %v14142_v24, %v14138_v13  ;;  %v25946_v35 = vsel %vm13956_vm14, %v14131_v26, %v14135_v62  ;;  %v13722_v15 = vcombine.low %v12796_v16, %v12798_v4  ;;  %v12814_v11 = vcombine.high %v12806_v34, %v12806_v34  ;;  %v13950_v13 = vld [vmem:[%s26641_s4 + $0x6] sm:$0x3]  ;;  %v28564_v62 = vld [vmem:[#allocation108_spill] sm:$0xff] }
 0x564   : > { %18340 = vmatprep.mubr.msk.bf16.mxu1 %vm4355_vm2, %v25946_v35  ;;  %v14147_v1 = vrot.slane %v14145_v10, 1  ;;  %v12815_v7 = vcombine.high %v12813_v38, %v12813_v38  ;;  %v12823_v46 = vrot.slane %v12126_v44, %v25287_v39  ;;  %v13721_v19 = vcombine.low %v12789_v12, %v12797_v45  ;;  %v28565_v44 = vld [vmem:[#allocation286_spill] sm:$0xff] }
 0x565   : > { %v19562_v40 = vmov 0.0|0.0   ;;  %v13736_v25 = vrot.slane %v13722_v15, %v25287_v39  ;;  %v13738_v56 = vcombine.low %v12806_v34, %v12814_v11  ;;  %v14721_v26 = vsel %vm4419_vm0, %v25707_v43, 0 }
 0x566   : > { %v25952_v42 = vsel %vm13956_vm14, %v14143_v29, %v14147_v1  ;;  %v13739_v32 = vcombine.low %v12813_v38, %v12815_v7  ;;  %v13761_v16 = vrot.slane %v12823_v46, %v25287_v39  ;;  %v13729_v23 = vrot.slane %v13721_v19, %v25287_v39  ;;  %v13951_v19 = vld [vmem:[%s26641_s4 + $0x8] sm:$0x3] }
 0x567   : > { %18341 = vmatmul.mubr.msk.bf16.gmra.mrb[124].mxu1 %vm4355_vm2, %v25952_v42  ;;  %v13746_v12 = vrot.slane %v13738_v56, %v25287_v39  ;;  %v26010_v22 = vrot.slane %v19562_v40, 1  ;;  %v14185_v45 = vrot.slane %v28564_v62, 1  ;;  %v14186_v1 = vrot.slane %v28565_v44, 1 }
 0x568   : > { %18346 = vmatprep.mubr.bf16.mxu1 %v19562_v40  ;;  %v13737_v14 = vcombine.low %v13729_v23, %v13736_v25  ;;  %v13753_v24 = vrot.slane %v13739_v32, %v25287_v39  ;;  %v13907_v4 = vsel %vm13010_vm8, %v13761_v16, 0.0  ;;  %vm14181_vm8 = vcmask 1046528   ;;  %v28566_v16 = vld [vmem:[#allocation6_spill] sm:$0xff] }
 0x569   : > { %v25973_v38 = vpack.c.bf16 %v13907_v4, %v13907_v4  ;;  %v14188_v15 = vrot.slane %v25359_v0, 1  ;;  %v14919_v11 = vsel %vm4419_vm0, %v13950_v13, 0  ;;  %v14189_v7 = vrot.slane %v25419_v20, 1 }
 0x56a   : > { %v13905_v34 = vsel %vm12951_vm6, %v13737_v14, 0.0  ;;  %v13754_v43 = vcombine.low %v13746_v12, %v13753_v24  ;;  %v26022_v46 = vsel %vm14181_vm8, %v14185_v45, %v14186_v1  ;;  %v14191_v20 = vrot.slane %v25384_v47, 1 }
 0x56b   : > { %v14245_v39 = vrot.slane %v25973_v38, 1  ;;  %v26030_v25 = vsel %vm14181_vm8, %v14188_v15, %v14189_v7  ;;  %v14192_v56 = vrot.slane %v25459_v18, 1  ;;  %v14194_v32 = vrot.slane %v25413_v58, 1 }
 0x56c   : > { %v25978_v29 = vpack.c.bf16 %v13754_v43, %v13905_v34  ;;  %v14195_v23 = vrot.slane %v28566_v16, 1  ;;  %v14197_v12 = vrot.slane %v25466_v63, 1  ;;  %v14200_v18 = vrot.slane %v25501_v2, 1 }
 0x56d   : > { %v14201_v4 = vrot.slane %v25578_v21, 1  ;;  %v14206_v45 = vrot.slane %v25594_v48, 1  ;;  %v14207_v21 = vrot.slane %v25697_v53, 1  ;;  %v14209_v15 = vrot.slane %v25665_v27, 1 }
 0x56e   : > { %v14244_v31 = vrot.slane %v25978_v29, 1  ;;  %v26045_v14 = vsel %vm14181_vm8, %v14194_v32, %v14195_v23  ;;  %v14213_v53 = vrot.slane %v25800_v52, 1  ;;  %v14218_v32 = vrot.slane %v25805_v60, 1 }
 0x56f   : > { %18347 = vmatmul.mubr.msk.bf16.vlgmr.msra.gmra.mrb[96].mxu1 %vm4355_vm2, %v28564_v62  ;;  %v26059_v43 = vsel %vm14181_vm8, %v14200_v18, %v14201_v4  ;;  %v26073_v1 = vsel %vm14181_vm8, %v14206_v45, %v14207_v21  ;;  %v14219_v52 = vrot.slane %v25869_v8, 1  ;;  %v14222_v18 = vrot.slane %v25901_v37, 1  ;;  %v28569_v45 = vld [vmem:[#allocation5_spill] sm:$0xff]  ;;  %v28570_v21 = vld [vmem:[#allocation10_spill] sm:$0xff] }
 0x570   : > { %18379 = vmatpush3.bf16.msra.mxu1 %v14721_v26  ;;  %18350 = vmatprep.mubr.msk.bf16.mxu1 %vm4355_vm2, %v25359_v0  ;;  %v25983_v10 = vsel %vm14181_vm8, %v14244_v31, %v14245_v39  ;;  %v26040_v26 = vsel %vm14181_vm8, %v14191_v20, %v14192_v56  ;;  %v14203_v39 = vrot.slane %v25545_v6, 1  ;;  %v14204_v31 = vrot.slane %v25629_v28, 1 }
 0x571   : > { %19446 = vmatprep.subr.msk.bf16.mxu1 %vm4419_vm0, %v13950_v13  ;;  %v28567_v13 = vld [vmem:[#allocation111_spill] sm:$0xff]  ;;  %v14210_v28 = vrot.slane %v25753_v49, 1  ;;  %v14215_v56 = vrot.slane %v25759_v55, 1  ;;  %v14216_v49 = vrot.slane %v25838_v57, 1  ;;  %v26101_v23 = vsel %vm14181_vm8, %v14218_v32, %v14219_v52 }
 0x572   : > { %v14198_v24 = vrot.slane %v28567_v13, 1  ;;  %v26068_v44 = vsel %vm14181_vm8, %v14203_v39, %v14204_v31  ;;  %v14224_v57 = vrot.slane %v25882_v54, 1  ;;  %v14225_v8 = vrot.slane %v25931_v5, 1  ;;  %v13952_v31 = vld [vmem:[%s26641_s4 + $0xa] sm:$0x3] }
 0x573   : > { %v26082_v7 = vsel %vm14181_vm8, %v14209_v15, %v14210_v28  ;;  %v26096_v16 = vsel %vm14181_vm8, %v14215_v56, %v14216_v49  ;;  %v14227_v4 = vrot.slane %v25913_v41, 1  ;;  %v14228_v39 = vrot.slane %v25939_v61, 1  ;;  %v28568_v61 = vld [vmem:[#allocation9_spill] sm:$0xff]  ;;  %v28572_v28 = vld [vmem:[#allocation8_spill] sm:$0xff] }
 0x574   : > { %v26054_v34 = vsel %vm14181_vm8, %v14197_v12, %v14198_v24  ;;  %v14221_v12 = vrot.slane %v25847_v51, 1  ;;  %v26115_v24 = vsel %vm14181_vm8, %v14224_v57, %v14225_v8  ;;  %v15118_v5 = vsel %vm4419_vm0, %v13951_v19, 0  ;;  %v28571_v15 = vld [vmem:[#allocation113_spill] sm:$0xff]  ;;  %v13954_v8 = vld [vmem:[%s26641_s4 + $0xe] sm:$0x3] }
 0x575   : > { %v26122_v37 = vsel %vm14181_vm8, %v14227_v4, %v14228_v39  ;;  %v14231_v49 = vshrl.u32 %v25978_v29, 16  ;;  %v14238_v32 = vshll.u32 %v25973_v38, 16  ;;  %v15714_v38 = vsel %vm4419_vm0, %v13954_v8, 0  ;;  %v19495_v4 = vld [vmem:[%s19643_s10 + $0x88] sm:$0xf] }
 0x576   : > { %v26110_v13 = vsel %vm14181_vm8, %v14221_v12, %v14222_v18  ;;  %v16175_v39 = vrot.slane %v19495_v4, 2 }
 0x577   : > { %18351 = vmatmul.mubr.msk.bf16.gmra.mrb[100].mxu1 %vm4355_vm2, %v25384_v47  ;;  %v14240_v12 = vrot.slane %v14238_v32, 1 }
 0x578   : > { %18354 = vmatprep.mubr.msk.bf16.mxu1 %vm4355_vm2, %v25413_v58 }
 0x57f   : > { %18355 = vmatmul.mubr.msk.bf16.gmra.mrb[104].mxu1 %vm4355_vm2, %v25466_v63 }
 0x580   : > { %18358 = vmatprep.mubr.msk.bf16.mxu1 %vm4355_vm2, %v25501_v2 }
 0x587   : > { %18359 = vmatmul.mubr.msk.bf16.gmra.mrb[108].mxu1 %vm4355_vm2, %v25545_v6 }
 0x588   : > { %18362 = vmatprep.mubr.msk.bf16.mxu1 %vm4355_vm2, %v25594_v48 }
 0x58f   : > { %18363 = vmatmul.mubr.msk.bf16.gmra.mrb[112].mxu1 %vm4355_vm2, %v25665_v27 }
 0x590   : > { %18366 = vmatprep.mubr.msk.bf16.mxu1 %vm4355_vm2, %v25701_v59 }
 0x597   : > { %18367 = vmatmul.mubr.msk.bf16.gmra.mrb[116].mxu1 %vm4355_vm2, %v25759_v55 }
 0x598   : > { %18370 = vmatprep.mubr.msk.bf16.mxu1 %vm4355_vm2, %v25805_v60 }
 0x59f   : > { %18371 = vmatmul.mubr.msk.bf16.gmra.mrb[120].mxu1 %vm4355_vm2, %v25847_v51 }
 0x5a0   : > { %18374 = vmatprep.mubr.msk.bf16.mxu1 %vm4355_vm2, %v25882_v54 }
 0x5a7   : > { %18375 = vmatmul.mubr.msk.bf16.gmra.mrb[124].mxu1 %vm4355_vm2, %v25913_v41 }
 0x5a8   : > { %18380 = vmatprep.mubr.msk.bf16.mxu1 %vm4355_vm2, %v26010_v22 }
 0x5af   : > { %18381 = vmatmul.mubr.msk.bf16.vlgmr.msra.gmra.mrb[96].mxu1 %vm4355_vm2, %v26022_v46 }
 0x5b0   : > { %18413 = vmatpush3.bf16.msra.mxu1 %v14919_v11  ;;  %18384 = vmatprep.mubr.msk.bf16.mxu1 %vm4355_vm2, %v26030_v25  ;;  %v14212_v11 = vrot.slane %v25701_v59, 1 }
 0x5b1   : > { %19447 = vmatprep.subr.msk.bf16.mxu1 %vm4419_vm0, %v13951_v19  ;;  %v13953_v19 = vld [vmem:[%s26641_s4 + $0xc] sm:$0x3] }
 0x5b2   : > { %v26087_v20 = vsel %vm14181_vm8, %v14212_v11, %v14213_v53  ;;  %v28573_v11 = vld [vmem:[#allocation7_spill] sm:$0xff]  ;;  %v14233_v53 = vshll.u32 %v25978_v29, 16  ;;  %v15515_v18 = vsel %vm4419_vm0, %v13953_v19, 0 }
 0x5b4   : > { %v14235_v56 = vrot.slane %v14233_v53, 1 }
 0x5b6   : > { %v14236_v52 = vor.u32 %v14235_v56, %v14231_v49 }
 0x5b7   : > { %18385 = vmatmul.mubr.msk.bf16.gmra.mrb[100].mxu1 %vm4355_vm2, %v26040_v26 }
 0x5b8   : > { %18388 = vmatprep.mubr.msk.bf16.mxu1 %vm4355_vm2, %v26045_v14  ;;  %v14241_v57 = vsel %vm13956_vm14, %v14236_v52, %v14240_v12 }
 0x5bf   : > { %18389 = vmatmul.mubr.msk.bf16.gmra.mrb[104].mxu1 %vm4355_vm2, %v26054_v34 }
 0x5c0   : > { %18392 = vmatprep.mubr.msk.bf16.mxu1 %vm4355_vm2, %v26059_v43 }
 0x5c7   : > { %18393 = vmatmul.mubr.msk.bf16.gmra.mrb[108].mxu1 %vm4355_vm2, %v26068_v44 }
 0x5c8   : > { %18396 = vmatprep.mubr.msk.bf16.mxu1 %vm4355_vm2, %v26073_v1 }
 0x5cf   : > { %18397 = vmatmul.mubr.msk.bf16.gmra.mrb[112].mxu1 %vm4355_vm2, %v26082_v7 }
 0x5d0   : > { %18400 = vmatprep.mubr.msk.bf16.mxu1 %vm4355_vm2, %v26087_v20 }
 0x5d7   : > { %18401 = vmatmul.mubr.msk.bf16.gmra.mrb[116].mxu1 %vm4355_vm2, %v26096_v16 }
 0x5d8   : > { %18404 = vmatprep.mubr.msk.bf16.mxu1 %vm4355_vm2, %v26101_v23 }
 0x5df   : > { %18405 = vmatmul.mubr.msk.bf16.gmra.mrb[120].mxu1 %vm4355_vm2, %v26110_v13 }
 0x5e0   : > { %18408 = vmatprep.mubr.msk.bf16.mxu1 %vm4355_vm2, %v26115_v24 }
 0x5e7   : > { %18409 = vmatmul.mubr.msk.bf16.gmra.mrb[124].mxu1 %vm4355_vm2, %v26122_v37 }
 0x5e8   : > { %18414 = vmatprep.mubr.msk.bf16.mxu1 %vm4355_vm2, %v28564_v62  ;;  %v15317_v62 = vsel %vm4419_vm0, %v13952_v31, 0 }
 0x5ef   : > { %18415 = vmatmul.mubr.msk.bf16.vlgmr.msra.gmra.mrb[96].mxu1 %vm4355_vm2, %v25359_v0 }
 0x5f0   : > { %18447 = vmatpush3.bf16.msra.mxu1 %v15118_v5  ;;  %18418 = vmatprep.mubr.msk.bf16.mxu1 %vm4355_vm2, %v25384_v47 }
 0x5f1   : > { %19448 = vmatprep.subr.msk.bf16.mxu1 %vm4419_vm0, %v13952_v31  ;;  %v19497_v31 = vld [vmem:[%s19643_s10 + $0xa8] sm:$0xff] }
 0x5f7   : > { %18419 = vmatmul.mubr.msk.bf16.gmra.mrb[100].mxu1 %vm4355_vm2, %v25413_v58 }
 0x5f8   : > { %18422 = vmatprep.mubr.msk.bf16.mxu1 %vm4355_vm2, %v25466_v63 }
 0x5ff   : > { %18423 = vmatmul.mubr.msk.bf16.gmra.mrb[104].mxu1 %vm4355_vm2, %v25501_v2 }
 0x600   : > { %18426 = vmatprep.mubr.msk.bf16.mxu1 %vm4355_vm2, %v25545_v6 }
 0x607   : > { %18427 = vmatmul.mubr.msk.bf16.gmra.mrb[108].mxu1 %vm4355_vm2, %v25594_v48 }
 0x608   : > { %18430 = vmatprep.mubr.msk.bf16.mxu1 %vm4355_vm2, %v25665_v27 }
 0x60f   : > { %18431 = vmatmul.mubr.msk.bf16.gmra.mrb[112].mxu1 %vm4355_vm2, %v25701_v59 }
 0x610   : > { %18434 = vmatprep.mubr.msk.bf16.mxu1 %vm4355_vm2, %v25759_v55 }
 0x617   : > { %18435 = vmatmul.mubr.msk.bf16.gmra.mrb[116].mxu1 %vm4355_vm2, %v25805_v60 }
 0x618   : > { %18438 = vmatprep.mubr.msk.bf16.mxu1 %vm4355_vm2, %v25847_v51 }
 0x61f   : > { %18439 = vmatmul.mubr.msk.bf16.gmra.mrb[120].mxu1 %vm4355_vm2, %v25882_v54 }
 0x620   : > { %18442 = vmatprep.mubr.msk.bf16.mxu1 %vm4355_vm2, %v25913_v41 }
 0x627   : > { %18443 = vmatmul.mubr.msk.bf16.gmra.mrb[124].mxu1 %vm4355_vm2, %v25978_v29 }
 0x628   : > { %18448 = vmatprep.mubr.msk.bf16.mxu1 %vm4355_vm2, %v28568_v61  ;;  %v16182_v61 = vrot.slane %v19497_v31, 2 }
 0x62f   : > { %18449 = vmatmul.mubr.msk.bf16.vlgmr.msra.gmra.mrb[96].mxu1 %vm4355_vm2, %v28569_v45 }
 0x630   : > { %18481 = vmatpush3.bf16.msra.mxu1 %v15317_v62  ;;  %18452 = vmatprep.mubr.msk.bf16.mxu1 %vm4355_vm2, %v28570_v21 }
 0x631   : > { %19449 = vmatprep.subr.msk.bf16.mxu1 %vm4419_vm0, %v13953_v19 }
 0x637   : > { %18453 = vmatmul.mubr.msk.bf16.gmra.mrb[100].mxu1 %vm4355_vm2, %v28571_v15 }
 0x638   : > { %18456 = vmatprep.mubr.msk.bf16.mxu1 %vm4355_vm2, %v28572_v28 }
 0x63f   : > { %18457 = vmatmul.mubr.msk.bf16.gmra.mrb[104].mxu1 %vm4355_vm2, %v25601_v36 }
 0x640   : > { %18460 = vmatprep.mubr.msk.bf16.mxu1 %vm4355_vm2, %v25648_v30 }
 0x647   : > { %18461 = vmatmul.mubr.msk.bf16.gmra.mrb[108].mxu1 %vm4355_vm2, %v25728_v33 }
 0x648   : > { %18464 = vmatprep.mubr.msk.bf16.mxu1 %vm4355_vm2, %v28573_v11 }
 0x64f   : > { %18465 = vmatmul.mubr.msk.bf16.gmra.mrb[112].mxu1 %vm4355_vm2, %v25824_v50 }
 0x650   : > { %18468 = vmatprep.mubr.msk.bf16.mxu1 %vm4355_vm2, %v25859_v17 }
 0x657   : > { %18469 = vmatmul.mubr.msk.bf16.gmra.mrb[116].mxu1 %vm4355_vm2, %v25891_v3 }
 0x658   : > { %18472 = vmatprep.mubr.msk.bf16.mxu1 %vm4355_vm2, %v25918_v9 }
 0x65f   : > { %18473 = vmatmul.mubr.msk.bf16.gmra.mrb[120].mxu1 %vm4355_vm2, %v25946_v35 }
 0x660   : > { %18476 = vmatprep.mubr.msk.bf16.mxu1 %vm4355_vm2, %v25952_v42 }
 0x667   : > { %18477 = vmatmul.mubr.msk.bf16.gmra.mrb[124].mxu1 %vm4355_vm2, %v14241_v57 }
 0x668   : > { %18482 = vmatprep.mubr.msk.bf16.mxu1 %vm4355_vm2, %v26022_v46  ;;  %v13955_v46 = vld [vmem:[%s26641_s4 + $0x10] sm:$0x3] }
 0x66f   : > { %18483 = vmatmul.mubr.msk.bf16.vlgmr.msra.gmra.mrb[96].mxu1 %vm4355_vm2, %v26030_v25 }
 0x670   : > { %18515 = vmatpush3.bf16.msra.mxu1 %v15515_v18  ;;  %18486 = vmatprep.mubr.msk.bf16.mxu1 %vm4355_vm2, %v26040_v26 }
 0x671   : > { %19450 = vmatprep.subr.msk.bf16.mxu1 %vm4419_vm0, %v13954_v8 }
 0x677   : > { %18487 = vmatmul.mubr.msk.bf16.gmra.mrb[100].mxu1 %vm4355_vm2, %v26045_v14 }
 0x678   : > { %18490 = vmatprep.mubr.msk.bf16.mxu1 %vm4355_vm2, %v26054_v34 }
 0x67f   : > { %18491 = vmatmul.mubr.msk.bf16.gmra.mrb[104].mxu1 %vm4355_vm2, %v26059_v43 }
 0x680   : > { %18494 = vmatprep.mubr.msk.bf16.mxu1 %vm4355_vm2, %v26068_v44 }
 0x687   : > { %18495 = vmatmul.mubr.msk.bf16.gmra.mrb[108].mxu1 %vm4355_vm2, %v26073_v1 }
 0x688   : > { %18498 = vmatprep.mubr.msk.bf16.mxu1 %vm4355_vm2, %v26082_v7 }
 0x68f   : > { %18499 = vmatmul.mubr.msk.bf16.gmra.mrb[112].mxu1 %vm4355_vm2, %v26087_v20 }
 0x690   : > { %18502 = vmatprep.mubr.msk.bf16.mxu1 %vm4355_vm2, %v26096_v16 }
 0x697   : > { %18503 = vmatmul.mubr.msk.bf16.gmra.mrb[116].mxu1 %vm4355_vm2, %v26101_v23 }
 0x698   : > { %18506 = vmatprep.mubr.msk.bf16.mxu1 %vm4355_vm2, %v26110_v13 }
 0x69f   : > { %18507 = vmatmul.mubr.msk.bf16.gmra.mrb[120].mxu1 %vm4355_vm2, %v26115_v24 }
 0x6a0   : > { %18510 = vmatprep.mubr.msk.bf16.mxu1 %vm4355_vm2, %v26122_v37 }
 0x6a7   : > { %18511 = vmatmul.mubr.msk.bf16.gmra.mrb[124].mxu1 %vm4355_vm2, %v25983_v10 }
 0x6a8   : > { %18516 = vmatprep.mubr.msk.bf16.mxu1 %vm4355_vm2, %v25359_v0  ;;  %v28574_v0 = vld [vmem:[#allocation285_spill] sm:$0xff] }
 0x6af   : > { %18517 = vmatmul.mubr.msk.bf16.vlgmr.msra.gmra.mrb[96].mxu1 %vm4355_vm2, %v25384_v47  ;;  %v28575_v47 = vld [vmem:[#allocation310_spill] sm:$0xff] }
 0x6b0   : > { %18549 = vmatpush3.bf16.msra.mxu1 %v15714_v38  ;;  %18520 = vmatprep.mubr.msk.bf16.mxu1 %vm4355_vm2, %v25413_v58  ;;  %v11588_v58 = vcombine.low %v28575_v47, %v28574_v0  ;;  %v19501_v38 = vld [vmem:[%s19643_s10 + $0xb8] sm:$0xf] }
 0x6b1   : > { %19451 = vmatprep.subr.msk.bf16.mxu1 %vm4419_vm0, %v13955_v46 }
 0x6b7   : > { %18521 = vmatmul.mubr.msk.bf16.gmra.mrb[100].mxu1 %vm4355_vm2, %v25466_v63  ;;  %v28576_v63 = vld [vmem:[#allocation4_spill] sm:$0xff] }
 0x6b8   : > { %18524 = vmatprep.mubr.msk.bf16.mxu1 %vm4355_vm2, %v25501_v2 }
 0x6bf   : > { %18525 = vmatmul.mubr.msk.bf16.gmra.mrb[104].mxu1 %vm4355_vm2, %v25545_v6  ;;  %v15913_v6 = vsel %vm4419_vm0, %v13955_v46, 0  ;;  %vm16156_vm0 = vcmask 1045504   ;;  %v16185_v46 = vrot.slane %v19501_v38, 2 }
 0x6c0   : > { %18528 = vmatprep.mubr.msk.bf16.mxu1 %vm4355_vm2, %v25594_v48  ;;  %v11595_v48 = vrot.slane %v11588_v58, %v28576_v63 }
 0x6c2   : > { %v11602_v2 = vrot.slane %v11595_v48, %v28576_v63 }
 0x6c4   : > { %18307 = vmatmul.mubr.msk.bf16.gmra.mrb[124].mxu0 %vm4355_vm2, %v11602_v2 }
 0x6c7   : > { %18529 = vmatmul.mubr.msk.bf16.gmra.mrb[108].mxu1 %vm4355_vm2, %v25665_v27 }
 0x6c8   : > { %18532 = vmatprep.mubr.msk.bf16.mxu1 %vm4355_vm2, %v25701_v59 }
 0x6cf   : > { %18533 = vmatmul.mubr.msk.bf16.gmra.mrb[112].mxu1 %vm4355_vm2, %v25759_v55  ;;  %v19485_v55 = vld [vmem:[%s19643_s10 + $0x48] sm:$0xff] }
 0x6d0   : > { %18536 = vmatprep.mubr.msk.bf16.mxu1 %vm4355_vm2, %v25805_v60  ;;  %v16162_v60 = vrot.slane %v19485_v55, 2 }
 0x6d7   : > { %18537 = vmatmul.mubr.msk.bf16.gmra.mrb[116].mxu1 %vm4355_vm2, %v25847_v51 }
 0x6d8   : > { %18540 = vmatprep.mubr.msk.bf16.mxu1 %vm4355_vm2, %v25882_v54 }
 0x6df   : > { %18541 = vmatmul.mubr.msk.bf16.gmra.mrb[120].mxu1 %vm4355_vm2, %v25913_v41 }
 0x6e0   : > { %18544 = vmatprep.mubr.msk.bf16.mxu1 %vm4355_vm2, %v25978_v29  ;;  %v19490_v29 = vld [vmem:[%s19643_s10 + $0x40] sm:$0xf] }
 0x6e7   : > { %18545 = vmatmul.mubr.bf16.gmra.mrb[124].mxu1 %v19562_v40 }
 0x6e8   : > { %18550 = vmatprep.mubr.msk.bf16.mxu1 %vm4355_vm2, %v28569_v45  ;;  %v19498_v45 = vld [vmem:[%s19643_s10 + $0xb0] sm:$0xff] }
 0x6ef   : > { %18551 = vmatmul.mubr.msk.bf16.vlgmr.msra.gmra.mrb[96].mxu1 %vm4355_vm2, %v28570_v21  ;;  %v16183_v21 = vrot.slane %v19498_v45, 2 }
 0x6f0   : > { %18583 = vmatpush3.bf16.msra.mxu1 %v15913_v6  ;;  %18554 = vmatprep.mubr.msk.bf16.mxu1 %vm4355_vm2, %v28571_v15  ;;  %v19499_v15 = vld [vmem:[%s19643_s10 + $0x90] sm:$0xff] }
 0x6f1   : > { %v26393_v6 = vsel %vm16156_vm0, %v16182_v61, %v16183_v21  ;;  %v19507_v61 = vld [vmem:[%s19643_s10 + $0xe8] sm:$0xf] }
 0x6f7   : > { %18555 = vmatmul.mubr.msk.bf16.gmra.mrb[100].mxu1 %vm4355_vm2, %v28572_v28  ;;  %v16177_v28 = vrot.slane %v19499_v15, 2 }
 0x6f8   : > { %18558 = vmatprep.mubr.msk.bf16.mxu1 %vm4355_vm2, %v25601_v36  ;;  %v28577_v36 = vld [vmem:[#allocation284_spill] sm:$0xff] }
 0x6ff   : > { %18559 = vmatmul.mubr.msk.bf16.gmra.mrb[104].mxu1 %vm4355_vm2, %v25648_v30 }
 0x700   : > { %18562 = vmatprep.mubr.msk.bf16.mxu1 %vm4355_vm2, %v25728_v33 }
 0x707   : > { %18563 = vmatmul.mubr.msk.bf16.gmra.mrb[108].mxu1 %vm4355_vm2, %v28573_v11  ;;  %v26376_v11 = vld [vmem:[%s19643_s10 + $0x98] sm:$0xff] }
 0x708   : > { %18566 = vmatprep.mubr.msk.bf16.mxu1 %vm4355_vm2, %v25824_v50  ;;  %v19486_v50 = vld [vmem:[%s19643_s10 + $0x50] sm:$0xff]  ;;  %v16178_v53 = vrot.slane %v26376_v11, 2 }
 0x709   : > { %v16163_v51 = vrot.slane %v19486_v50, 2 }
 0x70b   : > { %v16164_v40 = vsel %vm16156_vm0, %v16162_v60, %v16163_v51 }
 0x70f   : > { %18567 = vmatmul.mubr.msk.bf16.gmra.mrb[112].mxu1 %vm4355_vm2, %v25859_v17  ;;  %v19487_v17 = vld [vmem:[%s19643_s10 + $0x30] sm:$0xff] }
 0x710   : > { %18570 = vmatprep.mubr.msk.bf16.mxu1 %vm4355_vm2, %v25891_v3  ;;  %v16157_v54 = vrot.slane %v19487_v17, 2  ;;  %v19488_v3 = vld [vmem:[%s19643_s10 + $0x38] sm:$0xff] }
 0x711   : > { %v16158_v41 = vrot.slane %v19488_v3, 2 }
 0x717   : > { %18571 = vmatmul.mubr.msk.bf16.gmra.mrb[116].mxu1 %vm4355_vm2, %v25918_v9  ;;  %v19489_v9 = vld [vmem:[%s19643_s10 + $0x58] sm:$0xf] }
 0x718   : > { %18574 = vmatprep.mubr.msk.bf16.mxu1 %vm4355_vm2, %v25946_v35  ;;  %v16165_v35 = vrot.slane %v19489_v9, 2 }
 0x71f   : > { %18575 = vmatmul.mubr.msk.bf16.gmra.mrb[120].mxu1 %vm4355_vm2, %v25952_v42  ;;  %v26353_v42 = vld [vmem:[%s26642_s5] ss:$0 sm:$0xff] }
 0x720   : > { %18578 = vmatprep.mubr.msk.bf16.mxu1 %vm4355_vm2, %v14241_v57 }
 0x727   : > { %18579 = vmatmul.mubr.msk.bf16.gmra.mrb[124].mxu1 %vm4355_vm2, %v28577_v36  ;;  %v26398_v36 = vsel %vm16156_vm0, %v16177_v28, %v16178_v53  ;;  %v19509_v28 = vld [vmem:[%s19643_s10 + $0x108] sm:$0xff] }
 0x728   : > { %18584 = vmatprep.mubr.msk.bf16.mxu1 %vm4355_vm2, %v26030_v25 }
 0x72f   : > { %18585 = vmatmul.mubr.msk.bf16.vlgmr.msra.gmra.mrb[96].mxu1 %vm4355_vm2, %v26040_v26  ;;  %v19492_v26 = vld [vmem:[%s19643_s10 + $0x80] sm:$0xff] }
 0x730   : > { %18588 = vmatprep.mubr.msk.bf16.mxu1 %vm4355_vm2, %v26045_v14  ;;  %v16173_v14 = vrot.slane %v19492_v26, 2 }
 0x732   : > { %v16176_v58 = vsel %vm16156_vm0, %v16173_v14, %v16175_v39  ;;  %v19506_v39 = vld [vmem:[%s19643_s10 + $0xc8] sm:$0xff] }
 0x737   : > { %18589 = vmatmul.mubr.msk.bf16.gmra.mrb[100].mxu1 %vm4355_vm2, %v26054_v34 }
 0x738   : > { %18592 = vmatprep.mubr.msk.bf16.mxu1 %vm4355_vm2, %v26059_v43  ;;  %v26362_v43 = vld [vmem:[%s26643_s6] ss:$0 sm:$0xff] }
 0x73f   : > { %18593 = vmatmul.mubr.msk.bf16.gmra.mrb[104].mxu1 %vm4355_vm2, %v26068_v44  ;;  %v16159_v44 = vsel %vm16156_vm0, %v16157_v54, %v16158_v41 }
 0x740   : > { %18596 = vmatprep.mubr.msk.bf16.mxu1 %vm4355_vm2, %v26073_v1  ;;  %v16166_v1 = vsel %vm16156_vm0, %v16163_v51, %v16165_v35  ;;  %v26410_v51 = vsel %vm16156_vm0, %v16183_v21, %v16185_v46 }
 0x747   : > { %18597 = vmatmul.mubr.msk.bf16.gmra.mrb[108].mxu1 %vm4355_vm2, %v26082_v7  ;;  %v19493_v7 = vld [vmem:[%s19643_s10 + $0x60] sm:$0xff] }
 0x748   : > { %18600 = vmatprep.mubr.msk.bf16.mxu1 %vm4355_vm2, %v26087_v20  ;;  %v16167_v20 = vrot.slane %v19493_v7, 2 }
 0x74f   : > { %18601 = vmatmul.mubr.msk.bf16.gmra.mrb[112].mxu1 %vm4355_vm2, %v26096_v16  ;;  %v19494_v16 = vld [vmem:[%s19643_s10 + $0x68] sm:$0xff] }
 0x750   : > { %18604 = vmatprep.mubr.msk.bf16.mxu1 %vm4355_vm2, %v26101_v23  ;;  %v16168_v23 = vrot.slane %v19494_v16, 2 }
 0x752   : > { %v16169_v8 = vsel %vm16156_vm0, %v16167_v20, %v16168_v23  ;;  %v19504_v20 = vld [vmem:[%s19643_s10 + $0xe0] sm:$0xff] }
 0x753   : > { %v16193_v16 = vrot.slane %v19504_v20, 2 }
 0x757   : > { %18605 = vmatmul.mubr.msk.bf16.gmra.mrb[116].mxu1 %vm4355_vm2, %v26110_v13 }
 0x758   : > { %18608 = vmatprep.mubr.msk.bf16.mxu1 %vm4355_vm2, %v26115_v24 }
 0x75f   : > { %18609 = vmatmul.mubr.msk.bf16.gmra.mrb[120].mxu1 %vm4355_vm2, %v26122_v37  ;;  %v19496_v37 = vld [vmem:[%s19643_s10 + $0x70] sm:$0xf] }
 0x760   : > { %18612 = vmatprep.mubr.msk.bf16.mxu1 %vm4355_vm2, %v25983_v10  ;;  %v16160_v10 = vrot.slane %v19490_v29, 2  ;;  %v16170_v5 = vrot.slane %v19496_v37, 2  ;;  %v16188_v37 = vrot.slane %v19506_v39, 2 }
 0x762   : > { %v16161_v52 = vsel %vm16156_vm0, %v16158_v41, %v16160_v10  ;;  %v16171_v63 = vsel %vm16156_vm0, %v16168_v23, %v16170_v5 }
 0x767   : > { %18613 = vmatmul.mubr.msk.bf16.gmra.mrb[124].mxu1 %vm4355_vm2, %v26010_v22  ;;  %v19491_v22 = vld [vmem:[%s19643_s10 + $0x78] sm:$0xff] }
 0x768   : > { %v16172_v25 = vrot.slane %v19491_v22, 2 }
 0x76a   : > { %v16174_v12 = vsel %vm16156_vm0, %v16172_v25, %v16173_v14  ;;  %v19503_v14 = vld [vmem:[%s19643_s10 + $0xd8] sm:$0xff] }
 0x797   : > { %v11863_v30 = vpop.f32.mrb[124].mxu0 }
 0x798   : > { %v18308_v27 = vpop.f32.mrb[125].mxu0 }
 0x799   : > { %v11866_v59 = vpop.f32.mrb[126].mxu0 }
 0x79a   : > { %v18309_v33 = vpop.f32.mrb[127].mxu0  ;;  %v26406_v59 = vld [vmem:[%s19643_s10 + $0xa0] sm:$0xf] }
 0x79b   : > { %v16180_v33 = vrot.slane %v26406_v59, 2 }
 0x802   : > { %v18586_v34 = vpop.f32.mrb[96].mxu1 }
 0x803   : > { %v16278_v13 = vmul.f32 %v18586_v34, %v26353_v42  ;;  %v15949_v24 = vpop.f32.mrb[97].mxu1  ;;  %v16192_v34 = vrot.slane %v19503_v14, 2 }
 0x804   : > { %v16276_v62 = vmul.f32 %v26353_v42, %v15949_v24  ;;  %v18587_v19 = vpop.f32.mrb[98].mxu1  ;;  %v19505_v24 = vld [vmem:[%s19643_s10 + $0xc0] sm:$0xff] }
 0x805   : > { %v16317_v56 = vadd.f32 %v26362_v43, %v16278_v13  ;;  %v16279_v49 = vmul.f32 %v18587_v19, %v26353_v42  ;;  %v15952_v32 = vpop.f32.mrb[99].mxu1  ;;  %v16187_v4 = vrot.slane %v19505_v24, 2  ;;  %v19508_v19 = vld [vmem:[%s19643_s10 + $0xd0] sm:$0xf] }
 0x806   : > { %v16315_v57 = vadd.f32 %v26362_v43, %v16276_v62  ;;  %v16277_v18 = vmul.f32 %v26353_v42, %v15952_v32  ;;  %v16195_v62 = vrot.slane %v19507_v61, 2  ;;  %v16190_v45 = vrot.slane %v19508_v19, 2 }
 0x807   : > { %v16349_v0 = vadd.f32 %v16317_v56, %v16164_v40  ;;  %v16318_v47 = vadd.f32 %v26362_v43, %v16279_v49  ;;  %v16202_v56 = vrot.slane %v19509_v28, 2  ;;  %v16189_v11 = vsel %vm16156_vm0, %v16187_v4, %v16188_v37 }
 0x808   : > { %v16347_v48 = vadd.f32 %v16315_v57, %v16159_v44  ;;  %v16316_v2 = vadd.f32 %v26362_v43, %v16277_v18 }
 0x809   : > { %vm16381_vm6 = vcmp.gt.f32.partialorder %v16349_v0, 0.0  ;;  %v16413_v30 = vmul.f32 0.1, %v16349_v0  ;;  %v16350_v27 = vadd.f32 %v16318_v47, %v16166_v1 }
 0x80a   : > { %vm16379_vm14 = vcmp.gt.f32.partialorder %v16347_v48, 0.0  ;;  %v16411_v55 = vmul.f32 0.1, %v16347_v48  ;;  %v16348_v60 = vadd.f32 %v16316_v2, %v16161_v52  ;;  %v18590_v50 = vpop.f32.mrb[100].mxu1 }
 0x80b   : > { %v16445_v17 = vsel %vm16381_vm6, %v16349_v0, %v16413_v30  ;;  %vm16382_vm10 = vcmp.gt.f32.partialorder %v16350_v27, 0.0  ;;  %v16414_v54 = vmul.f32 0.1, %v16350_v27  ;;  %v16282_v3 = vmul.f32 %v18590_v50, %v26353_v42  ;;  %v15965_v41 = vpop.f32.mrb[101].mxu1 }
 0x80c   : > { %16477 = vst.msk [vmem:[%s26403_s23 + $0x10] sm:$0xff] %vm4355_vm2, %v16445_v17  ;;  %v16443_v9 = vsel %vm16379_vm14, %v16347_v48, %v16411_v55  ;;  %vm16380_vm11 = vcmp.gt.f32.partialorder %v16348_v60, 0.0  ;;  %v16412_v35 = vmul.f32 0.1, %v16348_v60  ;;  %v16280_v40 = vmul.f32 %v26353_v42, %v15965_v41  ;;  %v18591_v29 = vpop.f32.mrb[102].mxu1 }
 0x80d   : > { %16475 = vst.msk [vmem:[%s26403_s23] sm:$0xff] %vm4355_vm2, %v16443_v9  ;;  %v16446_v10 = vsel %vm16382_vm10, %v16350_v27, %v16414_v54  ;;  %v16321_v22 = vadd.f32 %v26362_v43, %v16282_v3  ;;  %v16283_v25 = vmul.f32 %v18591_v29, %v26353_v42  ;;  %v15968_v26 = vpop.f32.mrb[103].mxu1  ;;  %v16181_v55 = vsel %vm16156_vm0, %v16178_v53, %v16180_v33  ;;  %v19511_v29 = vld [vmem:[%s19643_s10 + $0xf0] sm:$0xff] }
 0x80e   : > { %16478 = vst.msk [vmem:[%s26403_s23 + $0x18] sm:$0xff] %vm4355_vm2, %v16446_v10  ;;  %v16444_v44 = vsel %vm16380_vm11, %v16348_v60, %v16412_v35  ;;  %v16319_v1 = vadd.f32 %v26362_v43, %v16280_v40  ;;  %v16281_v7 = vmul.f32 %v26353_v42, %v15968_v26  ;;  %v16194_v54 = vsel %vm16156_vm0, %v16192_v34, %v16193_v16  ;;  %v26474_v26 = vld [vmem:[%s19643_s10 + $0xf8] sm:$0xff] }
 0x80f   : > { %16476 = vst.msk [vmem:[%s26403_s23 + $0x8] sm:$0xff] %vm4355_vm2, %v16444_v44  ;;  %v16353_v23 = vadd.f32 %v16321_v22, %v16174_v12  ;;  %v16322_v13 = vadd.f32 %v26362_v43, %v16283_v25  ;;  %v26436_v12 = vld [vmem:[%s19643_s10 + $0x110] sm:$0xff]  ;;  %v16196_v53 = vsel %vm16156_vm0, %v16193_v16, %v16195_v62  ;;  %v16191_v9 = vsel %vm16156_vm0, %v16188_v37, %v16190_v45  ;;  %v19513_v37 = vld [vmem:[%s19643_s10 + $0x118] sm:$0xf] }
 0x810   : > { %v16351_v5 = vadd.f32 %v16319_v1, %v16169_v8  ;;  %v16320_v31 = vadd.f32 %v26362_v43, %v16281_v7  ;;  %v16203_v57 = vrot.slane %v26436_v12, 2  ;;  %v16197_v10 = vrot.slane %v19511_v29, 2 }
 0x811   : > { %vm16385_vm12 = vcmp.gt.f32.partialorder %v16353_v23, 0.0  ;;  %v16417_v21 = vmul.f32 0.1, %v16353_v23  ;;  %v16354_v15 = vadd.f32 %v16322_v13, %v16176_v58  ;;  %v16198_v14 = vrot.slane %v26474_v26, 2 }
 0x812   : > { %vm16383_vm13 = vcmp.gt.f32.partialorder %v16351_v5, 0.0  ;;  %v16415_v49 = vmul.f32 0.1, %v16351_v5  ;;  %v16352_v32 = vadd.f32 %v16320_v31, %v16171_v63  ;;  %v18594_v52 = vpop.f32.mrb[104].mxu1  ;;  %v26469_v35 = vsel %vm16156_vm0, %v16202_v56, %v16203_v57  ;;  %v19515_v56 = vld [vmem:[%s19643_s10 + $0x138] sm:$0xff] }
 0x813   : > { %v16449_v18 = vsel %vm16385_vm12, %v16353_v23, %v16417_v21  ;;  %vm16386_vm15 = vcmp.gt.f32.partialorder %v16354_v15, 0.0  ;;  %v16418_v8 = vmul.f32 0.1, %v16354_v15  ;;  %v16286_v38 = vmul.f32 %v18594_v52, %v26353_v42  ;;  %v15981_v46 = vpop.f32.mrb[105].mxu1 }
 0x814   : > { %16481 = vst.msk [vmem:[%s26403_s23 + $0x30] sm:$0xff] %vm4355_vm2, %v16449_v18  ;;  %v16447_v0 = vsel %vm16383_vm13, %v16351_v5, %v16415_v49  ;;  %vm16384_vm3 = vcmp.gt.f32.partialorder %v16352_v32, 0.0  ;;  %v16416_v47 = vmul.f32 0.1, %v16352_v32  ;;  %v16284_v58 = vmul.f32 %v26353_v42, %v15981_v46  ;;  %v18595_v63 = vpop.f32.mrb[106].mxu1  ;;  %v19516_v18 = vld [vmem:[%s19643_s10 + $0x140] sm:$0xff] }
 0x815   : > { %16479 = vst.msk [vmem:[%s26403_s23 + $0x20] sm:$0xff] %vm4355_vm2, %v16447_v0  ;;  %v16450_v48 = vsel %vm16386_vm15, %v16354_v15, %v16418_v8  ;;  %v16325_v2 = vadd.f32 %v26362_v43, %v16286_v38  ;;  %v16287_v30 = vmul.f32 %v18595_v63, %v26353_v42  ;;  %v15984_v27 = vpop.f32.mrb[107].mxu1  ;;  %v16205_v5 = vrot.slane %v19513_v37, 2  ;;  %v19514_v15 = vld [vmem:[%s19643_s10 + $0x100] sm:$0xf] }
 0x816   : > { %16482 = vst.msk [vmem:[%s26403_s23 + $0x38] sm:$0xff] %vm4355_vm2, %v16450_v48  ;;  %v16448_v60 = vsel %vm16384_vm3, %v16352_v32, %v16416_v47  ;;  %v16323_v50 = vadd.f32 %v26362_v43, %v16284_v58  ;;  %v16285_v17 = vmul.f32 %v26353_v42, %v15984_v27  ;;  %v16199_v19 = vsel %vm16156_vm0, %v16197_v10, %v16198_v14  ;;  %v19517_v38 = vld [vmem:[%s19643_s10 + $0x120] sm:$0xff]  ;;  %v26502_v58 = vld [vmem:[%s19643_s10 + $0x128] sm:$0xff] }
 0x817   : > { %16480 = vst.msk [vmem:[%s26403_s23 + $0x28] sm:$0xff] %vm4355_vm2, %v16448_v60  ;;  %v16357_v3 = vadd.f32 %v16325_v2, %v26393_v6  ;;  %v16326_v59 = vadd.f32 %v26362_v43, %v16287_v30  ;;  %v16200_v28 = vrot.slane %v19514_v15, 2  ;;  %v16212_v49 = vrot.slane %v19515_v56, 2  ;;  %v19519_v27 = vld [vmem:[%s19643_s10 + $0x148] sm:$0xf] }
 0x818   : > { %v16355_v33 = vadd.f32 %v16323_v50, %v26398_v36  ;;  %v16324_v41 = vadd.f32 %v26362_v43, %v16285_v17  ;;  %v16213_v8 = vrot.slane %v19516_v18, 2  ;;  %v16207_v46 = vrot.slane %v19517_v38, 2 }
 0x819   : > { %vm16389_vm4 = vcmp.gt.f32.partialorder %v16357_v3, 0.0  ;;  %v16421_v6 = vmul.f32 0.1, %v16357_v3  ;;  %v16358_v40 = vadd.f32 %v16326_v59, %v26410_v51  ;;  %v16208_v63 = vrot.slane %v26502_v58, 2 }
 0x81a   : > { %vm16387_vm1 = vcmp.gt.f32.partialorder %v16355_v33, 0.0  ;;  %v16419_v22 = vmul.f32 0.1, %v16355_v33  ;;  %v16356_v36 = vadd.f32 %v16324_v41, %v16181_v55  ;;  %v18598_v25 = vpop.f32.mrb[108].mxu1  ;;  %v16215_v55 = vrot.slane %v19519_v27, 2 }
 0x81b   : > { %v16453_v34 = vsel %vm16389_vm4, %v16357_v3, %v16421_v6  ;;  %vm16390_vm5 = vcmp.gt.f32.partialorder %v16358_v40, 0.0  ;;  %v16422_v44 = vmul.f32 0.1, %v16358_v40  ;;  %v16290_v1 = vmul.f32 %v18598_v25, %v26353_v42  ;;  %v15997_v7 = vpop.f32.mrb[109].mxu1  ;;  %v19525_v27 = vld [vmem:[%s19643_s10 + $0x178] sm:$0xf] }
 0x81c   : > { %16485 = vst.msk [vmem:[%s26403_s23 + $0x50] sm:$0xff] %vm4355_vm2, %v16453_v34  ;;  %v16451_v51 = vsel %vm16387_vm1, %v16355_v33, %v16419_v22  ;;  %vm16388_vm7 = vcmp.gt.f32.partialorder %v16356_v36, 0.0  ;;  %v16420_v20 = vmul.f32 0.1, %v16356_v36  ;;  %v16288_v16 = vmul.f32 %v26353_v42, %v15997_v7  ;;  %v18599_v23 = vpop.f32.mrb[110].mxu1 }
 0x81d   : > { %16483 = vst.msk [vmem:[%s26403_s23 + $0x40] sm:$0xff] %vm4355_vm2, %v16451_v51  ;;  %v16454_v13 = vsel %vm16390_vm5, %v16358_v40, %v16422_v44  ;;  %v16329_v24 = vadd.f32 %v26362_v43, %v16290_v1  ;;  %v16291_v4 = vmul.f32 %v18599_v23, %v26353_v42  ;;  %v16000_v39 = vpop.f32.mrb[111].mxu1  ;;  %v16201_v22 = vsel %vm16156_vm0, %v16198_v14, %v16200_v28  ;;  %v19520_v1 = vld [vmem:[%s19643_s10 + $0x130] sm:$0xf] }
 0x81e   : > { %16486 = vst.msk [vmem:[%s26403_s23 + $0x58] sm:$0xff] %vm4355_vm2, %v16454_v13  ;;  %v16452_v31 = vsel %vm16388_vm7, %v16356_v36, %v16420_v20  ;;  %v16327_v61 = vadd.f32 %v26362_v43, %v16288_v16  ;;  %v16289_v62 = vmul.f32 %v26353_v42, %v16000_v39  ;;  %v16214_v25 = vsel %vm16156_vm0, %v16212_v49, %v16213_v8  ;;  %v19521_v20 = vld [vmem:[%s19643_s10 + $0x168] sm:$0xff] }
 0x81f   : > { %16484 = vst.msk [vmem:[%s26403_s23 + $0x48] sm:$0xff] %vm4355_vm2, %v16452_v31  ;;  %v16361_v45 = vadd.f32 %v16329_v24, %v16194_v54  ;;  %v16330_v21 = vadd.f32 %v26362_v43, %v16291_v4  ;;  %v16209_v34 = vsel %vm16156_vm0, %v16207_v46, %v16208_v63  ;;  %v16216_v14 = vsel %vm16156_vm0, %v16213_v8, %v16215_v55  ;;  %v26537_v4 = vld [vmem:[%s19643_s10 + $0x170] sm:$0xff] }
 0x820   : > { %v16359_v32 = vadd.f32 %v16327_v61, %v16189_v11  ;;  %v16328_v52 = vadd.f32 %v26362_v43, %v16289_v62  ;;  %v16210_v7 = vrot.slane %v19520_v1, 2  ;;  %v16222_v16 = vrot.slane %v19521_v20, 2 }
 0x821   : > { %vm16393_vm9 = vcmp.gt.f32.partialorder %v16361_v45, 0.0  ;;  %v16425_v0 = vmul.f32 0.1, %v16361_v45  ;;  %v16362_v47 = vadd.f32 %v16330_v21, %v16196_v53  ;;  %v16223_v39 = vrot.slane %v26537_v4, 2 }
 0x822   : > { %vm16391_vm8 = vcmp.gt.f32.partialorder %v16359_v32, 0.0  ;;  %v16423_v48 = vmul.f32 0.1, %v16359_v32  ;;  %v16360_v2 = vadd.f32 %v16328_v52, %v16191_v9  ;;  %v18602_v30 = vpop.f32.mrb[112].mxu1  ;;  %v16206_v9 = vsel %vm16156_vm0, %v16203_v57, %v16205_v5 }
 0x823   : > { %v16457_v60 = vsel %vm16393_vm9, %v16361_v45, %v16425_v0  ;;  %vm16394_vm6 = vcmp.gt.f32.partialorder %v16362_v47, 0.0  ;;  %v16426_v50 = vmul.f32 0.1, %v16362_v47  ;;  %v16294_v17 = vmul.f32 %v18602_v30, %v26353_v42  ;;  %v16013_v54 = vpop.f32.mrb[113].mxu1 }
 0x824   : > { %16489 = vst.msk [vmem:[%s26403_s23 + $0x70] sm:$0xff] %vm4355_vm2, %v16457_v60  ;;  %v16455_v3 = vsel %vm16391_vm8, %v16359_v32, %v16423_v48  ;;  %vm16392_vm14 = vcmp.gt.f32.partialorder %v16360_v2, 0.0  ;;  %v16424_v59 = vmul.f32 0.1, %v16360_v2  ;;  %v16292_v11 = vmul.f32 %v26353_v42, %v16013_v54  ;;  %v18603_v53 = vpop.f32.mrb[114].mxu1 }
 0x825   : > { %16487 = vst.msk [vmem:[%s26403_s23 + $0x60] sm:$0xff] %vm4355_vm2, %v16455_v3  ;;  %v16458_v33 = vsel %vm16394_vm6, %v16362_v47, %v16426_v50  ;;  %v16333_v41 = vadd.f32 %v26362_v43, %v16294_v17  ;;  %v16295_v6 = vmul.f32 %v18603_v53, %v26353_v42  ;;  %v16016_v40 = vpop.f32.mrb[115].mxu1  ;;  %v16211_v32 = vsel %vm16156_vm0, %v16208_v63, %v16210_v7  ;;  %v19523_v47 = vld [vmem:[%s19643_s10 + $0x150] sm:$0xff]  ;;  %v19524_v63 = vld [vmem:[%s19643_s10 + $0x158] sm:$0xff]  ;;  %v19526_v60 = vld [vmem:[%s19643_s10 + $0x160] sm:$0xf] }
 0x826   : > { %16490 = vst.msk [vmem:[%s26403_s23 + $0x78] sm:$0xff] %vm4355_vm2, %v16458_v33  ;;  %v16456_v29 = vsel %vm16392_vm14, %v16360_v2, %v16424_v59  ;;  %v16331_v10 = vadd.f32 %v26362_v43, %v16292_v11  ;;  %v16293_v36 = vmul.f32 %v26353_v42, %v16016_v40  ;;  %v16224_v38 = vsel %vm16156_vm0, %v16222_v16, %v16223_v39  ;;  %v19527_v3 = vld [vmem:[%s19643_s10 + $0x198] sm:$0xff] }
 0x827   : > { %16488 = vst.msk [vmem:[%s26403_s23 + $0x68] sm:$0xff] %vm4355_vm2, %v16456_v29  ;;  %v16365_v12 = vadd.f32 %v16333_v41, %v26469_v35  ;;  %v16334_v57 = vadd.f32 %v26362_v43, %v16295_v6  ;;  %v16217_v58 = vrot.slane %v19523_v47, 2  ;;  %v16218_v48 = vrot.slane %v19524_v63, 2  ;;  %v26568_v41 = vld [vmem:[%s19643_s10 + $0x1a0] sm:$0xff] }
 0x828   : > { %v16363_v44 = vadd.f32 %v16331_v10, %v16199_v19  ;;  %v16332_v26 = vadd.f32 %v26362_v43, %v16293_v36  ;;  %v16225_v55 = vrot.slane %v19525_v27, 2  ;;  %v16220_v50 = vrot.slane %v19526_v60, 2 }
 0x829   : > { %vm16397_vm10 = vcmp.gt.f32.partialorder %v16365_v12, 0.0  ;;  %v16429_v51 = vmul.f32 0.1, %v16365_v12  ;;  %v16366_v35 = vadd.f32 %v16334_v57, %v16206_v9  ;;  %v16232_v59 = vrot.slane %v19527_v3, 2 }
 0x82a   : > { %vm16395_vm11 = vcmp.gt.f32.partialorder %v16363_v44, 0.0  ;;  %v16427_v23 = vmul.f32 0.1, %v16363_v44  ;;  %v16364_v13 = vadd.f32 %v16332_v26, %v16201_v22  ;;  %v18606_v24 = vpop.f32.mrb[116].mxu1  ;;  %v16233_v9 = vrot.slane %v26568_v41, 2 }
 0x82b   : > { %v16461_v37 = vsel %vm16397_vm10, %v16365_v12, %v16429_v51  ;;  %vm16398_vm12 = vcmp.gt.f32.partialorder %v16366_v35, 0.0  ;;  %v16430_v5 = vmul.f32 0.1, %v16366_v35  ;;  %v16298_v31 = vmul.f32 %v18606_v24, %v26353_v42  ;;  %v16029_v61 = vpop.f32.mrb[117].mxu1 }
 0x82c   : > { %16493 = vst.msk [vmem:[%s26403_s23 + $0x90] sm:$0xff] %vm4355_vm2, %v16461_v37  ;;  %v16459_v62 = vsel %vm16395_vm11, %v16363_v44, %v16427_v23  ;;  %vm16396_vm13 = vcmp.gt.f32.partialorder %v16364_v13, 0.0  ;;  %v16428_v19 = vmul.f32 0.1, %v16364_v13  ;;  %v16296_v45 = vmul.f32 %v26353_v42, %v16029_v61  ;;  %v18607_v21 = vpop.f32.mrb[118].mxu1  ;;  %v19529_v37 = vld [vmem:[%s19643_s10 + $0x180] sm:$0xff] }
 0x82d   : > { %16491 = vst.msk [vmem:[%s26403_s23 + $0x80] sm:$0xff] %vm4355_vm2, %v16459_v62  ;;  %v16462_v15 = vsel %vm16398_vm12, %v16366_v35, %v16430_v5  ;;  %v16337_v28 = vadd.f32 %v26362_v43, %v16298_v31  ;;  %v16299_v56 = vmul.f32 %v18607_v21, %v26353_v42  ;;  %v16032_v49 = vpop.f32.mrb[119].mxu1  ;;  %v16219_v44 = vsel %vm16156_vm0, %v16217_v58, %v16218_v48  ;;  %v19530_v5 = vld [vmem:[%s19643_s10 + $0x188] sm:$0xff] }
 0x82e   : > { %16494 = vst.msk [vmem:[%s26403_s23 + $0x98] sm:$0xff] %vm4355_vm2, %v16462_v15  ;;  %v16460_v52 = vsel %vm16396_vm13, %v16364_v13, %v16428_v19  ;;  %v16335_v18 = vadd.f32 %v26362_v43, %v16296_v45  ;;  %v16297_v8 = vmul.f32 %v26353_v42, %v16032_v49  ;;  %v16226_v51 = vsel %vm16156_vm0, %v16223_v39, %v16225_v55  ;;  %v19531_v19 = vld [vmem:[%s19643_s10 + $0x1a8] sm:$0xf] }
 0x82f   : > { %16492 = vst.msk [vmem:[%s26403_s23 + $0x88] sm:$0xff] %vm4355_vm2, %v16460_v52  ;;  %v16369_v46 = vadd.f32 %v16337_v28, %v16214_v25  ;;  %v16338_v0 = vadd.f32 %v26362_v43, %v16299_v56  ;;  %v16221_v23 = vsel %vm16156_vm0, %v16218_v48, %v16220_v50  ;;  %v16234_v13 = vsel %vm16156_vm0, %v16232_v59, %v16233_v9  ;;  %v19532_v56 = vld [vmem:[%s19643_s10 + $0x190] sm:$0xf] }
 0x830   : > { %v16367_v2 = vadd.f32 %v16335_v18, %v16209_v34  ;;  %v16336_v30 = vadd.f32 %v26362_v43, %v16297_v8  ;;  %v16227_v39 = vrot.slane %v19529_v37, 2  ;;  %v16228_v31 = vrot.slane %v19530_v5, 2 }
 0x831   : > { %vm16401_vm15 = vcmp.gt.f32.partialorder %v16369_v46, 0.0  ;;  %v16433_v17 = vmul.f32 0.1, %v16369_v46  ;;  %v16370_v54 = vadd.f32 %v16338_v0, %v16216_v14  ;;  %v16235_v45 = vrot.slane %v19531_v19, 2 }
 0x832   : > { %vm16399_vm3 = vcmp.gt.f32.partialorder %v16367_v2, 0.0  ;;  %v16431_v11 = vmul.f32 0.1, %v16367_v2  ;;  %v16368_v53 = vadd.f32 %v16336_v30, %v16211_v32  ;;  %v18610_v33 = vpop.f32.mrb[120].mxu1  ;;  %v16230_v49 = vrot.slane %v19532_v56, 2 }
 0x833   : > { %v16465_v6 = vsel %vm16401_vm15, %v16369_v46, %v16433_v17  ;;  %vm16402_vm4 = vcmp.gt.f32.partialorder %v16370_v54, 0.0  ;;  %v16434_v40 = vmul.f32 0.1, %v16370_v54  ;;  %v16302_v29 = vmul.f32 %v18610_v33, %v26353_v42  ;;  %v16045_v10 = vpop.f32.mrb[121].mxu1 }
 0x834   : > { %16497 = vst.msk [vmem:[%s26403_s23 + $0xb0] sm:$0xff] %vm4355_vm2, %v16465_v6  ;;  %v16463_v22 = vsel %vm16399_vm3, %v16367_v2, %v16431_v11  ;;  %vm16400_vm1 = vcmp.gt.f32.partialorder %v16368_v53, 0.0  ;;  %v16432_v36 = vmul.f32 0.1, %v16368_v53  ;;  %v16300_v12 = vmul.f32 %v26353_v42, %v16045_v10  ;;  %v18611_v57 = vpop.f32.mrb[122].mxu1 }
 0x835   : > { %16495 = vst.msk [vmem:[%s26403_s23 + $0xa0] sm:$0xff] %vm4355_vm2, %v16463_v22  ;;  %v16466_v25 = vsel %vm16402_vm4, %v16370_v54, %v16434_v40  ;;  %v16341_v34 = vadd.f32 %v26362_v43, %v16302_v29  ;;  %v16303_v26 = vmul.f32 %v18611_v57, %v26353_v42  ;;  %v16048_v14 = vpop.f32.mrb[123].mxu1  ;;  %v16229_v48 = vsel %vm16156_vm0, %v16227_v39, %v16228_v31 }
 0x836   : > { %16498 = vst.msk [vmem:[%s26403_s23 + $0xb8] sm:$0xff] %vm4355_vm2, %v16466_v25  ;;  %v16464_v1 = vsel %vm16400_vm1, %v16368_v53, %v16432_v36  ;;  %v16339_v7 = vadd.f32 %v26362_v43, %v16300_v12  ;;  %v16301_v35 = vmul.f32 %v26353_v42, %v16048_v14  ;;  %v16236_v60 = vsel %vm16156_vm0, %v16233_v9, %v16235_v45 }
 0x837   : > { %16496 = vst.msk [vmem:[%s26403_s23 + $0xa8] sm:$0xff] %vm4355_vm2, %v16464_v1  ;;  %v16373_v20 = vadd.f32 %v16341_v34, %v16224_v38  ;;  %v16342_v16 = vadd.f32 %v26362_v43, %v16303_v26  ;;  %v16231_v3 = vsel %vm16156_vm0, %v16228_v31, %v16230_v49 }
 0x838   : > { %v16371_v24 = vadd.f32 %v16339_v7, %v16219_v44  ;;  %v16340_v4 = vadd.f32 %v26362_v43, %v16301_v35 }
 0x839   : > { %vm16405_vm5 = vcmp.gt.f32.partialorder %v16373_v20, 0.0  ;;  %v16437_v61 = vmul.f32 0.1, %v16373_v20  ;;  %v16374_v62 = vadd.f32 %v16342_v16, %v16226_v51 }
 0x83a   : > { %vm16403_vm7 = vcmp.gt.f32.partialorder %v16371_v24, 0.0  ;;  %v16435_v21 = vmul.f32 0.1, %v16371_v24  ;;  %v16372_v15 = vadd.f32 %v16340_v4, %v16221_v23  ;;  %v18614_v28 = vpop.f32.mrb[124].mxu1 }
 0x83b   : > { %v16469_v32 = vsel %vm16405_vm5, %v16373_v20, %v16437_v61  ;;  %vm16406_vm9 = vcmp.gt.f32.partialorder %v16374_v62, 0.0  ;;  %v16438_v52 = vmul.f32 0.1, %v16374_v62  ;;  %v16306_v18 = vmul.f32 %v18614_v28, %v26353_v42  ;;  %v16061_v8 = vpop.f32.mrb[125].mxu1 }
 0x83c   : > { %16501 = vst.msk [vmem:[%s26403_s23 + $0xd0] sm:$0xff] %vm4355_vm2, %v16469_v32  ;;  %v16467_v38 = vsel %vm16403_vm7, %v16371_v24, %v16435_v21  ;;  %vm16404_vm8 = vcmp.gt.f32.partialorder %v16372_v15, 0.0  ;;  %v16436_v46 = vmul.f32 0.1, %v16372_v15  ;;  %v16304_v0 = vmul.f32 %v26353_v42, %v16061_v8  ;;  %v18615_v47 = vpop.f32.mrb[126].mxu1 }
 0x83d   : > { %16499 = vst.msk [vmem:[%s26403_s23 + $0xc0] sm:$0xff] %vm4355_vm2, %v16467_v38  ;;  %v16470_v58 = vsel %vm16406_vm9, %v16374_v62, %v16438_v52  ;;  %v16345_v63 = vadd.f32 %v26362_v43, %v16306_v18  ;;  %v16307_v2 = vmul.f32 %v18615_v47, %v26353_v42  ;;  %v16064_v30 = vpop.f32.mrb[127].mxu1 }
 0x83e   : > { %16502 = vst.msk [vmem:[%s26403_s23 + $0xd8] sm:$0xff] %vm4355_vm2, %v16470_v58  ;;  %v16468_v27 = vsel %vm16404_vm8, %v16372_v15, %v16436_v46  ;;  %v16343_v55 = vadd.f32 %v26362_v43, %v16304_v0  ;;  %v16305_v50 = vmul.f32 %v26353_v42, %v16064_v30 }
 0x83f   : > { %16500 = vst.msk [vmem:[%s26403_s23 + $0xc8] sm:$0xff] %vm4355_vm2, %v16468_v27  ;;  %v16377_v17 = vadd.f32 %v16345_v63, %v16234_v13  ;;  %v16346_v54 = vadd.f32 %v26362_v43, %v16307_v2 }
 0x840   : > { %v16375_v59 = vadd.f32 %v16343_v55, %v16229_v48  ;;  %v16344_v11 = vadd.f32 %v26362_v43, %v16305_v50 }
 0x841   : > { %vm16409_vm6 = vcmp.gt.f32.partialorder %v16377_v17, 0.0  ;;  %v16441_v53 = vmul.f32 0.1, %v16377_v17  ;;  %v16378_v33 = vadd.f32 %v16346_v54, %v16236_v60 }
 0x842   : > { %vm16407_vm14 = vcmp.gt.f32.partialorder %v16375_v59, 0.0  ;;  %v16439_v41 = vmul.f32 0.1, %v16375_v59  ;;  %v16376_v42 = vadd.f32 %v16344_v11, %v16231_v3 }
 0x843   : > { %v16473_v9 = vsel %vm16409_vm6, %v16377_v17, %v16441_v53  ;;  %vm16410_vm10 = vcmp.gt.f32.partialorder %v16378_v33, 0.0  ;;  %v16442_v6 = vmul.f32 0.1, %v16378_v33 }
 0x844   : > { %16505 = vst.msk [vmem:[%s26403_s23 + $0xf0] sm:$0xff] %vm4355_vm2, %v16473_v9  ;;  %v16471_v40 = vsel %vm16407_vm14, %v16375_v59, %v16439_v41  ;;  %vm16408_vm11 = vcmp.gt.f32.partialorder %v16376_v42, 0.0  ;;  %v16440_v29 = vmul.f32 0.1, %v16376_v42 }
 0x845   : > { %16503 = vst.msk [vmem:[%s26403_s23 + $0xe0] sm:$0xff] %vm4355_vm2, %v16471_v40  ;;  %v16474_v10 = vsel %vm16410_vm10, %v16378_v33, %v16442_v6 }
 0x846   : > { %16506 = vst.msk [vmem:[%s26403_s23 + $0xf8] sm:$0xff] %vm4355_vm2, %v16474_v10  ;;  %v16472_v43 = vsel %vm16408_vm11, %v16376_v42, %v16440_v29 }
 0x847   : > { %16504 = vst.msk [vmem:[%s26403_s23 + $0xe8] sm:$0xff] %vm4355_vm2, %v16472_v43 }
 0x848 PF: > { %s17_s26 = sadd.s32 1, %s19555_s26   ;;  %s28578_s24 = smov %s19551_s25 }
 0x849   : > { %p14_p5 = scmp.ge.s32.totalorder %s17_s26, 4   ;;  %s28579_s25 = smov %s28581_s27 }
 0x84b   :  { %16 = sbr.rel (!%p14_p5) target bundleno = 2 (0x2), region = 78 }

</bundles_post_ra>
